<compile_context>
chip_gen: v5e
topology: v5e:2x2
jax: 0.10.0
libtpu: 0.0.40
codegen_flags: <defaults>
</compile_context>

<pallas_src>
import numpy as np

import jax
import jax.numpy as jnp
from jax.experimental import pallas as pl
from jax.experimental.pallas import tpu as pltpu


# ----------------------------- Pallas kernels ------------------------------

def _conv_pool_kernel(xc_ref, xn_ref, w_ref, b_ref, o_ref):
    """Fused conv (as matmuls) + bias + relu + 2x2 maxpool.

    xc_ref: (M, K)  current row-pairs (bf16)
    xn_ref: (M, K)  next row-pairs    (bf16)
    w_ref : (8, K, N) expanded weights: [delta*4 + row_parity*2 + col_parity]
    b_ref : (1, N)  bias replicated per pooled column (f32)
    o_ref : (M, N)  pooled output (bf16), lane-dense
    """
    xc = xc_ref[...]
    xn = xn_ref[...]
    m = None
    for k in range(4):  # (conv-row parity, conv-col parity) of the pool window
        y = (jnp.dot(xc, w_ref[k], preferred_element_type=jnp.float32)
             + jnp.dot(xn, w_ref[4 + k], preferred_element_type=jnp.float32))
        m = y if m is None else jnp.maximum(m, y)
    o_ref[...] = jnp.maximum(m + b_ref[...], 0.0).astype(o_ref.dtype)


def _head_kernel(x_ref, w1_ref, b1_ref, w2_ref, b2_ref, o_ref):
    """Fused fc1 + relu + fc2 + log_softmax (the (B,128) stays in VMEM)."""
    h = jnp.dot(x_ref[...], w1_ref[...], preferred_element_type=jnp.float32)
    h = jnp.maximum(h + b1_ref[...], 0.0)
    y = jnp.dot(h.astype(jnp.bfloat16), w2_ref[...],
                preferred_element_type=jnp.float32)
    y = y + b2_ref[...]
    mx = jnp.max(y, axis=-1, keepdims=True)
    s = y - mx
    lse = jnp.log(jnp.sum(jnp.exp(s), axis=-1, keepdims=True))
    o_ref[...] = (s - lse).astype(o_ref.dtype)


# ------------------------------ Pallas wrappers -----------------------------

def _pick_tile(n, cap, need_8=False):
    """Largest divisor of n that is <= cap (sublane-friendly if need_8)."""
    for d in range(min(n, cap), 0, -1):
        if n % d == 0 and (not need_8 or d % 8 == 0 or d == n):
            return d
    return n


def _conv_pool_stage(xc, xn, w, b, bt, rows_per_img):
    n_rows, k_in = xc.shape
    n_out = w.shape[2]
    m_tile = bt * rows_per_img                    # always a multiple of 8
    grid = (n_rows // m_tile,)
    return pl.pallas_call(
        _conv_pool_kernel,
        out_shape=jax.ShapeDtypeStruct((n_rows, n_out), jnp.bfloat16),
        grid=grid,
        in_specs=[
            pl.BlockSpec((m_tile, k_in), lambda i: (i, 0)),
            pl.BlockSpec((m_tile, k_in), lambda i: (i, 0)),
            pl.BlockSpec(w.shape, lambda i: (0, 0, 0)),   # resident weights
            pl.BlockSpec(b.shape, lambda i: (0, 0)),
        ],
        out_specs=pl.BlockSpec((m_tile, n_out), lambda i: (i, 0)),
        compiler_params=pltpu.CompilerParams(
            dimension_semantics=("parallel",)),
    )(xc, xn, w, b)


def _head(x, w1, b1, w2, b2, bt):
    n = x.shape[0]
    return pl.pallas_call(
        _head_kernel,
        out_shape=jax.ShapeDtypeStruct((n, 2), jnp.float32),
        grid=(n // bt,),
        in_specs=[
            pl.BlockSpec((bt, x.shape[1]), lambda i: (i, 0)),
            pl.BlockSpec(w1.shape, lambda i: (0, 0)),
            pl.BlockSpec(b1.shape, lambda i: (0, 0)),
            pl.BlockSpec(w2.shape, lambda i: (0, 0)),
            pl.BlockSpec(b2.shape, lambda i: (0, 0)),
        ],
        out_specs=pl.BlockSpec((bt, 2), lambda i: (i, 0)),
        compiler_params=pltpu.CompilerParams(
            dimension_semantics=("parallel",)),
    )(x, w1, b1, w2, b2)


# --------------------- one-time weight preprocessing (init) -----------------

def _expand_conv_pool(w_torch, b_torch, win, q_out):
    """Build the 8 'width-unrolled' matmul weights for a fused conv+pool stage.

    Input lane layout of an activation row-pair: (s, w, ci) -> s*win*Ci + w*Ci + ci.
    Matrix index = delta*4 + dr*2 + cp, where delta=0 acts on the current pair,
    delta=1 on the next pair; (dr, cp) = conv row/col parity within the window.
    """
    w_np = np.asarray(w_torch, np.float32)          # (Co, Ci, 3, 3) torch layout
    b_np = np.asarray(b_torch, np.float32)          # (Co,)
    co_dim, ci_dim, kh_dim, kw_dim = w_np.shape
    k_in = 2 * win * ci_dim
    n_out = q_out * co_dim
    mats = np.zeros((8, k_in, n_out), np.float32)
    for dr in (0, 1):
        for cp in (0, 1):
            for kh in range(kh_dim):
                delta, s = divmod(dr + kh, 2)
                dst = mats[delta * 4 + dr * 2 + cp]
                for kw in range(kw_dim):
                    for q in range(q_out):
                        x_col = 2 * q + cp + kw
                        col = q * co_dim
                        for ci in range(ci_dim):
                            row = (s * win + x_col) * ci_dim + ci
                            dst[row, col:col + co_dim] += w_np[:, ci, kh, kw]
    bias = np.tile(b_np, q_out)[None, :]            # (1, q_out*Co)
    return jnp.asarray(mats, jnp.bfloat16), jnp.asarray(bias, jnp.float32)


def _expand_fc1(fc1_w):
    """Fold PyTorch's NCHW x.view(-1, 32*6*6) into fc1; pad rows are zeroed."""
    w_np = np.asarray(fc1_w, np.float32)            # (128, 1152), in = c*36+h*6+w
    out = np.zeros((8 * 192, 128), np.float32)      # rows h=6,7 are zero (pad)
    for h in range(6):
        for q in range(6):
            for co in range(32):
                out[h * 192 + q * 32 + co, :] = w_np[:, co * 36 + h * 6 + q]
    return out


def init_params(key):
    """Synthetic parameters in the original PyTorch layouts."""
    ks = jax.random.split(key, 8)
    s = 0.05
    return {
        "conv1_w": s * jax.random.normal(ks[0], (16, 3, 3, 3), jnp.float32),
        "conv1_b": s * jax.random.normal(ks[1], (16,), jnp.float32),
        "conv2_w": s * jax.random.normal(ks[2], (32, 16, 3, 3), jnp.float32),
        "conv2_b": s * jax.random.normal(ks[3], (32,), jnp.float32),
        "fc1_w": s * jax.random.normal(ks[4], (128, 32 * 6 * 6), jnp.float32),
        "fc1_b": s * jax.random.normal(ks[5], (128,), jnp.float32),
        "fc2_w": s * jax.random.normal(ks[6], (2, 128), jnp.float32),
        "fc2_b": s * jax.random.normal(ks[7], (2,), jnp.float32),
    }


def prepare_params(p):
    """One-time conversion PyTorch layout -> fused-kernel layout (bf16 matmuls)."""
    w1, b1 = _expand_conv_pool(p["conv1_w"], p["conv1_b"], win=32, q_out=15)
    w2, b2 = _expand_conv_pool(p["conv2_w"], p["conv2_b"], win=15, q_out=6)
    return {
        "w1": w1, "b1": b1,                                   # (8,192,240), (1,240)
        "w2": w2, "b2": b2,                                   # (8,480,192), (1,192)
        "wf1": jnp.asarray(_expand_fc1(p["fc1_w"]), jnp.bfloat16),   # (1536,128)
        "bf1": jnp.asarray(np.asarray(p["fc1_b"], np.float32))[None, :],
        "wf2": jnp.asarray(np.asarray(p["fc2_w"], np.float32).T, jnp.bfloat16),
        "bf2": jnp.asarray(np.asarray(p["fc2_b"], np.float32))[None, :],
    }


# --------------------------------- forward ---------------------------------

def _next_pair(x2d, bsz, pairs):
    """Shift by one row-pair per image (last pair -> zeros).  Cheap XLA glue."""
    lanes = x2d.shape[1]
    x3 = x2d.reshape(bsz, pairs, lanes)
    pad = jnp.zeros((bsz, 1, lanes), x2d.dtype)
    return jnp.concatenate([x3[:, 1:, :], pad], axis=1).reshape(bsz * pairs, lanes)


def simple_cnn_forward(x_nchw, kp):
    """Same semantics as the PyTorch SimpleCNN.forward (x: (B, 3, 32, 32) f32)."""
    bsz = x_nchw.shape[0]
    bt = _pick_tile(bsz, 32)                    # images / conv-stage grid step
    bt_head = _pick_tile(bsz, 256, need_8=True)

    # NCHW -> NHWC, bf16, two image rows packed per sublane row.
    x = jnp.transpose(x_nchw, (0, 2, 3, 1)).astype(jnp.bfloat16)
    xc1 = x.reshape(bsz * 16, 2 * 32 * 3)                        # (B*16, 192)
    xn1 = _next_pair(xc1, bsz, 16)

    # conv1 + relu + maxpool(2)  -> rows=(b, pooled-row), lanes=(col, 16ch)
    h1 = _conv_pool_stage(xc1, xn1, kp["w1"], kp["b1"], bt, 16)  # (B*16, 240)

    xc2 = h1.reshape(bsz * 8, 2 * 15 * 16)                       # (B*8, 480)
    xn2 = _next_pair(xc2, bsz, 8)

    # conv2 + relu + maxpool(2)  -> rows=(b, pooled-row), lanes=(col, 32ch)
    h2 = _conv_pool_stage(xc2, xn2, kp["w2"], kp["b2"], bt, 8)   # (B*8, 192)

    # flatten (pad rows killed by the zero rows folded into wf1), then the head
    flat = h2.reshape(bsz, 8 * 192)                              # (B, 1536)
    return _head(flat, kp["wf1"], kp["bf1"], kp["wf2"], kp["bf2"], bt_head)


# ------------------------- pure-XLA f32 reference ---------------------------

def reference_forward(x_nchw, p):
    x = jnp.transpose(x_nchw, (0, 2, 3, 1))
    w1 = jnp.transpose(p["conv1_w"], (2, 3, 1, 0))
    a = jax.lax.conv_general_dilated(x, w1, (1, 1), "VALID",
                                     dimension_numbers=("NHWC", "HWIO", "NHWC"))
    a = jax.nn.relu(a + p["conv1_b"])
    a = jax.lax.reduce_window(a, -jnp.inf, jax.lax.max,
                              (1, 2, 2, 1), (1, 2, 2, 1), "VALID")
    w2 = jnp.transpose(p["conv2_w"], (2, 3, 1, 0))
    a = jax.lax.conv_general_dilated(a, w2, (1, 1), "VALID",
                                     dimension_numbers=("NHWC", "HWIO", "NHWC"))
    a = jax.nn.relu(a + p["conv2_b"])
    a = jax.lax.reduce_window(a, -jnp.inf, jax.lax.max,
                              (1, 2, 2, 1), (1, 2, 2, 1), "VALID")
    a = jnp.transpose(a, (0, 3, 1, 2)).reshape(a.shape[0], -1)   # NCHW flatten
    h = jax.nn.relu(a @ p["fc1_w"].T + p["fc1_b"])
    y = h @ p["fc2_w"].T + p["fc2_b"]
    return jax.nn.log_softmax(y, axis=-1)


if __name__ == "__main__":
    key = jax.random.PRNGKey(0)
    kx, kparam = jax.random.split(key)
    # Input spatial size must be 32x32 so that the 32*6*6 flatten holds.
    x = jax.random.normal(kx, (2, 3, 32, 32), dtype=jnp.float32)

    torch_params = init_params(kparam)              # PyTorch-layout params
    kernel_params = prepare_params(torch_params)    # fused-kernel layout

    fwd = jax.jit(simple_cnn_forward)
    out = jax.block_until_ready(fwd(x, kernel_params))

    assert out.shape == (2, 2) and out.dtype == jnp.float32
    # log_softmax rows exp-sum to ~1
    assert bool(jnp.allclose(jnp.sum(jnp.exp(out), axis=1), 1.0, atol=1e-4))
    # matches the f32 XLA reference of the PyTorch forward (bf16-matmul tolerance)
    ref = reference_forward(x, torch_params)
    assert bool(jnp.allclose(out, ref.astype(jnp.float32), atol=3e-2, rtol=3e-2))
    print("KERNEL_OK")
</pallas_src>

<mosaic_0001>
module attributes {stable_mosaic.version = 11 : i64} {
  func.func @_conv_pool_kernel(%arg0: i32, %arg1: memref<32x192xbf16, #tpu.memory_space<vmem>>, %arg2: memref<32x192xbf16, #tpu.memory_space<vmem>>, %arg3: memref<8x192x240xbf16, #tpu.memory_space<vmem>>, %arg4: memref<1x240xf32, #tpu.memory_space<vmem>>, %arg5: memref<32x240xbf16, #tpu.memory_space<vmem>>) attributes {dimension_semantics = [#tpu.dimension_semantics<parallel>], iteration_bounds = array<i64: 1>, scalar_prefetch = 0 : i64, scratch_operands = 0 : i64, tpu.core_type = #tpu.core_type<tc>, window_params = [{transform_indices = @transform_0, window_bounds = array<i64: 32, 192>}, {transform_indices = @transform_1, window_bounds = array<i64: 32, 192>}, {pipeline_mode = #tpu.pipeline_mode<synchronous>, transform_indices = @transform_2, window_bounds = array<i64: 8, 192, 240>}, {pipeline_mode = #tpu.pipeline_mode<synchronous>, transform_indices = @transform_3, window_bounds = array<i64: 1, 240>}, {transform_indices = @transform_4, window_bounds = array<i64: 32, 240>}]} {
    %c0 = arith.constant 0 : index
    %c0_0 = arith.constant 0 : index
    %0 = vector.load %arg1[%c0, %c0_0] : memref<32x192xbf16, #tpu.memory_space<vmem>>, vector<32x192xbf16>
    %c0_1 = arith.constant 0 : index
    %c0_2 = arith.constant 0 : index
    %1 = vector.load %arg2[%c0_1, %c0_2] : memref<32x192xbf16, #tpu.memory_space<vmem>>, vector<32x192xbf16>
    %c0_3 = arith.constant 0 : index
    %c0_4 = arith.constant 0 : index
    %c0_5 = arith.constant 0 : index
    %2 = vector.load %arg3[%c0_3, %c0_4, %c0_5] : memref<8x192x240xbf16, #tpu.memory_space<vmem>>, vector<1x192x240xbf16>
    %3 = vector.shape_cast %2 : vector<1x192x240xbf16> to vector<192x240xbf16>
    %cst = arith.constant dense<0.000000e+00> : vector<32x240xf32>
    %4 = tpu.matmul %0, %3, %cst {dimension_numbers = #tpu.dot_dimension_numbers<[1], [0], [0], [1], [0, 0, 1, 1], [], []>} : vector<32x192xbf16>, vector<192x240xbf16>, vector<32x240xf32> -> vector<32x240xf32>
    %c4 = arith.constant 4 : index
    %c0_6 = arith.constant 0 : index
    %c0_7 = arith.constant 0 : index
    %5 = vector.load %arg3[%c4, %c0_6, %c0_7] : memref<8x192x240xbf16, #tpu.memory_space<vmem>>, vector<1x192x240xbf16>
    %6 = vector.shape_cast %5 : vector<1x192x240xbf16> to vector<192x240xbf16>
    %cst_8 = arith.constant dense<0.000000e+00> : vector<32x240xf32>
    %7 = tpu.matmul %1, %6, %cst_8 {dimension_numbers = #tpu.dot_dimension_numbers<[1], [0], [0], [1], [0, 0, 1, 1], [], []>} : vector<32x192xbf16>, vector<192x240xbf16>, vector<32x240xf32> -> vector<32x240xf32>
    %8 = arith.addf %4, %7 : vector<32x240xf32>
    %c1 = arith.constant 1 : index
    %c0_9 = arith.constant 0 : index
    %c0_10 = arith.constant 0 : index
    %9 = vector.load %arg3[%c1, %c0_9, %c0_10] : memref<8x192x240xbf16, #tpu.memory_space<vmem>>, vector<1x192x240xbf16>
    %10 = vector.shape_cast %9 : vector<1x192x240xbf16> to vector<192x240xbf16>
    %cst_11 = arith.constant dense<0.000000e+00> : vector<32x240xf32>
    %11 = tpu.matmul %0, %10, %cst_11 {dimension_numbers = #tpu.dot_dimension_numbers<[1], [0], [0], [1], [0, 0, 1, 1], [], []>} : vector<32x192xbf16>, vector<192x240xbf16>, vector<32x240xf32> -> vector<32x240xf32>
    %c5 = arith.constant 5 : index
    %c0_12 = arith.constant 0 : index
    %c0_13 = arith.constant 0 : index
    %12 = vector.load %arg3[%c5, %c0_12, %c0_13] : memref<8x192x240xbf16, #tpu.memory_space<vmem>>, vector<1x192x240xbf16>
    %13 = vector.shape_cast %12 : vector<1x192x240xbf16> to vector<192x240xbf16>
    %cst_14 = arith.constant dense<0.000000e+00> : vector<32x240xf32>
    %14 = tpu.matmul %1, %13, %cst_14 {dimension_numbers = #tpu.dot_dimension_numbers<[1], [0], [0], [1], [0, 0, 1, 1], [], []>} : vector<32x192xbf16>, vector<192x240xbf16>, vector<32x240xf32> -> vector<32x240xf32>
    %15 = arith.addf %11, %14 : vector<32x240xf32>
    %16 = arith.maximumf %8, %15 : vector<32x240xf32>
    %c2 = arith.constant 2 : index
    %c0_15 = arith.constant 0 : index
    %c0_16 = arith.constant 0 : index
    %17 = vector.load %arg3[%c2, %c0_15, %c0_16] : memref<8x192x240xbf16, #tpu.memory_space<vmem>>, vector<1x192x240xbf16>
    %18 = vector.shape_cast %17 : vector<1x192x240xbf16> to vector<192x240xbf16>
    %cst_17 = arith.constant dense<0.000000e+00> : vector<32x240xf32>
    %19 = tpu.matmul %0, %18, %cst_17 {dimension_numbers = #tpu.dot_dimension_numbers<[1], [0], [0], [1], [0, 0, 1, 1], [], []>} : vector<32x192xbf16>, vector<192x240xbf16>, vector<32x240xf32> -> vector<32x240xf32>
    %c6 = arith.constant 6 : index
    %c0_18 = arith.constant 0 : index
    %c0_19 = arith.constant 0 : index
    %20 = vector.load %arg3[%c6, %c0_18, %c0_19] : memref<8x192x240xbf16, #tpu.memory_space<vmem>>, vector<1x192x240xbf16>
    %21 = vector.shape_cast %20 : vector<1x192x240xbf16> to vector<192x240xbf16>
    %cst_20 = arith.constant dense<0.000000e+00> : vector<32x240xf32>
    %22 = tpu.matmul %1, %21, %cst_20 {dimension_numbers = #tpu.dot_dimension_numbers<[1], [0], [0], [1], [0, 0, 1, 1], [], []>} : vector<32x192xbf16>, vector<192x240xbf16>, vector<32x240xf32> -> vector<32x240xf32>
    %23 = arith.addf %19, %22 : vector<32x240xf32>
    %24 = arith.maximumf %16, %23 : vector<32x240xf32>
    %c3 = arith.constant 3 : index
    %c0_21 = arith.constant 0 : index
    %c0_22 = arith.constant 0 : index
    %25 = vector.load %arg3[%c3, %c0_21, %c0_22] : memref<8x192x240xbf16, #tpu.memory_space<vmem>>, vector<1x192x240xbf16>
    %26 = vector.shape_cast %25 : vector<1x192x240xbf16> to vector<192x240xbf16>
    %cst_23 = arith.constant dense<0.000000e+00> : vector<32x240xf32>
    %27 = tpu.matmul %0, %26, %cst_23 {dimension_numbers = #tpu.dot_dimension_numbers<[1], [0], [0], [1], [0, 0, 1, 1], [], []>} : vector<32x192xbf16>, vector<192x240xbf16>, vector<32x240xf32> -> vector<32x240xf32>
    %c7 = arith.constant 7 : index
    %c0_24 = arith.constant 0 : index
    %c0_25 = arith.constant 0 : index
    %28 = vector.load %arg3[%c7, %c0_24, %c0_25] : memref<8x192x240xbf16, #tpu.memory_space<vmem>>, vector<1x192x240xbf16>
    %29 = vector.shape_cast %28 : vector<1x192x240xbf16> to vector<192x240xbf16>
    %cst_26 = arith.constant dense<0.000000e+00> : vector<32x240xf32>
    %30 = tpu.matmul %1, %29, %cst_26 {dimension_numbers = #tpu.dot_dimension_numbers<[1], [0], [0], [1], [0, 0, 1, 1], [], []>} : vector<32x192xbf16>, vector<192x240xbf16>, vector<32x240xf32> -> vector<32x240xf32>
    %31 = arith.addf %27, %30 : vector<32x240xf32>
    %32 = arith.maximumf %24, %31 : vector<32x240xf32>
    %c0_27 = arith.constant 0 : index
    %c0_28 = arith.constant 0 : index
    %33 = vector.load %arg4[%c0_27, %c0_28] : memref<1x240xf32, #tpu.memory_space<vmem>>, vector<1x240xf32>
    %34 = vector.broadcast %33 : vector<1x240xf32> to vector<32x240xf32>
    %35 = arith.addf %32, %34 : vector<32x240xf32>
    %cst_29 = arith.constant 0.000000e+00 : f32
    %36 = vector.broadcast %cst_29 : f32 to vector<32x240xf32>
    %37 = arith.maximumf %35, %36 : vector<32x240xf32>
    %38 = arith.truncf %37 : vector<32x240xf32> to vector<32x240xbf16>
    %c0_30 = arith.constant 0 : index
    %c0_31 = arith.constant 0 : index
    %39 = vector.load %arg5[%c0_30, %c0_31] : memref<32x240xbf16, #tpu.memory_space<vmem>>, vector<32x240xbf16>
    tpu.vector_store %arg5[%c0_30, %c0_31], %38 {strides = array<i32>} : memref<32x240xbf16, #tpu.memory_space<vmem>>, vector<32x240xbf16>,
    return
  }
  func.func @transform_0(%arg0: i32) -> (i32, i32) {
    %c0_i32 = arith.constant 0 : i32
    %c0_i32_0 = arith.constant 0 : i32
    return %arg0, %c0_i32 : i32, i32
  }
  func.func @transform_1(%arg0: i32) -> (i32, i32) {
    %c0_i32 = arith.constant 0 : i32
    %c0_i32_0 = arith.constant 0 : i32
    return %arg0, %c0_i32 : i32, i32
  }
  func.func @transform_2(%arg0: i32) -> (i32, i32, i32) {
    %c0_i32 = arith.constant 0 : i32
    %c0_i32_0 = arith.constant 0 : i32
    %c0_i32_1 = arith.constant 0 : i32
    %c0_i32_2 = arith.constant 0 : i32
    return %c0_i32, %c0_i32_0, %c0_i32_1 : i32, i32, i32
  }
  func.func @transform_3(%arg0: i32) -> (i32, i32) {
    %c0_i32 = arith.constant 0 : i32
    %c0_i32_0 = arith.constant 0 : i32
    %c0_i32_1 = arith.constant 0 : i32
    return %c0_i32, %c0_i32_0 : i32, i32
  }
  func.func @transform_4(%arg0: i32) -> (i32, i32) {
    %c0_i32 = arith.constant 0 : i32
    %c0_i32_0 = arith.constant 0 : i32
    return %arg0, %c0_i32 : i32, i32
  }
}

module attributes {stable_mosaic.version = 11 : i64} {
  func.func @_conv_pool_kernel(%arg0: i32, %arg1: memref<16x480xbf16, #tpu.memory_space<vmem>>, %arg2: memref<16x480xbf16, #tpu.memory_space<vmem>>, %arg3: memref<8x480x192xbf16, #tpu.memory_space<vmem>>, %arg4: memref<1x192xf32, #tpu.memory_space<vmem>>, %arg5: memref<16x192xbf16, #tpu.memory_space<vmem>>) attributes {dimension_semantics = [#tpu.dimension_semantics<parallel>], iteration_bounds = array<i64: 1>, scalar_prefetch = 0 : i64, scratch_operands = 0 : i64, tpu.core_type = #tpu.core_type<tc>, window_params = [{transform_indices = @transform_0, window_bounds = array<i64: 16, 480>}, {transform_indices = @transform_1, window_bounds = array<i64: 16, 480>}, {pipeline_mode = #tpu.pipeline_mode<synchronous>, transform_indices = @transform_2, window_bounds = array<i64: 8, 480, 192>}, {pipeline_mode = #tpu.pipeline_mode<synchronous>, transform_indices = @transform_3, window_bounds = array<i64: 1, 192>}, {transform_indices = @transform_4, window_bounds = array<i64: 16, 192>}]} {
    %c0 = arith.constant 0 : index
    %c0_0 = arith.constant 0 : index
    %0 = vector.load %arg1[%c0, %c0_0] : memref<16x480xbf16, #tpu.memory_space<vmem>>, vector<16x480xbf16>
    %c0_1 = arith.constant 0 : index
    %c0_2 = arith.constant 0 : index
    %1 = vector.load %arg2[%c0_1, %c0_2] : memref<16x480xbf16, #tpu.memory_space<vmem>>, vector<16x480xbf16>
    %c0_3 = arith.constant 0 : index
    %c0_4 = arith.constant 0 : index
    %c0_5 = arith.constant 0 : index
    %2 = vector.load %arg3[%c0_3, %c0_4, %c0_5] : memref<8x480x192xbf16, #tpu.memory_space<vmem>>, vector<1x480x192xbf16>
    %3 = vector.shape_cast %2 : vector<1x480x192xbf16> to vector<480x192xbf16>
    %cst = arith.constant dense<0.000000e+00> : vector<16x192xf32>
    %4 = tpu.matmul %0, %3, %cst {dimension_numbers = #tpu.dot_dimension_numbers<[1], [0], [0], [1], [0, 0, 1, 1], [], []>} : vector<16x480xbf16>, vector<480x192xbf16>, vector<16x192xf32> -> vector<16x192xf32>
    %c4 = arith.constant 4 : index
    %c0_6 = arith.constant 0 : index
    %c0_7 = arith.constant 0 : index
    %5 = vector.load %arg3[%c4, %c0_6, %c0_7] : memref<8x480x192xbf16, #tpu.memory_space<vmem>>, vector<1x480x192xbf16>
    %6 = vector.shape_cast %5 : vector<1x480x192xbf16> to vector<480x192xbf16>
    %cst_8 = arith.constant dense<0.000000e+00> : vector<16x192xf32>
    %7 = tpu.matmul %1, %6, %cst_8 {dimension_numbers = #tpu.dot_dimension_numbers<[1], [0], [0], [1], [0, 0, 1, 1], [], []>} : vector<16x480xbf16>, vector<480x192xbf16>, vector<16x192xf32> -> vector<16x192xf32>
    %8 = arith.addf %4, %7 : vector<16x192xf32>
    %c1 = arith.constant 1 : index
    %c0_9 = arith.constant 0 : index
    %c0_10 = arith.constant 0 : index
    %9 = vector.load %arg3[%c1, %c0_9, %c0_10] : memref<8x480x192xbf16, #tpu.memory_space<vmem>>, vector<1x480x192xbf16>
    %10 = vector.shape_cast %9 : vector<1x480x192xbf16> to vector<480x192xbf16>
    %cst_11 = arith.constant dense<0.000000e+00> : vector<16x192xf32>
    %11 = tpu.matmul %0, %10, %cst_11 {dimension_numbers = #tpu.dot_dimension_numbers<[1], [0], [0], [1], [0, 0, 1, 1], [], []>} : vector<16x480xbf16>, vector<480x192xbf16>, vector<16x192xf32> -> vector<16x192xf32>
    %c5 = arith.constant 5 : index
    %c0_12 = arith.constant 0 : index
    %c0_13 = arith.constant 0 : index
    %12 = vector.load %arg3[%c5, %c0_12, %c0_13] : memref<8x480x192xbf16, #tpu.memory_space<vmem>>, vector<1x480x192xbf16>
    %13 = vector.shape_cast %12 : vector<1x480x192xbf16> to vector<480x192xbf16>
    %cst_14 = arith.constant dense<0.000000e+00> : vector<16x192xf32>
    %14 = tpu.matmul %1, %13, %cst_14 {dimension_numbers = #tpu.dot_dimension_numbers<[1], [0], [0], [1], [0, 0, 1, 1], [], []>} : vector<16x480xbf16>, vector<480x192xbf16>, vector<16x192xf32> -> vector<16x192xf32>
    %15 = arith.addf %11, %14 : vector<16x192xf32>
    %16 = arith.maximumf %8, %15 : vector<16x192xf32>
    %c2 = arith.constant 2 : index
    %c0_15 = arith.constant 0 : index
    %c0_16 = arith.constant 0 : index
    %17 = vector.load %arg3[%c2, %c0_15, %c0_16] : memref<8x480x192xbf16, #tpu.memory_space<vmem>>, vector<1x480x192xbf16>
    %18 = vector.shape_cast %17 : vector<1x480x192xbf16> to vector<480x192xbf16>
    %cst_17 = arith.constant dense<0.000000e+00> : vector<16x192xf32>
    %19 = tpu.matmul %0, %18, %cst_17 {dimension_numbers = #tpu.dot_dimension_numbers<[1], [0], [0], [1], [0, 0, 1, 1], [], []>} : vector<16x480xbf16>, vector<480x192xbf16>, vector<16x192xf32> -> vector<16x192xf32>
    %c6 = arith.constant 6 : index
    %c0_18 = arith.constant 0 : index
    %c0_19 = arith.constant 0 : index
    %20 = vector.load %arg3[%c6, %c0_18, %c0_19] : memref<8x480x192xbf16, #tpu.memory_space<vmem>>, vector<1x480x192xbf16>
    %21 = vector.shape_cast %20 : vector<1x480x192xbf16> to vector<480x192xbf16>
    %cst_20 = arith.constant dense<0.000000e+00> : vector<16x192xf32>
    %22 = tpu.matmul %1, %21, %cst_20 {dimension_numbers = #tpu.dot_dimension_numbers<[1], [0], [0], [1], [0, 0, 1, 1], [], []>} : vector<16x480xbf16>, vector<480x192xbf16>, vector<16x192xf32> -> vector<16x192xf32>
    %23 = arith.addf %19, %22 : vector<16x192xf32>
    %24 = arith.maximumf %16, %23 : vector<16x192xf32>
    %c3 = arith.constant 3 : index
    %c0_21 = arith.constant 0 : index
    %c0_22 = arith.constant 0 : index
    %25 = vector.load %arg3[%c3, %c0_21, %c0_22] : memref<8x480x192xbf16, #tpu.memory_space<vmem>>, vector<1x480x192xbf16>
    %26 = vector.shape_cast %25 : vector<1x480x192xbf16> to vector<480x192xbf16>
    %cst_23 = arith.constant dense<0.000000e+00> : vector<16x192xf32>
    %27 = tpu.matmul %0, %26, %cst_23 {dimension_numbers = #tpu.dot_dimension_numbers<[1], [0], [0], [1], [0, 0, 1, 1], [], []>} : vector<16x480xbf16>, vector<480x192xbf16>, vector<16x192xf32> -> vector<16x192xf32>
    %c7 = arith.constant 7 : index
    %c0_24 = arith.constant 0 : index
    %c0_25 = arith.constant 0 : index
    %28 = vector.load %arg3[%c7, %c0_24, %c0_25] : memref<8x480x192xbf16, #tpu.memory_space<vmem>>, vector<1x480x192xbf16>
    %29 = vector.shape_cast %28 : vector<1x480x192xbf16> to vector<480x192xbf16>
    %cst_26 = arith.constant dense<0.000000e+00> : vector<16x192xf32>
    %30 = tpu.matmul %1, %29, %cst_26 {dimension_numbers = #tpu.dot_dimension_numbers<[1], [0], [0], [1], [0, 0, 1, 1], [], []>} : vector<16x480xbf16>, vector<480x192xbf16>, vector<16x192xf32> -> vector<16x192xf32>
    %31 = arith.addf %27, %30 : vector<16x192xf32>
    %32 = arith.maximumf %24, %31 : vector<16x192xf32>
    %c0_27 = arith.constant 0 : index
    %c0_28 = arith.constant 0 : index
    %33 = vector.load %arg4[%c0_27, %c0_28] : memref<1x192xf32, #tpu.memory_space<vmem>>, vector<1x192xf32>
    %34 = vector.broadcast %33 : vector<1x192xf32> to vector<16x192xf32>
    %35 = arith.addf %32, %34 : vector<16x192xf32>
    %cst_29 = arith.constant 0.000000e+00 : f32
    %36 = vector.broadcast %cst_29 : f32 to vector<16x192xf32>
    %37 = arith.maximumf %35, %36 : vector<16x192xf32>
    %38 = arith.truncf %37 : vector<16x192xf32> to vector<16x192xbf16>
    %c0_30 = arith.constant 0 : index
    %c0_31 = arith.constant 0 : index
    %39 = vector.load %arg5[%c0_30, %c0_31] : memref<16x192xbf16, #tpu.memory_space<vmem>>, vector<16x192xbf16>
    tpu.vector_store %arg5[%c0_30, %c0_31], %38 {strides = array<i32>} : memref<16x192xbf16, #tpu.memory_space<vmem>>, vector<16x192xbf16>,
    return
  }
  func.func @transform_0(%arg0: i32) -> (i32, i32) {
    %c0_i32 = arith.constant 0 : i32
    %c0_i32_0 = arith.constant 0 : i32
    return %arg0, %c0_i32 : i32, i32
  }
  func.func @transform_1(%arg0: i32) -> (i32, i32) {
    %c0_i32 = arith.constant 0 : i32
    %c0_i32_0 = arith.constant 0 : i32
    return %arg0, %c0_i32 : i32, i32
  }
  func.func @transform_2(%arg0: i32) -> (i32, i32, i32) {
    %c0_i32 = arith.constant 0 : i32
    %c0_i32_0 = arith.constant 0 : i32
    %c0_i32_1 = arith.constant 0 : i32
    %c0_i32_2 = arith.constant 0 : i32
    return %c0_i32, %c0_i32_0, %c0_i32_1 : i32, i32, i32
  }
  func.func @transform_3(%arg0: i32) -> (i32, i32) {
    %c0_i32 = arith.constant 0 : i32
    %c0_i32_0 = arith.constant 0 : i32
    %c0_i32_1 = arith.constant 0 : i32
    return %c0_i32, %c0_i32_0 : i32, i32
  }
  func.func @transform_4(%arg0: i32) -> (i32, i32) {
    %c0_i32 = arith.constant 0 : i32
    %c0_i32_0 = arith.constant 0 : i32
    return %arg0, %c0_i32 : i32, i32
  }
}

module attributes {stable_mosaic.version = 11 : i64} {
  func.func @_head_kernel(%arg0: i32, %arg1: memref<2x1536xbf16, #tpu.memory_space<vmem>>, %arg2: memref<1536x128xbf16, #tpu.memory_space<vmem>>, %arg3: memref<1x128xf32, #tpu.memory_space<vmem>>, %arg4: memref<128x2xbf16, #tpu.memory_space<vmem>>, %arg5: memref<1x2xf32, #tpu.memory_space<vmem>>, %arg6: memref<2x2xf32, #tpu.memory_space<vmem>>) attributes {dimension_semantics = [#tpu.dimension_semantics<parallel>], iteration_bounds = array<i64: 1>, scalar_prefetch = 0 : i64, scratch_operands = 0 : i64, tpu.core_type = #tpu.core_type<tc>, window_params = [{transform_indices = @transform_0, window_bounds = array<i64: 2, 1536>}, {pipeline_mode = #tpu.pipeline_mode<synchronous>, transform_indices = @transform_1, window_bounds = array<i64: 1536, 128>}, {pipeline_mode = #tpu.pipeline_mode<synchronous>, transform_indices = @transform_2, window_bounds = array<i64: 1, 128>}, {pipeline_mode = #tpu.pipeline_mode<synchronous>, transform_indices = @transform_3, window_bounds = array<i64: 128, 2>}, {pipeline_mode = #tpu.pipeline_mode<synchronous>, transform_indices = @transform_4, window_bounds = array<i64: 1, 2>}, {transform_indices = @transform_5, window_bounds = array<i64: 2, 2>}]} {
    %c0 = arith.constant 0 : index
    %c0_0 = arith.constant 0 : index
    %0 = vector.load %arg1[%c0, %c0_0] : memref<2x1536xbf16, #tpu.memory_space<vmem>>, vector<2x1536xbf16>
    %c0_1 = arith.constant 0 : index
    %c0_2 = arith.constant 0 : index
    %1 = vector.load %arg2[%c0_1, %c0_2] : memref<1536x128xbf16, #tpu.memory_space<vmem>>, vector<1536x128xbf16>
    %cst = arith.constant dense<0.000000e+00> : vector<2x128xf32>
    %2 = tpu.matmul %0, %1, %cst {dimension_numbers = #tpu.dot_dimension_numbers<[1], [0], [0], [1], [0, 0, 1, 1], [], []>} : vector<2x1536xbf16>, vector<1536x128xbf16>, vector<2x128xf32> -> vector<2x128xf32>
    %c0_3 = arith.constant 0 : index
    %c0_4 = arith.constant 0 : index
    %3 = vector.load %arg3[%c0_3, %c0_4] : memref<1x128xf32, #tpu.memory_space<vmem>>, vector<1x128xf32>
    %4 = vector.broadcast %3 : vector<1x128xf32> to vector<2x128xf32>
    %5 = arith.addf %2, %4 : vector<2x128xf32>
    %cst_5 = arith.constant 0.000000e+00 : f32
    %6 = vector.broadcast %cst_5 : f32 to vector<2x128xf32>
    %7 = arith.maximumf %5, %6 : vector<2x128xf32>
    %8 = arith.truncf %7 : vector<2x128xf32> to vector<2x128xbf16>
    %c0_6 = arith.constant 0 : index
    %c0_7 = arith.constant 0 : index
    %9 = vector.load %arg4[%c0_6, %c0_7] : memref<128x2xbf16, #tpu.memory_space<vmem>>, vector<128x2xbf16>
    %cst_8 = arith.constant dense<0.000000e+00> : vector<2x2xf32>
    %10 = tpu.matmul %8, %9, %cst_8 {dimension_numbers = #tpu.dot_dimension_numbers<[1], [0], [0], [1], [0, 0, 1, 1], [], []>} : vector<2x128xbf16>, vector<128x2xbf16>, vector<2x2xf32> -> vector<2x2xf32>
    %c0_9 = arith.constant 0 : index
    %c0_10 = arith.constant 0 : index
    %11 = vector.load %arg5[%c0_9, %c0_10] : memref<1x2xf32, #tpu.memory_space<vmem>>, vector<1x2xf32>
    %12 = vector.broadcast %11 : vector<1x2xf32> to vector<2x2xf32>
    %13 = arith.addf %10, %12 : vector<2x2xf32>
    %cst_11 = arith.constant dense<0xFF800000> : vector<2xf32>
    %14 = vector.multi_reduction <maximumf>, %13, %cst_11 [1] : vector<2x2xf32> to vector<2xf32>
    %15 = vector.shape_cast %14 : vector<2xf32> to vector<2x1xf32>
    %16 = vector.broadcast %15 : vector<2x1xf32> to vector<2x2xf32>
    %17 = arith.subf %13, %16 : vector<2x2xf32>
    %18 = math.exp %17 : vector<2x2xf32>
    %cst_12 = arith.constant dense<0.000000e+00> : vector<2xf32>
    %19 = vector.multi_reduction <add>, %18, %cst_12 [1] : vector<2x2xf32> to vector<2xf32>
    %20 = vector.shape_cast %19 : vector<2xf32> to vector<2x1xf32>
    %21 = math.log %20 : vector<2x1xf32>
    %22 = vector.broadcast %21 : vector<2x1xf32> to vector<2x2xf32>
    %23 = arith.subf %17, %22 : vector<2x2xf32>
    %c0_13 = arith.constant 0 : index
    %c0_14 = arith.constant 0 : index
    %24 = vector.load %arg6[%c0_13, %c0_14] : memref<2x2xf32, #tpu.memory_space<vmem>>, vector<2x2xf32>
    tpu.vector_store %arg6[%c0_13, %c0_14], %23 {strides = array<i32>} : memref<2x2xf32, #tpu.memory_space<vmem>>, vector<2x2xf32>,
    return
  }
  func.func @transform_0(%arg0: i32) -> (i32, i32) {
    %c0_i32 = arith.constant 0 : i32
    %c0_i32_0 = arith.constant 0 : i32
    return %arg0, %c0_i32 : i32, i32
  }
  func.func @transform_1(%arg0: i32) -> (i32, i32) {
    %c0_i32 = arith.constant 0 : i32
    %c0_i32_0 = arith.constant 0 : i32
    %c0_i32_1 = arith.constant 0 : i32
    return %c0_i32, %c0_i32_0 : i32, i32
  }
  func.func @transform_2(%arg0: i32) -> (i32, i32) {
    %c0_i32 = arith.constant 0 : i32
    %c0_i32_0 = arith.constant 0 : i32
    %c0_i32_1 = arith.constant 0 : i32
    return %c0_i32, %c0_i32_0 : i32, i32
  }
  func.func @transform_3(%arg0: i32) -> (i32, i32) {
    %c0_i32 = arith.constant 0 : i32
    %c0_i32_0 = arith.constant 0 : i32
    %c0_i32_1 = arith.constant 0 : i32
    return %c0_i32, %c0_i32_0 : i32, i32
  }
  func.func @transform_4(%arg0: i32) -> (i32, i32) {
    %c0_i32 = arith.constant 0 : i32
    %c0_i32_0 = arith.constant 0 : i32
    %c0_i32_1 = arith.constant 0 : i32
    return %c0_i32, %c0_i32_0 : i32, i32
  }
  func.func @transform_5(%arg0: i32) -> (i32, i32) {
    %c0_i32 = arith.constant 0 : i32
    %c0_i32_0 = arith.constant 0 : i32
    return %arg0, %c0_i32 : i32, i32
  }
}

</mosaic_0001>

<bundles_post_ra>
// kernel: simple_cnn_forward.3
= control target key start
LH: loop header
LB: loop body
LE: loop exit
PB: predicated region body
PF: predicated region fallthrough
CT: control target
= control target key end

     0   :  { %9 = vsyncpa [#allocation3], 0  ;;  %s3368_s0 = inlined_call_operand.vmem [shape: bf16[32,192], index: 0, kind: input, shape index: {}]   ;;  %s3369_s1 = inlined_call_operand.vmem [shape: bf16[32,192], index: 1, kind: input, shape index: {}]   ;;  %s3370_s2 = inlined_call_operand.hbm [shape: bf16[8,192,240], index: 2, kind: input, shape index: {}]   ;;  %s3371_s3 = inlined_call_operand.hbm [shape: f32[1,240], index: 3, kind: input, shape index: {}]   ;;  %s3372_s4 = inlined_call_operand.vmem [shape: bf16[32,240], index: 4, kind: output, shape index: {}]  }
   0x1   :  { %s19_s17 = sshll.u32 %s3370_s2, 4  ;;  %s20_s17 = int_to_ptr.hbm [resolvable:$true] %s19_s17 }
   0x2   :  { %10 = vsyncpa [#allocation5], 0  ;;  %s3023_s18 = smov [#allocation2]   ;;  %s33_s22 = sshll.u32 %s3371_s3, 4  ;;  %s34_s22 = int_to_ptr.hbm [resolvable:$true] %s33_s22 }
   0x3   :  { %s21_s19 = sshll.u32 %s3023_s18, 4  ;;  %s3024_s23 = smov 128   ;;  %s22_s19 = int_to_ptr.vmem [resolvable:$true] %s21_s19 }
   0x4   :  { %s3025_s24 = smov 8   ;;  %s3026_s25 = smov [#allocation4]  }
   0x5   :  { %27 = dma.hbm_to_vmem [thread:$0]  %s20_s17, 24576, %s22_s19, [#allocation3], %s3024_s23, %s3024_s23, %s3025_s24  }
   0x6   :  { %s35_s26 = sshll.u32 %s3026_s25, 4  ;;  %s36_s26 = int_to_ptr.vmem [resolvable:$true] %s35_s26 }
   0x7   :  { %38 = dma.hbm_to_vmem [thread:$0]  %s34_s22, 32, %s36_s26, [#allocation5]  }
   0x8   :  { %3019 = dma.done.wait [#allocation3], 24576  }
   0x9   :  { %3020 = vsyncadd [#allocation3], 4294942720 }
   0xa   :  { %3021 = dma.done.wait [#allocation5], 32  }
   0xb   :  { %3022 = vsyncadd [#allocation5], 4294967264  ;;  %v2009_v0 = vld [vmem:[#allocation2 + $0x370] sm:$0xf]  ;;  %v2814_v1 = vld [vmem:[#allocation2 + $0x374] sm:$0xf0] }
   0xc   :  { %v2041_v2 = vld [vmem:[#allocation2 + $0x3b0] sm:$0xf]  ;;  %v2010_v3 = vor.u32 %v2814_v1, %v2009_v0  ;;  %v2822_v4 = vld [vmem:[#allocation2 + $0x3b4] sm:$0xf0]  ;;  %v2813_v5 = vld [vmem:[#allocation2 + $0x374] sm:$0xf] }
   0xd   :  { %v2011_v6 = vld [vmem:[#allocation2 + $0x378] sm:$0xf0]  ;;  %v2042_v7 = vor.u32 %v2822_v4, %v2041_v2  ;;  %v2821_v9 = vld [vmem:[#allocation2 + $0x3b4] sm:$0xf]  ;;  %v2001_v11 = vld [vmem:[#allocation2 + $0x360] sm:$0xf] }
   0xe   :  { %v2014_v8 = vor.u32 %v2813_v5, %v2011_v6  ;;  %v2043_v10 = vld [vmem:[#allocation2 + $0x3b8] sm:$0xf0]  ;;  %250 = vmatpush.bf16.msra.mxu0 %v2010_v3  ;;  %v2812_v13 = vld [vmem:[#allocation2 + $0x364] sm:$0xf0]  ;;  %v2033_v14 = vld [vmem:[#allocation2 + $0x3a0] sm:$0xf] }
   0xf   :  { %v2046_v12 = vor.u32 %v2821_v9, %v2043_v10  ;;  %v2820_v15 = vld [vmem:[#allocation2 + $0x3a4] sm:$0xf0]  ;;  %273 = vmatpush.bf16.msra.mxu1 %v2042_v7  ;;  %v2002_v16 = vor.u32 %v2812_v13, %v2001_v11  ;;  %v2811_v18 = vld [vmem:[#allocation2 + $0x364] sm:$0xf]  ;;  %v2003_v19 = vld [vmem:[#allocation2 + $0x368] sm:$0xf0] }
  0x10   :  { %288 = vmatpush.bf16.msra.mxu2 %v2014_v8  ;;  %v2034_v17 = vor.u32 %v2820_v15, %v2033_v14  ;;  %v2819_v20 = vld [vmem:[#allocation2 + $0x3a4] sm:$0xf]  ;;  %v2006_v21 = vor.u32 %v2811_v18, %v2003_v19  ;;  %v2035_v22 = vld [vmem:[#allocation2 + $0x3a8] sm:$0xf0]  ;;  %v1993_v23 = vld [vmem:[#allocation2 + $0x350] sm:$0xf] }
  0x11   :  { %311 = vmatpush.bf16.msra.mxu3 %v2046_v12  ;;  %v2810_v24 = vld [vmem:[#allocation2 + $0x354] sm:$0xf0]  ;;  %v2038_v25 = vor.u32 %v2819_v20, %v2035_v22  ;;  %v2025_v26 = vld [vmem:[#allocation2 + $0x390] sm:$0xf]  ;;  %v2809_v28 = vld [vmem:[#allocation2 + $0x354] sm:$0xf] }
  0x12   :  { %v2818_v27 = vld [vmem:[#allocation2 + $0x394] sm:$0xf0]  ;;  %251 = vmatpush.bf16.msra.mxu0 %v2002_v16  ;;  %v1994_v29 = vor.u32 %v2810_v24, %v1993_v23  ;;  %v1995_v30 = vld [vmem:[#allocation2 + $0x358] sm:$0xf0]  ;;  %v2817_v31 = vld [vmem:[#allocation2 + $0x394] sm:$0xf] }
  0x13   :  { %v2027_v32 = vld [vmem:[#allocation2 + $0x398] sm:$0xf0]  ;;  %274 = vmatpush.bf16.msra.mxu1 %v2034_v17  ;;  %v2026_v33 = vor.u32 %v2818_v27, %v2025_v26  ;;  %v1998_v34 = vor.u32 %v2809_v28, %v1995_v30  ;;  %v1985_v35 = vld [vmem:[#allocation2 + $0x340] sm:$0xf]  ;;  %v2808_v36 = vld [vmem:[#allocation2 + $0x344] sm:$0xf0] }
  0x14   :  { %289 = vmatpush.bf16.msra.mxu2 %v2006_v21  ;;  %v2017_v37 = vld [vmem:[#allocation2 + $0x380] sm:$0xf]  ;;  %v2030_v38 = vor.u32 %v2817_v31, %v2027_v32  ;;  %v2816_v39 = vld [vmem:[#allocation2 + $0x384] sm:$0xf0]  ;;  %v2807_v40 = vld [vmem:[#allocation2 + $0x344] sm:$0xf]  ;;  %v1986_v44 = vor.u32 %v2808_v36, %v1985_v35 }
  0x15   :  { %312 = vmatpush.bf16.msra.mxu3 %v2038_v25  ;;  %v1987_v41 = vld [vmem:[#allocation2 + $0x348] sm:$0xf0]  ;;  %v2815_v42 = vld [vmem:[#allocation2 + $0x384] sm:$0xf]  ;;  %v2018_v47 = vor.u32 %v2816_v39, %v2017_v37  ;;  %v1977_v49 = vld [vmem:[#allocation2 + $0x330] sm:$0xf] }
  0x16   :  { %v2019_v43 = vld [vmem:[#allocation2 + $0x388] sm:$0xf0]  ;;  %252 = vmatpush.bf16.msra.mxu0 %v1994_v29  ;;  %v2771_v45 = vld [vmem:[%s3369_s1 + $0x4] sm:$0xf]  ;;  %v1990_v48 = vor.u32 %v2807_v40, %v1987_v41  ;;  %v2806_v50 = vld [vmem:[#allocation2 + $0x334] sm:$0xf0] }
  0x17   :  { %v1939_v46 = vld [vmem:[%s3369_s1 + $0x8] sm:$0xf0]  ;;  %275 = vmatpush.bf16.msra.mxu1 %v2026_v33  ;;  %v2125_v51 = vld [vmem:[#allocation2 + $0x70] sm:$0xf]  ;;  %v2022_v52 = vor.u32 %v2815_v42, %v2019_v43  ;;  %v2805_v53 = vld [vmem:[#allocation2 + $0x334] sm:$0xf]  ;;  %v1978_v59 = vor.u32 %v2806_v50, %v1977_v49 }
  0x18   :  { %290 = vmatpush.bf16.msra.mxu2 %v1998_v34  ;;  %v1979_v54 = vld [vmem:[#allocation2 + $0x338] sm:$0xf0]  ;;  %v2790_v55 = vld [vmem:[#allocation2 + $0x74] sm:$0xf0]  ;;  %v2117_v57 = vld [vmem:[#allocation2 + $0x60] sm:$0xf]  ;;  %v3064_v58 = vor.u32 %v2771_v45, %v1939_v46 }
  0x19   :  { %313 = vmatpush.bf16.msra.mxu3 %v2030_v38  ;;  %v2126_v56 = vor.u32 %v2790_v55, %v2125_v51  ;;  %v2788_v60 = vld [vmem:[#allocation2 + $0x64] sm:$0xf0]  ;;  %vm243_vm0 = vcmask 523264   ;;  %v1982_v61 = vor.u32 %v2805_v53, %v1979_v54  ;;  %v1969_v62 = vld [vmem:[#allocation2 + $0x320] sm:$0xf]  ;;  %vm1922_vm1 = vcmask 1043456  }
  0x1a   :  { %253 = vmatpush.bf16.msra.mxu0 %v1986_v44  ;;  %v2804_v63 = vld [vmem:[#allocation2 + $0x324] sm:$0xf0]  ;;  %v2803_v0 = vld [vmem:[#allocation2 + $0x324] sm:$0xf]  ;;  %v1971_v1 = vld [vmem:[#allocation2 + $0x328] sm:$0xf0]  ;;  %v2118_v2 = vor.u32 %v2788_v60, %v2117_v57 }
  0x1b   :  { %276 = vmatpush.bf16.msra.mxu1 %v2018_v47  ;;  %v2109_v3 = vld [vmem:[#allocation2 + $0x50] sm:$0xf]  ;;  %v2786_v4 = vld [vmem:[#allocation2 + $0x54] sm:$0xf0]  ;;  %v1970_v5 = vor.u32 %v2804_v63, %v1969_v62  ;;  %v1974_v6 = vor.u32 %v2803_v0, %v1971_v1  ;;  %v2801_v10 = vld [vmem:[#allocation2 + $0x314] sm:$0xf] }
  0x1c   :  { %291 = vmatpush.bf16.msra.mxu2 %v1990_v48  ;;  %v1961_v7 = vld [vmem:[#allocation2 + $0x310] sm:$0xf]  ;;  %v2802_v8 = vld [vmem:[#allocation2 + $0x314] sm:$0xf0]  ;;  %v1963_v11 = vld [vmem:[#allocation2 + $0x318] sm:$0xf0]  ;;  %v2110_v12 = vor.u32 %v2786_v4, %v2109_v3 }
  0x1d   :  { %314 = vmatpush.bf16.msra.mxu3 %v2022_v52  ;;  %v2157_v9 = vld [vmem:[#allocation2 + $0xb0] sm:$0xf]  ;;  %v2798_v13 = vld [vmem:[#allocation2 + $0xb4] sm:$0xf0]  ;;  %v2101_v14 = vld [vmem:[#allocation2 + $0x40] sm:$0xf]  ;;  %v1962_v17 = vor.u32 %v2802_v8, %v1961_v7  ;;  %v1966_v21 = vor.u32 %v2801_v10, %v1963_v11 }
  0x1e   :  { %2047 = vmatmul.msk.bf16.vlgmr.msra.gmra.mxu1 %vm243_vm0, %v3064_v58  ;;  %254 = vmatpush.bf16.msra.mxu0 %v1978_v59  ;;  %v2784_v15 = vld [vmem:[#allocation2 + $0x44] sm:$0xf0]  ;;  %v2158_v16 = vor.u32 %v2798_v13, %v2157_v9  ;;  %v1953_v18 = vld [vmem:[#allocation2 + $0x300] sm:$0xf]  ;;  %v2799_v20 = vld [vmem:[#allocation2 + $0x304] sm:$0xf] }
  0x1f   :  { %470 = vmatpush.bf16.msrb.mxu1 %v2126_v56  ;;  %v2800_v19 = vld [vmem:[#allocation2 + $0x304] sm:$0xf0]  ;;  %v1955_v22 = vld [vmem:[#allocation2 + $0x308] sm:$0xf0]  ;;  %v2149_v23 = vld [vmem:[#allocation2 + $0xa0] sm:$0xf]  ;;  %v2102_v25 = vor.u32 %v2784_v15, %v2101_v14 }
  0x20   :  { %2049 = vmatmul.msk.bf16.vlgmr.msra.gmra.mxu3 %vm243_vm0, %v3064_v58  ;;  %292 = vmatpush.bf16.msra.mxu2 %v1982_v61  ;;  %v2796_v24 = vld [vmem:[#allocation2 + $0xa4] sm:$0xf0]  ;;  %v1937_v26 = vld [vmem:[%s3369_s1] sm:$0xf]  ;;  %v2797_v27 = vld [vmem:[#allocation2 + $0xb4] sm:$0xf]  ;;  %v1954_v34 = vor.u32 %v2800_v19, %v1953_v18  ;;  %v1958_v38 = vor.u32 %v2799_v20, %v1955_v22 }
  0x21   :  { %493 = vmatpush.bf16.msrb.mxu3 %v2158_v16  ;;  %v2789_v28 = vld [vmem:[#allocation2 + $0x74] sm:$0xf]  ;;  %v2127_v29 = vld [vmem:[#allocation2 + $0x78] sm:$0xf0]  ;;  %v2150_v30 = vor.u32 %v2796_v24, %v2149_v23  ;;  %v2093_v32 = vld [vmem:[#allocation2 + $0x30] sm:$0xf] }
  0x22   :  { %255 = vmatpush.bf16.msra.mxu0 %v1970_v5  ;;  %v2159_v31 = vld [vmem:[#allocation2 + $0xb8] sm:$0xf0]  ;;  %v2782_v33 = vld [vmem:[#allocation2 + $0x34] sm:$0xf0]  ;;  %v2772_v35 = vld [vmem:[%s3369_s1 + $0x4] sm:$0xf0]  ;;  %v2130_v41 = vor.u32 %v2789_v28, %v2127_v29 }
  0x23   :  { %471 = vmatpush.bf16.msrb.mxu1 %v2118_v2  ;;  %v2141_v36 = vld [vmem:[#allocation2 + $0x90] sm:$0xf]  ;;  %v2794_v37 = vld [vmem:[#allocation2 + $0x94] sm:$0xf0]  ;;  %v2773_v39 = vld [vmem:[%s3369_s1 + $0x14] sm:$0xf]  ;;  %v2162_v42 = vor.u32 %v2797_v27, %v2159_v31  ;;  %v2094_v43 = vor.u32 %v2782_v33, %v2093_v32  ;;  %v3082_v47 = vor.u32 %v2772_v35, %v1937_v26 }
  0x24   :  { %293 = vmatpush.bf16.msra.mxu2 %v1974_v6  ;;  %v1947_v40 = vld [vmem:[%s3369_s1 + $0x18] sm:$0xf0]  ;;  %v2085_v44 = vld [vmem:[#allocation2 + $0x20] sm:$0xf]  ;;  %v2787_v45 = vld [vmem:[#allocation2 + $0x64] sm:$0xf]  ;;  %v2142_v51 = vor.u32 %v2794_v37, %v2141_v36 }
  0x25   :  { %494 = vmatpush.bf16.msrb.mxu3 %v2150_v30  ;;  %v2119_v46 = vld [vmem:[#allocation2 + $0x68] sm:$0xf0]  ;;  %v2780_v48 = vld [vmem:[#allocation2 + $0x24] sm:$0xf0]  ;;  %v2795_v49 = vld [vmem:[#allocation2 + $0xa4] sm:$0xf]  ;;  %v3084_v52 = vor.u32 %v2773_v39, %v1947_v40 }
  0x26   :  { %256 = vmatpush.bf16.msra.mxu0 %v1962_v17  ;;  %v2151_v50 = vld [vmem:[#allocation2 + $0xa8] sm:$0xf0]  ;;  %v2133_v53 = vld [vmem:[#allocation2 + $0x80] sm:$0xf]  ;;  %v2792_v54 = vld [vmem:[#allocation2 + $0x84] sm:$0xf0]  ;;  %v2122_v55 = vor.u32 %v2787_v45, %v2119_v46  ;;  %v2086_v56 = vor.u32 %v2780_v48, %v2085_v44 }
  0x27   :  { %472 = vmatpush.bf16.msrb.mxu1 %v2110_v12  ;;  %v2154_v57 = vor.u32 %v2795_v49, %v2151_v50  ;;  %v2077_v59 = vld [vmem:[#allocation2 + $0x10] sm:$0xf]  ;;  %v2785_v60 = vld [vmem:[#allocation2 + $0x54] sm:$0xf]  ;;  %v2111_v61 = vld [vmem:[#allocation2 + $0x58] sm:$0xf0]  ;;  %v2134_v63 = vor.u32 %v2792_v54, %v2133_v53 }
  0x28   :  { %294 = vmatpush.bf16.msra.mxu2 %v1966_v21  ;;  %v2778_v62 = vld [vmem:[#allocation2 + $0x14] sm:$0xf0]  ;;  %v2793_v0 = vld [vmem:[#allocation2 + $0x94] sm:$0xf]  ;;  %v2143_v1 = vld [vmem:[#allocation2 + $0x98] sm:$0xf0]  ;;  %v2114_v2 = vor.u32 %v2785_v60, %v2111_v61 }
  0x29   :  { %495 = vmatpush.bf16.msrb.mxu3 %v2142_v51  ;;  %v2078_v3 = vor.u32 %v2778_v62, %v2077_v59  ;;  %v2069_v4 = vld [vmem:[#allocation2] sm:$0xf]  ;;  %v2783_v5 = vld [vmem:[#allocation2 + $0x44] sm:$0xf]  ;;  %v2103_v6 = vld [vmem:[#allocation2 + $0x48] sm:$0xf0]  ;;  %v2146_v7 = vor.u32 %v2793_v0, %v2143_v1 }
  0x2a   :  { %257 = vmatpush.bf16.msra.mxu0 %v1954_v34  ;;  %v2776_v8 = vld [vmem:[#allocation2 + $0x4] sm:$0xf0]  ;;  %v2791_v9 = vld [vmem:[#allocation2 + $0x84] sm:$0xf]  ;;  %v2135_v10 = vld [vmem:[#allocation2 + $0x88] sm:$0xf0]  ;;  %v2106_v13 = vor.u32 %v2783_v5, %v2103_v6 }
  0x2b   :  { %473 = vmatpush.bf16.msrb.mxu1 %v2102_v25  ;;  %v2225_v11 = vld [vmem:[#allocation2 + $0x430] sm:$0xf]  ;;  %v2862_v12 = vld [vmem:[#allocation2 + $0x434] sm:$0xf0]  ;;  %v2869_v16 = vld [vmem:[#allocation2 + $0x474] sm:$0xf]  ;;  %v2070_v17 = vor.u32 %v2776_v8, %v2069_v4  ;;  %v2138_v21 = vor.u32 %v2791_v9, %v2135_v10 }
  0x2c   :  { %295 = vmatpush.bf16.msra.mxu2 %v1958_v38  ;;  %v2257_v14 = vld [vmem:[#allocation2 + $0x470] sm:$0xf]  ;;  %v2870_v15 = vld [vmem:[#allocation2 + $0x474] sm:$0xf0]  ;;  %v2781_v19 = vld [vmem:[#allocation2 + $0x34] sm:$0xf]  ;;  %v2226_v26 = vor.u32 %v2862_v12, %v2225_v11 }
  0x2d   :  { %258 = vmatmul.bf16.vlgmr.msra.gmra.mxu0 %v3082_v47  ;;  %496 = vmatpush.bf16.msrb.mxu3 %v2134_v63  ;;  %v1945_v18 = vld [vmem:[%s3369_s1 + $0x10] sm:$0xf]  ;;  %v2095_v20 = vld [vmem:[#allocation2 + $0x38] sm:$0xf0]  ;;  %v2258_v22 = vor.u32 %v2870_v15, %v2257_v14  ;;  %v2774_v24 = vld [vmem:[%s3369_s1 + $0x14] sm:$0xf0] }
  0x2e   :  { %508 = vmatpush.bf16.msrb.mxu0 %v2130_v41  ;;  %2048 = vmatmul.msk.bf16.gmra.mxu1 %vm243_vm0, %v3084_v52  ;;  %v2259_v23 = vld [vmem:[#allocation2 + $0x478] sm:$0xf0]  ;;  %v2053_v25 = vld [vmem:[%s3368_s0] sm:$0xf]  ;;  %v2860_v29 = vld [vmem:[#allocation2 + $0x424] sm:$0xf0]  ;;  %v2098_v35 = vor.u32 %v2781_v19, %v2095_v20  ;;  %v3110_v40 = vor.u32 %v2774_v24, %v1945_v18 }
  0x2f   :  { %474 = vmatpush.bf16.msrb.mxu1 %v2094_v43  ;;  %296 = vmatmul.bf16.vlgmr.msra.gmra.mxu2 %v3082_v47  ;;  %v2217_v27 = vld [vmem:[#allocation2 + $0x420] sm:$0xf]  ;;  %v2262_v28 = vor.u32 %v2869_v16, %v2259_v23  ;;  %v2868_v31 = vld [vmem:[#allocation2 + $0x464] sm:$0xf0]  ;;  %v2767_v33 = vld [vmem:[%s3368_s0 + $0x4] sm:$0xf] }
  0x30   :  { %531 = vmatpush.bf16.msrb.mxu2 %v2162_v42  ;;  %2050 = vmatmul.msk.bf16.gmra.mxu3 %vm243_vm0, %v3084_v52  ;;  %v2249_v30 = vld [vmem:[#allocation2 + $0x460] sm:$0xf]  ;;  %v2768_v32 = vld [vmem:[%s3368_s0 + $0x4] sm:$0xf0]  ;;  %v2055_v34 = vld [vmem:[%s3368_s0 + $0x8] sm:$0xf0]  ;;  %v2218_v41 = vor.u32 %v2860_v29, %v2217_v27 }
  0x31   :  { %739 = vmatpush.bf16.msra.mxu3 %v2258_v22  ;;  %v2250_v36 = vor.u32 %v2868_v31, %v2249_v30  ;;  %v2779_v37 = vld [vmem:[#allocation2 + $0x24] sm:$0xf]  ;;  %v2087_v38 = vld [vmem:[#allocation2 + $0x28] sm:$0xf0]  ;;  %v2241_v43 = vld [vmem:[#allocation2 + $0x450] sm:$0xf]  ;;  %v3112_v45 = vor.u32 %v2768_v32, %v2053_v25  ;;  %v3114_v49 = vor.u32 %v2767_v33, %v2055_v34 }
  0x32   :  { %509 = vmatpush.bf16.msrb.mxu0 %v2122_v55  ;;  %v2867_v39 = vld [vmem:[#allocation2 + $0x464] sm:$0xf]  ;;  %v2251_v42 = vld [vmem:[#allocation2 + $0x468] sm:$0xf0]  ;;  %v2866_v44 = vld [vmem:[#allocation2 + $0x454] sm:$0xf0]  ;;  %v2090_v50 = vor.u32 %v2779_v37, %v2087_v38 }
  0x33   :  { %475 = vmatpush.bf16.msrb.mxu1 %v2086_v56  ;;  %v2209_v46 = vld [vmem:[#allocation2 + $0x410] sm:$0xf]  ;;  %v2858_v48 = vld [vmem:[#allocation2 + $0x414] sm:$0xf0]  ;;  %v2777_v51 = vld [vmem:[#allocation2 + $0x14] sm:$0xf]  ;;  %v2254_v54 = vor.u32 %v2867_v39, %v2251_v42  ;;  %v2242_v55 = vor.u32 %v2866_v44, %v2241_v43 }
  0x34   :  { %532 = vmatpush.bf16.msrb.mxu2 %v2154_v57  ;;  %v2079_v53 = vld [vmem:[#allocation2 + $0x18] sm:$0xf0]  ;;  %v2210_v56 = vor.u32 %v2858_v48, %v2209_v46  ;;  %v2233_v57 = vld [vmem:[#allocation2 + $0x440] sm:$0xf]  ;;  %v2864_v59 = vld [vmem:[#allocation2 + $0x444] sm:$0xf0] }
  0x35   :  { %740 = vmatpush.bf16.msra.mxu3 %v2250_v36  ;;  %v2201_v60 = vld [vmem:[#allocation2 + $0x400] sm:$0xf]  ;;  %v2856_v61 = vld [vmem:[#allocation2 + $0x404] sm:$0xf0]  ;;  %v2082_v62 = vor.u32 %v2777_v51, %v2079_v53  ;;  %v2865_v63 = vld [vmem:[#allocation2 + $0x454] sm:$0xf]  ;;  %v2234_v4 = vor.u32 %v2864_v59, %v2233_v57 }
  0x36   :  { %510 = vmatpush.bf16.msrb.mxu0 %v2114_v2  ;;  %v2243_v0 = vld [vmem:[#allocation2 + $0x458] sm:$0xf0]  ;;  %v2775_v1 = vld [vmem:[#allocation2 + $0x4] sm:$0xf]  ;;  %v2071_v2 = vld [vmem:[#allocation2 + $0x8] sm:$0xf0]  ;;  %v2202_v6 = vor.u32 %v2856_v61, %v2201_v60 }
  0x37   :  { %476 = vmatpush.bf16.msrb.mxu1 %v2078_v3  ;;  %v2861_v3 = vld [vmem:[#allocation2 + $0x434] sm:$0xf]  ;;  %v2246_v5 = vor.u32 %v2865_v63, %v2243_v0  ;;  %v2863_v8 = vld [vmem:[#allocation2 + $0x444] sm:$0xf]  ;;  %v2235_v9 = vld [vmem:[#allocation2 + $0x448] sm:$0xf0]  ;;  %v2074_v12 = vor.u32 %v2775_v1, %v2071_v2 }
  0x38   :  { %533 = vmatpush.bf16.msrb.mxu2 %v2146_v7  ;;  %v2227_v7 = vld [vmem:[#allocation2 + $0x438] sm:$0xf0]  ;;  %v2193_v10 = vld [vmem:[#allocation2 + $0x3f0] sm:$0xf]  ;;  %v2854_v11 = vld [vmem:[#allocation2 + $0x3f4] sm:$0xf0]  ;;  %v2238_v14 = vor.u32 %v2863_v8, %v2235_v9 }
  0x39   :  { %741 = vmatpush.bf16.msra.mxu3 %v2242_v55  ;;  %v2194_v15 = vor.u32 %v2854_v11, %v2193_v10  ;;  %v2859_v16 = vld [vmem:[#allocation2 + $0x424] sm:$0xf]  ;;  %v2185_v18 = vld [vmem:[#allocation2 + $0x3e0] sm:$0xf]  ;;  %v2852_v19 = vld [vmem:[#allocation2 + $0x3e4] sm:$0xf0] }
  0x3a   :  { %511 = vmatpush.bf16.msrb.mxu0 %v2106_v13  ;;  %v2230_v13 = vor.u32 %v2861_v3, %v2227_v7  ;;  %v2061_v20 = vld [vmem:[%s3368_s0 + $0x10] sm:$0xf]  ;;  %v2769_v22 = vld [vmem:[%s3368_s0 + $0x14] sm:$0xf]  ;;  %v2063_v23 = vld [vmem:[%s3368_s0 + $0x18] sm:$0xf0]  ;;  %v2186_v25 = vor.u32 %v2852_v19, %v2185_v18 }
  0x3b   :  { %477 = vmatpush.bf16.msrb.mxu1 %v2070_v17  ;;  %v2219_v17 = vld [vmem:[#allocation2 + $0x428] sm:$0xf0]  ;;  %v2211_v27 = vld [vmem:[#allocation2 + $0x418] sm:$0xf0]  ;;  %v2177_v29 = vld [vmem:[#allocation2 + $0x3d0] sm:$0xf]  ;;  %v3135_v31 = vor.u32 %v2769_v22, %v2063_v23 }
  0x3c   :  { %534 = vmatpush.bf16.msrb.mxu2 %v2138_v21  ;;  %v2770_v21 = vld [vmem:[%s3368_s0 + $0x14] sm:$0xf0]  ;;  %v2222_v24 = vor.u32 %v2859_v16, %v2219_v17  ;;  %v2855_v33 = vld [vmem:[#allocation2 + $0x404] sm:$0xf]  ;;  %v2357_v36 = vld [vmem:[#allocation2 + $0x170] sm:$0xf] }
  0x3d   :  { %263 = vmatmul.bf16.gmra.mxu0 %v3110_v40  ;;  %742 = vmatpush.bf16.msra.mxu3 %v2234_v4  ;;  %v2850_v30 = vld [vmem:[#allocation2 + $0x3d4] sm:$0xf0]  ;;  %v2169_v38 = vld [vmem:[#allocation2 + $0x3c0] sm:$0xf]  ;;  %v2848_v39 = vld [vmem:[#allocation2 + $0x3c4] sm:$0xf0] }
  0x3e   :  { %512 = vmatpush.bf16.msrb.mxu0 %v2098_v35  ;;  %478 = vmatmul.bf16.vlgmr.msrb.gmra.mxu1 %v3112_v45  ;;  %v2178_v34 = vor.u32 %v2850_v30, %v2177_v29  ;;  %v2203_v35 = vld [vmem:[#allocation2 + $0x408] sm:$0xf0]  ;;  %v2846_v37 = vld [vmem:[#allocation2 + $0x174] sm:$0xf0]  ;;  %v2845_v44 = vld [vmem:[#allocation2 + $0x174] sm:$0xf] }
  0x3f   :  { %716 = vmatpush.bf16.msra.mxu1 %v2226_v26  ;;  %301 = vmatmul.bf16.gmra.mxu2 %v3110_v40  ;;  %v2857_v26 = vld [vmem:[#allocation2 + $0x414] sm:$0xf]  ;;  %v2358_v42 = vor.u32 %v2846_v37, %v2357_v36  ;;  %v2838_v43 = vld [vmem:[#allocation2 + $0x134] sm:$0xf0]  ;;  %v2359_v46 = vld [vmem:[#allocation2 + $0x178] sm:$0xf0]  ;;  %v2206_v48 = vor.u32 %v2855_v33, %v2203_v35 }
  0x40   :  { %777 = vmatpush.bf16.msra.mxu2 %v2262_v28  ;;  %2163 = vmatmul.msk.bf16.vlgmr.msrb.gmra.mxu3 %vm243_vm0, %v3114_v49  ;;  %v3133_v28 = vor.u32 %v2770_v21, %v2061_v20  ;;  %v2214_v32 = vor.u32 %v2857_v26, %v2211_v27  ;;  %v2349_v51 = vld [vmem:[#allocation2 + $0x160] sm:$0xf]  ;;  %v2844_v53 = vld [vmem:[#allocation2 + $0x164] sm:$0xf0]  ;;  %v2853_v55 = vld [vmem:[#allocation2 + $0x3f4] sm:$0xf] }
  0x41   :  { %935 = vmatpush.bf16.msrb.mxu3 %v2358_v42  ;;  %v2350_v57 = vor.u32 %v2844_v53, %v2349_v51  ;;  %v2843_v59 = vld [vmem:[#allocation2 + $0x164] sm:$0xf]  ;;  %v2317_v61 = vld [vmem:[#allocation2 + $0x120] sm:$0xf]  ;;  %v2836_v63 = vld [vmem:[#allocation2 + $0x124] sm:$0xf0] }
  0x42   :  { %513 = vmatpush.bf16.msrb.mxu0 %v2090_v50  ;;  %v2362_v50 = vor.u32 %v2845_v44, %v2359_v46  ;;  %v2341_v1 = vld [vmem:[#allocation2 + $0x150] sm:$0xf]  ;;  %v2842_v2 = vld [vmem:[#allocation2 + $0x154] sm:$0xf0]  ;;  %v2851_v4 = vld [vmem:[#allocation2 + $0x3e4] sm:$0xf]  ;;  %v2318_v9 = vor.u32 %v2836_v63, %v2317_v61 }
  0x43   :  { %717 = vmatpush.bf16.msra.mxu1 %v2218_v41  ;;  %v2325_v41 = vld [vmem:[#allocation2 + $0x130] sm:$0xf]  ;;  %v2333_v7 = vld [vmem:[#allocation2 + $0x140] sm:$0xf]  ;;  %v2840_v8 = vld [vmem:[#allocation2 + $0x144] sm:$0xf0] }
  0x44   :  { %778 = vmatpush.bf16.msra.mxu2 %v2254_v54  ;;  %v2170_v54 = vor.u32 %v2848_v39, %v2169_v38  ;;  %v2326_v60 = vor.u32 %v2838_v43, %v2325_v41  ;;  %v2309_v11 = vld [vmem:[#allocation2 + $0x110] sm:$0xf]  ;;  %v2301_v18 = vld [vmem:[#allocation2 + $0x100] sm:$0xf]  ;;  %v2832_v19 = vld [vmem:[#allocation2 + $0x104] sm:$0xf0] }
  0x45   :  { %936 = vmatpush.bf16.msrb.mxu3 %v2350_v57  ;;  %v2847_v20 = vld [vmem:[#allocation2 + $0x3c4] sm:$0xf]  ;;  %v2171_v21 = vld [vmem:[#allocation2 + $0x3c8] sm:$0xf0]  ;;  %v2837_v22 = vld [vmem:[#allocation2 + $0x134] sm:$0xf] }
  0x46   :  { %514 = vmatpush.bf16.msrb.mxu0 %v2082_v62  ;;  %v2351_v62 = vld [vmem:[#allocation2 + $0x168] sm:$0xf0]  ;;  %v2327_v23 = vld [vmem:[#allocation2 + $0x138] sm:$0xf0]  ;;  %v2174_v27 = vor.u32 %v2847_v20, %v2171_v21  ;;  %v2293_v29 = vld [vmem:[#allocation2 + $0xf0] sm:$0xf] }
  0x47   :  { %718 = vmatpush.bf16.msra.mxu1 %v2210_v56  ;;  %v2195_v56 = vld [vmem:[#allocation2 + $0x3f8] sm:$0xf0]  ;;  %v2354_v0 = vor.u32 %v2843_v59, %v2351_v62  ;;  %v2830_v30 = vld [vmem:[#allocation2 + $0xf4] sm:$0xf0]  ;;  %v2330_v33 = vor.u32 %v2837_v22, %v2327_v23  ;;  %v2335_v35 = vld [vmem:[#allocation2 + $0x148] sm:$0xf0] }
  0x48   :  { %779 = vmatpush.bf16.msra.mxu2 %v2246_v5  ;;  %v2198_v3 = vor.u32 %v2853_v55, %v2195_v56  ;;  %v2342_v5 = vor.u32 %v2842_v2, %v2341_v1  ;;  %v2343_v26 = vld [vmem:[#allocation2 + $0x158] sm:$0xf0]  ;;  %v2835_v36 = vld [vmem:[#allocation2 + $0x124] sm:$0xf]  ;;  %v2319_v37 = vld [vmem:[#allocation2 + $0x128] sm:$0xf0]  ;;  %v2294_v39 = vor.u32 %v2830_v30, %v2293_v29 }
  0x49   :  { %v2285_v41 = vld [vmem:[#allocation2 + $0xe0] sm:$0xf]  ;;  %v2828_v42 = vld [vmem:[#allocation2 + $0xe4] sm:$0xf0]  ;;  %v2322_v43 = vor.u32 %v2835_v36, %v2319_v37  ;;  %v2277_v46 = vld [vmem:[#allocation2 + $0xd0] sm:$0xf] }
  0x4a   :  { %515 = vmatpush.bf16.msrb.mxu0 %v2074_v12  ;;  %v2834_v12 = vld [vmem:[#allocation2 + $0x114] sm:$0xf0]  ;;  %937 = vmatpush.bf16.msrb.mxu3 %v2342_v5  ;;  %v2286_v44 = vor.u32 %v2828_v42, %v2285_v41  ;;  %v2311_v51 = vld [vmem:[#allocation2 + $0x118] sm:$0xf0]  ;;  %v2824_v55 = vld [vmem:[#allocation2 + $0xc4] sm:$0xf0] }
  0x4b   :  { %719 = vmatpush.bf16.msra.mxu1 %v2202_v6  ;;  %v2187_v6 = vld [vmem:[#allocation2 + $0x3e8] sm:$0xf0]  ;;  %v2310_v16 = vor.u32 %v2834_v12, %v2309_v11  ;;  %v2831_v57 = vld [vmem:[#allocation2 + $0x104] sm:$0xf]  ;;  %v2910_v61 = vld [vmem:[#allocation2 + $0x4f4] sm:$0xf0] }
  0x4c   :  { %780 = vmatpush.bf16.msra.mxu2 %v2238_v14  ;;  %v2190_v10 = vor.u32 %v2851_v4, %v2187_v6  ;;  %v2849_v14 = vld [vmem:[#allocation2 + $0x3d4] sm:$0xf]  ;;  %v2303_v59 = vld [vmem:[#allocation2 + $0x108] sm:$0xf0]  ;;  %v2457_v62 = vld [vmem:[#allocation2 + $0x530] sm:$0xf] }
  0x4d   :  { %516 = vmatmul.bf16.vlgmr.msrb.gmra.mxu0 %v3112_v45  ;;  %v2918_v63 = vld [vmem:[#allocation2 + $0x534] sm:$0xf0]  ;;  %v2829_v2 = vld [vmem:[#allocation2 + $0xf4] sm:$0xf]  ;;  %v2459_v4 = vld [vmem:[#allocation2 + $0x538] sm:$0xf0]  ;;  %v2306_v5 = vor.u32 %v2831_v57, %v2303_v59 }
  0x4e   :  { %754 = vmatpush.bf16.msra.mxu0 %v2230_v13  ;;  %483 = vmatmul.bf16.gmra.mxu1 %v3133_v28  ;;  %v2334_v13 = vor.u32 %v2840_v8, %v2333_v7  ;;  %v2295_v6 = vld [vmem:[#allocation2 + $0xf8] sm:$0xf0]  ;;  %v2417_v11 = vld [vmem:[#allocation2 + $0x4e0] sm:$0xf]  ;;  %v2908_v12 = vld [vmem:[#allocation2 + $0x4e4] sm:$0xf0] }
  0x4f   :  { %720 = vmatpush.bf16.msra.mxu1 %v2194_v15  ;;  %2165 = vmatmul.msk.bf16.vlgmr.msrb.gmra.mxu2 %vm243_vm0, %v3114_v49  ;;  %v2179_v15 = vld [vmem:[#allocation2 + $0x3d8] sm:$0xf0]  ;;  %v2827_v20 = vld [vmem:[#allocation2 + $0xe4] sm:$0xf]  ;;  %v2418_v21 = vor.u32 %v2908_v12, %v2417_v11  ;;  %v2287_v22 = vld [vmem:[#allocation2 + $0xe8] sm:$0xf0] }
  0x50   :  { %2164 = vmatmul.msk.bf16.gmra.mxu3 %vm243_vm0, %v3135_v31  ;;  %973 = vmatpush.bf16.msrb.mxu2 %v2362_v50  ;;  %v2182_v17 = vor.u32 %v2849_v14, %v2179_v15  ;;  %v2833_v50 = vld [vmem:[#allocation2 + $0x114] sm:$0xf]  ;;  %v2915_v14 = vld [vmem:[#allocation2 + $0x524] sm:$0xf]  ;;  %v2451_v15 = vld [vmem:[#allocation2 + $0x528] sm:$0xf0] }
  0x51   :  { %938 = vmatpush.bf16.msrb.mxu3 %v2334_v13  ;;  %v2314_v56 = vor.u32 %v2833_v50, %v2311_v51  ;;  %v2409_v23 = vld [vmem:[#allocation2 + $0x4d0] sm:$0xf]  ;;  %v2279_v29 = vld [vmem:[#allocation2 + $0xd8] sm:$0xf0]  ;;  %v2271_v41 = vld [vmem:[#allocation2 + $0xc8] sm:$0xf0] }
  0x52   :  { %755 = vmatpush.bf16.msra.mxu0 %v2222_v24  ;;  %v2302_v24 = vor.u32 %v2832_v19, %v2301_v18  ;;  %v2914_v18 = vld [vmem:[#allocation2 + $0x514] sm:$0xf0]  ;;  %v2298_v19 = vor.u32 %v2829_v2, %v2295_v6  ;;  %v2393_v42 = vld [vmem:[#allocation2 + $0x4b0] sm:$0xf]  ;;  %v2443_v50 = vld [vmem:[#allocation2 + $0x518] sm:$0xf0] }
  0x53   :  { %721 = vmatpush.bf16.msra.mxu1 %v2186_v25  ;;  %v2841_v25 = vld [vmem:[#allocation2 + $0x154] sm:$0xf]  ;;  %v2900_v57 = vld [vmem:[#allocation2 + $0x4a4] sm:$0xf0]  ;;  %v2907_v59 = vld [vmem:[#allocation2 + $0x4e4] sm:$0xf] }
  0x54   :  { %974 = vmatpush.bf16.msrb.mxu2 %v2354_v0  ;;  %v2458_v0 = vor.u32 %v2918_v63, %v2457_v62  ;;  %v2435_v62 = vld [vmem:[#allocation2 + $0x508] sm:$0xf0]  ;;  %v2377_v2 = vld [vmem:[#allocation2 + $0x490] sm:$0xf]  ;;  %v2411_v6 = vld [vmem:[#allocation2 + $0x4d8] sm:$0xf0] }
  0x55   :  { %vm1923_vm2 = vcmask 916484  }
  0x56   :  { %756 = vmatpush.bf16.msra.mxu0 %v2214_v32  ;;  %v2346_v32 = vor.u32 %v2841_v25, %v2343_v26  ;;  %v2290_v26 = vor.u32 %v2827_v20, %v2287_v22  ;;  %v2893_v22 = vld [vmem:[#allocation2 + $0x234] sm:$0xf]  ;;  %vm3339_vm3 = vmor %vm1923_vm2, %vm1922_vm1 }
  0x57   :  { %722 = vmatpush.bf16.msra.mxu1 %v2178_v34  ;;  %v2839_v34 = vld [vmem:[#allocation2 + $0x144] sm:$0xf] }
  0x58   :  { %975 = vmatpush.bf16.msrb.mxu2 %v2346_v32  ;;  %v2338_v38 = vor.u32 %v2839_v34, %v2335_v35  ;;  %v2401_v32 = vld [vmem:[#allocation2 + $0x4c0] sm:$0xf]  ;;  %v2912_v35 = vld [vmem:[#allocation2 + $0x504] sm:$0xf0] }
  0x59   :  { %v2433_v34 = vld [vmem:[#allocation2 + $0x500] sm:$0xf] }
  0x5a   :  { %757 = vmatpush.bf16.msra.mxu0 %v2206_v48  ;;  %v2826_v48 = vld [vmem:[#allocation2 + $0xd4] sm:$0xf0]  ;;  %v2434_v36 = vor.u32 %v2912_v35, %v2433_v34  ;;  %v2899_v35 = vld [vmem:[#allocation2 + $0x4a4] sm:$0xf] }
  0x5b   :  { %723 = vmatpush.bf16.msra.mxu1 %v2170_v54  ;;  %v2278_v53 = vor.u32 %v2826_v48, %v2277_v46  ;;  %v2269_v54 = vld [vmem:[#allocation2 + $0xc0] sm:$0xf]  ;;  %v2427_v46 = vld [vmem:[#allocation2 + $0x4f8] sm:$0xf0]  ;;  %v2913_v48 = vld [vmem:[#allocation2 + $0x514] sm:$0xf] }
  0x5c   :  { %976 = vmatpush.bf16.msrb.mxu2 %v2338_v38  ;;  %v2270_v1 = vor.u32 %v2824_v55, %v2269_v54  ;;  %v2823_v38 = vld [vmem:[#allocation2 + $0xc4] sm:$0xf]  ;;  %v2446_v54 = vor.u32 %v2913_v48, %v2443_v50  ;;  %v2501_v48 = vld [vmem:[#allocation2 + $0x1c0] sm:$0xf]  ;;  %v2880_v50 = vld [vmem:[#allocation2 + $0x1c4] sm:$0xf0] }
  0x5d   :  { %521 = vmatmul.bf16.gmra.mxu0 %v3133_v28  ;;  %v2274_v51 = vor.u32 %v2823_v38, %v2271_v41  ;;  %v2551_v38 = vld [vmem:[#allocation2 + $0x228] sm:$0xf0] }
  0x5e   :  { %758 = vmatpush.bf16.msra.mxu0 %v2198_v3  ;;  %724 = vmatmul.bf16.vlgmr.msra.gmra.mxu1 %v3082_v47  ;;  %v2917_v3 = vld [vmem:[#allocation2 + $0x534] sm:$0xf] }
  0x5f   :  { %912 = vmatpush.bf16.msrb.mxu1 %v2326_v60  ;;  %2166 = vmatmul.msk.bf16.gmra.mxu2 %vm243_vm0, %v3135_v31  ;;  %v2425_v60 = vld [vmem:[#allocation2 + $0x4f0] sm:$0xf]  ;;  %v2462_v8 = vor.u32 %v2917_v3, %v2459_v4  ;;  %v2898_v3 = vld [vmem:[#allocation2 + $0x494] sm:$0xf0] }
  0x60   :  { %2263 = vmatmul.msk.bf16.vlgmr.msra.gmra.mxu3 %vm243_vm0, %v3064_v58  ;;  %v2426_v7 = vor.u32 %v2910_v61, %v2425_v60  ;;  %v2419_v60 = vld [vmem:[#allocation2 + $0x4e8] sm:$0xf0]  ;;  %v2911_v61 = vld [vmem:[#allocation2 + $0x504] sm:$0xf]  ;;  %v2378_v4 = vor.u32 %v2898_v3, %v2377_v2  ;;  %v2885_v3 = vld [vmem:[#allocation2 + $0x1f4] sm:$0xf] }
  0x61   :  { %1189 = vmatpush.bf16.msra.mxu3 %v2458_v0  ;;  %v2438_v0 = vor.u32 %v2911_v61, %v2435_v62 }
  0x62   :  { %759 = vmatpush.bf16.msra.mxu0 %v2190_v10  ;;  %v2916_v10 = vld [vmem:[#allocation2 + $0x524] sm:$0xf0] }
  0x63   :  { %913 = vmatpush.bf16.msrb.mxu1 %v2318_v9  ;;  %v2449_v9 = vld [vmem:[#allocation2 + $0x520] sm:$0xf] }
  0x64   :  { %v2450_v13 = vor.u32 %v2916_v10, %v2449_v9  ;;  %v2525_v9 = vld [vmem:[#allocation2 + $0x1f0] sm:$0xf]  ;;  %v2886_v10 = vld [vmem:[#allocation2 + $0x1f4] sm:$0xf0] }
  0x66   :  { %760 = vmatpush.bf16.msra.mxu0 %v2182_v17  ;;  %v2441_v17 = vld [vmem:[#allocation2 + $0x510] sm:$0xf]  ;;  %1190 = vmatpush.bf16.msra.mxu3 %v2450_v13  ;;  %v2903_v13 = vld [vmem:[#allocation2 + $0x4c4] sm:$0xf] }
  0x67   :  { %914 = vmatpush.bf16.msrb.mxu1 %v2310_v16  ;;  %v2454_v16 = vor.u32 %v2915_v14, %v2451_v15  ;;  %v2442_v25 = vor.u32 %v2914_v18, %v2441_v17  ;;  %v2403_v14 = vld [vmem:[#allocation2 + $0x4c8] sm:$0xf0]  ;;  %v2526_v15 = vor.u32 %v2886_v10, %v2525_v9  ;;  %v2894_v17 = vld [vmem:[#allocation2 + $0x234] sm:$0xf0]  ;;  %v2517_v18 = vld [vmem:[#allocation2 + $0x1e0] sm:$0xf] }
  0x68   :  { %v2543_v9 = vld [vmem:[#allocation2 + $0x218] sm:$0xf0] }
  0x6a   :  { %761 = vmatpush.bf16.msra.mxu0 %v2174_v27  ;;  %v2825_v27 = vld [vmem:[#allocation2 + $0xd4] sm:$0xf]  ;;  %1191 = vmatpush.bf16.msra.mxu3 %v2442_v25  ;;  %v2395_v25 = vld [vmem:[#allocation2 + $0x4b8] sm:$0xf0] }
  0x6b   :  { %915 = vmatpush.bf16.msrb.mxu1 %v2302_v24  ;;  %v2906_v24 = vld [vmem:[#allocation2 + $0x4d4] sm:$0xf0]  ;;  %v2282_v37 = vor.u32 %v2825_v27, %v2279_v29  ;;  %v2549_v29 = vld [vmem:[#allocation2 + $0x220] sm:$0xf] }
  0x6c   :  { %v2410_v30 = vor.u32 %v2906_v24, %v2409_v23  ;;  %v2559_v23 = vld [vmem:[#allocation2 + $0x238] sm:$0xf0]  ;;  %v2901_v24 = vld [vmem:[#allocation2 + $0x4b4] sm:$0xf] }
  0x6d   :  { %762 = vmatmul.bf16.vlgmr.msra.gmra.mxu0 %v3082_v47  ;;  %v2398_v34 = vor.u32 %v2901_v24, %v2395_v25  ;;  %v2511_v24 = vld [vmem:[#allocation2 + $0x1d8] sm:$0xf0] }
  0x6e   :  { %950 = vmatpush.bf16.msrb.mxu0 %v2330_v33  ;;  %729 = vmatmul.bf16.gmra.mxu1 %v3110_v40  ;;  %v2904_v33 = vld [vmem:[#allocation2 + $0x4c4] sm:$0xf0] }
  0x6f   :  { %916 = vmatpush.bf16.msrb.mxu1 %v2294_v39  ;;  %2265 = vmatmul.msk.bf16.vlgmr.msra.gmra.mxu2 %vm243_vm0, %v3064_v58  ;;  %v2402_v39 = vor.u32 %v2904_v33, %v2401_v32  ;;  %v2882_v32 = vld [vmem:[#allocation2 + $0x1d4] sm:$0xf0]  ;;  %v2892_v33 = vld [vmem:[#allocation2 + $0x224] sm:$0xf0] }
  0x70   :  { %2264 = vmatmul.msk.bf16.gmra.mxu3 %vm243_vm0, %v3084_v52  ;;  %1227 = vmatpush.bf16.msra.mxu2 %v2462_v8  ;;  %v2896_v8 = vld [vmem:[#allocation2 + $0x484] sm:$0xf0] }
  0x71   :  { %1192 = vmatpush.bf16.msra.mxu3 %v2434_v36  ;;  %v2550_v36 = vor.u32 %v2892_v33, %v2549_v29 }
  0x72   :  { %951 = vmatpush.bf16.msrb.mxu0 %v2322_v43  ;;  %v2902_v43 = vld [vmem:[#allocation2 + $0x4b4] sm:$0xf0] }
  0x73   :  { %917 = vmatpush.bf16.msrb.mxu1 %v2286_v44  ;;  %v2909_v44 = vld [vmem:[#allocation2 + $0x4f4] sm:$0xf] }
  0x74   :  { %1228 = vmatpush.bf16.msra.mxu2 %v2454_v16  ;;  %v2430_v55 = vor.u32 %v2909_v44, %v2427_v46  ;;  %v2557_v16 = vld [vmem:[#allocation2 + $0x230] sm:$0xf] }
  0x75   :  { %v2558_v20 = vor.u32 %v2894_v17, %v2557_v16  ;;  %v2477_v16 = vld [vmem:[#allocation2 + $0x190] sm:$0xf]  ;;  %v2874_v17 = vld [vmem:[#allocation2 + $0x194] sm:$0xf0] }
  0x76   :  { %952 = vmatpush.bf16.msrb.mxu0 %v2314_v56  ;;  %v2385_v56 = vld [vmem:[#allocation2 + $0x4a0] sm:$0xf] }
  0x77   :  { %918 = vmatpush.bf16.msrb.mxu1 %v2278_v53  ;;  %v2394_v53 = vor.u32 %v2902_v43, %v2393_v42  ;;  %v2386_v63 = vor.u32 %v2900_v57, %v2385_v56  ;;  %v2541_v42 = vld [vmem:[#allocation2 + $0x210] sm:$0xf]  ;;  %v2890_v43 = vld [vmem:[#allocation2 + $0x214] sm:$0xf0]  ;;  %v2533_v56 = vld [vmem:[#allocation2 + $0x200] sm:$0xf] }
  0x78   :  { %1229 = vmatpush.bf16.msra.mxu2 %v2446_v54  ;;  %v2542_v46 = vor.u32 %v2890_v43, %v2541_v42  ;;  %v2379_v54 = vld [vmem:[#allocation2 + $0x498] sm:$0xf0]  ;;  %v2493_v57 = vld [vmem:[#allocation2 + $0x1b0] sm:$0xf]  ;;  %v2877_v43 = vld [vmem:[#allocation2 + $0x1b4] sm:$0xf] }
  0x7a   :  { %953 = vmatpush.bf16.msrb.mxu0 %v2306_v5  ;;  %v2905_v5 = vld [vmem:[#allocation2 + $0x4d4] sm:$0xf] }
  0x7b   :  { %919 = vmatpush.bf16.msrb.mxu1 %v2270_v1  ;;  %v2422_v1 = vor.u32 %v2907_v59, %v2419_v60  ;;  %v2414_v11 = vor.u32 %v2905_v5, %v2411_v6  ;;  %v2878_v59 = vld [vmem:[#allocation2 + $0x1b4] sm:$0xf0]  ;;  %v2888_v60 = vld [vmem:[#allocation2 + $0x204] sm:$0xf0]  ;;  %v2485_v5 = vld [vmem:[#allocation2 + $0x1a0] sm:$0xf] }
  0x7c   :  { %1230 = vmatpush.bf16.msra.mxu2 %v2438_v0  ;;  %v2371_v0 = vld [vmem:[#allocation2 + $0x488] sm:$0xf0]  ;;  %v2494_v2 = vor.u32 %v2878_v59, %v2493_v57  ;;  %v2876_v6 = vld [vmem:[#allocation2 + $0x1a4] sm:$0xf0]  ;;  %v2609_v59 = vld [vmem:[#allocation2 + $0x590] sm:$0xf] }
  0x7d   :  { %767 = vmatmul.bf16.gmra.mxu0 %v3110_v40 }
  0x7e   :  { %954 = vmatpush.bf16.msrb.mxu0 %v2298_v19  ;;  %920 = vmatmul.bf16.vlgmr.msrb.gmra.mxu1 %v3112_v45  ;;  %v2884_v19 = vld [vmem:[#allocation2 + $0x1e4] sm:$0xf0] }
  0x7f   :  { %1166 = vmatpush.bf16.msra.mxu1 %v2426_v7  ;;  %2266 = vmatmul.msk.bf16.gmra.mxu2 %vm243_vm0, %v3084_v52  ;;  %v2369_v7 = vld [vmem:[#allocation2 + $0x480] sm:$0xf]  ;;  %v2518_v27 = vor.u32 %v2884_v19, %v2517_v18 }
  0x80   :  { %2363 = vmatmul.msk.bf16.vlgmr.msrb.gmra.mxu3 %vm243_vm0, %v3114_v49  ;;  %v2370_v12 = vor.u32 %v2896_v8, %v2369_v7  ;;  %v2889_v8 = vld [vmem:[#allocation2 + $0x214] sm:$0xf] }
  0x81   :  { %1385 = vmatpush.bf16.msrb.mxu3 %v2558_v20  ;;  %v2887_v20 = vld [vmem:[#allocation2 + $0x204] sm:$0xf] }
  0x82   :  { %955 = vmatpush.bf16.msrb.mxu0 %v2290_v26  ;;  %v2562_v26 = vor.u32 %v2893_v22, %v2559_v23  ;;  %v2478_v22 = vor.u32 %v2874_v17, %v2477_v16  ;;  %v2881_v23 = vld [vmem:[#allocation2 + $0x1d4] sm:$0xf]  ;;  %v2479_v16 = vld [vmem:[#allocation2 + $0x198] sm:$0xf0] }
  0x83   :  { %1167 = vmatpush.bf16.msra.mxu1 %v2418_v21  ;;  %v2406_v21 = vor.u32 %v2903_v13, %v2403_v14  ;;  %v2883_v13 = vld [vmem:[#allocation2 + $0x1e4] sm:$0xf]  ;;  %v2519_v14 = vld [vmem:[#allocation2 + $0x1e8] sm:$0xf0]  ;;  %v2514_v29 = vor.u32 %v2881_v23, %v2511_v24  ;;  %v2593_v23 = vld [vmem:[#allocation2 + $0x570] sm:$0xf] }
  0x84   :  { %v2522_v19 = vor.u32 %v2883_v13, %v2519_v14  ;;  %v2952_v13 = vld [vmem:[#allocation2 + $0x584] sm:$0xf0]  ;;  %v2963_v14 = vld [vmem:[#allocation2 + $0x5e4] sm:$0xf]  ;;  %v2950_v24 = vld [vmem:[#allocation2 + $0x574] sm:$0xf0] }
  0x85   :  { %1386 = vmatpush.bf16.msrb.mxu3 %v2550_v36 }
  0x86   :  { %956 = vmatpush.bf16.msrb.mxu0 %v2282_v37  ;;  %v2891_v37 = vld [vmem:[#allocation2 + $0x224] sm:$0xf] }
  0x87   :  { %1168 = vmatpush.bf16.msra.mxu1 %v2410_v30  ;;  %v2509_v30 = vld [vmem:[#allocation2 + $0x1d0] sm:$0xf]  ;;  %v2554_v41 = vor.u32 %v2891_v37, %v2551_v38 }
  0x88   :  { %v2510_v44 = vor.u32 %v2882_v32, %v2509_v30  ;;  %v2625_v30 = vld [vmem:[#allocation2 + $0x5b0] sm:$0xf]  ;;  %v2958_v32 = vld [vmem:[#allocation2 + $0x5b4] sm:$0xf0] }
  0x89   :  { %1387 = vmatpush.bf16.msrb.mxu3 %v2542_v46  ;;  %v2956_v46 = vld [vmem:[#allocation2 + $0x5a4] sm:$0xf0] }
  0x8a   :  { %957 = vmatpush.bf16.msrb.mxu0 %v2274_v51 }
  0x8b   :  { %1169 = vmatpush.bf16.msra.mxu1 %v2402_v39  ;;  %v2387_v39 = vld [vmem:[#allocation2 + $0x4a8] sm:$0xf0] }
  0x8c   :  { %v2390_v51 = vor.u32 %v2899_v35, %v2387_v39  ;;  %v2503_v35 = vld [vmem:[#allocation2 + $0x1c8] sm:$0xf0] }
  0x8d   :  { %958 = vmatmul.bf16.vlgmr.msrb.gmra.mxu0 %v3112_v45 }
  0x8e   :  { %1204 = vmatpush.bf16.msra.mxu0 %v2430_v55  ;;  %925 = vmatmul.bf16.gmra.mxu1 %v3133_v28  ;;  %v2502_v55 = vor.u32 %v2880_v50, %v2501_v48  ;;  %v2495_v48 = vld [vmem:[#allocation2 + $0x1b8] sm:$0xf0]  ;;  %v2657_v50 = vld [vmem:[#allocation2 + $0x5f0] sm:$0xf] }
  0x8f   :  { %1170 = vmatpush.bf16.msra.mxu1 %v2394_v53  ;;  %2365 = vmatmul.msk.bf16.vlgmr.msrb.gmra.mxu2 %vm243_vm0, %v3114_v49  ;;  %v2897_v53 = vld [vmem:[#allocation2 + $0x494] sm:$0xf]  ;;  %v2498_v57 = vor.u32 %v2877_v43, %v2495_v48  ;;  %v2594_v43 = vor.u32 %v2950_v24, %v2593_v23  ;;  %v2717_v23 = vld [vmem:[#allocation2 + $0x2a0] sm:$0xf]  ;;  %v2932_v24 = vld [vmem:[#allocation2 + $0x2a4] sm:$0xf0] }
  0x90   :  { %2364 = vmatmul.msk.bf16.gmra.mxu3 %vm243_vm0, %v3135_v31  ;;  %1423 = vmatpush.bf16.msrb.mxu2 %v2562_v26  ;;  %v2382_v62 = vor.u32 %v2897_v53, %v2379_v54  ;;  %v2469_v26 = vld [vmem:[#allocation2 + $0x180] sm:$0xf] }
  0x92   :  { %1205 = vmatpush.bf16.msra.mxu0 %v2422_v1  ;;  %v2534_v1 = vor.u32 %v2888_v60, %v2533_v56  ;;  %v2659_v56 = vld [vmem:[#allocation2 + $0x5f8] sm:$0xf0]  ;;  %v2954_v60 = vld [vmem:[#allocation2 + $0x594] sm:$0xf0] }
  0x93   :  { %1171 = vmatpush.bf16.msra.mxu1 %v2386_v63  ;;  %v2895_v63 = vld [vmem:[#allocation2 + $0x484] sm:$0xf] }
  0x94   :  { %1424 = vmatpush.bf16.msrb.mxu2 %v2554_v41  ;;  %v2374_v7 = vor.u32 %v2895_v63, %v2371_v0  ;;  %1388 = vmatpush.bf16.msrb.mxu3 %v2534_v1  ;;  %v2626_v41 = vor.u32 %v2958_v32, %v2625_v30  ;;  %v2875_v63 = vld [vmem:[#allocation2 + $0x1a4] sm:$0xf]  ;;  %v2487_v0 = vld [vmem:[#allocation2 + $0x1a8] sm:$0xf0]  ;;  %v2649_v1 = vld [vmem:[#allocation2 + $0x5e0] sm:$0xf] }
  0x96   :  { %1206 = vmatpush.bf16.msra.mxu0 %v2414_v11  ;;  %v2546_v11 = vor.u32 %v2889_v8, %v2543_v9  ;;  %v2873_v8 = vld [vmem:[#allocation2 + $0x194] sm:$0xf]  ;;  %v2610_v9 = vor.u32 %v2954_v60, %v2609_v59 }
  0x97   :  { %1172 = vmatpush.bf16.msra.mxu1 %v2378_v4  ;;  %v2527_v4 = vld [vmem:[#allocation2 + $0x1f8] sm:$0xf0] }
  0x98   :  { %v2530_v10 = vor.u32 %v2885_v3, %v2527_v4  ;;  %1425 = vmatpush.bf16.msrb.mxu2 %v2546_v11 }
  0x9a   :  { %1207 = vmatpush.bf16.msra.mxu0 %v2406_v21  ;;  %v2535_v21 = vld [vmem:[#allocation2 + $0x208] sm:$0xf0] }
  0x9b   :  { %1173 = vmatpush.bf16.msra.mxu1 %v2370_v12  ;;  %v278_v61 = vpop.f32.mrf.mxu1  ;;  %v2486_v12 = vor.u32 %v2876_v6, %v2485_v5  ;;  %v2538_v25 = vor.u32 %v2887_v20, %v2535_v21  ;;  %v2964_v5 = vld [vmem:[#allocation2 + $0x5e4] sm:$0xf0]  ;;  %v2962_v20 = vld [vmem:[#allocation2 + $0x5d4] sm:$0xf0] }
  0x9c   :  { %v2650_v11 = vor.u32 %v2964_v5, %v2649_v1  ;;  %v2953_v1 = vld [vmem:[#allocation2 + $0x594] sm:$0xf] }
  0x9d   :  { %963 = vmatmul.bf16.gmra.mxu0 %v3133_v28  ;;  %1426 = vmatpush.bf16.msrb.mxu2 %v2538_v25 }
  0x9e   :  { %1208 = vmatpush.bf16.msra.mxu0 %v2398_v34  ;;  %1174 = vmatmul.bf16.vlgmr.msra.gmra.mxu1 %v3082_v47  ;;  %v2879_v34 = vld [vmem:[#allocation2 + $0x1c4] sm:$0xf] }
  0x9f   :  { %1362 = vmatpush.bf16.msrb.mxu1 %v2526_v15  ;;  %2366 = vmatmul.msk.bf16.gmra.mxu2 %vm243_vm0, %v3135_v31  ;;  %v2506_v42 = vor.u32 %v2879_v34, %v2503_v35  ;;  %v2957_v34 = vld [vmem:[#allocation2 + $0x5b4] sm:$0xf]  ;;  %v2627_v35 = vld [vmem:[#allocation2 + $0x5b8] sm:$0xf0] }
  0xa0   :  { %2463 = vmatmul.msk.bf16.vlgmr.msra.gmra.mxu3 %vm243_vm0, %v3064_v58 }
  0xa2   :  { %1209 = vmatpush.bf16.msra.mxu0 %v2390_v51  ;;  %v2966_v51 = vld [vmem:[#allocation2 + $0x5f4] sm:$0xf0] }
  0xa3   :  { %1363 = vmatpush.bf16.msrb.mxu1 %v2518_v27  ;;  %v316_v15 = vpop.f32.mrf.mxu3  ;;  %v280_v18 = vpop.f32.mrf.mxu1  ;;  %v2872_v27 = vld [vmem:[#allocation2 + $0x184] sm:$0xf0]  ;;  %v2658_v53 = vor.u32 %v2966_v51, %v2657_v50  ;;  %v2585_v50 = vld [vmem:[#allocation2 + $0x560] sm:$0xf]  ;;  %v2630_v51 = vor.u32 %v2957_v34, %v2627_v35 }
  0xa4   :  { %v2470_v33 = vor.u32 %v2872_v27, %v2469_v26  ;;  %v2871_v26 = vld [vmem:[#allocation2 + $0x184] sm:$0xf]  ;;  %v2471_v27 = vld [vmem:[#allocation2 + $0x188] sm:$0xf0] }
  0xa5   :  { %1639 = vmatpush.bf16.msra.mxu3 %v2658_v53  ;;  %v2474_v48 = vor.u32 %v2871_v26, %v2471_v27  ;;  %v2619_v53 = vld [vmem:[#allocation2 + $0x5a8] sm:$0xf0] }
  0xa6   :  { %1210 = vmatpush.bf16.msra.mxu0 %v2382_v62 }
  0xa7   :  { %1364 = vmatpush.bf16.msrb.mxu1 %v2510_v44  ;;  %v2617_v44 = vld [vmem:[#allocation2 + $0x5a0] sm:$0xf] }
  0xa8   :  { %v2618_v54 = vor.u32 %v2956_v46, %v2617_v44 }
  0xa9   :  { %1640 = vmatpush.bf16.msra.mxu3 %v2650_v11  ;;  %v2959_v11 = vld [vmem:[#allocation2 + $0x5c4] sm:$0xf] }
  0xaa   :  { %1211 = vmatpush.bf16.msra.mxu0 %v2374_v7  ;;  %v259_v37 = vpop.f32.mrf.mxu0 }
  0xab   :  { %1365 = vmatpush.bf16.msrb.mxu1 %v2502_v55  ;;  %v3173_v36 = vpop.f32.mrf.mxu3  ;;  %v3175_v38 = vadd.f32 %v278_v61, %v259_v37  ;;  %v3177_v39 = vpop.f32.mrf.mxu1  ;;  %v2965_v55 = vld [vmem:[#allocation2 + $0x5f4] sm:$0xf]  ;;  %v2960_v37 = vld [vmem:[#allocation2 + $0x5c4] sm:$0xf0] }
  0xac   :  { %v2662_v61 = vor.u32 %v2965_v55, %v2659_v56  ;;  %v2643_v55 = vld [vmem:[#allocation2 + $0x5d8] sm:$0xf0]  ;;  %v2577_v56 = vld [vmem:[#allocation2 + $0x550] sm:$0xf] }
  0xad   :  { %1212 = vmatmul.bf16.vlgmr.msra.gmra.mxu0 %v3082_v47 }
  0xae   :  { %1400 = vmatpush.bf16.msrb.mxu0 %v2530_v10  ;;  %1179 = vmatmul.bf16.gmra.mxu1 %v3110_v40  ;;  %v2601_v10 = vld [vmem:[#allocation2 + $0x580] sm:$0xf] }
  0xaf   :  { %1366 = vmatpush.bf16.msrb.mxu1 %v2494_v2  ;;  %2465 = vmatmul.msk.bf16.vlgmr.msra.gmra.mxu2 %vm243_vm0, %v3064_v58 }
  0xb0   :  { %2464 = vmatmul.msk.bf16.gmra.mxu3 %vm243_vm0, %v3084_v52  ;;  %1677 = vmatpush.bf16.msra.mxu2 %v2662_v61 }
  0xb2   :  { %1401 = vmatpush.bf16.msrb.mxu0 %v2522_v19  ;;  %v297_v62 = vpop.f32.mrf.mxu2  ;;  %v261_v4 = vpop.f32.mrf.mxu0  ;;  %v2641_v19 = vld [vmem:[#allocation2 + $0x5d0] sm:$0xf] }
  0xb3   :  { %1367 = vmatpush.bf16.msrb.mxu1 %v2486_v12  ;;  %v3185_v2 = vadd.f32 %v316_v15, %v297_v62  ;;  %v3187_v3 = vpop.f32.mrf.mxu3  ;;  %v3189_v6 = vadd.f32 %v280_v18, %v261_v4  ;;  %v3191_v7 = vpop.f32.mrf.mxu1  ;;  %v2490_v12 = vor.u32 %v2875_v63, %v2487_v0  ;;  %v2651_v15 = vld [vmem:[#allocation2 + $0x5e8] sm:$0xf0]  ;;  %v2642_v21 = vor.u32 %v2962_v20, %v2641_v19  ;;  %v2611_v4 = vld [vmem:[#allocation2 + $0x598] sm:$0xf0]  ;;  %v2934_v19 = vld [vmem:[#allocation2 + $0x2b4] sm:$0xf0] }
  0xb4   :  { %v2654_v17 = vor.u32 %v2963_v14, %v2651_v15  ;;  %v2602_v18 = vor.u32 %v2952_v13, %v2601_v10  ;;  %v2569_v14 = vld [vmem:[#allocation2 + $0x540] sm:$0xf] }
  0xb5   :  { %1641 = vmatpush.bf16.msra.mxu3 %v2642_v21  ;;  %v2951_v21 = vld [vmem:[#allocation2 + $0x584] sm:$0xf] }
  0xb6   :  { %1402 = vmatpush.bf16.msrb.mxu0 %v2514_v29  ;;  %1678 = vmatpush.bf16.msra.mxu2 %v2654_v17  ;;  %v2633_v29 = vld [vmem:[#allocation2 + $0x5c0] sm:$0xf]  ;;  %v2725_v17 = vld [vmem:[#allocation2 + $0x2b0] sm:$0xf] }
  0xb7   :  { %1368 = vmatpush.bf16.msrb.mxu1 %v2478_v22  ;;  %v2482_v22 = vor.u32 %v2873_v8, %v2479_v16  ;;  %v2634_v44 = vor.u32 %v2960_v37, %v2633_v29  ;;  %v2614_v16 = vor.u32 %v2953_v1, %v2611_v4  ;;  %v2949_v37 = vld [vmem:[#allocation2 + $0x574] sm:$0xf] }
  0xb9   :  { %1642 = vmatpush.bf16.msra.mxu3 %v2634_v44  ;;  %v2709_v44 = vld [vmem:[#allocation2 + $0x290] sm:$0xf] }
  0xba   :  { %1403 = vmatpush.bf16.msrb.mxu0 %v2506_v42  ;;  %v299_v25 = vpop.f32.mrf.mxu2 }
  0xbb   :  { %1369 = vmatpush.bf16.msrb.mxu1 %v2470_v33  ;;  %v3194_v30 = vadd.f32 %v3173_v36, %v299_v25  ;;  %v3196_v32 = vpop.f32.mrf.mxu3  ;;  %v264_v33 = vpop.f32.mrf.mxu0  ;;  %v2948_v36 = vld [vmem:[#allocation2 + $0x564] sm:$0xf0] }
  0xbc   :  { %v479_v42 = vpop.f32.mrf.mxu1 }
  0xbd   :  { %v480_v46 = vadd.f32 %v479_v42, %v3175_v38  ;;  %1217 = vmatmul.bf16.gmra.mxu0 %v3110_v40  ;;  %v2586_v38 = vor.u32 %v2948_v36, %v2585_v50  ;;  %v2595_v42 = vld [vmem:[#allocation2 + $0x578] sm:$0xf0]  ;;  %v2941_v50 = vld [vmem:[#allocation2 + $0x2f4] sm:$0xf] }
  0xbe   :  { %1404 = vmatpush.bf16.msrb.mxu0 %v2498_v57  ;;  %1370 = vmatmul.bf16.vlgmr.msrb.gmra.mxu1 %v3112_v45  ;;  %v2946_v57 = vld [vmem:[#allocation2 + $0x554] sm:$0xf0]  ;;  %v2759_v36 = vld [vmem:[#allocation2 + $0x2f8] sm:$0xf0] }
  0xbf   :  { %1616 = vmatpush.bf16.msra.mxu1 %v2626_v41  ;;  %v3199_v41 = vadd.f32 %v3177_v39, %v264_v33  ;;  %2466 = vmatmul.msk.bf16.gmra.mxu2 %vm243_vm0, %v3084_v52  ;;  %v2955_v39 = vld [vmem:[#allocation2 + $0x5a4] sm:$0xf]  ;;  %v2578_v10 = vor.u32 %v2946_v57, %v2577_v56  ;;  %v2928_v56 = vld [vmem:[#allocation2 + $0x284] sm:$0xf0]  ;;  %v2749_v57 = vld [vmem:[#allocation2 + $0x2e0] sm:$0xf] }
  0xc0   :  { %2563 = vmatmul.msk.bf16.vlgmr.msrb.gmra.mxu3 %vm243_vm0, %v3114_v49  ;;  %v2622_v61 = vor.u32 %v2955_v39, %v2619_v53  ;;  %v2587_v39 = vld [vmem:[#allocation2 + $0x568] sm:$0xf0] }
  0xc2   :  { %1405 = vmatpush.bf16.msrb.mxu0 %v2490_v12  ;;  %v302_v60 = vpop.f32.mrf.mxu2  ;;  %v2635_v12 = vld [vmem:[#allocation2 + $0x5c8] sm:$0xf0] }
  0xc3   :  { %1617 = vmatpush.bf16.msra.mxu1 %v2618_v54  ;;  %v2961_v54 = vld [vmem:[#allocation2 + $0x5d4] sm:$0xf]  ;;  %v3209_v62 = vadd.f32 %v3187_v3, %v302_v60  ;;  %v498_v63 = vpop.f32.mrf.mxu3  ;;  %v266_v0 = vpop.f32.mrf.mxu0  ;;  %v2944_v3 = vld [vmem:[#allocation2 + $0x544] sm:$0xf0]  ;;  %v2638_v15 = vor.u32 %v2959_v11, %v2635_v12  ;;  %v2939_v12 = vld [vmem:[#allocation2 + $0x2e4] sm:$0xf] }
  0xc4   :  { %v2646_v59 = vor.u32 %v2961_v54, %v2643_v55  ;;  %v3211_v5 = vadd.f32 %v498_v63, %v480_v46  ;;  %v3214_v8 = vadd.f32 %v3191_v7, %v266_v0  ;;  %v2570_v20 = vor.u32 %v2944_v3, %v2569_v14  ;;  %v2603_v7 = vld [vmem:[#allocation2 + $0x588] sm:$0xf0]  ;;  %v2757_v46 = vld [vmem:[#allocation2 + $0x2f0] sm:$0xf]  ;;  %v2701_v55 = vld [vmem:[#allocation2 + $0x280] sm:$0xf] }
  0xc5   :  { %v2606_v34 = vor.u32 %v2951_v21, %v2603_v7  ;;  %v2940_v63 = vld [vmem:[#allocation2 + $0x2e4] sm:$0xf0]  ;;  %v2579_v3 = vld [vmem:[#allocation2 + $0x558] sm:$0xf0]  ;;  %v2926_v21 = vld [vmem:[#allocation2 + $0x274] sm:$0xf0] }
  0xc6   :  { %1406 = vmatpush.bf16.msrb.mxu0 %v2482_v22  ;;  %1679 = vmatpush.bf16.msra.mxu2 %v2646_v59  ;;  %v2750_v11 = vor.u32 %v2940_v63, %v2749_v57  ;;  %v2920_v63 = vld [vmem:[#allocation2 + $0x244] sm:$0xf0] }
  0xc7   :  { %1618 = vmatpush.bf16.msra.mxu1 %v2610_v9  ;;  %v481_v9 = vpop.f32.mrf.mxu1 }
  0xc8   :  { %v482_v13 = vadd.f32 %v481_v9, %v3189_v6 }
  0xca   :  { %1407 = vmatpush.bf16.msrb.mxu0 %v2474_v48  ;;  %1680 = vmatpush.bf16.msra.mxu2 %v2638_v15  ;;  %v304_v22 = vpop.f32.mrf.mxu2  ;;  %v2942_v48 = vld [vmem:[#allocation2 + $0x2f4] sm:$0xf0]  ;;  %v2702_v15 = vor.u32 %v2928_v56, %v2701_v55  ;;  %v2929_v55 = vld [vmem:[#allocation2 + $0x294] sm:$0xf] }
  0xcb   :  { %1619 = vmatpush.bf16.msra.mxu1 %v2602_v18  ;;  %v2726_v18 = vor.u32 %v2934_v19, %v2725_v17  ;;  %v3218_v25 = vadd.f32 %v3196_v32, %v304_v22  ;;  %v500_v6 = vpop.f32.mrf.mxu3  ;;  %v517_v26 = vpop.f32.mrf.mxu0  ;;  %v2930_v32 = vld [vmem:[#allocation2 + $0x294] sm:$0xf0]  ;;  %v2741_v17 = vld [vmem:[#allocation2 + $0x2d0] sm:$0xf]  ;;  %v2571_v22 = vld [vmem:[#allocation2 + $0x548] sm:$0xf0] }
  0xcc   :  { %v3220_v27 = vadd.f32 %v500_v6, %v482_v13  ;;  %v518_v33 = vadd.f32 %v517_v26, %v3185_v2  ;;  %v2758_v2 = vor.u32 %v2942_v48, %v2757_v46  ;;  %v2710_v53 = vor.u32 %v2930_v32, %v2709_v44  ;;  %v2751_v13 = vld [vmem:[#allocation2 + $0x2e8] sm:$0xf0]  ;;  %v2938_v19 = vld [vmem:[#allocation2 + $0x2d4] sm:$0xf0]  ;;  %v2727_v6 = vld [vmem:[#allocation2 + $0x2b8] sm:$0xf0] }
  0xcd   :  { %1408 = vmatmul.bf16.vlgmr.msrb.gmra.mxu0 %v3112_v45  ;;  %v2742_v7 = vor.u32 %v2938_v19, %v2741_v17  ;;  %v2685_v26 = vld [vmem:[#allocation2 + $0x260] sm:$0xf]  ;;  %v2735_v17 = vld [vmem:[#allocation2 + $0x2c8] sm:$0xf0] }
  0xce   :  { %1654 = vmatpush.bf16.msra.mxu0 %v2630_v51  ;;  %1375 = vmatmul.bf16.gmra.mxu1 %v3133_v28  ;;  %v2947_v51 = vld [vmem:[#allocation2 + $0x564] sm:$0xf] }
  0xcf   :  { %1620 = vmatpush.bf16.msra.mxu1 %v2594_v43  ;;  %v484_v29 = vpop.f32.mrf.mxu1  ;;  %v2718_v43 = vor.u32 %v2932_v24, %v2717_v23  ;;  %2565 = vmatmul.msk.bf16.vlgmr.msrb.gmra.mxu2 %vm243_vm0, %v3114_v49  ;;  %v2590_v9 = vor.u32 %v2947_v51, %v2587_v39  ;;  %v2933_v24 = vld [vmem:[#allocation2 + $0x2b4] sm:$0xf]  ;;  %v2677_v51 = vld [vmem:[#allocation2 + $0x250] sm:$0xf]  ;;  %v2922_v39 = vld [vmem:[#allocation2 + $0x254] sm:$0xf0] }
  0xd0   :  { %v485_v35 = vadd.f32 %v484_v29, %v3199_v41  ;;  %2564 = vmatmul.msk.bf16.gmra.mxu3 %vm243_vm0, %v3135_v31  ;;  %v2598_v41 = vor.u32 %v2949_v37, %v2595_v42  ;;  %v2924_v29 = vld [vmem:[#allocation2 + $0x264] sm:$0xf0] }
  0xd1   :  { %1835 = vmatpush.bf16.msrb.mxu3 %v2758_v2  ;;  %v2936_v42 = vld [vmem:[#allocation2 + $0x2c4] sm:$0xf0]  ;;  %v2730_v2 = vor.u32 %v2933_v24, %v2727_v6 }
  0xd2   :  { %1655 = vmatpush.bf16.msra.mxu0 %v2622_v61  ;;  %v536_v54 = vpop.f32.mrf.mxu2 }
  0xd3   :  { %1621 = vmatpush.bf16.msra.mxu1 %v2586_v38  ;;  %v2762_v38 = vor.u32 %v2941_v50, %v2759_v36  ;;  %v503_v59 = vpop.f32.mrf.mxu3  ;;  %v3230_v60 = vadd.f32 %v536_v54, %v518_v33  ;;  %v519_v61 = vpop.f32.mrf.mxu0  ;;  %v2733_v33 = vld [vmem:[#allocation2 + $0x2c0] sm:$0xf]  ;;  %v2931_v50 = vld [vmem:[#allocation2 + $0x2a4] sm:$0xf]  ;;  %v2719_v36 = vld [vmem:[#allocation2 + $0x2a8] sm:$0xf0]  ;;  %v2678_v54 = vor.u32 %v2922_v39, %v2677_v51 }
  0xd4   :  { %v3232_v0 = vadd.f32 %v503_v59, %v485_v35  ;;  %v520_v4 = vadd.f32 %v519_v61, %v3194_v30  ;;  %v2734_v48 = vor.u32 %v2936_v42, %v2733_v33  ;;  %v2711_v59 = vld [vmem:[#allocation2 + $0x298] sm:$0xf0]  ;;  %v2669_v61 = vld [vmem:[#allocation2 + $0x240] sm:$0xf] }
  0xd5   :  { %1873 = vmatpush.bf16.msrb.mxu2 %v2762_v38  ;;  %1836 = vmatpush.bf16.msrb.mxu3 %v2750_v11  ;;  %v2722_v38 = vor.u32 %v2931_v50, %v2719_v36 }
  0xd6   :  { %1656 = vmatpush.bf16.msra.mxu0 %v2614_v16  ;;  %v2754_v16 = vor.u32 %v2939_v12, %v2751_v13  ;;  %v2714_v13 = vor.u32 %v2929_v55, %v2711_v59 }
  0xd7   :  { %1622 = vmatpush.bf16.msra.mxu1 %v2578_v10  ;;  %v486_v1 = vpop.f32.mrf.mxu1  ;;  %v2945_v10 = vld [vmem:[#allocation2 + $0x554] sm:$0xf] }
  0xd8   :  { %v487_v14 = vadd.f32 %v486_v1, %v3214_v8  ;;  %v2582_v30 = vor.u32 %v2945_v10, %v2579_v3  ;;  %v2927_v3 = vld [vmem:[#allocation2 + $0x284] sm:$0xf] }
  0xd9   :  { %1874 = vmatpush.bf16.msrb.mxu2 %v2754_v16  ;;  %1837 = vmatpush.bf16.msrb.mxu3 %v2742_v7  ;;  %v2935_v16 = vld [vmem:[#allocation2 + $0x2c4] sm:$0xf]  ;;  %v2925_v7 = vld [vmem:[#allocation2 + $0x274] sm:$0xf] }
  0xda   :  { %1657 = vmatpush.bf16.msra.mxu0 %v2606_v34  ;;  %v538_v8 = vpop.f32.mrf.mxu2  ;;  %v2738_v19 = vor.u32 %v2935_v16, %v2735_v17 }
  0xdb   :  { %1623 = vmatpush.bf16.msra.mxu1 %v2570_v20  ;;  %v2693_v20 = vld [vmem:[#allocation2 + $0x270] sm:$0xf]  ;;  %v505_v34 = vpop.f32.mrf.mxu3  ;;  %v3236_v35 = vadd.f32 %v538_v8, %v520_v4  ;;  %v522_v37 = vpop.f32.mrf.mxu0  ;;  %v2923_v8 = vld [vmem:[#allocation2 + $0x264] sm:$0xf] }
  0xdc   :  { %v2694_v23 = vor.u32 %v2926_v21, %v2693_v20  ;;  %v523_v44 = vadd.f32 %v522_v37, %v3209_v62  ;;  %v2937_v62 = vld [vmem:[#allocation2 + $0x2d4] sm:$0xf]  ;;  %v2679_v37 = vld [vmem:[#allocation2 + $0x258] sm:$0xf0] }
  0xdd   :  { %1413 = vmatmul.bf16.gmra.mxu0 %v3133_v28  ;;  %1838 = vmatpush.bf16.msrb.mxu3 %v2734_v48 }
  0xde   :  { %1658 = vmatpush.bf16.msra.mxu0 %v2598_v41  ;;  %v2686_v41 = vor.u32 %v2924_v29, %v2685_v26  ;;  %1624 = vmatmul.bf16.vlgmr.msra.gmra.mxu1 %v3082_v47  ;;  %v2687_v26 = vld [vmem:[#allocation2 + $0x268] sm:$0xf0] }
  0xdf   :  { %1812 = vmatpush.bf16.msrb.mxu1 %v2726_v18  ;;  %v2943_v18 = vld [vmem:[#allocation2 + $0x544] sm:$0xf]  ;;  %v725_v32 = vpop.f32.mrf.mxu1  ;;  %2566 = vmatmul.msk.bf16.gmra.mxu2 %vm243_vm0, %v3135_v31  ;;  %v2690_v29 = vor.u32 %v2923_v8, %v2687_v26 }
  0xe0   :  { %v2574_v46 = vor.u32 %v2943_v18, %v2571_v22  ;;  %2663 = vmatmul.msk.bf16.vlgmr.msra.gmra.mxu3 %vm243_vm0, %v3064_v58 }
  0xe2   :  { %1659 = vmatpush.bf16.msra.mxu0 %v2590_v9  ;;  %v541_v57 = vpop.f32.mrf.mxu2 }
  0xe3   :  { %1813 = vmatpush.bf16.msrb.mxu1 %v2718_v43  ;;  %v3238_v43 = vadd.f32 %v505_v34, %v487_v14  ;;  %v3247_v1 = vadd.f32 %v541_v57, %v523_v44  ;;  %v744_v4 = vpop.f32.mrf.mxu3  ;;  %v524_v9 = vpop.f32.mrf.mxu0  ;;  %v2670_v14 = vor.u32 %v2920_v63, %v2669_v61  ;;  %v2921_v34 = vld [vmem:[#allocation2 + $0x254] sm:$0xf] }
  0xe4   :  { %v745_v10 = vadd.f32 %v744_v4, %v725_v32  ;;  %v525_v11 = vadd.f32 %v524_v9, %v3218_v25  ;;  %v2682_v48 = vor.u32 %v2921_v34, %v2679_v37 }
  0xe6   :  { %1660 = vmatpush.bf16.msra.mxu0 %v2582_v30  ;;  %v2695_v30 = vld [vmem:[#allocation2 + $0x278] sm:$0xf0] }
  0xe7   :  { %1814 = vmatpush.bf16.msrb.mxu1 %v2710_v53  ;;  %v2743_v53 = vld [vmem:[#allocation2 + $0x2d8] sm:$0xf0]  ;;  %v727_v12 = vpop.f32.mrf.mxu1  ;;  %v2698_v6 = vor.u32 %v2925_v7, %v2695_v30 }
  0xe8   :  { %v2746_v56 = vor.u32 %v2937_v62, %v2743_v53 }
  0xea   :  { %1661 = vmatpush.bf16.msra.mxu0 %v2574_v46  ;;  %1875 = vmatpush.bf16.msrb.mxu2 %v2746_v56  ;;  %v543_v21 = vpop.f32.mrf.mxu2 }
  0xeb   :  { %1815 = vmatpush.bf16.msrb.mxu1 %v2702_v15  ;;  %v2703_v15 = vld [vmem:[#allocation2 + $0x288] sm:$0xf0]  ;;  %v3250_v18 = vadd.f32 %v543_v21, %v525_v11  ;;  %v746_v25 = vpop.f32.mrf.mxu3  ;;  %v763_v22 = vpop.f32.mrf.mxu0 }
  0xec   :  { %v2706_v20 = vor.u32 %v2927_v3, %v2703_v15 }
  0xed   :  { %1662 = vmatmul.bf16.vlgmr.msra.gmra.mxu0 %v3082_v47 }
  0xee   :  { %1850 = vmatpush.bf16.msrb.mxu0 %v2730_v2  ;;  %1876 = vmatpush.bf16.msrb.mxu2 %v2738_v19  ;;  %v2919_v2 = vld [vmem:[#allocation2 + $0x244] sm:$0xf] }
  0xef   :  { %1816 = vmatpush.bf16.msrb.mxu1 %v2694_v23  ;;  %v747_v23 = vadd.f32 %v746_v25, %v727_v12  ;;  %v730_v24 = vpop.f32.mrf.mxu1  ;;  %2665 = vmatmul.msk.bf16.vlgmr.msra.gmra.mxu2 %vm243_vm0, %v3064_v58 }
  0xf0   :  { %1629 = vmatmul.bf16.gmra.mxu1 %v3110_v40  ;;  %2664 = vmatmul.msk.bf16.gmra.mxu3 %vm243_vm0, %v3084_v52 }
  0xf2   :  { %1851 = vmatpush.bf16.msrb.mxu0 %v2722_v38  ;;  %v782_v33 = vpop.f32.mrf.mxu2 }
  0xf3   :  { %1817 = vmatpush.bf16.msrb.mxu1 %v2686_v41  ;;  %v749_v42 = vpop.f32.mrf.mxu3  ;;  %v783_v44 = vadd.f32 %v782_v33, %v763_v22  ;;  %v765_v32 = vpop.f32.mrf.mxu0  ;;  %v2671_v41 = vld [vmem:[#allocation2 + $0x248] sm:$0xf0] }
  0xf4   :  { %v750_v46 = vadd.f32 %v749_v42, %v730_v24  ;;  %v2674_v50 = vor.u32 %v2919_v2, %v2671_v41 }
  0xf6   :  { %1852 = vmatpush.bf16.msrb.mxu0 %v2714_v13 }
  0xf7   :  { %1818 = vmatpush.bf16.msrb.mxu1 %v2678_v54  ;;  %v732_v47 = vpop.f32.mrf.mxu1 }
  0xfa   :  { %1853 = vmatpush.bf16.msrb.mxu0 %v2706_v20  ;;  %v784_v58 = vpop.f32.mrf.mxu2 }
  0xfb   :  { %1819 = vmatpush.bf16.msrb.mxu1 %v2670_v14  ;;  %v751_v36 = vpop.f32.mrf.mxu3  ;;  %v785_v51 = vadd.f32 %v784_v58, %v765_v32  ;;  %v768_v39 = vpop.f32.mrf.mxu0 }
  0xfc   :  { %v752_v62 = vadd.f32 %v751_v36, %v732_v47 }
  0xfd   :  { %1667 = vmatmul.bf16.gmra.mxu0 %v3110_v40 }
  0xfe   :  { %1854 = vmatpush.bf16.msrb.mxu0 %v2698_v6 }
  0xff   :  { %v921_v53 = vpop.f32.mrf.mxu1  ;;  %2666 = vmatmul.msk.bf16.gmra.mxu2 %vm243_vm0, %v3084_v52 }
 0x100   :  { %v922_v38 = vadd.f32 %v921_v53, %v745_v10  ;;  %1820 = vmatmul.bf16.vlgmr.msrb.gmra.mxu1 %v3112_v45  ;;  %2763 = vmatmul.msk.bf16.vlgmr.msrb.gmra.mxu3 %vm243_vm0, %v3114_v49 }
 0x102   :  { %1855 = vmatpush.bf16.msrb.mxu0 %v2690_v29  ;;  %v787_v54 = vpop.f32.mrf.mxu2 }
 0x103   :  { %v788_v55 = vadd.f32 %v787_v54, %v768_v39  ;;  %v940_v56 = vpop.f32.mrf.mxu3  ;;  %v770_v57 = vpop.f32.mrf.mxu0 }
 0x104   :  { %v3264_v59 = vadd.f32 %v940_v56, %v922_v38 }
 0x106   :  { %1856 = vmatpush.bf16.msrb.mxu0 %v2682_v48  ;;  %v988_v4 = vmax.f32 %v3211_v5, %v3264_v59 }
 0x107   :  { %v923_v61 = vpop.f32.mrf.mxu1 }
 0x108   :  { %v924_v63 = vadd.f32 %v923_v61, %v747_v23 }
 0x10a   :  { %1857 = vmatpush.bf16.msrb.mxu0 %v2674_v50  ;;  %v789_v40 = vpop.f32.mrf.mxu2 }
 0x10b   :  { %v790_v9 = vadd.f32 %v789_v40, %v770_v57  ;;  %v942_v10 = vpop.f32.mrf.mxu3  ;;  %v959_v52 = vpop.f32.mrf.mxu0 }
 0x10c   :  { %v3268_v11 = vadd.f32 %v942_v10, %v924_v63  ;;  %v960_v13 = vadd.f32 %v959_v52, %v783_v44 }
 0x10d   :  { %1858 = vmatmul.bf16.vlgmr.msrb.gmra.mxu0 %v3112_v45 }
 0x10e   :  { %v990_v3 = vmax.f32 %v3220_v27, %v3268_v11 }
 0x10f   :  { %v926_v12 = vpop.f32.mrf.mxu1  ;;  %2765 = vmatmul.msk.bf16.vlgmr.msrb.gmra.mxu2 %vm243_vm0, %v3114_v49 }
 0x110   :  { %v927_v14 = vadd.f32 %v926_v12, %v750_v46  ;;  %1825 = vmatmul.bf16.gmra.mxu1 %v3133_v28  ;;  %2764 = vmatmul.msk.bf16.gmra.mxu3 %vm243_vm0, %v3135_v31 }
 0x112   :  { %v978_v15 = vpop.f32.mrf.mxu2 }
 0x113   :  { %v945_v16 = vpop.f32.mrf.mxu3  ;;  %v3278_v17 = vadd.f32 %v978_v15, %v960_v13  ;;  %v961_v19 = vpop.f32.mrf.mxu0 }
 0x114   :  { %v3280_v20 = vadd.f32 %v945_v16, %v927_v14  ;;  %v962_v7 = vadd.f32 %v961_v19, %v785_v51 }
 0x115   :  { %v989_v45 = vmax.f32 %v3230_v60, %v3278_v17 }
 0x116   :  { %v992_v25 = vmax.f32 %v3232_v0, %v3280_v20 }
 0x117   :  { %v928_v21 = vpop.f32.mrf.mxu1 }
 0x118   :  { %v929_v30 = vadd.f32 %v928_v21, %v752_v62 }
 0x11a   :  { %v980_v49 = vpop.f32.mrf.mxu2 }
 0x11b   :  { %v947_v22 = vpop.f32.mrf.mxu3  ;;  %v3286_v23 = vadd.f32 %v980_v49, %v962_v7  ;;  %v964_v24 = vpop.f32.mrf.mxu0 }
 0x11c   :  { %v3288_v6 = vadd.f32 %v947_v22, %v929_v30  ;;  %v965_v8 = vadd.f32 %v964_v24, %v788_v55 }
 0x11d   :  { %v991_v29 = vmax.f32 %v3236_v35, %v3286_v23  ;;  %1863 = vmatmul.bf16.gmra.mxu0 %v3133_v28 }
 0x11e   :  { %v994_v33 = vmax.f32 %v3238_v43, %v3288_v6 }
 0x11f   :  { %v1175_v26 = vpop.f32.mrf.mxu1  ;;  %2766 = vmatmul.msk.bf16.gmra.mxu2 %vm243_vm0, %v3135_v31 }
 0x122   :  { %v983_v34 = vpop.f32.mrf.mxu2 }
 0x123   :  { %v3297_v37 = vadd.f32 %v983_v34, %v965_v8  ;;  %v1194_v42 = vpop.f32.mrf.mxu3  ;;  %v966_v44 = vpop.f32.mrf.mxu0 }
 0x124   :  { %v1195_v32 = vadd.f32 %v1194_v42, %v1175_v26  ;;  %v967_v46 = vadd.f32 %v966_v44, %v790_v9 }
 0x125   :  { %v993_v48 = vmax.f32 %v3247_v1, %v3297_v37 }
 0x127   :  { %v1177_v47 = vpop.f32.mrf.mxu1 }
 0x12a   :  { %v985_v2 = vpop.f32.mrf.mxu2 }
 0x12b   :  { %v3301_v41 = vadd.f32 %v985_v2, %v967_v46  ;;  %v1196_v50 = vpop.f32.mrf.mxu3  ;;  %v1213_v58 = vpop.f32.mrf.mxu0 }
 0x12c   :  { %v1197_v28 = vadd.f32 %v1196_v50, %v1177_v47 }
 0x12d   :  { %v995_v31 = vmax.f32 %v3250_v18, %v3301_v41 }
 0x12f   :  { %v1180_v36 = vpop.f32.mrf.mxu1 }
 0x132   :  { %v1232_v51 = vpop.f32.mrf.mxu2 }
 0x133   :  { %v1199_v39 = vpop.f32.mrf.mxu3  ;;  %v1233_v62 = vadd.f32 %v1232_v51, %v1213_v58  ;;  %v1215_v53 = vpop.f32.mrf.mxu0 }
 0x134   :  { %v1200_v38 = vadd.f32 %v1199_v39, %v1180_v36 }
 0x137   :  { %v1182_v54 = vpop.f32.mrf.mxu1 }
 0x13a   :  { %v1234_v55 = vpop.f32.mrf.mxu2 }
 0x13b   :  { %v1201_v56 = vpop.f32.mrf.mxu3  ;;  %v1235_v57 = vadd.f32 %v1234_v55, %v1215_v53  ;;  %v1218_v1 = vpop.f32.mrf.mxu0 }
 0x13c   :  { %v1202_v61 = vadd.f32 %v1201_v56, %v1182_v54 }
 0x13f   :  { %v1371_v63 = vpop.f32.mrf.mxu1 }
 0x140   :  { %v1372_v40 = vadd.f32 %v1371_v63, %v1195_v32 }
 0x142   :  { %v1237_v9 = vpop.f32.mrf.mxu2 }
 0x143   :  { %v1238_v10 = vadd.f32 %v1237_v9, %v1218_v1  ;;  %v1390_v52 = vpop.f32.mrf.mxu3  ;;  %v1220_v12 = vpop.f32.mrf.mxu0 }
 0x144   :  { %v1391_v13 = vadd.f32 %v1390_v52, %v1372_v40 }
 0x146   :  { %v3308_v18 = vmax.f32 %v988_v4, %v1391_v13 }
 0x147   :  { %v1373_v14 = vpop.f32.mrf.mxu1 }
 0x148   :  { %v1374_v15 = vadd.f32 %v1373_v14, %v1197_v28 }
 0x14a   :  { %v1239_v16 = vpop.f32.mrf.mxu2 }
 0x14b   :  { %v1240_v19 = vadd.f32 %v1239_v16, %v1220_v12  ;;  %v1392_v21 = vpop.f32.mrf.mxu3  ;;  %v1409_v7 = vpop.f32.mrf.mxu0 }
 0x14c   :  { %v1393_v30 = vadd.f32 %v1392_v21, %v1374_v15  ;;  %v1410_v24 = vadd.f32 %v1409_v7, %v1233_v62 }
 0x14e   :  { %v3313_v22 = vmax.f32 %v990_v3, %v1393_v30 }
 0x14f   :  { %v1376_v49 = vpop.f32.mrf.mxu1 }
 0x150   :  { %v1377_v8 = vadd.f32 %v1376_v49, %v1200_v38 }
 0x152   :  { %v1428_v26 = vpop.f32.mrf.mxu2 }
 0x153   :  { %v1395_v34 = vpop.f32.mrf.mxu3  ;;  %v1429_v37 = vadd.f32 %v1428_v26, %v1410_v24  ;;  %v1411_v5 = vpop.f32.mrf.mxu0 }
 0x154   :  { %v1396_v59 = vadd.f32 %v1395_v34, %v1377_v8  ;;  %v1412_v27 = vadd.f32 %v1411_v5, %v1235_v57 }
 0x155   :  { %v1439_v42 = vmax.f32 %v989_v45, %v1429_v37 }
 0x156   :  { %v3321_v44 = vmax.f32 %v992_v25, %v1396_v59 }
 0x157   :  { %v1378_v4 = vpop.f32.mrf.mxu1 }
 0x158   :  { %v1379_v11 = vadd.f32 %v1378_v4, %v1202_v61 }
 0x15a   :  { %v1430_v3 = vpop.f32.mrf.mxu2 }
 0x15b   :  { %v1397_v32 = vpop.f32.mrf.mxu3  ;;  %v1431_v46 = vadd.f32 %v1430_v3, %v1412_v27  ;;  %v1414_v47 = vpop.f32.mrf.mxu0 }
 0x15c   :  { %v1398_v2 = vadd.f32 %v1397_v32, %v1379_v11  ;;  %v1415_v0 = vadd.f32 %v1414_v47, %v1238_v10 }
 0x15d   :  { %v3326_v50 = vmax.f32 %v991_v29, %v1431_v46 }
 0x15e   :  { %v3331_v60 = vmax.f32 %v994_v33, %v1398_v2 }
 0x15f   :  { %v1625_v41 = vpop.f32.mrf.mxu1 }
 0x162   :  { %v1433_v17 = vpop.f32.mrf.mxu2 }
 0x163   :  { %v1434_v20 = vadd.f32 %v1433_v17, %v1415_v0  ;;  %v1644_v45 = vpop.f32.mrf.mxu3  ;;  %v1416_v25 = vpop.f32.mrf.mxu0 }
 0x164   :  { %v1417_v36 = vadd.f32 %v1416_v25, %v1240_v19  ;;  %v1645_v61 = vadd.f32 %v1644_v45, %v1625_v41 }
 0x165   :  { %v3333_v28 = vmax.f32 %v993_v48, %v1434_v20 }
 0x167   :  { %v1627_v58 = vpop.f32.mrf.mxu1 }
 0x16a   :  { %v1435_v51 = vpop.f32.mrf.mxu2 }
 0x16b   :  { %v1436_v39 = vadd.f32 %v1435_v51, %v1417_v36  ;;  %v1646_v62 = vpop.f32.mrf.mxu3  ;;  %v1663_v35 = vpop.f32.mrf.mxu0 }
 0x16c   :  { %v1647_v14 = vadd.f32 %v1646_v62, %v1627_v58 }
 0x16d   :  { %v3335_v23 = vmax.f32 %v995_v31, %v1436_v39  ;;  %v1896_v31 = vld [vmem:[#allocation4] sm:$0x3] }
 0x16e   :  { %v1898_v16 = vperm.slane %v1896_v31, 0  ;;  %v1899_v49 = vperm.slane %v1896_v31, 1 }
 0x16f   :  { %v1630_v29 = vpop.f32.mrf.mxu1 }
 0x172   :  { %v1682_v53 = vpop.f32.mrf.mxu2 }
 0x173   :  { %v1649_v43 = vpop.f32.mrf.mxu3  ;;  %v1665_v6 = vpop.f32.mrf.mxu0  ;;  %v1683_v13 = vadd.f32 %v1682_v53, %v1663_v35 }
 0x174   :  { %v1650_v4 = vadd.f32 %v1649_v43, %v1630_v29 }
 0x177   :  { %v1632_v33 = vpop.f32.mrf.mxu1 }
 0x17a   :  { %v1684_v38 = vpop.f32.mrf.mxu2 }
 0x17b   :  { %v1651_v54 = vpop.f32.mrf.mxu3  ;;  %v1668_v55 = vpop.f32.mrf.mxu0  ;;  %v1685_v5 = vadd.f32 %v1684_v38, %v1665_v6 }
 0x17c   :  { %v1652_v58 = vadd.f32 %v1651_v54, %v1632_v33 }
 0x17f   :  { %v1821_v56 = vpop.f32.mrf.mxu1 }
 0x180   :  { %v1822_v40 = vadd.f32 %v1821_v56, %v1645_v61 }
 0x182   :  { %v1687_v57 = vpop.f32.mrf.mxu2 }
 0x183   :  { %v1670_v1 = vpop.f32.mrf.mxu0  ;;  %v1840_v48 = vpop.f32.mrf.mxu3  ;;  %v1688_v45 = vadd.f32 %v1687_v57, %v1668_v55 }
 0x184   :  { %v1841_v52 = vadd.f32 %v1840_v48, %v1822_v40 }
 0x186   :  { %v1888_v15 = vmax.f32 %v3308_v18, %v1841_v52 }
 0x187   :  { %v1823_v10 = vpop.f32.mrf.mxu1 }
 0x188   :  { %v1824_v7 = vadd.f32 %v1823_v10, %v1647_v14  ;;  %v1902_v8 = vadd.f32 %v1898_v16, %v1888_v15 }
 0x18a   :  { %v1689_v63 = vpop.f32.mrf.mxu2  ;;  %v1910_v11 = vmax.f32 %v1902_v8, 0.0 }
 0x18b   :  { %v1859_v9 = vpop.f32.mrf.mxu0  ;;  %v1842_v12 = vpop.f32.mrf.mxu3  ;;  %v1690_v54 = vadd.f32 %v1689_v63, %v1670_v1 }
 0x18c   :  { %v1860_v19 = vadd.f32 %v1859_v9, %v1683_v13  ;;  %v1843_v26 = vadd.f32 %v1842_v12, %v1824_v7 }
 0x18e   :  { %v1890_v18 = vmax.f32 %v3313_v22, %v1843_v26 }
 0x18f   :  { %v1826_v37 = vpop.f32.mrf.mxu1 }
 0x190   :  { %v1827_v2 = vadd.f32 %v1826_v37, %v1650_v4  ;;  %v1904_v17 = vadd.f32 %v1898_v16, %v1890_v18 }
 0x192   :  { %v1878_v21 = vpop.f32.mrf.mxu2  ;;  %v1912_v51 = vmax.f32 %v1904_v17, 0.0 }
 0x193   :  { %v1879_v30 = vadd.f32 %v1878_v21, %v1860_v19  ;;  %v1861_v24 = vpop.f32.mrf.mxu0  ;;  %v1845_v27 = vpop.f32.mrf.mxu3 }
 0x194   :  { %v1862_v32 = vadd.f32 %v1861_v24, %v1685_v5  ;;  %v1846_v20 = vadd.f32 %v1845_v27, %v1827_v2 }
 0x195   :  { %v1889_v34 = vmax.f32 %v1439_v42, %v1879_v30 }
 0x196   :  { %v1892_v39 = vmax.f32 %v3321_v44, %v1846_v20 }
 0x197   :  { %v1903_v59 = vadd.f32 %v1899_v49, %v1889_v34  ;;  %v1828_v36 = vpop.f32.mrf.mxu1 }
 0x198   :  { %v1829_v43 = vadd.f32 %v1828_v36, %v1652_v58  ;;  %v1906_v56 = vadd.f32 %v1898_v16, %v1892_v39 }
 0x199   :  { %v1911_v3 = vmax.f32 %v1903_v59, 0.0 }
 0x19a   :  { %v1880_v47 = vpop.f32.mrf.mxu2  ;;  %v1914_v55 = vmax.f32 %v1906_v56, 0.0 }
 0x19b   :  { %v1918_v41 = vpack.c.bf16 %v1911_v3, %v1910_v11  ;;  %v1881_v42 = vadd.f32 %v1880_v47, %v1862_v32  ;;  %v1864_v0 = vpop.f32.mrf.mxu0  ;;  %v1847_v29 = vpop.f32.mrf.mxu3 }
 0x19c   :  { %v1865_v35 = vadd.f32 %v1864_v0, %v1688_v45  ;;  %v1848_v48 = vadd.f32 %v1847_v29, %v1829_v43 }
 0x19d   :  { %1925 = vst.msk [vmem:[%s3372_s4] sm:$0xff] %vm3339_vm3, %v1918_v41  ;;  %v1891_v22 = vmax.f32 %v3326_v50, %v1881_v42 }
 0x19e   :  { %v1894_v57 = vmax.f32 %v3331_v60, %v1848_v48 }
 0x19f   :  { %v1905_v25 = vadd.f32 %v1899_v49, %v1891_v22 }
 0x1a0   :  { %v1908_v31 = vadd.f32 %v1898_v16, %v1894_v57 }
 0x1a1   :  { %v1913_v62 = vmax.f32 %v1905_v25, 0.0 }
 0x1a2   :  { %v1883_v53 = vpop.f32.mrf.mxu2  ;;  %v1916_v1 = vmax.f32 %v1908_v31, 0.0 }
 0x1a3   :  { %v1919_v6 = vpack.c.bf16 %v1913_v62, %v1912_v51  ;;  %v1884_v38 = vadd.f32 %v1883_v53, %v1865_v35  ;;  %v1866_v33 = vpop.f32.mrf.mxu0 }
 0x1a4   :  { %v1867_v40 = vadd.f32 %v1866_v33, %v1690_v54 }
 0x1a5   :  { %1926 = vst.msk [vmem:[%s3372_s4 + $0x8] sm:$0xff] %vm3339_vm3, %v1919_v6  ;;  %v1893_v50 = vmax.f32 %v3333_v28, %v1884_v38 }
 0x1a7   :  { %v1907_v44 = vadd.f32 %v1899_v49, %v1893_v50 }
 0x1a9   :  { %v1915_v61 = vmax.f32 %v1907_v44, 0.0 }
 0x1aa   :  { %v1885_v9 = vpop.f32.mrf.mxu2 }
 0x1ab   :  { %v1920_v10 = vpack.c.bf16 %v1915_v61, %v1914_v55  ;;  %v1886_v52 = vadd.f32 %v1885_v9, %v1867_v40 }
 0x1ad   :  { %1927 = vst.msk [vmem:[%s3372_s4 + $0x10] sm:$0xff] %vm3339_vm3, %v1920_v10  ;;  %v1895_v28 = vmax.f32 %v3335_v23, %v1886_v52 }
 0x1af   :  { %v1909_v12 = vadd.f32 %v1899_v49, %v1895_v28 }
 0x1b1   :  { %v1917_v63 = vmax.f32 %v1909_v12, 0.0 }
 0x1b3   :  { %v1921_v13 = vpack.c.bf16 %v1917_v63, %v1916_v1 }
 0x1b5   :  { %1928 = vst.msk [vmem:[%s3372_s4 + $0x18] sm:$0xff] %vm3339_vm3, %v1921_v13 }
 0x1b6   :  { %1933 = vsyncpa [#allocation3], 1 }
 0x1b7   :  { %1934 = vsyncpa [#allocation5], 1 }

// kernel: simple_cnn_forward.4
= control target key start
LH: loop header
LB: loop body
LE: loop exit
PB: predicated region body
PF: predicated region fallthrough
CT: control target
= control target key end

     0   :  { %vm466_vm0 = vcmask 785408   ;;  %vm3882_vm1 = vcmask 1043456   ;;  %vm3883_vm2 = vcmask 523268   ;;  %s9939_s2 = inlined_call_operand.vmem [shape: bf16[8,480,192], index: 2, kind: input, shape index: {}]   ;;  %s9940_s1 = inlined_call_operand.vmem [shape: bf16[16,480], index: 1, kind: input, shape index: {}]   ;;  %s9941_s0 = inlined_call_operand.vmem [shape: bf16[16,480], index: 0, kind: input, shape index: {}]   ;;  %s9942_s3 = inlined_call_operand.vmem [shape: f32[1,192], index: 3, kind: input, shape index: {}]   ;;  %s9943_s4 = inlined_call_operand.vmem [shape: bf16[16,192], index: 4, kind: output, shape index: {}]  }
   0x1   :  { %v4089_v0 = vld [vmem:[%s9939_s2 + $0x870] sm:$0xf]  ;;  %v6378_v1 = vld [vmem:[%s9939_s2 + $0x874] sm:$0xf0]  ;;  %v4081_v11 = vld [vmem:[%s9939_s2 + $0x860] sm:$0xf] }
   0x2   :  { %v4153_v2 = vld [vmem:[%s9939_s2 + $0x8f0] sm:$0xf]  ;;  %v4090_v3 = vor.u32 %v6378_v1, %v4089_v0  ;;  %v6394_v4 = vld [vmem:[%s9939_s2 + $0x8f4] sm:$0xf0]  ;;  %v6376_v13 = vld [vmem:[%s9939_s2 + $0x864] sm:$0xf0] }
   0x3   :  { %v4201_v5 = vld [vmem:[%s9939_s2 + $0x950] sm:$0xf]  ;;  %v6406_v6 = vld [vmem:[%s9939_s2 + $0x954] sm:$0xf0]  ;;  %v4154_v7 = vor.u32 %v6394_v4, %v4153_v2  ;;  %v4145_v14 = vld [vmem:[%s9939_s2 + $0x8e0] sm:$0xf]  ;;  %v4082_v16 = vor.u32 %v6376_v13, %v4081_v11 }
   0x4   :  { %v4202_v8 = vor.u32 %v6406_v6, %v4201_v5  ;;  %v4025_v9 = vld [vmem:[%s9939_s2 + $0x7f0] sm:$0xf]  ;;  %v6362_v10 = vld [vmem:[%s9939_s2 + $0x7f4] sm:$0xf0]  ;;  %484 = vmatpush.bf16.msra.mxu1 %v4090_v3  ;;  %v6392_v15 = vld [vmem:[%s9939_s2 + $0x8e4] sm:$0xf0] }
   0x5   :  { %v4026_v12 = vor.u32 %v6362_v10, %v4025_v9  ;;  %498 = vmatpush.bf16.msra.mxu2 %v4154_v7  ;;  %v4146_v17 = vor.u32 %v6392_v15, %v4145_v14  ;;  %v4193_v18 = vld [vmem:[%s9939_s2 + $0x940] sm:$0xf]  ;;  %v6404_v19 = vld [vmem:[%s9939_s2 + $0x944] sm:$0xf0]  ;;  %v4073_v23 = vld [vmem:[%s9939_s2 + $0x850] sm:$0xf] }
   0x6   :  { %514 = vmatpush.bf16.msra.mxu3 %v4202_v8  ;;  %v4017_v20 = vld [vmem:[%s9939_s2 + $0x7e0] sm:$0xf]  ;;  %v4194_v21 = vor.u32 %v6404_v19, %v4193_v18  ;;  %v6360_v22 = vld [vmem:[%s9939_s2 + $0x7e4] sm:$0xf0]  ;;  %v6374_v24 = vld [vmem:[%s9939_s2 + $0x854] sm:$0xf0] }
   0x7   :  { %470 = vmatpush.bf16.msra.mxu0 %v4026_v12  ;;  %v4018_v25 = vor.u32 %v6360_v22, %v4017_v20  ;;  %v4137_v26 = vld [vmem:[%s9939_s2 + $0x8d0] sm:$0xf]  ;;  %v6390_v27 = vld [vmem:[%s9939_s2 + $0x8d4] sm:$0xf0]  ;;  %v4074_v29 = vor.u32 %v6374_v24, %v4073_v23  ;;  %v4065_v35 = vld [vmem:[%s9939_s2 + $0x840] sm:$0xf] }
   0x8   :  { %v4185_v28 = vld [vmem:[%s9939_s2 + $0x930] sm:$0xf]  ;;  %485 = vmatpush.bf16.msra.mxu1 %v4082_v16  ;;  %v6402_v30 = vld [vmem:[%s9939_s2 + $0x934] sm:$0xf0]  ;;  %v4138_v33 = vor.u32 %v6390_v27, %v4137_v26  ;;  %v6372_v36 = vld [vmem:[%s9939_s2 + $0x844] sm:$0xf0] }
   0x9   :  { %v4009_v31 = vld [vmem:[%s9939_s2 + $0x7d0] sm:$0xf]  ;;  %v6358_v32 = vld [vmem:[%s9939_s2 + $0x7d4] sm:$0xf0]  ;;  %499 = vmatpush.bf16.msra.mxu2 %v4146_v17  ;;  %v4186_v34 = vor.u32 %v6402_v30, %v4185_v28  ;;  %v4129_v37 = vld [vmem:[%s9939_s2 + $0x8c0] sm:$0xf]  ;;  %v4066_v44 = vor.u32 %v6372_v36, %v4065_v35 }
   0xa   :  { %515 = vmatpush.bf16.msra.mxu3 %v4194_v21  ;;  %v4010_v38 = vor.u32 %v6358_v32, %v4009_v31  ;;  %v6388_v39 = vld [vmem:[%s9939_s2 + $0x8c4] sm:$0xf0]  ;;  %v4177_v40 = vld [vmem:[%s9939_s2 + $0x920] sm:$0xf]  ;;  %v4057_v47 = vld [vmem:[%s9939_s2 + $0x830] sm:$0xf] }
   0xb   :  { %471 = vmatpush.bf16.msra.mxu0 %v4018_v25  ;;  %v6400_v41 = vld [vmem:[%s9939_s2 + $0x924] sm:$0xf0]  ;;  %v4001_v42 = vld [vmem:[%s9939_s2 + $0x7c0] sm:$0xf]  ;;  %v4130_v45 = vor.u32 %v6388_v39, %v4129_v37  ;;  %v6370_v48 = vld [vmem:[%s9939_s2 + $0x834] sm:$0xf0] }
   0xc   :  { %v6356_v43 = vld [vmem:[%s9939_s2 + $0x7c4] sm:$0xf0]  ;;  %486 = vmatpush.bf16.msra.mxu1 %v4074_v29  ;;  %v4178_v46 = vor.u32 %v6400_v41, %v4177_v40  ;;  %v4121_v49 = vld [vmem:[%s9939_s2 + $0x8b0] sm:$0xf]  ;;  %v6386_v51 = vld [vmem:[%s9939_s2 + $0x8b4] sm:$0xf0]  ;;  %v4058_v56 = vor.u32 %v6370_v48, %v4057_v47 }
   0xd   :  { %500 = vmatpush.bf16.msra.mxu2 %v4138_v33  ;;  %v4002_v50 = vor.u32 %v6356_v43, %v4001_v42  ;;  %v4169_v52 = vld [vmem:[%s9939_s2 + $0x910] sm:$0xf]  ;;  %v6398_v53 = vld [vmem:[%s9939_s2 + $0x914] sm:$0xf0]  ;;  %v4049_v57 = vld [vmem:[%s9939_s2 + $0x820] sm:$0xf]  ;;  %v4122_v58 = vor.u32 %v6386_v51, %v4121_v49 }
   0xe   :  { %516 = vmatpush.bf16.msra.mxu3 %v4186_v34  ;;  %v3993_v54 = vld [vmem:[%s9939_s2 + $0x7b0] sm:$0xf]  ;;  %v6354_v55 = vld [vmem:[%s9939_s2 + $0x7b4] sm:$0xf0]  ;;  %v4170_v59 = vor.u32 %v6398_v53, %v4169_v52  ;;  %v6368_v60 = vld [vmem:[%s9939_s2 + $0x824] sm:$0xf0] }
   0xf   :  { %472 = vmatpush.bf16.msra.mxu0 %v4010_v38  ;;  %v4113_v61 = vld [vmem:[%s9939_s2 + $0x8a0] sm:$0xf]  ;;  %v6384_v62 = vld [vmem:[%s9939_s2 + $0x8a4] sm:$0xf0]  ;;  %v3994_v63 = vor.u32 %v6354_v55, %v3993_v54  ;;  %v6361_v2 = vld [vmem:[%s9939_s2 + $0x7f4] sm:$0xf]  ;;  %v4050_v6 = vor.u32 %v6368_v60, %v4049_v57 }
  0x10   :  { %487 = vmatpush.bf16.msra.mxu1 %v4066_v44  ;;  %v4161_v0 = vld [vmem:[%s9939_s2 + $0x900] sm:$0xf]  ;;  %v6396_v1 = vld [vmem:[%s9939_s2 + $0x904] sm:$0xf0]  ;;  %v4027_v3 = vld [vmem:[%s9939_s2 + $0x7f8] sm:$0xf0]  ;;  %v4114_v7 = vor.u32 %v6384_v62, %v4113_v61 }
  0x11   :  { %501 = vmatpush.bf16.msra.mxu2 %v4130_v45  ;;  %v3985_v4 = vld [vmem:[%s9939_s2 + $0x7a0] sm:$0xf]  ;;  %v6352_v5 = vld [vmem:[%s9939_s2 + $0x7a4] sm:$0xf0]  ;;  %v4162_v8 = vor.u32 %v6396_v1, %v4161_v0  ;;  %v4041_v9 = vld [vmem:[%s9939_s2 + $0x810] sm:$0xf]  ;;  %v4030_v11 = vor.u32 %v6361_v2, %v4027_v3 }
  0x12   :  { %517 = vmatpush.bf16.msra.mxu3 %v4178_v46  ;;  %v6366_v10 = vld [vmem:[%s9939_s2 + $0x814] sm:$0xf0]  ;;  %v3986_v12 = vor.u32 %v6352_v5, %v3985_v4  ;;  %v4105_v13 = vld [vmem:[%s9939_s2 + $0x890] sm:$0xf]  ;;  %v6359_v15 = vld [vmem:[%s9939_s2 + $0x7e4] sm:$0xf] }
  0x13   :  { %473 = vmatpush.bf16.msra.mxu0 %v4002_v50  ;;  %v6382_v14 = vld [vmem:[%s9939_s2 + $0x894] sm:$0xf0]  ;;  %v4019_v16 = vld [vmem:[%s9939_s2 + $0x7e8] sm:$0xf0]  ;;  %v3977_v17 = vld [vmem:[%s9939_s2 + $0x790] sm:$0xf]  ;;  %v4042_v19 = vor.u32 %v6366_v10, %v4041_v9 }
  0x14   :  { %488 = vmatpush.bf16.msra.mxu1 %v4058_v56  ;;  %v6350_v18 = vld [vmem:[%s9939_s2 + $0x794] sm:$0xf0]  ;;  %v4033_v20 = vld [vmem:[%s9939_s2 + $0x800] sm:$0xf]  ;;  %v4106_v21 = vor.u32 %v6382_v14, %v4105_v13  ;;  %v6364_v22 = vld [vmem:[%s9939_s2 + $0x804] sm:$0xf0]  ;;  %v4022_v25 = vor.u32 %v6359_v15, %v4019_v16 }
  0x15   :  { %502 = vmatpush.bf16.msra.mxu2 %v4122_v58  ;;  %v4097_v23 = vld [vmem:[%s9939_s2 + $0x880] sm:$0xf]  ;;  %v6380_v24 = vld [vmem:[%s9939_s2 + $0x884] sm:$0xf0]  ;;  %v3978_v26 = vor.u32 %v6350_v18, %v3977_v17  ;;  %v6357_v27 = vld [vmem:[%s9939_s2 + $0x7d4] sm:$0xf]  ;;  %v4034_v33 = vor.u32 %v6364_v22, %v4033_v20 }
  0x16   :  { %518 = vmatpush.bf16.msra.mxu3 %v4170_v59  ;;  %v6393_v28 = vld [vmem:[%s9939_s2 + $0x8f4] sm:$0xf]  ;;  %v4155_v29 = vld [vmem:[%s9939_s2 + $0x8f8] sm:$0xf0]  ;;  %v3969_v34 = vld [vmem:[%s9939_s2 + $0x780] sm:$0xf]  ;;  %v4098_v37 = vor.u32 %v6380_v24, %v4097_v23 }
  0x17   :  { %474 = vmatpush.bf16.msra.mxu0 %v3994_v63  ;;  %v4011_v30 = vld [vmem:[%s9939_s2 + $0x7d8] sm:$0xf0]  ;;  %v6405_v31 = vld [vmem:[%s9939_s2 + $0x954] sm:$0xf]  ;;  %v6348_v35 = vld [vmem:[%s9939_s2 + $0x784] sm:$0xf0]  ;;  %v4158_v38 = vor.u32 %v6393_v28, %v4155_v29 }
  0x18   :  { %489 = vmatpush.bf16.msra.mxu1 %v4050_v6  ;;  %v4203_v32 = vld [vmem:[%s9939_s2 + $0x958] sm:$0xf0]  ;;  %v6377_v36 = vld [vmem:[%s9939_s2 + $0x874] sm:$0xf]  ;;  %v6355_v40 = vld [vmem:[%s9939_s2 + $0x7c4] sm:$0xf]  ;;  %v4014_v42 = vor.u32 %v6357_v27, %v4011_v30  ;;  %v3970_v47 = vor.u32 %v6348_v35, %v3969_v34 }
  0x19   :  { %503 = vmatpush.bf16.msra.mxu2 %v4114_v7  ;;  %v4091_v39 = vld [vmem:[%s9939_s2 + $0x878] sm:$0xf0]  ;;  %v4003_v41 = vld [vmem:[%s9939_s2 + $0x7c8] sm:$0xf0]  ;;  %v4206_v43 = vor.u32 %v6405_v31, %v4203_v32  ;;  %v6391_v44 = vld [vmem:[%s9939_s2 + $0x8e4] sm:$0xf] }
  0x1a   :  { %519 = vmatpush.bf16.msra.mxu3 %v4162_v8  ;;  %v4147_v45 = vld [vmem:[%s9939_s2 + $0x8e8] sm:$0xf0]  ;;  %v6403_v46 = vld [vmem:[%s9939_s2 + $0x944] sm:$0xf]  ;;  %v4094_v51 = vor.u32 %v6377_v36, %v4091_v39  ;;  %v6353_v52 = vld [vmem:[%s9939_s2 + $0x7b4] sm:$0xf]  ;;  %v4006_v60 = vor.u32 %v6355_v40, %v4003_v41 }
  0x1b   :  { %475 = vmatpush.bf16.msra.mxu0 %v3986_v12  ;;  %v4195_v48 = vld [vmem:[%s9939_s2 + $0x948] sm:$0xf0]  ;;  %v6375_v49 = vld [vmem:[%s9939_s2 + $0x864] sm:$0xf]  ;;  %v3961_v53 = vld [vmem:[%s9940_s1 + $0x8] sm:$0xf]  ;;  %v4150_v55 = vor.u32 %v6391_v44, %v4147_v45 }
  0x1c   :  { %490 = vmatpush.bf16.msra.mxu1 %v4042_v19  ;;  %v4083_v50 = vld [vmem:[%s9939_s2 + $0x868] sm:$0xf0]  ;;  %v6286_v54 = vld [vmem:[%s9940_s1 + $0x14] sm:$0xf0]  ;;  %v3995_v56 = vld [vmem:[%s9939_s2 + $0x7b8] sm:$0xf0]  ;;  %v4198_v61 = vor.u32 %v6403_v46, %v4195_v48 }
  0x1d   :  { %504 = vmatpush.bf16.msra.mxu2 %v4106_v21  ;;  %v6389_v57 = vld [vmem:[%s9939_s2 + $0x8d4] sm:$0xf]  ;;  %v7047_v58 = vor.u32 %v6286_v54, %v3961_v53  ;;  %v6284_v59 = vld [vmem:[%s9940_s1 + $0xc] sm:$0xf]  ;;  %v4139_v62 = vld [vmem:[%s9939_s2 + $0x8d8] sm:$0xf0]  ;;  %v4086_v3 = vor.u32 %v6375_v49, %v4083_v50  ;;  %v3998_v7 = vor.u32 %v6353_v52, %v3995_v56 }
  0x1e   :  { %526 = vmatpush.bf16.msrb.mxu3 %v4030_v11  ;;  %v3963_v63 = vld [vmem:[%s9940_s1 + $0x18] sm:$0xf0]  ;;  %v6401_v0 = vld [vmem:[%s9939_s2 + $0x934] sm:$0xf]  ;;  %v3953_v6 = vld [vmem:[%s9940_s1] sm:$0xf]  ;;  %v4142_v8 = vor.u32 %v6389_v57, %v4139_v62 }
  0x1f   :  { %476 = vmatpush.bf16.msra.mxu0 %v3978_v26  ;;  %v4187_v1 = vld [vmem:[%s9939_s2 + $0x938] sm:$0xf0]  ;;  %v7064_v2 = vor.u32 %v6284_v59, %v3963_v63  ;;  %v6373_v4 = vld [vmem:[%s9939_s2 + $0x854] sm:$0xf]  ;;  %v6285_v9 = vld [vmem:[%s9940_s1 + $0xc] sm:$0xf0] }
  0x20   :  { %491 = vmatpush.bf16.msra.mxu1 %v4034_v33  ;;  %v4075_v5 = vld [vmem:[%s9939_s2 + $0x858] sm:$0xf0]  ;;  %v6283_v10 = vld [vmem:[%s9940_s1 + $0x4] sm:$0xf]  ;;  %v3955_v11 = vld [vmem:[%s9940_s1 + $0x10] sm:$0xf0]  ;;  %v4190_v12 = vor.u32 %v6401_v0, %v4187_v1  ;;  %v7096_v16 = vor.u32 %v6285_v9, %v3953_v6 }
  0x21   :  { %505 = vmatpush.bf16.msra.mxu2 %v4098_v37  ;;  %4207 = vmatmul.msk.bf16.vlgmr.msra.gmra.mxu3 %vm466_vm0, %v7064_v2  ;;  %v6351_v13 = vld [vmem:[%s9939_s2 + $0x7a4] sm:$0xf]  ;;  %v4131_v15 = vld [vmem:[%s9939_s2 + $0x8c8] sm:$0xf0]  ;;  %v7098_v17 = vor.u32 %v6283_v10, %v3955_v11  ;;  %v4078_v21 = vor.u32 %v6373_v4, %v4075_v5  ;;  %v6349_v27 = vld [vmem:[%s9939_s2 + $0x794] sm:$0xf] }
  0x22   :  { %527 = vmatpush.bf16.msrb.mxu3 %v4022_v25  ;;  %v6387_v14 = vld [vmem:[%s9939_s2 + $0x8c4] sm:$0xf]  ;;  %v3987_v18 = vld [vmem:[%s9939_s2 + $0x7a8] sm:$0xf0]  ;;  %v6385_v28 = vld [vmem:[%s9939_s2 + $0x8b4] sm:$0xf] }
  0x23   :  { %477 = vmatpush.bf16.msra.mxu0 %v3970_v47  ;;  %v6399_v19 = vld [vmem:[%s9939_s2 + $0x924] sm:$0xf]  ;;  %v4179_v20 = vld [vmem:[%s9939_s2 + $0x928] sm:$0xf0]  ;;  %492 = vmatmul.bf16.vlgmr.msra.gmra.mxu1 %v7098_v17  ;;  %v4134_v22 = vor.u32 %v6387_v14, %v4131_v15  ;;  %v3990_v25 = vor.u32 %v6351_v13, %v3987_v18  ;;  %v4123_v29 = vld [vmem:[%s9939_s2 + $0x8b8] sm:$0xf0] }
  0x24   :  { %554 = vmatpush.bf16.msrb.mxu1 %v4158_v38  ;;  %506 = vmatmul.bf16.vlgmr.msra.gmra.mxu2 %v7047_v58  ;;  %v6371_v23 = vld [vmem:[%s9939_s2 + $0x844] sm:$0xf]  ;;  %v4067_v24 = vld [vmem:[%s9939_s2 + $0x848] sm:$0xf0]  ;;  %v4182_v26 = vor.u32 %v6399_v19, %v4179_v20  ;;  %v3979_v30 = vld [vmem:[%s9939_s2 + $0x798] sm:$0xf0]  ;;  %v4126_v34 = vor.u32 %v6385_v28, %v4123_v29 }
  0x25   :  { %570 = vmatpush.bf16.msrb.mxu2 %v4206_v43  ;;  %v6397_v31 = vld [vmem:[%s9939_s2 + $0x914] sm:$0xf]  ;;  %v4171_v32 = vld [vmem:[%s9939_s2 + $0x918] sm:$0xf0]  ;;  %v4070_v33 = vor.u32 %v6371_v23, %v4067_v24  ;;  %v6347_v37 = vld [vmem:[%s9939_s2 + $0x784] sm:$0xf]  ;;  %v3982_v38 = vor.u32 %v6349_v27, %v3979_v30 }
  0x26   :  { %528 = vmatpush.bf16.msrb.mxu3 %v4014_v42  ;;  %478 = vmatmul.bf16.vlgmr.msra.gmra.mxu0 %v7096_v16  ;;  %v6369_v35 = vld [vmem:[%s9939_s2 + $0x834] sm:$0xf]  ;;  %v4059_v36 = vld [vmem:[%s9939_s2 + $0x838] sm:$0xf0]  ;;  %v4174_v39 = vor.u32 %v6397_v31, %v4171_v32  ;;  %v3971_v40 = vld [vmem:[%s9939_s2 + $0x788] sm:$0xf0] }
  0x27   :  { %540 = vmatpush.bf16.msrb.mxu0 %v4094_v51  ;;  %v6383_v41 = vld [vmem:[%s9939_s2 + $0x8a4] sm:$0xf]  ;;  %v4115_v42 = vld [vmem:[%s9939_s2 + $0x8a8] sm:$0xf0]  ;;  %v4283_v45 = vld [vmem:[%s9939_s2 + $0x70] sm:$0xf]  ;;  %v4062_v46 = vor.u32 %v6369_v35, %v4059_v36  ;;  %v3974_v53 = vor.u32 %v6347_v37, %v3971_v40 }
  0x28   :  { %555 = vmatpush.bf16.msrb.mxu1 %v4150_v55  ;;  %v6395_v43 = vld [vmem:[%s9939_s2 + $0x904] sm:$0xf]  ;;  %v4163_v44 = vld [vmem:[%s9939_s2 + $0x908] sm:$0xf0]  ;;  %v6302_v47 = vld [vmem:[%s9939_s2 + $0x74] sm:$0xf0]  ;;  %v4118_v50 = vor.u32 %v6383_v41, %v4115_v42 }
  0x29   :  { %571 = vmatpush.bf16.msrb.mxu2 %v4198_v61  ;;  %v4347_v48 = vld [vmem:[%s9939_s2 + $0xf0] sm:$0xf]  ;;  %v6318_v49 = vld [vmem:[%s9939_s2 + $0xf4] sm:$0xf0]  ;;  %v6367_v51 = vld [vmem:[%s9939_s2 + $0x824] sm:$0xf]  ;;  %v4166_v54 = vor.u32 %v6395_v43, %v4163_v44  ;;  %v4284_v57 = vor.u32 %v6302_v47, %v4283_v45 }
  0x2a   :  { %529 = vmatpush.bf16.msrb.mxu3 %v4006_v60  ;;  %v4051_v52 = vld [vmem:[%s9939_s2 + $0x828] sm:$0xf0]  ;;  %v6381_v55 = vld [vmem:[%s9939_s2 + $0x894] sm:$0xf]  ;;  %v4107_v56 = vld [vmem:[%s9939_s2 + $0x898] sm:$0xf0]  ;;  %v4348_v59 = vor.u32 %v6318_v49, %v4347_v48 }
  0x2b   :  { %541 = vmatpush.bf16.msrb.mxu0 %v4086_v3  ;;  %v4275_v60 = vld [vmem:[%s9939_s2 + $0x60] sm:$0xf]  ;;  %v4054_v61 = vor.u32 %v6367_v51, %v4051_v52  ;;  %v6300_v62 = vld [vmem:[%s9939_s2 + $0x64] sm:$0xf0]  ;;  %v4110_v1 = vor.u32 %v6381_v55, %v4107_v56  ;;  %v6365_v3 = vld [vmem:[%s9939_s2 + $0x814] sm:$0xf] }
  0x2c   :  { %556 = vmatpush.bf16.msrb.mxu1 %v4142_v8  ;;  %v4339_v63 = vld [vmem:[%s9939_s2 + $0xe0] sm:$0xf]  ;;  %v6316_v0 = vld [vmem:[%s9939_s2 + $0xe4] sm:$0xf0]  ;;  %v4043_v4 = vld [vmem:[%s9939_s2 + $0x818] sm:$0xf0] }
  0x2d   :  { %572 = vmatpush.bf16.msrb.mxu2 %v4190_v12  ;;  %v6379_v5 = vld [vmem:[%s9939_s2 + $0x884] sm:$0xf]  ;;  %v4099_v6 = vld [vmem:[%s9939_s2 + $0x888] sm:$0xf0]  ;;  %v4340_v8 = vor.u32 %v6316_v0, %v4339_v63  ;;  %v4267_v9 = vld [vmem:[%s9939_s2 + $0x50] sm:$0xf]  ;;  %v4046_v12 = vor.u32 %v6365_v3, %v4043_v4 }
  0x2e   :  { %530 = vmatpush.bf16.msrb.mxu3 %v3998_v7  ;;  %v4276_v7 = vor.u32 %v6300_v62, %v4275_v60  ;;  %v4459_v10 = vld [vmem:[%s9939_s2 + $0x1d0] sm:$0xf]  ;;  %v6346_v11 = vld [vmem:[%s9939_s2 + $0x1d4] sm:$0xf0]  ;;  %v4102_v18 = vor.u32 %v6379_v5, %v4099_v6  ;;  %v6363_v19 = vld [vmem:[%s9939_s2 + $0x804] sm:$0xf] }
  0x2f   :  { %542 = vmatpush.bf16.msrb.mxu0 %v4078_v21  ;;  %v6298_v13 = vld [vmem:[%s9939_s2 + $0x54] sm:$0xf0]  ;;  %v4331_v14 = vld [vmem:[%s9939_s2 + $0xd0] sm:$0xf]  ;;  %v4035_v20 = vld [vmem:[%s9939_s2 + $0x808] sm:$0xf0]  ;;  %v4460_v21 = vor.u32 %v6346_v11, %v4459_v10 }
  0x30   :  { %557 = vmatpush.bf16.msrb.mxu1 %v4134_v22  ;;  %v6314_v15 = vld [vmem:[%s9939_s2 + $0xd4] sm:$0xf0]  ;;  %v4411_v22 = vld [vmem:[%s9939_s2 + $0x170] sm:$0xf]  ;;  %v4268_v24 = vor.u32 %v6298_v13, %v4267_v9  ;;  %v4451_v27 = vld [vmem:[%s9939_s2 + $0x1c0] sm:$0xf]  ;;  %v4038_v29 = vor.u32 %v6363_v19, %v4035_v20 }
  0x31   :  { %573 = vmatpush.bf16.msrb.mxu2 %v4182_v26  ;;  %v6334_v23 = vld [vmem:[%s9939_s2 + $0x174] sm:$0xf0]  ;;  %v4259_v26 = vld [vmem:[%s9939_s2 + $0x40] sm:$0xf]  ;;  %v6344_v28 = vld [vmem:[%s9939_s2 + $0x1c4] sm:$0xf0] }
  0x32   :  { %531 = vmatpush.bf16.msrb.mxu3 %v3990_v25  ;;  %v4332_v25 = vor.u32 %v6314_v15, %v4331_v14  ;;  %v6296_v30 = vld [vmem:[%s9939_s2 + $0x44] sm:$0xf0]  ;;  %v4323_v31 = vld [vmem:[%s9939_s2 + $0xc0] sm:$0xf]  ;;  %v4443_v40 = vld [vmem:[%s9939_s2 + $0x1b0] sm:$0xf] }
  0x33   :  { %543 = vmatpush.bf16.msrb.mxu0 %v4070_v33  ;;  %v6312_v32 = vld [vmem:[%s9939_s2 + $0xc4] sm:$0xf0]  ;;  %v4412_v33 = vor.u32 %v6334_v23, %v4411_v22  ;;  %v4403_v35 = vld [vmem:[%s9939_s2 + $0x160] sm:$0xf]  ;;  %v4260_v37 = vor.u32 %v6296_v30, %v4259_v26  ;;  %v6342_v41 = vld [vmem:[%s9939_s2 + $0x1b4] sm:$0xf0] }
  0x34   :  { %558 = vmatpush.bf16.msrb.mxu1 %v4126_v34  ;;  %v4452_v34 = vor.u32 %v6344_v28, %v4451_v27  ;;  %v6332_v36 = vld [vmem:[%s9939_s2 + $0x164] sm:$0xf0]  ;;  %v6294_v42 = vld [vmem:[%s9939_s2 + $0x34] sm:$0xf0]  ;;  %v4315_v43 = vld [vmem:[%s9939_s2 + $0xb0] sm:$0xf] }
  0x35   :  { %574 = vmatpush.bf16.msrb.mxu2 %v4174_v39  ;;  %v4251_v39 = vld [vmem:[%s9939_s2 + $0x30] sm:$0xf]  ;;  %v6310_v44 = vld [vmem:[%s9939_s2 + $0xb4] sm:$0xf0]  ;;  %v4404_v45 = vor.u32 %v6332_v36, %v4403_v35  ;;  %v4243_v51 = vld [vmem:[%s9939_s2 + $0x20] sm:$0xf] }
  0x36   :  { %532 = vmatpush.bf16.msrb.mxu3 %v3982_v38  ;;  %v4324_v38 = vor.u32 %v6312_v32, %v4323_v31  ;;  %v4395_v47 = vld [vmem:[%s9939_s2 + $0x150] sm:$0xf]  ;;  %v6330_v48 = vld [vmem:[%s9939_s2 + $0x154] sm:$0xf0]  ;;  %v4252_v49 = vor.u32 %v6294_v42, %v4251_v39  ;;  %v4435_v52 = vld [vmem:[%s9939_s2 + $0x1a0] sm:$0xf] }
  0x37   :  { %544 = vmatpush.bf16.msrb.mxu0 %v4062_v46  ;;  %v4444_v46 = vor.u32 %v6342_v41, %v4443_v40  ;;  %v4307_v55 = vld [vmem:[%s9939_s2 + $0xa0] sm:$0xf]  ;;  %v6308_v56 = vld [vmem:[%s9939_s2 + $0xa4] sm:$0xf0]  ;;  %v4235_v0 = vld [vmem:[%s9939_s2 + $0x10] sm:$0xf] }
  0x38   :  { %559 = vmatpush.bf16.msrb.mxu1 %v4118_v50  ;;  %v4316_v50 = vor.u32 %v6310_v44, %v4315_v43  ;;  %v4387_v60 = vld [vmem:[%s9939_s2 + $0x140] sm:$0xf]  ;;  %v4308_v63 = vor.u32 %v6308_v56, %v4307_v55  ;;  %v6338_v3 = vld [vmem:[%s9939_s2 + $0x194] sm:$0xf0]  ;;  %v4299_v5 = vld [vmem:[%s9939_s2 + $0x90] sm:$0xf] }
  0x39   :  { %575 = vmatpush.bf16.msrb.mxu2 %v4166_v54  ;;  %v6292_v54 = vld [vmem:[%s9939_s2 + $0x24] sm:$0xf0]  ;;  %v6290_v4 = vld [vmem:[%s9939_s2 + $0x14] sm:$0xf0]  ;;  %v4227_v11 = vld [vmem:[%s9939_s2] sm:$0xf] }
  0x3a   :  { %533 = vmatpush.bf16.msrb.mxu3 %v3974_v53  ;;  %v6340_v53 = vld [vmem:[%s9939_s2 + $0x1a4] sm:$0xf0]  ;;  %v4244_v62 = vor.u32 %v6292_v54, %v4243_v51  ;;  %v6306_v6 = vld [vmem:[%s9939_s2 + $0x94] sm:$0xf0]  ;;  %v4291_v13 = vld [vmem:[%s9939_s2 + $0x80] sm:$0xf]  ;;  %v4236_v15 = vor.u32 %v6290_v4, %v4235_v0 }
  0x3b   :  { %545 = vmatpush.bf16.msrb.mxu0 %v4054_v61  ;;  %v6328_v61 = vld [vmem:[%s9939_s2 + $0x144] sm:$0xf0]  ;;  %v6326_v9 = vld [vmem:[%s9939_s2 + $0x134] sm:$0xf0]  ;;  %v4419_v19 = vld [vmem:[%s9939_s2 + $0x180] sm:$0xf] }
  0x3c   :  { %560 = vmatpush.bf16.msrb.mxu1 %v4110_v1  ;;  %4208 = vmatmul.msk.bf16.vlgmr.msrb.gmra.mxu2 %vm466_vm0, %v7064_v2  ;;  %v4427_v1 = vld [vmem:[%s9939_s2 + $0x190] sm:$0xf]  ;;  %v6304_v14 = vld [vmem:[%s9939_s2 + $0x84] sm:$0xf0]  ;;  %v4285_v22 = vld [vmem:[%s9939_s2 + $0x78] sm:$0xf0] }
  0x3d   :  { %904 = vmatpush.bf16.msra.mxu2 %v4284_v57  ;;  %534 = vmatmul.bf16.vlgmr.msrb.gmra.mxu3 %v7096_v16  ;;  %v4396_v57 = vor.u32 %v6330_v48, %v4395_v47  ;;  %v4428_v10 = vor.u32 %v6338_v3, %v4427_v1  ;;  %v6336_v20 = vld [vmem:[%s9939_s2 + $0x184] sm:$0xf0]  ;;  %v6317_v23 = vld [vmem:[%s9939_s2 + $0xf4] sm:$0xf]  ;;  %v4413_v27 = vld [vmem:[%s9939_s2 + $0x178] sm:$0xf0] }
  0x3e   :  { %918 = vmatpush.bf16.msra.mxu3 %v4348_v59  ;;  %v4436_v59 = vor.u32 %v6340_v53, %v4435_v52  ;;  %v6333_v26 = vld [vmem:[%s9939_s2 + $0x174] sm:$0xf]  ;;  %v4371_v28 = vld [vmem:[%s9939_s2 + $0x120] sm:$0xf]  ;;  %v6324_v30 = vld [vmem:[%s9939_s2 + $0x124] sm:$0xf0] }
  0x3f   :  { %546 = vmatpush.bf16.msrb.mxu0 %v4046_v12  ;;  %v6288_v12 = vld [vmem:[%s9939_s2 + $0x4] sm:$0xf0]  ;;  %v4211_v31 = vld [vmem:[%s9941_s0] sm:$0xf]  ;;  %v6281_v32 = vld [vmem:[%s9941_s0 + $0xc] sm:$0xf0]  ;;  %v4416_v43 = vor.u32 %v6333_v26, %v4413_v27  ;;  %v4372_v44 = vor.u32 %v6324_v30, %v4371_v28 }
  0x40   :  { %561 = vmatpush.bf16.msrb.mxu1 %v4102_v18  ;;  %v4300_v18 = vor.u32 %v6306_v6, %v4299_v5  ;;  %v6279_v35 = vld [vmem:[%s9941_s0 + $0x4] sm:$0xf]  ;;  %v4213_v36 = vld [vmem:[%s9941_s0 + $0x10] sm:$0xf0]  ;;  %v4277_v40 = vld [vmem:[%s9939_s2 + $0x68] sm:$0xf0]  ;;  %v7413_v48 = vor.u32 %v6281_v32, %v4211_v31 }
  0x41   :  { %905 = vmatpush.bf16.msra.mxu2 %v4276_v7  ;;  %v4388_v7 = vor.u32 %v6328_v61, %v4387_v60  ;;  %v6280_v41 = vld [vmem:[%s9941_s0 + $0xc] sm:$0xf]  ;;  %v4221_v42 = vld [vmem:[%s9941_s0 + $0x18] sm:$0xf0]  ;;  %v6331_v47 = vld [vmem:[%s9939_s2 + $0x164] sm:$0xf] }
  0x42   :  { %919 = vmatpush.bf16.msra.mxu3 %v4340_v8  ;;  %v4379_v8 = vld [vmem:[%s9939_s2 + $0x130] sm:$0xf]  ;;  %v6322_v52 = vld [vmem:[%s9939_s2 + $0x114] sm:$0xf0]  ;;  %v7426_v53 = vor.u32 %v6280_v41, %v4221_v42  ;;  %v6297_v56 = vld [vmem:[%s9939_s2 + $0x54] sm:$0xf] }
  0x43   :  { %547 = vmatpush.bf16.msrb.mxu0 %v4038_v29  ;;  %562 = vmatmul.bf16.vlgmr.msrb.gmra.mxu1 %v7047_v58  ;;  %v4420_v29 = vor.u32 %v6336_v20, %v4419_v19  ;;  %v4363_v51 = vld [vmem:[%s9939_s2 + $0x110] sm:$0xf]  ;;  %v6313_v61 = vld [vmem:[%s9939_s2 + $0xd4] sm:$0xf]  ;;  %v4397_v0 = vld [vmem:[%s9939_s2 + $0x158] sm:$0xf0] }
  0x44   :  { %948 = vmatpush.bf16.msra.mxu1 %v4460_v21  ;;  %v6301_v21 = vld [vmem:[%s9939_s2 + $0x74] sm:$0xf]  ;;  %v4364_v60 = vor.u32 %v6322_v52, %v4363_v51  ;;  %v4355_v1 = vld [vmem:[%s9939_s2 + $0x100] sm:$0xf]  ;;  %v6320_v3 = vld [vmem:[%s9939_s2 + $0x104] sm:$0xf0] }
  0x45   :  { %906 = vmatpush.bf16.msra.mxu2 %v4268_v24  ;;  %v4349_v24 = vld [vmem:[%s9939_s2 + $0xf8] sm:$0xf0]  ;;  %v6345_v4 = vld [vmem:[%s9939_s2 + $0x1d4] sm:$0xf]  ;;  %v6327_v19 = vld [vmem:[%s9939_s2 + $0x144] sm:$0xf] }
  0x46   :  { %920 = vmatpush.bf16.msra.mxu3 %v4332_v25  ;;  %548 = vmatmul.bf16.vlgmr.msrb.gmra.mxu0 %v7098_v17  ;;  %v4380_v25 = vor.u32 %v6326_v9, %v4379_v8  ;;  %v4352_v39 = vor.u32 %v6317_v23, %v4349_v24  ;;  %v4461_v5 = vld [vmem:[%s9939_s2 + $0x1d8] sm:$0xf0]  ;;  %v4219_v8 = vld [vmem:[%s9941_s0 + $0x8] sm:$0xf]  ;;  %v6282_v9 = vld [vmem:[%s9941_s0 + $0x14] sm:$0xf0] }
  0x47   :  { %932 = vmatpush.bf16.msra.mxu0 %v4412_v33  ;;  %v4228_v33 = vor.u32 %v6288_v12, %v4227_v11  ;;  %v4356_v11 = vor.u32 %v6320_v3, %v4355_v1  ;;  %v6295_v12 = vld [vmem:[%s9939_s2 + $0x44] sm:$0xf]  ;;  %v4389_v20 = vld [vmem:[%s9939_s2 + $0x148] sm:$0xf0]  ;;  %v7492_v23 = vor.u32 %v6282_v9, %v4219_v8  ;;  %v6293_v27 = vld [vmem:[%s9939_s2 + $0x34] sm:$0xf] }
  0x48   :  { %949 = vmatpush.bf16.msra.mxu1 %v4452_v34  ;;  %v4292_v34 = vor.u32 %v6304_v14, %v4291_v13  ;;  %v4261_v13 = vld [vmem:[%s9939_s2 + $0x48] sm:$0xf0]  ;;  %v6311_v14 = vld [vmem:[%s9939_s2 + $0xc4] sm:$0xf]  ;;  %v4392_v26 = vor.u32 %v6327_v19, %v4389_v20  ;;  %v4253_v28 = vld [vmem:[%s9939_s2 + $0x38] sm:$0xf0] }
  0x49   :  { %907 = vmatpush.bf16.msra.mxu2 %v4260_v37  ;;  %v6299_v37 = vld [vmem:[%s9939_s2 + $0x64] sm:$0xf]  ;;  %v4264_v24 = vor.u32 %v6295_v12, %v4261_v13  ;;  %v4317_v31 = vld [vmem:[%s9939_s2 + $0xb8] sm:$0xf0]  ;;  %v6325_v32 = vld [vmem:[%s9939_s2 + $0x134] sm:$0xf] }
  0x4a   :  { %921 = vmatpush.bf16.msra.mxu3 %v4324_v38  ;;  %v4288_v38 = vor.u32 %v6301_v21, %v4285_v22  ;;  %v4280_v54 = vor.u32 %v6299_v37, %v4277_v40  ;;  %v6343_v21 = vld [vmem:[%s9939_s2 + $0x1c4] sm:$0xf]  ;;  %v4453_v22 = vld [vmem:[%s9939_s2 + $0x1c8] sm:$0xf0]  ;;  %v6498_v12 = vld [vmem:[%s9939_s2 + $0xa54] sm:$0xf0] }
  0x4b   :  { %933 = vmatpush.bf16.msra.mxu0 %v4404_v45  ;;  %v6315_v45 = vld [vmem:[%s9939_s2 + $0xe4] sm:$0xf]  ;;  %v4456_v30 = vor.u32 %v6343_v21, %v4453_v22  ;;  %v4245_v40 = vld [vmem:[%s9939_s2 + $0x28] sm:$0xf0]  ;;  %v4773_v13 = vld [vmem:[%s9939_s2 + $0xad0] sm:$0xf] }
  0x4c   :  { %950 = vmatpush.bf16.msra.mxu1 %v4444_v46  ;;  %v4341_v46 = vld [vmem:[%s9939_s2 + $0xe8] sm:$0xf0]  ;;  %v6307_v41 = vld [vmem:[%s9939_s2 + $0xa4] sm:$0xf]  ;;  %v6526_v19 = vld [vmem:[%s9939_s2 + $0xb34] sm:$0xf0] }
  0x4d   :  { %908 = vmatpush.bf16.msra.mxu2 %v4252_v49  ;;  %v7415_v49 = vor.u32 %v6279_v35, %v4213_v36  ;;  %v4344_v55 = vor.u32 %v6315_v45, %v4341_v46  ;;  %v4445_v35 = vld [vmem:[%s9939_s2 + $0x1b8] sm:$0xf0]  ;;  %v4256_v36 = vor.u32 %v6293_v27, %v4253_v28  ;;  %v4373_v45 = vld [vmem:[%s9939_s2 + $0x128] sm:$0xf0]  ;;  %v6339_v46 = vld [vmem:[%s9939_s2 + $0x1a4] sm:$0xf] }
  0x4e   :  { %922 = vmatpush.bf16.msra.mxu3 %v4316_v50  ;;  %v4405_v50 = vld [vmem:[%s9939_s2 + $0x168] sm:$0xf0]  ;;  %v6287_v1 = vld [vmem:[%s9939_s2 + $0x4] sm:$0xf]  ;;  %v4645_v27 = vld [vmem:[%s9939_s2 + $0x9d0] sm:$0xf] }
  0x4f   :  { %934 = vmatpush.bf16.msra.mxu0 %v4396_v57  ;;  %v4269_v57 = vld [vmem:[%s9939_s2 + $0x58] sm:$0xf0]  ;;  %v4229_v3 = vld [vmem:[%s9939_s2 + $0x8] sm:$0xf0]  ;;  %v6319_v8 = vld [vmem:[%s9939_s2 + $0x104] sm:$0xf] }
  0x50   :  { %951 = vmatpush.bf16.msra.mxu1 %v4436_v59  ;;  %v4408_v59 = vor.u32 %v6331_v47, %v4405_v50  ;;  %v4272_v6 = vor.u32 %v6297_v56, %v4269_v57  ;;  %v4437_v47 = vld [vmem:[%s9939_s2 + $0x1a8] sm:$0xf0]  ;;  %v6305_v56 = vld [vmem:[%s9939_s2 + $0x94] sm:$0xf]  ;;  %v6335_v20 = vld [vmem:[%s9939_s2 + $0x184] sm:$0xf] }
  0x51   :  { %909 = vmatpush.bf16.msra.mxu2 %v4244_v62  ;;  %v4333_v62 = vld [vmem:[%s9939_s2 + $0xd8] sm:$0xf0]  ;;  %v4440_v57 = vor.u32 %v6339_v46, %v4437_v47  ;;  %v4421_v21 = vld [vmem:[%s9939_s2 + $0x188] sm:$0xf0]  ;;  %v6482_v28 = vld [vmem:[%s9939_s2 + $0x9d4] sm:$0xf0] }
  0x52   :  { %923 = vmatpush.bf16.msra.mxu3 %v4308_v63  ;;  %v6329_v63 = vld [vmem:[%s9939_s2 + $0x154] sm:$0xf]  ;;  %v6510_v46 = vld [vmem:[%s9939_s2 + $0xab4] sm:$0xf0]  ;;  %v4805_v47 = vld [vmem:[%s9939_s2 + $0xb10] sm:$0xf] }
  0x53   :  { %935 = vmatpush.bf16.msra.mxu0 %v4388_v7  ;;  %v4336_v7 = vor.u32 %v6313_v61, %v4333_v62  ;;  %v4365_v61 = vld [vmem:[%s9939_s2 + $0x118] sm:$0xf0]  ;;  %v6337_v62 = vld [vmem:[%s9939_s2 + $0x194] sm:$0xf]  ;;  %vm3884_vm3 = vmor %vm3883_vm2, %vm3882_vm1 }
  0x54   :  { %952 = vmatpush.bf16.msra.mxu1 %v4428_v10  ;;  %v4400_v10 = vor.u32 %v6329_v63, %v4397_v0  ;;  %v4429_v63 = vld [vmem:[%s9939_s2 + $0x198] sm:$0xf0] }
  0x55   :  { %910 = vmatpush.bf16.msra.mxu2 %v4236_v15  ;;  %v4464_v15 = vor.u32 %v6345_v4, %v4461_v5  ;;  %v4432_v9 = vor.u32 %v6337_v62, %v4429_v63  ;;  %v6508_v62 = vld [vmem:[%s9939_s2 + $0xaa4] sm:$0xf0]  ;;  %v4797_v63 = vld [vmem:[%s9939_s2 + $0xb00] sm:$0xf] }
  0x56   :  { %924 = vmatpush.bf16.msra.mxu3 %v4300_v18  ;;  %v4325_v18 = vld [vmem:[%s9939_s2 + $0xc8] sm:$0xf0] }
  0x57   :  { %936 = vmatpush.bf16.msra.mxu0 %v4380_v25  ;;  %v4328_v25 = vor.u32 %v6311_v14, %v4325_v18  ;;  %v6514_v14 = vld [vmem:[%s9939_s2 + $0xad4] sm:$0xf0]  ;;  %v4232_v18 = vor.u32 %v6287_v1, %v4229_v3 }
  0x58   :  { %953 = vmatpush.bf16.msra.mxu1 %v4420_v29  ;;  %v6309_v29 = vld [vmem:[%s9939_s2 + $0xb4] sm:$0xf] }
  0x59   :  { %911 = vmatpush.bf16.msra.mxu2 %v4228_v33  ;;  %v4381_v33 = vld [vmem:[%s9939_s2 + $0x138] sm:$0xf0]  ;;  %v4320_v37 = vor.u32 %v6309_v29, %v4317_v31  ;;  %v4701_v29 = vld [vmem:[%s9939_s2 + $0xa40] sm:$0xf]  ;;  %v4424_v31 = vor.u32 %v6335_v20, %v4421_v21  ;;  %v6474_v20 = vld [vmem:[%s9939_s2 + $0x994] sm:$0xf0] }
  0x5a   :  { %925 = vmatpush.bf16.msra.mxu3 %v4292_v34  ;;  %v6341_v34 = vld [vmem:[%s9939_s2 + $0x1b4] sm:$0xf]  ;;  %v4669_v21 = vld [vmem:[%s9939_s2 + $0xa00] sm:$0xf] }
  0x5b   :  { %937 = vmatpush.bf16.msra.mxu0 %v4372_v44  ;;  %4465 = vmatmul.msk.bf16.vlgmr.msra.gmra.mxu1 %vm466_vm0, %v7426_v53  ;;  %v4448_v42 = vor.u32 %v6341_v34, %v4445_v35  ;;  %v6323_v44 = vld [vmem:[%s9939_s2 + $0x124] sm:$0xf]  ;;  %v6512_v34 = vld [vmem:[%s9939_s2 + $0xac4] sm:$0xf0]  ;;  %v4813_v35 = vld [vmem:[%s9939_s2 + $0xb20] sm:$0xf] }
  0x5c   :  { %960 = vmatpush.bf16.msrb.mxu1 %v4288_v38  ;;  %912 = vmatmul.bf16.vlgmr.msra.gmra.mxu2 %v7413_v48  ;;  %v4384_v38 = vor.u32 %v6325_v32, %v4381_v33  ;;  %v4376_v52 = vor.u32 %v6323_v44, %v4373_v45  ;;  %v6496_v32 = vld [vmem:[%s9939_s2 + $0xa44] sm:$0xf0]  ;;  %v4765_v33 = vld [vmem:[%s9939_s2 + $0xac0] sm:$0xf]  ;;  %v6494_v44 = vld [vmem:[%s9939_s2 + $0xa34] sm:$0xf0] }
  0x5d   :  { %974 = vmatpush.bf16.msrb.mxu2 %v4352_v39  ;;  %926 = vmatmul.bf16.vlgmr.msra.gmra.mxu3 %v7415_v49  ;;  %v6291_v39 = vld [vmem:[%s9939_s2 + $0x24] sm:$0xf]  ;;  %v4757_v45 = vld [vmem:[%s9939_s2 + $0xab0] sm:$0xf] }
  0x5e   :  { %988 = vmatpush.bf16.msrb.mxu3 %v4416_v43  ;;  %v4309_v43 = vld [vmem:[%s9939_s2 + $0xa8] sm:$0xf0]  ;;  %v4248_v50 = vor.u32 %v6291_v39, %v4245_v40  ;;  %v4766_v39 = vor.u32 %v6512_v34, %v4765_v33  ;;  %v4637_v40 = vld [vmem:[%s9939_s2 + $0x9c0] sm:$0xf] }
  0x5f   :  { %938 = vmatpush.bf16.msra.mxu0 %v4364_v60  ;;  %v4312_v51 = vor.u32 %v6307_v41, %v4309_v43  ;;  %v6321_v60 = vld [vmem:[%s9939_s2 + $0x114] sm:$0xf]  ;;  %v6480_v41 = vld [vmem:[%s9939_s2 + $0x9c4] sm:$0xf0]  ;;  %v4605_v34 = vld [vmem:[%s9939_s2 + $0x980] sm:$0xf] }
  0x60   :  { %961 = vmatpush.bf16.msrb.mxu1 %v4280_v54  ;;  %v6289_v54 = vld [vmem:[%s9939_s2 + $0x14] sm:$0xf]  ;;  %v4368_v5 = vor.u32 %v6321_v60, %v4365_v61  ;;  %v6492_v60 = vld [vmem:[%s9939_s2 + $0xa24] sm:$0xf0]  ;;  %v4749_v61 = vld [vmem:[%s9939_s2 + $0xaa0] sm:$0xf] }
  0x61   :  { %975 = vmatpush.bf16.msrb.mxu2 %v4344_v55  ;;  %v4237_v55 = vld [vmem:[%s9939_s2 + $0x18] sm:$0xf0] }
  0x62   :  { %989 = vmatpush.bf16.msrb.mxu3 %v4408_v59  ;;  %v4301_v59 = vld [vmem:[%s9939_s2 + $0x98] sm:$0xf0]  ;;  %v4240_v0 = vor.u32 %v6289_v54, %v4237_v55  ;;  %v4758_v54 = vor.u32 %v6510_v46, %v4757_v45  ;;  %v4629_v55 = vld [vmem:[%s9939_s2 + $0x9b0] sm:$0xf] }
  0x63   :  { %939 = vmatpush.bf16.msra.mxu0 %v4356_v11  ;;  %v4304_v4 = vor.u32 %v6305_v56, %v4301_v59  ;;  %v4709_v11 = vld [vmem:[%s9939_s2 + $0xa50] sm:$0xf]  ;;  %v6478_v56 = vld [vmem:[%s9939_s2 + $0x9b4] sm:$0xf0] }
  0x64   :  { %962 = vmatpush.bf16.msrb.mxu1 %v4272_v6  ;;  %v6303_v6 = vld [vmem:[%s9939_s2 + $0x84] sm:$0xf]  ;;  %v4630_v1 = vor.u32 %v6478_v56, %v4629_v55  ;;  %v4597_v45 = vld [vmem:[%s9939_s2 + $0x970] sm:$0xf]  ;;  %v6500_v55 = vld [vmem:[%s9939_s2 + $0xa64] sm:$0xf0] }
  0x65   :  { %976 = vmatpush.bf16.msrb.mxu2 %v4336_v7  ;;  %v4293_v7 = vld [vmem:[%s9939_s2 + $0x88] sm:$0xf0]  ;;  %v6513_v56 = vld [vmem:[%s9939_s2 + $0xad4] sm:$0xf] }
  0x66   :  { %990 = vmatpush.bf16.msrb.mxu3 %v4400_v10  ;;  %940 = vmatmul.bf16.vlgmr.msra.gmra.mxu0 %v7492_v23  ;;  %v4357_v10 = vld [vmem:[%s9939_s2 + $0x108] sm:$0xf0]  ;;  %v4296_v22 = vor.u32 %v6303_v6, %v4293_v7  ;;  %v6476_v6 = vld [vmem:[%s9939_s2 + $0x9a4] sm:$0xf0]  ;;  %v4677_v7 = vld [vmem:[%s9939_s2 + $0xa10] sm:$0xf] }
  0x67   :  { %1004 = vmatpush.bf16.msrb.mxu0 %v4464_v15  ;;  %v4821_v15 = vld [vmem:[%s9939_s2 + $0xb30] sm:$0xf] }
  0x68   :  { %963 = vmatpush.bf16.msrb.mxu1 %v4264_v24  ;;  %v4360_v24 = vor.u32 %v6319_v8, %v4357_v10  ;;  %v4741_v10 = vld [vmem:[%s9939_s2 + $0xa90] sm:$0xf] }
  0x69   :  { %977 = vmatpush.bf16.msrb.mxu2 %v4328_v25  ;;  %v4710_v25 = vor.u32 %v6498_v12, %v4709_v11  ;;  %v6506_v11 = vld [vmem:[%s9939_s2 + $0xa94] sm:$0xf0]  ;;  %v4789_v12 = vld [vmem:[%s9939_s2 + $0xaf0] sm:$0xf] }
  0x6a   :  { %991 = vmatpush.bf16.msrb.mxu3 %v4392_v26  ;;  %v4774_v26 = vor.u32 %v6514_v14, %v4773_v13  ;;  %v6518_v13 = vld [vmem:[%s9939_s2 + $0xaf4] sm:$0xf0] }
  0x6b   :  { %1005 = vmatpush.bf16.msrb.mxu0 %v4456_v30  ;;  %v4822_v30 = vor.u32 %v6526_v19, %v4821_v15  ;;  %v4613_v19 = vld [vmem:[%s9939_s2 + $0x990] sm:$0xf] }
  0x6c   :  { %964 = vmatpush.bf16.msrb.mxu1 %v4256_v36  ;;  %v6524_v36 = vld [vmem:[%s9939_s2 + $0xb24] sm:$0xf0] }
  0x6d   :  { %978 = vmatpush.bf16.msrb.mxu2 %v4320_v37  ;;  %v4646_v37 = vor.u32 %v6482_v28, %v4645_v27  ;;  %v4814_v43 = vor.u32 %v6524_v36, %v4813_v35  ;;  %v4781_v27 = vld [vmem:[%s9939_s2 + $0xae0] sm:$0xf]  ;;  %v6516_v28 = vld [vmem:[%s9939_s2 + $0xae4] sm:$0xf0]  ;;  %v4661_v36 = vld [vmem:[%s9939_s2 + $0x9f0] sm:$0xf] }
  0x6e   :  { %992 = vmatpush.bf16.msrb.mxu3 %v4384_v38  ;;  %v4702_v38 = vor.u32 %v6496_v32, %v4701_v29  ;;  %v4614_v29 = vor.u32 %v6474_v20, %v4613_v19  ;;  %v6472_v35 = vld [vmem:[%s9939_s2 + $0x984] sm:$0xf0]  ;;  %v4623_v19 = vld [vmem:[%s9939_s2 + $0x9a8] sm:$0xf0] }
  0x6f   :  { %1006 = vmatpush.bf16.msrb.mxu0 %v4448_v42  ;;  %v4693_v42 = vld [vmem:[%s9939_s2 + $0xa30] sm:$0xf] }
  0x70   :  { %965 = vmatpush.bf16.msrb.mxu1 %v4248_v50  ;;  %v6522_v50 = vld [vmem:[%s9939_s2 + $0xb14] sm:$0xf0] }
  0x71   :  { %979 = vmatpush.bf16.msrb.mxu2 %v4312_v51  ;;  %v4638_v51 = vor.u32 %v6480_v41, %v4637_v40  ;;  %v4806_v59 = vor.u32 %v6522_v50, %v4805_v47  ;;  %v6502_v40 = vld [vmem:[%s9939_s2 + $0xa74] sm:$0xf0] }
  0x72   :  { %993 = vmatpush.bf16.msrb.mxu3 %v4376_v52  ;;  %v4694_v52 = vor.u32 %v6494_v44, %v4693_v42  ;;  %v4606_v42 = vor.u32 %v6472_v35, %v4605_v34  ;;  %v4639_v44 = vld [vmem:[%s9939_s2 + $0x9c8] sm:$0xf0]  ;;  %v6470_v50 = vld [vmem:[%s9939_s2 + $0x974] sm:$0xf0] }
  0x73   :  { %1007 = vmatpush.bf16.msrb.mxu0 %v4440_v57  ;;  %v4685_v57 = vld [vmem:[%s9939_s2 + $0xa20] sm:$0xf] }
  0x74   :  { %966 = vmatpush.bf16.msrb.mxu1 %v4240_v0  ;;  %v6520_v0 = vld [vmem:[%s9939_s2 + $0xb04] sm:$0xf0]  ;;  %v4686_v3 = vor.u32 %v6492_v60, %v4685_v57  ;;  %v6525_v60 = vld [vmem:[%s9939_s2 + $0xb34] sm:$0xf] }
  0x75   :  { %980 = vmatpush.bf16.msrb.mxu2 %v4304_v4  ;;  %v4750_v4 = vor.u32 %v6508_v62, %v4749_v61  ;;  %v4798_v8 = vor.u32 %v6520_v0, %v4797_v63  ;;  %v4823_v61 = vld [vmem:[%s9939_s2 + $0xb38] sm:$0xf0]  ;;  %v4598_v62 = vor.u32 %v6470_v50, %v4597_v45  ;;  %v6477_v63 = vld [vmem:[%s9939_s2 + $0x9b4] sm:$0xf]  ;;  %v6491_v50 = vld [vmem:[%s9939_s2 + $0xa24] sm:$0xf] }
  0x76   :  { %994 = vmatpush.bf16.msrb.mxu3 %v4368_v5  ;;  %v4621_v5 = vld [vmem:[%s9939_s2 + $0x9a0] sm:$0xf]  ;;  %v4631_v0 = vld [vmem:[%s9939_s2 + $0x9b8] sm:$0xf0] }
  0x77   :  { %1008 = vmatpush.bf16.msrb.mxu0 %v4432_v9  ;;  %v6490_v9 = vld [vmem:[%s9939_s2 + $0xa14] sm:$0xf0]  ;;  %v4622_v14 = vor.u32 %v6476_v6, %v4621_v5  ;;  %v6468_v5 = vld [vmem:[%s9939_s2 + $0x964] sm:$0xf0] }
  0x78   :  { %967 = vmatpush.bf16.msrb.mxu1 %v4232_v18  ;;  %v4678_v15 = vor.u32 %v6490_v9, %v4677_v7  ;;  %v4742_v18 = vor.u32 %v6506_v11, %v4741_v10  ;;  %v4826_v7 = vor.u32 %v6525_v60, %v4823_v61  ;;  %v4711_v9 = vld [vmem:[%s9939_s2 + $0xa58] sm:$0xf0]  ;;  %v6511_v10 = vld [vmem:[%s9939_s2 + $0xac4] sm:$0xf]  ;;  %v4634_v11 = vor.u32 %v6477_v63, %v4631_v0 }
  0x79   :  { %981 = vmatpush.bf16.msrb.mxu2 %v4296_v22  ;;  %v4790_v22 = vor.u32 %v6518_v13, %v4789_v12  ;;  %v4767_v12 = vld [vmem:[%s9939_s2 + $0xac8] sm:$0xf0]  ;;  %v6523_v13 = vld [vmem:[%s9939_s2 + $0xb24] sm:$0xf]  ;;  %v4599_v60 = vld [vmem:[%s9939_s2 + $0x978] sm:$0xf0] }
  0x7a   :  { %995 = vmatpush.bf16.msrb.mxu3 %v4360_v24  ;;  %v6488_v24 = vld [vmem:[%s9939_s2 + $0xa04] sm:$0xf0] }
  0x7b   :  { %1009 = vmatpush.bf16.msrb.mxu0 %v4424_v31  ;;  %968 = vmatmul.bf16.vlgmr.msrb.gmra.mxu1 %v7413_v48  ;;  %v4647_v31 = vld [vmem:[%s9939_s2 + $0x9d8] sm:$0xf0]  ;;  %v4670_v32 = vor.u32 %v6488_v24, %v4669_v21  ;;  %v4770_v21 = vor.u32 %v6511_v10, %v4767_v12  ;;  %v6495_v24 = vld [vmem:[%s9939_s2 + $0xa44] sm:$0xf]  ;;  %v4887_v10 = vld [vmem:[%s9939_s2 + $0x250] sm:$0xf] }
  0x7c   :  { %1452 = vmatpush.bf16.msra.mxu1 %v4710_v25  ;;  %982 = vmatmul.bf16.vlgmr.msrb.gmra.mxu2 %v7415_v49  ;;  %v4733_v25 = vld [vmem:[%s9939_s2 + $0xa80] sm:$0xf] }
  0x7d   :  { %1466 = vmatpush.bf16.msra.mxu2 %v4774_v26  ;;  %996 = vmatmul.bf16.vlgmr.msrb.gmra.mxu3 %v7492_v23  ;;  %v6504_v26 = vld [vmem:[%s9939_s2 + $0xa84] sm:$0xf0] }
  0x7e   :  { %1482 = vmatpush.bf16.msra.mxu3 %v4822_v30  ;;  %4466 = vmatmul.msk.bf16.vlgmr.msrb.gmra.mxu0 %vm466_vm0, %v7426_v53  ;;  %v6481_v30 = vld [vmem:[%s9939_s2 + $0x9d4] sm:$0xf]  ;;  %v4734_v33 = vor.u32 %v6504_v26, %v4733_v25  ;;  %v4703_v25 = vld [vmem:[%s9939_s2 + $0xa48] sm:$0xf0] }
  0x7f   :  { %1438 = vmatpush.bf16.msra.mxu0 %v4646_v37  ;;  %v4782_v37 = vor.u32 %v6516_v28, %v4781_v27  ;;  %v4650_v41 = vor.u32 %v6481_v30, %v4647_v31  ;;  %v6509_v26 = vld [vmem:[%s9939_s2 + $0xab4] sm:$0xf]  ;;  %v4759_v28 = vld [vmem:[%s9939_s2 + $0xab8] sm:$0xf0] }
  0x80   :  { %1453 = vmatpush.bf16.msra.mxu1 %v4702_v38  ;;  %v6486_v38 = vld [vmem:[%s9939_s2 + $0x9f4] sm:$0xf0]  ;;  %v4807_v30 = vld [vmem:[%s9939_s2 + $0xb18] sm:$0xf0]  ;;  %v6473_v31 = vld [vmem:[%s9939_s2 + $0x994] sm:$0xf]  ;;  %v4762_v34 = vor.u32 %v6509_v26, %v4759_v28 }
  0x81   :  { %1467 = vmatpush.bf16.msra.mxu2 %v4766_v39  ;;  %v4725_v39 = vld [vmem:[%s9939_s2 + $0xa70] sm:$0xf]  ;;  %v4662_v46 = vor.u32 %v6486_v38, %v4661_v36  ;;  %v6493_v36 = vld [vmem:[%s9939_s2 + $0xa34] sm:$0xf]  ;;  %v6507_v38 = vld [vmem:[%s9939_s2 + $0xaa4] sm:$0xf] }
  0x82   :  { %1483 = vmatpush.bf16.msra.mxu3 %v4814_v43  ;;  %v6479_v43 = vld [vmem:[%s9939_s2 + $0x9c4] sm:$0xf]  ;;  %v4726_v47 = vor.u32 %v6502_v40, %v4725_v39  ;;  %v4751_v40 = vld [vmem:[%s9939_s2 + $0xaa8] sm:$0xf0]  ;;  %v6420_v28 = vld [vmem:[%s9939_s2 + $0x244] sm:$0xf0] }
  0x83   :  { %1439 = vmatpush.bf16.msra.mxu0 %v4638_v51  ;;  %v4653_v51 = vld [vmem:[%s9939_s2 + $0x9e0] sm:$0xf]  ;;  %v4642_v57 = vor.u32 %v6479_v43, %v4639_v44  ;;  %v6471_v43 = vld [vmem:[%s9939_s2 + $0x984] sm:$0xf]  ;;  %v4607_v44 = vld [vmem:[%s9939_s2 + $0x988] sm:$0xf0] }
  0x84   :  { %1454 = vmatpush.bf16.msra.mxu1 %v4694_v52  ;;  %v6484_v52 = vld [vmem:[%s9939_s2 + $0x9e4] sm:$0xf0] }
  0x85   :  { %1468 = vmatpush.bf16.msra.mxu2 %v4758_v54  ;;  %v4717_v54 = vld [vmem:[%s9939_s2 + $0xa60] sm:$0xf] }
  0x86   :  { %1484 = vmatpush.bf16.msra.mxu3 %v4806_v59  ;;  %v4775_v59 = vld [vmem:[%s9939_s2 + $0xad8] sm:$0xf0] }
  0x87   :  { %1440 = vmatpush.bf16.msra.mxu0 %v4630_v1  ;;  %v4654_v1 = vor.u32 %v6484_v52, %v4653_v51  ;;  %v4778_v6 = vor.u32 %v6513_v56, %v4775_v59  ;;  %v4687_v51 = vld [vmem:[%s9939_s2 + $0xa28] sm:$0xf0]  ;;  %v6505_v52 = vld [vmem:[%s9939_s2 + $0xa94] sm:$0xf] }
  0x88   :  { %1455 = vmatpush.bf16.msra.mxu1 %v4686_v3  ;;  %v4718_v3 = vor.u32 %v6500_v55, %v4717_v54  ;;  %v4610_v54 = vor.u32 %v6471_v43, %v4607_v44  ;;  %v4743_v55 = vld [vmem:[%s9939_s2 + $0xa98] sm:$0xf0]  ;;  %v6517_v56 = vld [vmem:[%s9939_s2 + $0xaf4] sm:$0xf]  ;;  %v4690_v61 = vor.u32 %v6491_v50, %v4687_v51  ;;  %v4935_v44 = vld [vmem:[%s9939_s2 + $0x2b0] sm:$0xf] }
  0x89   :  { %1469 = vmatpush.bf16.msra.mxu2 %v4750_v4  ;;  %v4589_v4 = vld [vmem:[%s9939_s2 + $0x960] sm:$0xf]  ;;  %v6469_v59 = vld [vmem:[%s9939_s2 + $0x974] sm:$0xf]  ;;  %v4746_v63 = vor.u32 %v6505_v52, %v4743_v55  ;;  %v6483_v51 = vld [vmem:[%s9939_s2 + $0x9e4] sm:$0xf] }
  0x8a   :  { %1485 = vmatpush.bf16.msra.mxu3 %v4798_v8  ;;  %v6497_v8 = vld [vmem:[%s9939_s2 + $0xa54] sm:$0xf]  ;;  %v4655_v52 = vld [vmem:[%s9939_s2 + $0x9e8] sm:$0xf0] }
  0x8b   :  { %1441 = vmatpush.bf16.msra.mxu0 %v4622_v14  ;;  %v4815_v14 = vld [vmem:[%s9939_s2 + $0xb28] sm:$0xf0]  ;;  %v4714_v20 = vor.u32 %v6497_v8, %v4711_v9 }
  0x8c   :  { %1456 = vmatpush.bf16.msra.mxu1 %v4678_v15  ;;  %v4590_v15 = vor.u32 %v6468_v5, %v4589_v4  ;;  %v6503_v4 = vld [vmem:[%s9939_s2 + $0xa84] sm:$0xf]  ;;  %v4602_v5 = vor.u32 %v6469_v59, %v4599_v60  ;;  %v4783_v8 = vld [vmem:[%s9939_s2 + $0xae8] sm:$0xf0]  ;;  %v6454_v59 = vld [vmem:[%s9939_s2 + $0x354] sm:$0xf0] }
  0x8d   :  { %1470 = vmatpush.bf16.msra.mxu2 %v4742_v18  ;;  %v6475_v18 = vld [vmem:[%s9939_s2 + $0x9a4] sm:$0xf]  ;;  %v4591_v9 = vld [vmem:[%s9939_s2 + $0x968] sm:$0xf0]  ;;  %v4863_v60 = vld [vmem:[%s9939_s2 + $0x220] sm:$0xf] }
  0x8e   :  { %1486 = vmatpush.bf16.msra.mxu3 %v4790_v22  ;;  %v4818_v22 = vor.u32 %v6523_v13, %v4815_v14  ;;  %v4626_v27 = vor.u32 %v6475_v18, %v4623_v19  ;;  %v4951_v13 = vld [vmem:[%s9939_s2 + $0x2d0] sm:$0xf]  ;;  %v6438_v14 = vld [vmem:[%s9939_s2 + $0x2d4] sm:$0xf0]  ;;  %v6487_v19 = vld [vmem:[%s9939_s2 + $0xa04] sm:$0xf] }
  0x8f   :  { %1442 = vmatpush.bf16.msra.mxu0 %v4614_v29  ;;  %v6521_v29 = vld [vmem:[%s9939_s2 + $0xb14] sm:$0xf]  ;;  %v4952_v26 = vor.u32 %v6438_v14, %v4951_v13  ;;  %v6452_v13 = vld [vmem:[%s9939_s2 + $0x344] sm:$0xf0]  ;;  %v4855_v14 = vld [vmem:[%s9939_s2 + $0x210] sm:$0xf] }
  0x90   :  { %1457 = vmatpush.bf16.msra.mxu1 %v4670_v32  ;;  %v4615_v32 = vld [vmem:[%s9939_s2 + $0x998] sm:$0xf0]  ;;  %v4810_v35 = vor.u32 %v6521_v29, %v4807_v30  ;;  %v4943_v30 = vld [vmem:[%s9939_s2 + $0x2c0] sm:$0xf] }
  0x91   :  { %1471 = vmatpush.bf16.msra.mxu2 %v4734_v33  ;;  %v4706_v33 = vor.u32 %v6495_v24, %v4703_v25  ;;  %v4618_v39 = vor.u32 %v6473_v31, %v4615_v32  ;;  %v6501_v24 = vld [vmem:[%s9939_s2 + $0xa74] sm:$0xf]  ;;  %v4727_v25 = vld [vmem:[%s9939_s2 + $0xa78] sm:$0xf0]  ;;  %v6436_v31 = vld [vmem:[%s9939_s2 + $0x2c4] sm:$0xf0] }
  0x92   :  { %1487 = vmatpush.bf16.msra.mxu3 %v4782_v37  ;;  %v4695_v37 = vld [vmem:[%s9939_s2 + $0xa38] sm:$0xf0]  ;;  %v4730_v32 = vor.u32 %v6501_v24, %v4727_v25 }
  0x93   :  { %1443 = vmatpush.bf16.msra.mxu0 %v4606_v42  ;;  %v4799_v42 = vld [vmem:[%s9939_s2 + $0xb08] sm:$0xf0]  ;;  %v4698_v45 = vor.u32 %v6493_v36, %v4695_v37  ;;  %v6499_v36 = vld [vmem:[%s9939_s2 + $0xa64] sm:$0xf] }
  0x94   :  { %1458 = vmatpush.bf16.msra.mxu1 %v4662_v46  ;;  %v4754_v46 = vor.u32 %v6507_v38, %v4751_v40  ;;  %v4719_v37 = vld [vmem:[%s9939_s2 + $0xa68] sm:$0xf0]  ;;  %v4871_v38 = vld [vmem:[%s9939_s2 + $0x230] sm:$0xf]  ;;  %v6418_v40 = vld [vmem:[%s9939_s2 + $0x234] sm:$0xf0] }
  0x95   :  { %1472 = vmatpush.bf16.msra.mxu2 %v4726_v47  ;;  %4827 = vmatmul.msk.bf16.vlgmr.msra.gmra.mxu3 %vm466_vm0, %v7064_v2  ;;  %v4722_v50 = vor.u32 %v6499_v36, %v4719_v37  ;;  %v4872_v55 = vor.u32 %v6418_v40, %v4871_v38  ;;  %v6448_v40 = vld [vmem:[%s9939_s2 + $0x324] sm:$0xf0] }
  0x96   :  { %1494 = vmatpush.bf16.msrb.mxu3 %v4650_v41  ;;  %v6519_v41 = vld [vmem:[%s9939_s2 + $0xb04] sm:$0xf] }
  0x97   :  { %1444 = vmatpush.bf16.msra.mxu0 %v4598_v62  ;;  %v4802_v47 = vor.u32 %v6519_v41, %v4799_v42  ;;  %v6489_v62 = vld [vmem:[%s9939_s2 + $0xa14] sm:$0xf]  ;;  %v5063_v41 = vld [vmem:[%s9939_s2 + $0x3b0] sm:$0xf]  ;;  %v6466_v42 = vld [vmem:[%s9939_s2 + $0x3b4] sm:$0xf0] }
  0x98   :  { %1459 = vmatpush.bf16.msra.mxu1 %v4654_v1  ;;  %v4679_v1 = vld [vmem:[%s9939_s2 + $0xa18] sm:$0xf0] }
  0x99   :  { %1473 = vmatpush.bf16.msra.mxu2 %v4718_v3  ;;  %v6467_v3 = vld [vmem:[%s9939_s2 + $0x964] sm:$0xf]  ;;  %v4682_v12 = vor.u32 %v6489_v62, %v4679_v1  ;;  %v6464_v1 = vld [vmem:[%s9939_s2 + $0x3a4] sm:$0xf0] }
  0x9a   :  { %1495 = vmatpush.bf16.msrb.mxu3 %v4642_v57  ;;  %v4791_v57 = vld [vmem:[%s9939_s2 + $0xaf8] sm:$0xf0] }
  0x9b   :  { %1445 = vmatpush.bf16.msra.mxu0 %v4590_v15  ;;  %1460 = vmatmul.bf16.vlgmr.msra.gmra.mxu1 %v7098_v17  ;;  %v4794_v0 = vor.u32 %v6517_v56, %v4791_v57  ;;  %v5064_v56 = vor.u32 %v6466_v42, %v5063_v41  ;;  %v5015_v57 = vld [vmem:[%s9939_s2 + $0x350] sm:$0xf] }
  0x9c   :  { %1522 = vmatpush.bf16.msrb.mxu1 %v4778_v6  ;;  %1474 = vmatmul.bf16.vlgmr.msra.gmra.mxu2 %v7047_v58  ;;  %v4735_v6 = vld [vmem:[%s9939_s2 + $0xa88] sm:$0xf0]  ;;  %v4839_v41 = vld [vmem:[%s9939_s2 + $0x1f0] sm:$0xf] }
  0x9d   :  { %1538 = vmatpush.bf16.msrb.mxu2 %v4826_v7  ;;  %v6515_v7 = vld [vmem:[%s9939_s2 + $0xae4] sm:$0xf]  ;;  %v4738_v15 = vor.u32 %v6503_v4, %v4735_v6  ;;  %v4658_v4 = vor.u32 %v6483_v51, %v4655_v52  ;;  %v6432_v6 = vld [vmem:[%s9939_s2 + $0x2a4] sm:$0xf0]  ;;  %v4983_v51 = vld [vmem:[%s9939_s2 + $0x310] sm:$0xf] }
  0x9e   :  { %1496 = vmatpush.bf16.msrb.mxu3 %v4634_v11  ;;  %1446 = vmatmul.bf16.vlgmr.msra.gmra.mxu0 %v7096_v16  ;;  %v6422_v11 = vld [vmem:[%s9939_s2 + $0x254] sm:$0xf0]  ;;  %v4786_v18 = vor.u32 %v6515_v7, %v4783_v8  ;;  %v5016_v8 = vor.u32 %v6454_v59, %v5015_v57  ;;  %v6408_v57 = vld [vmem:[%s9939_s2 + $0x1e4] sm:$0xf0]  ;;  %v4895_v59 = vld [vmem:[%s9939_s2 + $0x260] sm:$0xf] }
  0x9f   :  { %1508 = vmatpush.bf16.msrb.mxu0 %v4714_v20  ;;  %v4671_v20 = vld [vmem:[%s9939_s2 + $0xa08] sm:$0xf0]  ;;  %v6446_v52 = vld [vmem:[%s9939_s2 + $0x314] sm:$0xf0] }
  0xa0   :  { %1523 = vmatpush.bf16.msrb.mxu1 %v4770_v21  ;;  %v4594_v21 = vor.u32 %v6467_v3, %v4591_v9  ;;  %v4674_v29 = vor.u32 %v6487_v19, %v4671_v20  ;;  %v5047_v19 = vld [vmem:[%s9939_s2 + $0x390] sm:$0xf]  ;;  %v6462_v20 = vld [vmem:[%s9939_s2 + $0x394] sm:$0xf0] }
  0xa1   :  { %1539 = vmatpush.bf16.msrb.mxu2 %v4818_v22  ;;  %v4888_v22 = vor.u32 %v6422_v11, %v4887_v10 }
  0xa2   :  { %1497 = vmatpush.bf16.msrb.mxu3 %v4626_v27  ;;  %v4879_v27 = vld [vmem:[%s9939_s2 + $0x240] sm:$0xf] }
  0xa3   :  { %1509 = vmatpush.bf16.msrb.mxu0 %v4706_v33  ;;  %v6485_v33 = vld [vmem:[%s9939_s2 + $0x9f4] sm:$0xf] }
  0xa4   :  { %1524 = vmatpush.bf16.msrb.mxu1 %v4762_v34  ;;  %v4663_v34 = vld [vmem:[%s9939_s2 + $0x9f8] sm:$0xf0]  ;;  %v521_v7 = vpop.f32.mrf.mxu3 }
  0xa5   :  { %1540 = vmatpush.bf16.msrb.mxu2 %v4810_v35  ;;  %v4880_v35 = vor.u32 %v6420_v28, %v4879_v27  ;;  %v4666_v43 = vor.u32 %v6485_v33, %v4663_v34  ;;  %v4999_v27 = vld [vmem:[%s9939_s2 + $0x330] sm:$0xf]  ;;  %v6450_v28 = vld [vmem:[%s9939_s2 + $0x334] sm:$0xf0]  ;;  %v6460_v33 = vld [vmem:[%s9939_s2 + $0x384] sm:$0xf0] }
  0xa6   :  { %1498 = vmatpush.bf16.msrb.mxu3 %v4618_v39  ;;  %v4944_v39 = vor.u32 %v6436_v31, %v4943_v30  ;;  %v6412_v31 = vld [vmem:[%s9939_s2 + $0x204] sm:$0xf0]  ;;  %v4911_v34 = vld [vmem:[%s9939_s2 + $0x280] sm:$0xf]  ;;  %v5000_v36 = vor.u32 %v6450_v28, %v4999_v27  ;;  %v4945_v28 = vld [vmem:[%s9939_s2 + $0x2c8] sm:$0xf0] }
  0xa7   :  { %1510 = vmatpush.bf16.msrb.mxu0 %v4698_v45  ;;  %v6434_v45 = vld [vmem:[%s9939_s2 + $0x2b4] sm:$0xf0] }
  0xa8   :  { %1525 = vmatpush.bf16.msrb.mxu1 %v4754_v46  ;;  %v479_v46 = vpop.f32.mrf.mxu0  ;;  %v4936_v62 = vor.u32 %v6434_v45, %v4935_v44  ;;  %v5031_v44 = vld [vmem:[%s9939_s2 + $0x370] sm:$0xf]  ;;  %v6458_v45 = vld [vmem:[%s9939_s2 + $0x374] sm:$0xf0] }
  0xa9   :  { %1541 = vmatpush.bf16.msrb.mxu2 %v4802_v47  ;;  %v493_v47 = vpop.f32.mrf.mxu1 }
  0xaa   :  { %1499 = vmatpush.bf16.msrb.mxu3 %v4610_v54  ;;  %v494_v54 = vadd.f32 %v493_v47, %v479_v46  ;;  %v4903_v46 = vld [vmem:[%s9939_s2 + $0x270] sm:$0xf]  ;;  %v6426_v47 = vld [vmem:[%s9939_s2 + $0x274] sm:$0xf0] }
  0xab   :  { %1511 = vmatpush.bf16.msrb.mxu0 %v4690_v61  ;;  %v507_v61 = vpop.f32.mrf.mxu2 }
  0xac   :  { %1526 = vmatpush.bf16.msrb.mxu1 %v4746_v63  ;;  %v6416_v63 = vld [vmem:[%s9939_s2 + $0x224] sm:$0xf0]  ;;  %v508_v3 = vadd.f32 %v507_v61, %v494_v54  ;;  %v4904_v61 = vor.u32 %v6426_v47, %v4903_v46  ;;  %v4959_v47 = vld [vmem:[%s9939_s2 + $0x2e0] sm:$0xf] }
  0xad   :  { %1542 = vmatpush.bf16.msrb.mxu2 %v4794_v0  ;;  %v5055_v0 = vld [vmem:[%s9939_s2 + $0x3a0] sm:$0xf]  ;;  %v4864_v10 = vor.u32 %v6416_v63, %v4863_v60  ;;  %v6424_v63 = vld [vmem:[%s9939_s2 + $0x264] sm:$0xf0] }
  0xae   :  { %1500 = vmatpush.bf16.msrb.mxu3 %v4602_v5  ;;  %v4927_v5 = vld [vmem:[%s9939_s2 + $0x2a0] sm:$0xf]  ;;  %v8030_v9 = vadd.f32 %v521_v7, %v508_v3  ;;  %v5056_v11 = vor.u32 %v6464_v1, %v5055_v0  ;;  %v6456_v1 = vld [vmem:[%s9939_s2 + $0x364] sm:$0xf0]  ;;  %v6421_v3 = vld [vmem:[%s9939_s2 + $0x254] sm:$0xf]  ;;  %v4984_v7 = vor.u32 %v6446_v52, %v4983_v51 }
  0xaf   :  { %1512 = vmatpush.bf16.msrb.mxu0 %v4682_v12  ;;  %v5007_v12 = vld [vmem:[%s9939_s2 + $0x340] sm:$0xf] }
  0xb0   :  { %1527 = vmatpush.bf16.msrb.mxu1 %v4738_v15  ;;  %v4928_v15 = vor.u32 %v6432_v6, %v4927_v5  ;;  %v5008_v24 = vor.u32 %v6452_v13, %v5007_v12  ;;  %v8121_v60 = vpop.f32.mrf.mxu0  ;;  %v5023_v0 = vld [vmem:[%s9939_s2 + $0x360] sm:$0xf]  ;;  %v6437_v5 = vld [vmem:[%s9939_s2 + $0x2d4] sm:$0xf] }
  0xb1   :  { %1543 = vmatpush.bf16.msrb.mxu2 %v4786_v18  ;;  %v6414_v18 = vld [vmem:[%s9939_s2 + $0x214] sm:$0xf0]  ;;  %v8143_v6 = vpop.f32.mrf.mxu1  ;;  %v5024_v13 = vor.u32 %v6456_v1, %v5023_v0 }
  0xb2   :  { %1501 = vmatpush.bf16.msrb.mxu3 %v4594_v21  ;;  %v4919_v21 = vld [vmem:[%s9939_s2 + $0x290] sm:$0xf]  ;;  %v4856_v25 = vor.u32 %v6414_v18, %v4855_v14  ;;  %v4975_v14 = vld [vmem:[%s9939_s2 + $0x300] sm:$0xf] }
  0xb3   :  { %1513 = vmatpush.bf16.msrb.mxu0 %v4674_v29  ;;  %v4847_v29 = vld [vmem:[%s9939_s2 + $0x200] sm:$0xf]  ;;  %v8160_v18 = vpop.f32.mrf.mxu2 }
  0xb4   :  { %4828 = vmatmul.msk.bf16.vlgmr.msrb.gmra.mxu2 %vm466_vm0, %v7064_v2  ;;  %1528 = vmatpush.bf16.msrb.mxu1 %v4730_v32  ;;  %v5039_v32 = vld [vmem:[%s9939_s2 + $0x380] sm:$0xf]  ;;  %v4848_v37 = vor.u32 %v6412_v31, %v4847_v29  ;;  %v6451_v29 = vld [vmem:[%s9939_s2 + $0x344] sm:$0xf]  ;;  %v4967_v31 = vld [vmem:[%s9939_s2 + $0x2f0] sm:$0xf] }
  0xb5   :  { %1850 = vmatpush.bf16.msra.mxu2 %v4888_v22  ;;  %1502 = vmatmul.bf16.vlgmr.msrb.gmra.mxu3 %v7096_v16  ;;  %v6430_v22 = vld [vmem:[%s9939_s2 + $0x294] sm:$0xf0]  ;;  %v5040_v38 = vor.u32 %v6460_v33, %v5039_v32 }
  0xb6   :  { %1864 = vmatpush.bf16.msra.mxu3 %v4952_v26  ;;  %v5048_v26 = vor.u32 %v6462_v20, %v5047_v19  ;;  %v4920_v30 = vor.u32 %v6430_v22, %v4919_v21  ;;  %v4896_v19 = vor.u32 %v6424_v63, %v4895_v59  ;;  %v6442_v32 = vld [vmem:[%s9939_s2 + $0x2f4] sm:$0xf0]  ;;  %v4865_v63 = vld [vmem:[%s9939_s2 + $0x228] sm:$0xf0] }
  0xb7   :  { %1514 = vmatpush.bf16.msrb.mxu0 %v4666_v43  ;;  %v6410_v43 = vld [vmem:[%s9939_s2 + $0x1f4] sm:$0xf0] }
  0xb8   :  { %1529 = vmatpush.bf16.msrb.mxu1 %v4722_v50  ;;  %v4840_v54 = vor.u32 %v6410_v43, %v4839_v41  ;;  %v4937_v43 = vld [vmem:[%s9939_s2 + $0x2b8] sm:$0xf0] }
  0xb9   :  { %1851 = vmatpush.bf16.msra.mxu2 %v4880_v35  ;;  %v6428_v35 = vld [vmem:[%s9939_s2 + $0x284] sm:$0xf0] }
  0xba   :  { %1865 = vmatpush.bf16.msra.mxu3 %v4944_v39  ;;  %v4991_v39 = vld [vmem:[%s9939_s2 + $0x320] sm:$0xf]  ;;  %v4912_v42 = vor.u32 %v6428_v35, %v4911_v34 }
  0xbb   :  { %1515 = vmatpush.bf16.msrb.mxu0 %v4658_v4  ;;  %1530 = vmatmul.bf16.vlgmr.msrb.gmra.mxu1 %v7047_v58  ;;  %v4992_v50 = vor.u32 %v6448_v40, %v4991_v39  ;;  %v4889_v4 = vld [vmem:[%s9939_s2 + $0x258] sm:$0xf0]  ;;  %v6433_v40 = vld [vmem:[%s9939_s2 + $0x2b4] sm:$0xf] }
  0xbc   :  { %1894 = vmatpush.bf16.msra.mxu1 %v5064_v56  ;;  %v4831_v56 = vld [vmem:[%s9939_s2 + $0x1e0] sm:$0xf]  ;;  %v4892_v20 = vor.u32 %v6421_v3, %v4889_v4  ;;  %v4873_v39 = vld [vmem:[%s9939_s2 + $0x238] sm:$0xf0]  ;;  %v6431_v3 = vld [vmem:[%s9939_s2 + $0x2a4] sm:$0xf] }
  0xbd   :  { %1852 = vmatpush.bf16.msra.mxu2 %v4872_v55  ;;  %v5032_v55 = vor.u32 %v6458_v45, %v5031_v44  ;;  %v4832_v12 = vor.u32 %v6408_v57, %v4831_v56  ;;  %v6449_v44 = vld [vmem:[%s9939_s2 + $0x334] sm:$0xf]  ;;  %v5001_v45 = vld [vmem:[%s9939_s2 + $0x338] sm:$0xf0]  ;;  %v4940_v57 = vor.u32 %v6433_v40, %v4937_v43  ;;  %v4929_v4 = vld [vmem:[%s9939_s2 + $0x2a8] sm:$0xf0] }
  0xbe   :  { %1866 = vmatpush.bf16.msra.mxu3 %v4936_v62  ;;  %1516 = vmatmul.bf16.vlgmr.msrb.gmra.mxu0 %v7098_v17  ;;  %v8123_v62 = vpop.f32.mrf.mxu3  ;;  %v5065_v56 = vld [vmem:[%s9939_s2 + $0x3b8] sm:$0xf0]  ;;  %v5004_v59 = vor.u32 %v6449_v44, %v5001_v45  ;;  %v6409_v44 = vld [vmem:[%s9939_s2 + $0x1f4] sm:$0xf] }
  0xbf   :  { %1878 = vmatpush.bf16.msra.mxu0 %v5016_v8  ;;  %v4953_v8 = vld [vmem:[%s9939_s2 + $0x2d8] sm:$0xf0] }
  0xc0   :  { %1895 = vmatpush.bf16.msra.mxu1 %v5056_v11  ;;  %v5017_v11 = vld [vmem:[%s9939_s2 + $0x358] sm:$0xf0]  ;;  %v4956_v21 = vor.u32 %v6437_v5, %v4953_v8  ;;  %v563_v46 = vpop.f32.mrf.mxu1  ;;  %v4993_v8 = vld [vmem:[%s9939_s2 + $0x328] sm:$0xf0] }
  0xc1   :  { %1853 = vmatpush.bf16.msra.mxu2 %v4864_v10  ;;  %v6453_v10 = vld [vmem:[%s9939_s2 + $0x354] sm:$0xf]  ;;  %v4841_v45 = vld [vmem:[%s9939_s2 + $0x1f8] sm:$0xf0] }
  0xc2   :  { %1867 = vmatpush.bf16.msra.mxu3 %v4928_v15  ;;  %v6444_v15 = vld [vmem:[%s9939_s2 + $0x304] sm:$0xf0]  ;;  %v5020_v22 = vor.u32 %v6453_v10, %v5017_v11  ;;  %v6463_v11 = vld [vmem:[%s9939_s2 + $0x3a4] sm:$0xf] }
  0xc3   :  { %1879 = vmatpush.bf16.msra.mxu0 %v5008_v24  ;;  %v6419_v24 = vld [vmem:[%s9939_s2 + $0x244] sm:$0xf]  ;;  %v4976_v27 = vor.u32 %v6444_v15, %v4975_v14  ;;  %v549_v35 = vpop.f32.mrf.mxu0  ;;  %v6413_v14 = vld [vmem:[%s9939_s2 + $0x214] sm:$0xf]  ;;  %v4857_v15 = vld [vmem:[%s9939_s2 + $0x218] sm:$0xf0] }
  0xc4   :  { %1896 = vmatpush.bf16.msra.mxu1 %v5048_v26  ;;  %v6435_v26 = vld [vmem:[%s9939_s2 + $0x2c4] sm:$0xf] }
  0xc5   :  { %1854 = vmatpush.bf16.msra.mxu2 %v4856_v25  ;;  %v4881_v25 = vld [vmem:[%s9939_s2 + $0x248] sm:$0xf0] }
  0xc6   :  { %1868 = vmatpush.bf16.msra.mxu3 %v4920_v30  ;;  %v5009_v30 = vld [vmem:[%s9939_s2 + $0x348] sm:$0xf0]  ;;  %v4884_v33 = vor.u32 %v6419_v24, %v4881_v25  ;;  %v535_v34 = vpop.f32.mrf.mxu3  ;;  %v6445_v24 = vld [vmem:[%s9939_s2 + $0x314] sm:$0xf]  ;;  %v4985_v25 = vld [vmem:[%s9939_s2 + $0x318] sm:$0xf0] }
  0xc7   :  { %1880 = vmatpush.bf16.msra.mxu0 %v5000_v36  ;;  %v4948_v36 = vor.u32 %v6435_v26, %v4945_v28  ;;  %v550_v41 = vadd.f32 %v549_v35, %v535_v34  ;;  %v4860_v26 = vor.u32 %v6413_v14, %v4857_v15  ;;  %v5049_v28 = vld [vmem:[%s9939_s2 + $0x398] sm:$0xf0]  ;;  %v6427_v35 = vld [vmem:[%s9939_s2 + $0x284] sm:$0xf]  ;;  %v5377_v14 = vld [vmem:[%s9939_s2 + $0xcb0] sm:$0xf] }
  0xc8   :  { %1897 = vmatpush.bf16.msra.mxu1 %v5040_v38  ;;  %v6417_v38 = vld [vmem:[%s9939_s2 + $0x234] sm:$0xf]  ;;  %v6634_v15 = vld [vmem:[%s9939_s2 + $0xcb4] sm:$0xf0] }
  0xc9   :  { %1855 = vmatpush.bf16.msra.mxu2 %v4848_v37  ;;  %v5012_v37 = vor.u32 %v6451_v29, %v5009_v30  ;;  %v564_v51 = vadd.f32 %v563_v46, %v550_v41  ;;  %v4876_v52 = vor.u32 %v6417_v38, %v4873_v39  ;;  %v6411_v30 = vld [vmem:[%s9939_s2 + $0x204] sm:$0xf]  ;;  %v4977_v39 = vld [vmem:[%s9939_s2 + $0x308] sm:$0xf0] }
  0xca   :  { %1869 = vmatpush.bf16.msra.mxu3 %v4912_v42  ;;  %v4968_v42 = vor.u32 %v6442_v32, %v4967_v31  ;;  %v4849_v31 = vld [vmem:[%s9939_s2 + $0x208] sm:$0xf0]  ;;  %v4988_v32 = vor.u32 %v6445_v24, %v4985_v25  ;;  %v6443_v38 = vld [vmem:[%s9939_s2 + $0x304] sm:$0xf]  ;;  %v6646_v24 = vld [vmem:[%s9939_s2 + $0xd14] sm:$0xf0] }
  0xcb   :  { %1881 = vmatpush.bf16.msra.mxu0 %v4992_v50  ;;  %v6440_v50 = vld [vmem:[%s9939_s2 + $0x2e4] sm:$0xf0]  ;;  %v4852_v40 = vor.u32 %v6411_v30, %v4849_v31  ;;  %v6459_v41 = vld [vmem:[%s9939_s2 + $0x384] sm:$0xf]  ;;  %v4980_v46 = vor.u32 %v6443_v38, %v4977_v39  ;;  %v5378_v31 = vor.u32 %v6634_v15, %v5377_v14 }
  0xcc   :  { %1898 = vmatpush.bf16.msra.mxu1 %v5032_v55  ;;  %v6465_v55 = vld [vmem:[%s9939_s2 + $0x3b4] sm:$0xf]  ;;  %v4960_v1 = vor.u32 %v6440_v50, %v4959_v47  ;;  %v4905_v50 = vld [vmem:[%s9939_s2 + $0x278] sm:$0xf0]  ;;  %v6455_v25 = vld [vmem:[%s9939_s2 + $0x364] sm:$0xf] }
  0xcd   :  { %1856 = vmatpush.bf16.msra.mxu2 %v4840_v54  ;;  %v577_v54 = vpop.f32.mrf.mxu2  ;;  %v5068_v5 = vor.u32 %v6465_v55, %v5065_v56  ;;  %v6425_v47 = vld [vmem:[%s9939_s2 + $0x274] sm:$0xf]  ;;  %v8320_v56 = vpop.f32.mrf.mxu0  ;;  %v6616_v39 = vld [vmem:[%s9939_s2 + $0xc24] sm:$0xf0] }
  0xce   :  { %1870 = vmatpush.bf16.msra.mxu3 %v4904_v61  ;;  %v6415_v61 = vld [vmem:[%s9939_s2 + $0x224] sm:$0xf]  ;;  %v8226_v0 = vadd.f32 %v577_v54, %v564_v51  ;;  %v8279_v34 = vpop.f32.mrf.mxu3  ;;  %v4969_v54 = vld [vmem:[%s9939_s2 + $0x2f8] sm:$0xf0]  ;;  %v6457_v55 = vld [vmem:[%s9939_s2 + $0x374] sm:$0xf] }
  0xcf   :  { %1882 = vmatpush.bf16.msra.mxu0 %v4984_v7  ;;  %v6447_v7 = vld [vmem:[%s9939_s2 + $0x324] sm:$0xf]  ;;  %v4868_v10 = vor.u32 %v6415_v61, %v4865_v63  ;;  %v5033_v61 = vld [vmem:[%s9939_s2 + $0x378] sm:$0xf0]  ;;  %v6612_v15 = vld [vmem:[%s9939_s2 + $0xc04] sm:$0xf0] }
  0xd0   :  { %1899 = vmatpush.bf16.msra.mxu1 %v5024_v13  ;;  %v4932_v13 = vor.u32 %v6431_v3, %v4929_v4  ;;  %v6407_v63 = vld [vmem:[%s9939_s2 + $0x1e4] sm:$0xf]  ;;  %v4908_v3 = vor.u32 %v6425_v47, %v4905_v50 }
  0xd1   :  { %1857 = vmatpush.bf16.msra.mxu2 %v4832_v12  ;;  %v5057_v12 = vld [vmem:[%s9939_s2 + $0x3a8] sm:$0xf0]  ;;  %v6423_v4 = vld [vmem:[%s9939_s2 + $0x264] sm:$0xf] }
  0xd2   :  { %1871 = vmatpush.bf16.msra.mxu3 %v4896_v19  ;;  %v4996_v19 = vor.u32 %v6447_v7, %v4993_v8  ;;  %v6439_v7 = vld [vmem:[%s9939_s2 + $0x2e4] sm:$0xf] }
  0xd3   :  { %1883 = vmatpush.bf16.msra.mxu0 %v4976_v27  ;;  %5069 = vmatmul.msk.bf16.vlgmr.msra.gmra.mxu1 %vm466_vm0, %v7426_v53  ;;  %v6461_v27 = vld [vmem:[%s9939_s2 + $0x394] sm:$0xf] }
  0xd4   :  { %1906 = vmatpush.bf16.msrb.mxu1 %v4892_v20  ;;  %1858 = vmatmul.bf16.vlgmr.msra.gmra.mxu2 %v7413_v48  ;;  %v6429_v20 = vld [vmem:[%s9939_s2 + $0x294] sm:$0xf] }
  0xd5   :  { %1920 = vmatpush.bf16.msrb.mxu2 %v4956_v21  ;;  %1872 = vmatmul.bf16.vlgmr.msra.gmra.mxu3 %v7415_v49  ;;  %v4921_v21 = vld [vmem:[%s9939_s2 + $0x298] sm:$0xf0] }
  0xd6   :  { %1934 = vmatpush.bf16.msrb.mxu3 %v5020_v22  ;;  %v5060_v22 = vor.u32 %v6463_v11, %v5057_v12  ;;  %v4924_v29 = vor.u32 %v6429_v20, %v4921_v21  ;;  %v5313_v11 = vld [vmem:[%s9939_s2 + $0xc30] sm:$0xf]  ;;  %v6618_v12 = vld [vmem:[%s9939_s2 + $0xc34] sm:$0xf0] }
  0xd7   :  { %1884 = vmatpush.bf16.msra.mxu0 %v4968_v42  ;;  %v5041_v42 = vld [vmem:[%s9939_s2 + $0x388] sm:$0xf0] }
  0xd8   :  { %1907 = vmatpush.bf16.msrb.mxu1 %v4884_v33  ;;  %v8277_v33 = vpop.f32.mrf.mxu2  ;;  %v5044_v51 = vor.u32 %v6459_v41, %v5041_v42  ;;  %v6632_v41 = vld [vmem:[%s9939_s2 + $0xca4] sm:$0xf0] }
  0xd9   :  { %1921 = vmatpush.bf16.msrb.mxu2 %v4948_v36  ;;  %v4913_v36 = vld [vmem:[%s9939_s2 + $0x288] sm:$0xf0] }
  0xda   :  { %1935 = vmatpush.bf16.msrb.mxu3 %v5012_v37  ;;  %v5052_v37 = vor.u32 %v6461_v27, %v5049_v28  ;;  %v4916_v43 = vor.u32 %v6427_v35, %v4913_v36  ;;  %v6602_v35 = vld [vmem:[%s9939_s2 + $0xbb4] sm:$0xf0]  ;;  %v5305_v36 = vld [vmem:[%s9939_s2 + $0xc20] sm:$0xf] }
  0xdb   :  { %1885 = vmatpush.bf16.msra.mxu0 %v4960_v1  ;;  %v4833_v1 = vld [vmem:[%s9939_s2 + $0x1e8] sm:$0xf0]  ;;  %v5306_v50 = vor.u32 %v6616_v39, %v5305_v36  ;;  %v6626_v36 = vld [vmem:[%s9939_s2 + $0xc74] sm:$0xf0] }
  0xdc   :  { %1908 = vmatpush.bf16.msrb.mxu1 %v4876_v52  ;;  %v6441_v52 = vld [vmem:[%s9939_s2 + $0x2f4] sm:$0xf] }
  0xdd   :  { %1922 = vmatpush.bf16.msrb.mxu2 %v4940_v57  ;;  %v8322_v57 = vpop.f32.mrf.mxu1  ;;  %v4972_v8 = vor.u32 %v6441_v52, %v4969_v54  ;;  %v5241_v52 = vld [vmem:[%s9939_s2 + $0xba0] sm:$0xf]  ;;  %v6600_v54 = vld [vmem:[%s9939_s2 + $0xba4] sm:$0xf0] }
  0xde   :  { %1936 = vmatpush.bf16.msrb.mxu3 %v5004_v59  ;;  %1886 = vmatmul.bf16.vlgmr.msra.gmra.mxu0 %v7492_v23  ;;  %v4844_v59 = vor.u32 %v6409_v44, %v4841_v45  ;;  %v5417_v44 = vld [vmem:[%s9939_s2 + $0xd00] sm:$0xf]  ;;  %v6644_v45 = vld [vmem:[%s9939_s2 + $0xd04] sm:$0xf0] }
  0xdf   :  { %1950 = vmatpush.bf16.msrb.mxu0 %v5068_v5  ;;  %v4897_v5 = vld [vmem:[%s9939_s2 + $0x268] sm:$0xf0] }
  0xe0   :  { %1909 = vmatpush.bf16.msrb.mxu1 %v4868_v10  ;;  %v4961_v10 = vld [vmem:[%s9939_s2 + $0x2e8] sm:$0xf0]  ;;  %v913_v20 = vpop.f32.mrf.mxu2  ;;  %v927_v21 = vpop.f32.mrf.mxu3  ;;  %v4900_v28 = vor.u32 %v6423_v4, %v4897_v5  ;;  %v5409_v4 = vld [vmem:[%s9939_s2 + $0xcf0] sm:$0xf]  ;;  %v6642_v5 = vld [vmem:[%s9939_s2 + $0xcf4] sm:$0xf0] }
  0xe1   :  { %1923 = vmatpush.bf16.msrb.mxu2 %v4932_v13  ;;  %v5036_v13 = vor.u32 %v6457_v55, %v5033_v61  ;;  %v914_v27 = vadd.f32 %v913_v20, %v8030_v9  ;;  %v4964_v30 = vor.u32 %v6439_v7, %v4961_v10  ;;  %v5297_v55 = vld [vmem:[%s9939_s2 + $0xc10] sm:$0xf]  ;;  %v5418_v61 = vor.u32 %v6644_v45, %v5417_v44  ;;  %v6628_v20 = vld [vmem:[%s9939_s2 + $0xc84] sm:$0xf0] }
  0xe2   :  { %1937 = vmatpush.bf16.msrb.mxu3 %v4996_v19  ;;  %v5425_v19 = vld [vmem:[%s9939_s2 + $0xd10] sm:$0xf]  ;;  %v5242_v7 = vor.u32 %v6600_v54, %v5241_v52  ;;  %v5410_v14 = vor.u32 %v6642_v5, %v5409_v4  ;;  %v6608_v45 = vld [vmem:[%s9939_s2 + $0xbe4] sm:$0xf0]  ;;  %v6601_v54 = vld [vmem:[%s9939_s2 + $0xbb4] sm:$0xf] }
  0xe3   :  { %1951 = vmatpush.bf16.msrb.mxu0 %v5060_v22  ;;  %v4836_v22 = vor.u32 %v6407_v63, %v4833_v1  ;;  %v5426_v9 = vor.u32 %v6646_v24, %v5425_v19  ;;  %v941_v42 = vpop.f32.mrf.mxu0  ;;  %v6614_v63 = vld [vmem:[%s9939_s2 + $0xc14] sm:$0xf0]  ;;  %v5361_v1 = vld [vmem:[%s9939_s2 + $0xc90] sm:$0xf]  ;;  %v5353_v19 = vld [vmem:[%s9939_s2 + $0xc80] sm:$0xf] }
  0xe4   :  { %1910 = vmatpush.bf16.msrb.mxu1 %v4860_v26  ;;  %v5025_v26 = vld [vmem:[%s9939_s2 + $0x368] sm:$0xf0]  ;;  %v6592_v4 = vld [vmem:[%s9939_s2 + $0xb64] sm:$0xf0]  ;;  %v5265_v5 = vld [vmem:[%s9939_s2 + $0xbd0] sm:$0xf] }
  0xe5   :  { %1924 = vmatpush.bf16.msrb.mxu2 %v4924_v29  ;;  %v5314_v29 = vor.u32 %v6618_v12, %v5313_v11  ;;  %v5028_v38 = vor.u32 %v6455_v25, %v5025_v26  ;;  %v5233_v11 = vld [vmem:[%s9939_s2 + $0xb90] sm:$0xf]  ;;  %v6598_v12 = vld [vmem:[%s9939_s2 + $0xb94] sm:$0xf0] }
  0xe6   :  { %1938 = vmatpush.bf16.msrb.mxu3 %v4988_v32  ;;  %v5249_v32 = vld [vmem:[%s9939_s2 + $0xbb0] sm:$0xf]  ;;  %v5234_v24 = vor.u32 %v6598_v12, %v5233_v11  ;;  %v6622_v12 = vld [vmem:[%s9939_s2 + $0xc54] sm:$0xf0] }
  0xe7   :  { %1952 = vmatpush.bf16.msrb.mxu0 %v5052_v37  ;;  %v928_v37 = vadd.f32 %v927_v21, %v914_v27  ;;  %v5250_v47 = vor.u32 %v6602_v35, %v5249_v32  ;;  %v5401_v21 = vld [vmem:[%s9939_s2 + $0xce0] sm:$0xf]  ;;  %v5354_v27 = vor.u32 %v6628_v20, %v5353_v19  ;;  %v6610_v32 = vld [vmem:[%s9939_s2 + $0xbf4] sm:$0xf0]  ;;  %v5345_v35 = vld [vmem:[%s9939_s2 + $0xc70] sm:$0xf] }
  0xe8   :  { %1911 = vmatpush.bf16.msrb.mxu1 %v4852_v40  ;;  %v5369_v40 = vld [vmem:[%s9939_s2 + $0xca0] sm:$0xf]  ;;  %v5329_v11 = vld [vmem:[%s9939_s2 + $0xc50] sm:$0xf] }
  0xe9   :  { %1925 = vmatpush.bf16.msrb.mxu2 %v4916_v43  ;;  %v955_v43 = vpop.f32.mrf.mxu1 }
  0xea   :  { %1939 = vmatpush.bf16.msrb.mxu3 %v4980_v46  ;;  %v942_v46 = vadd.f32 %v941_v42, %v928_v37  ;;  %v5393_v37 = vld [vmem:[%s9939_s2 + $0xcd0] sm:$0xf]  ;;  %v6594_v42 = vld [vmem:[%s9939_s2 + $0xb74] sm:$0xf0] }
  0xeb   :  { %1953 = vmatpush.bf16.msrb.mxu0 %v5044_v51  ;;  %v5370_v51 = vor.u32 %v6632_v41, %v5369_v40  ;;  %v5346_v40 = vor.u32 %v6626_v36, %v5345_v35  ;;  %v5217_v41 = vld [vmem:[%s9939_s2 + $0xb70] sm:$0xf]  ;;  %v5379_v36 = vld [vmem:[%s9939_s2 + $0xcb8] sm:$0xf0] }
  0xec   :  { %1912 = vmatpush.bf16.msrb.mxu1 %v4844_v59  ;;  %v8403_v59 = vadd.f32 %v955_v43, %v942_v46  ;;  %v5273_v43 = vld [vmem:[%s9939_s2 + $0xbe0] sm:$0xf]  ;;  %v5218_v52 = vor.u32 %v6594_v42, %v5217_v41 }
  0xed   :  { %1926 = vmatpush.bf16.msrb.mxu2 %v4908_v3  ;;  %v6630_v3 = vld [vmem:[%s9939_s2 + $0xc94] sm:$0xf0]  ;;  %v5337_v46 = vld [vmem:[%s9939_s2 + $0xc60] sm:$0xf] }
  0xee   :  { %1940 = vmatpush.bf16.msrb.mxu3 %v4972_v8  ;;  %v5298_v8 = vor.u32 %v6614_v63, %v5297_v55  ;;  %v5362_v10 = vor.u32 %v6630_v3, %v5361_v1  ;;  %v5251_v55 = vld [vmem:[%s9939_s2 + $0xbb8] sm:$0xf0]  ;;  %v5274_v63 = vor.u32 %v6608_v45, %v5273_v43  ;;  %v5209_v3 = vld [vmem:[%s9939_s2 + $0xb60] sm:$0xf]  ;;  %v6588_v45 = vld [vmem:[%s9939_s2 + $0xb44] sm:$0xf0] }
  0xef   :  { %1954 = vmatpush.bf16.msrb.mxu0 %v5036_v13  ;;  %v5289_v13 = vld [vmem:[%s9939_s2 + $0xc00] sm:$0xf]  ;;  %v5210_v20 = vor.u32 %v6592_v4, %v5209_v3  ;;  %v5371_v3 = vld [vmem:[%s9939_s2 + $0xca8] sm:$0xf0]  ;;  %v6643_v4 = vld [vmem:[%s9939_s2 + $0xd04] sm:$0xf] }
  0xf0   :  { %1913 = vmatpush.bf16.msrb.mxu1 %v4836_v22  ;;  %v6640_v22 = vld [vmem:[%s9939_s2 + $0xce4] sm:$0xf0]  ;;  %v5290_v26 = vor.u32 %v6612_v15, %v5289_v13  ;;  %v8527_v13 = vpop.f32.mrf.mxu0  ;;  %v5254_v15 = vor.u32 %v6601_v54, %v5251_v55  ;;  %v5315_v54 = vld [vmem:[%s9939_s2 + $0xc38] sm:$0xf0]  ;;  %v6631_v55 = vld [vmem:[%s9939_s2 + $0xca4] sm:$0xf] }
  0xf1   :  { %1927 = vmatpush.bf16.msrb.mxu2 %v4900_v28  ;;  %v8449_v25 = vpop.f32.mrf.mxu1  ;;  %v5225_v28 = vld [vmem:[%s9939_s2 + $0xb80] sm:$0xf] }
  0xf2   :  { %1941 = vmatpush.bf16.msrb.mxu3 %v4964_v30  ;;  %v5281_v30 = vld [vmem:[%s9939_s2 + $0xbf0] sm:$0xf] }
  0xf3   :  { %1955 = vmatpush.bf16.msrb.mxu0 %v5028_v38  ;;  %1914 = vmatmul.bf16.vlgmr.msrb.gmra.mxu1 %v7413_v48  ;;  %v5282_v39 = vor.u32 %v6610_v32, %v5281_v30  ;;  %v5321_v30 = vld [vmem:[%s9939_s2 + $0xc40] sm:$0xf]  ;;  %v6633_v32 = vld [vmem:[%s9939_s2 + $0xcb4] sm:$0xf] }
  0xf4   :  { %2402 = vmatpush.bf16.msra.mxu1 %v5314_v29  ;;  %1928 = vmatmul.bf16.vlgmr.msrb.gmra.mxu2 %v7415_v49  ;;  %v6596_v29 = vld [vmem:[%s9939_s2 + $0xb84] sm:$0xf0] }
  0xf5   :  { %2416 = vmatpush.bf16.msra.mxu2 %v5378_v31  ;;  %1942 = vmatmul.bf16.vlgmr.msrb.gmra.mxu3 %v7492_v23  ;;  %v5402_v31 = vor.u32 %v6640_v22, %v5401_v21  ;;  %v5226_v38 = vor.u32 %v6596_v29, %v5225_v28  ;;  %v6599_v21 = vld [vmem:[%s9939_s2 + $0xba4] sm:$0xf]  ;;  %v5243_v22 = vld [vmem:[%s9939_s2 + $0xba8] sm:$0xf0]  ;;  %v5257_v28 = vld [vmem:[%s9939_s2 + $0xbc0] sm:$0xf] }
  0xf6   :  { %2432 = vmatpush.bf16.msra.mxu3 %v5426_v9  ;;  %5070 = vmatmul.msk.bf16.vlgmr.msrb.gmra.mxu0 %vm466_vm0, %v7426_v53  ;;  %v6638_v9 = vld [vmem:[%s9939_s2 + $0xcd4] sm:$0xf0]  ;;  %v6604_v29 = vld [vmem:[%s9939_s2 + $0xbc4] sm:$0xf0]  ;;  %v5246_v35 = vor.u32 %v6599_v21, %v5243_v22  ;;  %v6615_v21 = vld [vmem:[%s9939_s2 + $0xc24] sm:$0xf] }
  0xf7   :  { %2388 = vmatpush.bf16.msra.mxu0 %v5250_v47  ;;  %v5394_v44 = vor.u32 %v6638_v9, %v5393_v37  ;;  %v6624_v47 = vld [vmem:[%s9939_s2 + $0xc64] sm:$0xf0]  ;;  %v6645_v37 = vld [vmem:[%s9939_s2 + $0xd14] sm:$0xf]  ;;  %v5427_v9 = vld [vmem:[%s9939_s2 + $0xd18] sm:$0xf0]  ;;  %v5258_v42 = vor.u32 %v6604_v29, %v5257_v28 }
  0xf8   :  { %2403 = vmatpush.bf16.msra.mxu1 %v5306_v50  ;;  %v5385_v50 = vld [vmem:[%s9939_s2 + $0xcc0] sm:$0xf]  ;;  %v5338_v1 = vor.u32 %v6624_v47, %v5337_v46  ;;  %v5307_v22 = vld [vmem:[%s9939_s2 + $0xc28] sm:$0xf0]  ;;  %v5411_v28 = vld [vmem:[%s9939_s2 + $0xcf8] sm:$0xf0] }
  0xf9   :  { %2417 = vmatpush.bf16.msra.mxu2 %v5370_v51  ;;  %v6636_v51 = vld [vmem:[%s9939_s2 + $0xcc4] sm:$0xf0]  ;;  %v6593_v29 = vld [vmem:[%s9939_s2 + $0xb74] sm:$0xf] }
  0xfa   :  { %2433 = vmatpush.bf16.msra.mxu3 %v5418_v61  ;;  %v8505_v61 = vpop.f32.mrf.mxu2 }
  0xfb   :  { %2389 = vmatpush.bf16.msra.mxu0 %v5242_v7  ;;  %v8516_v7 = vpop.f32.mrf.mxu3 }
  0xfc   :  { %2404 = vmatpush.bf16.msra.mxu1 %v5298_v8  ;;  %v5386_v8 = vor.u32 %v6636_v51, %v5385_v50  ;;  %v5382_v50 = vor.u32 %v6633_v32, %v5379_v36  ;;  %v5430_v51 = vor.u32 %v6645_v37, %v5427_v9  ;;  %v6613_v36 = vld [vmem:[%s9939_s2 + $0xc14] sm:$0xf]  ;;  %v5299_v37 = vld [vmem:[%s9939_s2 + $0xc18] sm:$0xf0]  ;;  %v6627_v9 = vld [vmem:[%s9939_s2 + $0xc84] sm:$0xf] }
  0xfd   :  { %2418 = vmatpush.bf16.msra.mxu2 %v5362_v10  ;;  %v6606_v10 = vld [vmem:[%s9939_s2 + $0xbd4] sm:$0xf0] }
  0xfe   :  { %2434 = vmatpush.bf16.msra.mxu3 %v5410_v14  ;;  %v969_v14 = vpop.f32.mrf.mxu1 }
  0xff   :  { %2390 = vmatpush.bf16.msra.mxu0 %v5234_v24  ;;  %v970_v19 = vadd.f32 %v969_v14, %v8226_v0  ;;  %v5201_v24 = vld [vmem:[%s9939_s2 + $0xb50] sm:$0xf]  ;;  %v6590_v0 = vld [vmem:[%s9939_s2 + $0xb54] sm:$0xf0] }
 0x100   :  { %2405 = vmatpush.bf16.msra.mxu1 %v5290_v26  ;;  %v5266_v26 = vor.u32 %v6606_v10, %v5265_v5  ;;  %v5419_v5 = vld [vmem:[%s9939_s2 + $0xd08] sm:$0xf0] }
 0x101   :  { %2419 = vmatpush.bf16.msra.mxu2 %v5354_v27  ;;  %v5330_v27 = vor.u32 %v6622_v12, %v5329_v11  ;;  %v6595_v11 = vld [vmem:[%s9939_s2 + $0xb84] sm:$0xf]  ;;  %v5227_v12 = vld [vmem:[%s9939_s2 + $0xb88] sm:$0xf0] }
 0x102   :  { %2435 = vmatpush.bf16.msra.mxu3 %v5402_v31  ;;  %v6620_v31 = vld [vmem:[%s9939_s2 + $0xc44] sm:$0xf0]  ;;  %v983_v41 = vpop.f32.mrf.mxu2 }
 0x103   :  { %2391 = vmatpush.bf16.msra.mxu0 %v5226_v38  ;;  %v5202_v38 = vor.u32 %v6590_v0, %v5201_v24  ;;  %v5322_v43 = vor.u32 %v6620_v31, %v5321_v30  ;;  %v984_v46 = vadd.f32 %v983_v41, %v970_v19  ;;  %v997_v47 = vpop.f32.mrf.mxu3  ;;  %v5374_v19 = vor.u32 %v6631_v55, %v5371_v3  ;;  %v6629_v24 = vld [vmem:[%s9939_s2 + $0xc94] sm:$0xf]  ;;  %v5219_v30 = vld [vmem:[%s9939_s2 + $0xb78] sm:$0xf0]  ;;  %v5403_v41 = vld [vmem:[%s9939_s2 + $0xce8] sm:$0xf0] }
 0x104   :  { %2406 = vmatpush.bf16.msra.mxu1 %v5282_v39  ;;  %v6597_v39 = vld [vmem:[%s9939_s2 + $0xb94] sm:$0xf]  ;;  %v5310_v31 = vor.u32 %v6615_v21, %v5307_v22  ;;  %v5203_v3 = vld [vmem:[%s9939_s2 + $0xb58] sm:$0xf0]  ;;  %v5339_v22 = vld [vmem:[%s9939_s2 + $0xc68] sm:$0xf0] }
 0x105   :  { %2420 = vmatpush.bf16.msra.mxu2 %v5346_v40  ;;  %v5235_v40 = vld [vmem:[%s9939_s2 + $0xb98] sm:$0xf0]  ;;  %v6641_v0 = vld [vmem:[%s9939_s2 + $0xcf4] sm:$0xf] }
 0x106   :  { %2436 = vmatpush.bf16.msra.mxu3 %v5394_v44  ;;  %v5193_v44 = vld [vmem:[%s9939_s2 + $0xb40] sm:$0xf]  ;;  %v6637_v55 = vld [vmem:[%s9939_s2 + $0xcd4] sm:$0xf] }
 0x107   :  { %2392 = vmatpush.bf16.msra.mxu0 %v5218_v52  ;;  %v6617_v52 = vld [vmem:[%s9939_s2 + $0xc34] sm:$0xf]  ;;  %v5194_v10 = vor.u32 %v6588_v45, %v5193_v44  ;;  %v5302_v44 = vor.u32 %v6613_v36, %v5299_v37 }
 0x108   :  { %2407 = vmatpush.bf16.msra.mxu1 %v5274_v63  ;;  %v1011_v63 = vpop.f32.mrf.mxu0  ;;  %v5318_v14 = vor.u32 %v6617_v52, %v5315_v54  ;;  %v5347_v54 = vld [vmem:[%s9939_s2 + $0xc78] sm:$0xf0] }
 0x109   :  { %2421 = vmatpush.bf16.msra.mxu2 %v5338_v1  ;;  %v5238_v1 = vor.u32 %v6597_v39, %v5235_v40  ;;  %v5355_v39 = vld [vmem:[%s9939_s2 + $0xc88] sm:$0xf0]  ;;  %v6639_v40 = vld [vmem:[%s9939_s2 + $0xce4] sm:$0xf] }
 0x10a   :  { %2437 = vmatpush.bf16.msra.mxu3 %v5386_v8  ;;  %v998_v8 = vadd.f32 %v997_v47, %v984_v46  ;;  %v5358_v45 = vor.u32 %v6627_v9, %v5355_v39  ;;  %v5406_v46 = vor.u32 %v6639_v40, %v5403_v41  ;;  %v6611_v47 = vld [vmem:[%s9939_s2 + $0xc04] sm:$0xf]  ;;  %v6621_v41 = vld [vmem:[%s9939_s2 + $0xc54] sm:$0xf] }
 0x10b   :  { %2393 = vmatpush.bf16.msra.mxu0 %v5210_v20  ;;  %v5422_v20 = vor.u32 %v6643_v4, %v5419_v5  ;;  %v8681_v4 = vpop.f32.mrf.mxu1  ;;  %v6607_v9 = vld [vmem:[%s9939_s2 + $0xbe4] sm:$0xf] }
 0x10c   :  { %2408 = vmatpush.bf16.msra.mxu1 %v5266_v26  ;;  %v5230_v26 = vor.u32 %v6595_v11, %v5227_v12  ;;  %v5283_v12 = vld [vmem:[%s9939_s2 + $0xbf8] sm:$0xf0] }
 0x10d   :  { %2422 = vmatpush.bf16.msra.mxu2 %v5330_v27  ;;  %5431 = vmatmul.msk.bf16.vlgmr.msra.gmra.mxu3 %vm466_vm0, %v7064_v2  ;;  %v5363_v27 = vld [vmem:[%s9939_s2 + $0xc98] sm:$0xf0] }
 0x10e   :  { %2444 = vmatpush.bf16.msrb.mxu3 %v5254_v15  ;;  %v8604_v15 = vadd.f32 %v1011_v63, %v998_v8  ;;  %v5366_v32 = vor.u32 %v6629_v24, %v5363_v27  ;;  %v5395_v63 = vld [vmem:[%s9939_s2 + $0xcd8] sm:$0xf0]  ;;  %v6609_v8 = vld [vmem:[%s9939_s2 + $0xbf4] sm:$0xf]  ;;  %v6635_v24 = vld [vmem:[%s9939_s2 + $0xcc4] sm:$0xf]  ;;  %v8706_v27 = vpop.f32.mrf.mxu3 }
 0x10f   :  { %2394 = vmatpush.bf16.msra.mxu0 %v5202_v38  ;;  %v5222_v38 = vor.u32 %v6593_v29, %v5219_v30  ;;  %v5398_v11 = vor.u32 %v6637_v55, %v5395_v63  ;;  %v6542_v29 = vld [vmem:[%s9939_s2 + $0x434] sm:$0xf0]  ;;  %v5286_v30 = vor.u32 %v6609_v8, %v5283_v12  ;;  %v5267_v55 = vld [vmem:[%s9939_s2 + $0xbd8] sm:$0xf0]  ;;  %v5667_v12 = vld [vmem:[%s9939_s2 + $0x590] sm:$0xf] }
 0x110   :  { %2409 = vmatpush.bf16.msra.mxu1 %v5258_v42  ;;  %v6591_v42 = vld [vmem:[%s9939_s2 + $0xb64] sm:$0xf] }
 0x111   :  { %2423 = vmatpush.bf16.msra.mxu2 %v5322_v43  ;;  %v5211_v43 = vld [vmem:[%s9939_s2 + $0xb68] sm:$0xf0] }
 0x112   :  { %2445 = vmatpush.bf16.msrb.mxu3 %v5246_v35  ;;  %v5414_v35 = vor.u32 %v6641_v0, %v5411_v28  ;;  %v5214_v52 = vor.u32 %v6591_v42, %v5211_v43  ;;  %v5195_v0 = vld [vmem:[%s9939_s2 + $0xb48] sm:$0xf0]  ;;  %v5491_v28 = vld [vmem:[%s9939_s2 + $0x430] sm:$0xf]  ;;  %v5331_v42 = vld [vmem:[%s9939_s2 + $0xc58] sm:$0xf0] }
 0x113   :  { %2395 = vmatpush.bf16.msra.mxu0 %v5194_v10  ;;  %2410 = vmatmul.bf16.vlgmr.msra.gmra.mxu1 %v7098_v17  ;;  %v5492_v40 = vor.u32 %v6542_v29, %v5491_v28  ;;  %v6603_v28 = vld [vmem:[%s9939_s2 + $0xbc4] sm:$0xf]  ;;  %v5259_v29 = vld [vmem:[%s9939_s2 + $0xbc8] sm:$0xf0] }
 0x114   :  { %2472 = vmatpush.bf16.msrb.mxu1 %v5382_v50  ;;  %2424 = vmatmul.bf16.vlgmr.msra.gmra.mxu2 %v7047_v58  ;;  %v5291_v50 = vld [vmem:[%s9939_s2 + $0xc08] sm:$0xf0] }
 0x115   :  { %2488 = vmatpush.bf16.msrb.mxu2 %v5430_v51  ;;  %v6625_v51 = vld [vmem:[%s9939_s2 + $0xc74] sm:$0xf]  ;;  %v5294_v5 = vor.u32 %v6611_v47, %v5291_v50  ;;  %v5547_v47 = vld [vmem:[%s9939_s2 + $0x4a0] sm:$0xf]  ;;  %v6556_v50 = vld [vmem:[%s9939_s2 + $0x4a4] sm:$0xf0] }
 0x116   :  { %2446 = vmatpush.bf16.msrb.mxu3 %v5238_v1  ;;  %2396 = vmatmul.bf16.vlgmr.msra.gmra.mxu0 %v7096_v16  ;;  %v6589_v1 = vld [vmem:[%s9939_s2 + $0xb54] sm:$0xf]  ;;  %v5350_v10 = vor.u32 %v6625_v51, %v5347_v54 }
 0x117   :  { %2458 = vmatpush.bf16.msrb.mxu0 %v5318_v14  ;;  %v6587_v14 = vld [vmem:[%s9939_s2 + $0xb44] sm:$0xf]  ;;  %v5206_v21 = vor.u32 %v6589_v1, %v5203_v3  ;;  %v6605_v54 = vld [vmem:[%s9939_s2 + $0xbd4] sm:$0xf]  ;;  %v5323_v3 = vld [vmem:[%s9939_s2 + $0xc48] sm:$0xf0] }
 0x118   :  { %2473 = vmatpush.bf16.msrb.mxu1 %v5374_v19  ;;  %v6623_v19 = vld [vmem:[%s9939_s2 + $0xc64] sm:$0xf]  ;;  %v5198_v39 = vor.u32 %v6587_v14, %v5195_v0  ;;  %v1461_v51 = vpop.f32.mrf.mxu1  ;;  %v6586_v14 = vld [vmem:[%s9939_s2 + $0x594] sm:$0xf0] }
 0x119   :  { %2489 = vmatpush.bf16.msrb.mxu2 %v5422_v20  ;;  %v8695_v20 = vpop.f32.mrf.mxu0  ;;  %v5342_v36 = vor.u32 %v6623_v19, %v5339_v22  ;;  %v6619_v1 = vld [vmem:[%s9939_s2 + $0xc44] sm:$0xf]  ;;  %v5270_v22 = vor.u32 %v6605_v54, %v5267_v55  ;;  %v5611_v54 = vld [vmem:[%s9939_s2 + $0x520] sm:$0xf]  ;;  %v6572_v55 = vld [vmem:[%s9939_s2 + $0x524] sm:$0xf0] }
 0x11a   :  { %2447 = vmatpush.bf16.msrb.mxu3 %v5230_v26  ;;  %v5387_v26 = vld [vmem:[%s9939_s2 + $0xcc8] sm:$0xf0]  ;;  %v5326_v0 = vor.u32 %v6619_v1, %v5323_v3 }
 0x11b   :  { %2459 = vmatpush.bf16.msrb.mxu0 %v5310_v31  ;;  %v5555_v31 = vld [vmem:[%s9939_s2 + $0x4b0] sm:$0xf]  ;;  %v5390_v37 = vor.u32 %v6635_v24, %v5387_v26  ;;  %v6554_v26 = vld [vmem:[%s9939_s2 + $0x494] sm:$0xf0] }
 0x11c   :  { %2474 = vmatpush.bf16.msrb.mxu1 %v5366_v32  ;;  %v6558_v32 = vld [vmem:[%s9939_s2 + $0x4b4] sm:$0xf0]  ;;  %v5539_v24 = vld [vmem:[%s9939_s2 + $0x490] sm:$0xf] }
 0x11d   :  { %2490 = vmatpush.bf16.msrb.mxu2 %v5414_v35  ;;  %v8723_v35 = vpop.f32.mrf.mxu2  ;;  %v5556_v43 = vor.u32 %v6558_v32, %v5555_v31  ;;  %v5668_v32 = vor.u32 %v6586_v14, %v5667_v12  ;;  %v5523_v12 = vld [vmem:[%s9939_s2 + $0x470] sm:$0xf]  ;;  %v6550_v14 = vld [vmem:[%s9939_s2 + $0x474] sm:$0xf0] }
 0x11e   :  { %2448 = vmatpush.bf16.msrb.mxu3 %v5222_v38  ;;  %v5275_v38 = vld [vmem:[%s9939_s2 + $0xbe8] sm:$0xf0] }
 0x11f   :  { %2460 = vmatpush.bf16.msrb.mxu0 %v5302_v44  ;;  %v5483_v44 = vld [vmem:[%s9939_s2 + $0x420] sm:$0xf] }
 0x120   :  { %2475 = vmatpush.bf16.msrb.mxu1 %v5358_v45  ;;  %v6540_v45 = vld [vmem:[%s9939_s2 + $0x424] sm:$0xf0] }
 0x121   :  { %2491 = vmatpush.bf16.msrb.mxu2 %v5406_v46  ;;  %v5278_v46 = vor.u32 %v6607_v9, %v5275_v38  ;;  %v5484_v63 = vor.u32 %v6540_v45, %v5483_v44  ;;  %v1447_v8 = vpop.f32.mrf.mxu0  ;;  %v5467_v9 = vld [vmem:[%s9939_s2 + $0x400] sm:$0xf]  ;;  %v6552_v45 = vld [vmem:[%s9939_s2 + $0x484] sm:$0xf0] }
 0x122   :  { %2449 = vmatpush.bf16.msrb.mxu3 %v5214_v52  ;;  %v5334_v52 = vor.u32 %v6621_v41, %v5331_v42  ;;  %v1462_v19 = vadd.f32 %v1461_v51, %v1447_v8  ;;  %v5659_v41 = vld [vmem:[%s9939_s2 + $0x580] sm:$0xf]  ;;  %v6584_v42 = vld [vmem:[%s9939_s2 + $0x584] sm:$0xf0]  ;;  %v5651_v8 = vld [vmem:[%s9939_s2 + $0x570] sm:$0xf] }
 0x123   :  { %2461 = vmatpush.bf16.msrb.mxu0 %v5294_v5  ;;  %v5475_v5 = vld [vmem:[%s9939_s2 + $0x410] sm:$0xf]  ;;  %v5531_v44 = vld [vmem:[%s9939_s2 + $0x480] sm:$0xf] }
 0x124   :  { %2476 = vmatpush.bf16.msrb.mxu1 %v5350_v10  ;;  %v5548_v10 = vor.u32 %v6556_v50, %v5547_v47  ;;  %v1463_v47 = vpop.f32.mrf.mxu1  ;;  %v5532_v3 = vor.u32 %v6552_v45, %v5531_v44  ;;  %v6568_v44 = vld [vmem:[%s9939_s2 + $0x504] sm:$0xf0]  ;;  %v5443_v45 = vld [vmem:[%s9939_s2 + $0x3d0] sm:$0xf] }
 0x125   :  { %2492 = vmatpush.bf16.msrb.mxu2 %v5398_v11  ;;  %v6538_v11 = vld [vmem:[%s9939_s2 + $0x414] sm:$0xf0] }
 0x126   :  { %2450 = vmatpush.bf16.msrb.mxu3 %v5206_v21  ;;  %v1489_v21 = vpop.f32.mrf.mxu3  ;;  %v5476_v31 = vor.u32 %v6538_v11, %v5475_v5  ;;  %v6534_v5 = vld [vmem:[%s9939_s2 + $0x3f4] sm:$0xf0] }
 0x127   :  { %2462 = vmatpush.bf16.msrb.mxu0 %v5286_v30  ;;  %v1475_v30 = vpop.f32.mrf.mxu2 }
 0x128   :  { %2477 = vmatpush.bf16.msrb.mxu1 %v5342_v36  ;;  %v5619_v36 = vld [vmem:[%s9939_s2 + $0x530] sm:$0xf]  ;;  %v1476_v38 = vadd.f32 %v1475_v30, %v1462_v19  ;;  %v5612_v19 = vor.u32 %v6572_v55, %v5611_v54  ;;  %v6546_v55 = vld [vmem:[%s9939_s2 + $0x454] sm:$0xf0] }
 0x129   :  { %2493 = vmatpush.bf16.msrb.mxu2 %v5390_v37  ;;  %v6574_v37 = vld [vmem:[%s9939_s2 + $0x534] sm:$0xf0]  ;;  %v1449_v1 = vpop.f32.mrf.mxu0  ;;  %v5507_v54 = vld [vmem:[%s9939_s2 + $0x450] sm:$0xf] }
 0x12a   :  { %2451 = vmatpush.bf16.msrb.mxu3 %v5198_v39  ;;  %v5540_v39 = vor.u32 %v6554_v26, %v5539_v24  ;;  %v5620_v50 = vor.u32 %v6574_v37, %v5619_v36  ;;  %v1464_v11 = vadd.f32 %v1463_v47, %v1449_v1  ;;  %v5643_v36 = vld [vmem:[%s9939_s2 + $0x560] sm:$0xf]  ;;  %v6580_v37 = vld [vmem:[%s9939_s2 + $0x564] sm:$0xf0]  ;;  %v5587_v1 = vld [vmem:[%s9939_s2 + $0x4f0] sm:$0xf] }
 0x12b   :  { %2463 = vmatpush.bf16.msrb.mxu0 %v5278_v46  ;;  %v8812_v46 = vadd.f32 %v1489_v21, %v1476_v38  ;;  %v6548_v38 = vld [vmem:[%s9939_s2 + $0x464] sm:$0xf0] }
 0x12c   :  { %5432 = vmatmul.msk.bf16.vlgmr.msrb.gmra.mxu2 %vm466_vm0, %v7064_v2  ;;  %2478 = vmatpush.bf16.msrb.mxu1 %v5334_v52  ;;  %v5660_v52 = vor.u32 %v6584_v42, %v5659_v41  ;;  %v5644_v42 = vor.u32 %v6580_v37, %v5643_v36  ;;  %v5579_v37 = vld [vmem:[%s9939_s2 + $0x4e0] sm:$0xf] }
 0x12d   :  { %2800 = vmatpush.bf16.msra.mxu2 %v5492_v40  ;;  %2452 = vmatmul.bf16.vlgmr.msrb.gmra.mxu3 %v7096_v16  ;;  %v6536_v40 = vld [vmem:[%s9939_s2 + $0x404] sm:$0xf0] }
 0x12e   :  { %2814 = vmatpush.bf16.msra.mxu3 %v5556_v43  ;;  %v5262_v43 = vor.u32 %v6603_v28, %v5259_v29  ;;  %v5468_v51 = vor.u32 %v6536_v40, %v5467_v9  ;;  %v6570_v28 = vld [vmem:[%s9939_s2 + $0x514] sm:$0xf0]  ;;  %v5451_v29 = vld [vmem:[%s9939_s2 + $0x3e0] sm:$0xf] }
 0x12f   :  { %2464 = vmatpush.bf16.msrb.mxu0 %v5270_v22  ;;  %v1477_v21 = vpop.f32.mrf.mxu2  ;;  %v1491_v22 = vpop.f32.mrf.mxu3  ;;  %v5515_v9 = vld [vmem:[%s9939_s2 + $0x460] sm:$0xf] }
 0x130   :  { %2479 = vmatpush.bf16.msrb.mxu1 %v5326_v0  ;;  %v5603_v0 = vld [vmem:[%s9939_s2 + $0x510] sm:$0xf]  ;;  %v1478_v30 = vadd.f32 %v1477_v21, %v1464_v11  ;;  %v5516_v47 = vor.u32 %v6548_v38, %v5515_v9  ;;  %v6528_v11 = vld [vmem:[%s9939_s2 + $0x3c4] sm:$0xf0]  ;;  %v5627_v21 = vld [vmem:[%s9939_s2 + $0x540] sm:$0xf] }
 0x131   :  { %2801 = vmatpush.bf16.msra.mxu2 %v5484_v63  ;;  %v5459_v63 = vld [vmem:[%s9939_s2 + $0x3f0] sm:$0xf]  ;;  %v5604_v40 = vor.u32 %v6570_v28, %v5603_v0  ;;  %v6557_v0 = vld [vmem:[%s9939_s2 + $0x4b4] sm:$0xf]  ;;  %v6564_v9 = vld [vmem:[%s9939_s2 + $0x4e4] sm:$0xf0] }
 0x132   :  { %2815 = vmatpush.bf16.msra.mxu3 %v5548_v10  ;;  %v6582_v10 = vld [vmem:[%s9939_s2 + $0x574] sm:$0xf0]  ;;  %v5460_v24 = vor.u32 %v6534_v5, %v5459_v63 }
 0x133   :  { %2465 = vmatpush.bf16.msrb.mxu0 %v5262_v43  ;;  %2480 = vmatmul.bf16.vlgmr.msrb.gmra.mxu1 %v7047_v58  ;;  %v5652_v26 = vor.u32 %v6582_v10, %v5651_v8  ;;  %v5595_v43 = vld [vmem:[%s9939_s2 + $0x500] sm:$0xf] }
 0x134   :  { %2844 = vmatpush.bf16.msra.mxu1 %v5668_v32  ;;  %v6532_v32 = vld [vmem:[%s9939_s2 + $0x3e4] sm:$0xf0]  ;;  %v5596_v63 = vor.u32 %v6568_v44, %v5595_v43  ;;  %v5435_v10 = vld [vmem:[%s9939_s2 + $0x3c0] sm:$0xf]  ;;  %v6539_v44 = vld [vmem:[%s9939_s2 + $0x424] sm:$0xf] }
 0x135   :  { %2802 = vmatpush.bf16.msra.mxu2 %v5476_v31  ;;  %v5524_v31 = vor.u32 %v6550_v14, %v5523_v12  ;;  %v5452_v41 = vor.u32 %v6532_v32, %v5451_v29  ;;  %v5499_v12 = vld [vmem:[%s9939_s2 + $0x440] sm:$0xf]  ;;  %v5508_v14 = vor.u32 %v6546_v55, %v5507_v54  ;;  %v5557_v29 = vld [vmem:[%s9939_s2 + $0x4b8] sm:$0xf0]  ;;  %v5436_v32 = vor.u32 %v6528_v11, %v5435_v10  ;;  %v5613_v54 = vld [vmem:[%s9939_s2 + $0x528] sm:$0xf0] }
 0x136   :  { %2816 = vmatpush.bf16.msra.mxu3 %v5540_v39  ;;  %2466 = vmatmul.bf16.vlgmr.msrb.gmra.mxu0 %v7098_v17  ;;  %v8864_v39 = vadd.f32 %v1491_v22, %v1478_v30  ;;  %v6576_v22 = vld [vmem:[%s9939_s2 + $0x544] sm:$0xf0]  ;;  %v6573_v30 = vld [vmem:[%s9939_s2 + $0x534] sm:$0xf] }
 0x137   :  { %2828 = vmatpush.bf16.msra.mxu0 %v5620_v50  ;;  %v6530_v50 = vld [vmem:[%s9939_s2 + $0x3d4] sm:$0xf0]  ;;  %v5628_v36 = vor.u32 %v6576_v22, %v5627_v21  ;;  %v6537_v11 = vld [vmem:[%s9939_s2 + $0x414] sm:$0xf]  ;;  %v5541_v22 = vld [vmem:[%s9939_s2 + $0x498] sm:$0xf0] }
 0x138   :  { %2845 = vmatpush.bf16.msra.mxu1 %v5660_v52  ;;  %v6578_v52 = vld [vmem:[%s9939_s2 + $0x554] sm:$0xf0]  ;;  %v5444_v5 = vor.u32 %v6530_v50, %v5443_v45  ;;  %v5485_v45 = vld [vmem:[%s9939_s2 + $0x428] sm:$0xf0]  ;;  %v5580_v50 = vor.u32 %v6564_v9, %v5579_v37  ;;  %v1531_v55 = vpop.f32.mrf.mxu1 }
 0x139   :  { %2803 = vmatpush.bf16.msra.mxu2 %v5468_v51  ;;  %v5635_v51 = vld [vmem:[%s9939_s2 + $0x550] sm:$0xf] }
 0x13a   :  { %2817 = vmatpush.bf16.msra.mxu3 %v5532_v3  ;;  %v6566_v3 = vld [vmem:[%s9939_s2 + $0x4f4] sm:$0xf0]  ;;  %v5636_v8 = vor.u32 %v6578_v52, %v5635_v51  ;;  %v5549_v51 = vld [vmem:[%s9939_s2 + $0x4a8] sm:$0xf0]  ;;  %v6571_v52 = vld [vmem:[%s9939_s2 + $0x524] sm:$0xf] }
 0x13b   :  { %2829 = vmatpush.bf16.msra.mxu0 %v5612_v19  ;;  %v6544_v19 = vld [vmem:[%s9939_s2 + $0x444] sm:$0xf0]  ;;  %v5588_v28 = vor.u32 %v6566_v3, %v5587_v1  ;;  %v6562_v1 = vld [vmem:[%s9939_s2 + $0x4d4] sm:$0xf0]  ;;  %v5488_v3 = vor.u32 %v6539_v44, %v5485_v45  ;;  %v5616_v10 = vor.u32 %v6571_v52, %v5613_v54  ;;  %v5533_v44 = vld [vmem:[%s9939_s2 + $0x488] sm:$0xf0] }
 0x13c   :  { %2846 = vmatpush.bf16.msra.mxu1 %v5652_v26  ;;  %v5493_v26 = vld [vmem:[%s9939_s2 + $0x438] sm:$0xf0]  ;;  %v5500_v38 = vor.u32 %v6544_v19, %v5499_v12  ;;  %v6583_v54 = vld [vmem:[%s9939_s2 + $0x584] sm:$0xf] }
 0x13d   :  { %2804 = vmatpush.bf16.msra.mxu2 %v5460_v24  ;;  %v6541_v24 = vld [vmem:[%s9939_s2 + $0x434] sm:$0xf]  ;;  %v5477_v12 = vld [vmem:[%s9939_s2 + $0x418] sm:$0xf0] }
 0x13e   :  { %2818 = vmatpush.bf16.msra.mxu3 %v5524_v31  ;;  %v5621_v31 = vld [vmem:[%s9939_s2 + $0x538] sm:$0xf0] }
 0x13f   :  { %2830 = vmatpush.bf16.msra.mxu0 %v5604_v40  ;;  %v5496_v40 = vor.u32 %v6541_v24, %v5493_v26  ;;  %v5624_v43 = vor.u32 %v6573_v30, %v5621_v31  ;;  %v6569_v24 = vld [vmem:[%s9939_s2 + $0x514] sm:$0xf]  ;;  %v5605_v26 = vld [vmem:[%s9939_s2 + $0x518] sm:$0xf0]  ;;  %v5480_v31 = vor.u32 %v6537_v11, %v5477_v12 }
 0x140   :  { %2847 = vmatpush.bf16.msra.mxu1 %v5644_v42  ;;  %v5560_v42 = vor.u32 %v6557_v0, %v5557_v29  ;;  %v1545_v0 = vpop.f32.mrf.mxu2  ;;  %v6560_v29 = vld [vmem:[%s9939_s2 + $0x4c4] sm:$0xf0]  ;;  %v5608_v9 = vor.u32 %v6569_v24, %v5605_v26  ;;  %v6549_v12 = vld [vmem:[%s9939_s2 + $0x474] sm:$0xf] }
 0x141   :  { %2805 = vmatpush.bf16.msra.mxu2 %v5452_v41  ;;  %v1503_v41 = vpop.f32.mrf.mxu3 }
 0x142   :  { %2819 = vmatpush.bf16.msra.mxu3 %v5516_v47  ;;  %v6555_v47 = vld [vmem:[%s9939_s2 + $0x4a4] sm:$0xf] }
 0x143   :  { %2831 = vmatpush.bf16.msra.mxu0 %v5596_v63  ;;  %v5571_v63 = vld [vmem:[%s9939_s2 + $0x4d0] sm:$0xf] }
 0x144   :  { %2848 = vmatpush.bf16.msra.mxu1 %v5636_v8  ;;  %v5552_v8 = vor.u32 %v6555_v47, %v5549_v51  ;;  %v5572_v21 = vor.u32 %v6562_v1, %v5571_v63  ;;  %v5597_v51 = vld [vmem:[%s9939_s2 + $0x508] sm:$0xf0]  ;;  %v1533_v1 = vpop.f32.mrf.mxu1 }
 0x145   :  { %2806 = vmatpush.bf16.msra.mxu2 %v5444_v5  ;;  %v1517_v5 = vpop.f32.mrf.mxu0 }
 0x146   :  { %2820 = vmatpush.bf16.msra.mxu3 %v5508_v14  ;;  %v6553_v14 = vld [vmem:[%s9939_s2 + $0x494] sm:$0xf]  ;;  %v1518_v19 = vadd.f32 %v1517_v5, %v1503_v41 }
 0x147   :  { %2832 = vmatpush.bf16.msra.mxu0 %v5588_v28  ;;  %v5563_v28 = vld [vmem:[%s9939_s2 + $0x4c0] sm:$0xf]  ;;  %v5544_v37 = vor.u32 %v6553_v14, %v5541_v22  ;;  %v6533_v5 = vld [vmem:[%s9939_s2 + $0x3f4] sm:$0xf]  ;;  %v5525_v14 = vld [vmem:[%s9939_s2 + $0x478] sm:$0xf0] }
 0x148   :  { %2849 = vmatpush.bf16.msra.mxu1 %v5628_v36  ;;  %v1532_v30 = vadd.f32 %v1531_v55, %v1518_v19  ;;  %v5669_v36 = vld [vmem:[%s9939_s2 + $0x598] sm:$0xf0]  ;;  %v5661_v55 = vld [vmem:[%s9939_s2 + $0x588] sm:$0xf0] }
 0x149   :  { %2807 = vmatpush.bf16.msra.mxu2 %v5436_v32  ;;  %v6585_v32 = vld [vmem:[%s9939_s2 + $0x594] sm:$0xf]  ;;  %v1505_v45 = vpop.f32.mrf.mxu3  ;;  %v5664_v19 = vor.u32 %v6583_v54, %v5661_v55  ;;  %v5589_v22 = vld [vmem:[%s9939_s2 + $0x4f8] sm:$0xf0] }
 0x14a   :  { %2821 = vmatpush.bf16.msra.mxu3 %v5500_v38  ;;  %v6535_v38 = vld [vmem:[%s9939_s2 + $0x404] sm:$0xf]  ;;  %v9002_v41 = vadd.f32 %v1545_v0, %v1532_v30  ;;  %v5672_v47 = vor.u32 %v6585_v32, %v5669_v36  ;;  %v1547_v0 = vpop.f32.mrf.mxu2  ;;  %v5528_v30 = vor.u32 %v6549_v12, %v5525_v14  ;;  %v5453_v32 = vld [vmem:[%s9939_s2 + $0x3e8] sm:$0xf0]  ;;  %v6545_v55 = vld [vmem:[%s9939_s2 + $0x454] sm:$0xf] }
 0x14b   :  { %2833 = vmatpush.bf16.msra.mxu0 %v5580_v50  ;;  %5673 = vmatmul.msk.bf16.vlgmr.msra.gmra.mxu1 %vm466_vm0, %v7426_v53  ;;  %v6567_v50 = vld [vmem:[%s9939_s2 + $0x504] sm:$0xf]  ;;  %v5437_v14 = vld [vmem:[%s9939_s2 + $0x3c8] sm:$0xf0] }
 0x14c   :  { %2856 = vmatpush.bf16.msrb.mxu1 %v5496_v40  ;;  %2808 = vmatmul.bf16.vlgmr.msra.gmra.mxu2 %v7413_v48  ;;  %v5469_v40 = vld [vmem:[%s9939_s2 + $0x408] sm:$0xf0]  ;;  %v5600_v11 = vor.u32 %v6567_v50, %v5597_v51  ;;  %v6529_v51 = vld [vmem:[%s9939_s2 + $0x3d4] sm:$0xf]  ;;  %v6527_v12 = vld [vmem:[%s9939_s2 + $0x3c4] sm:$0xf] }
 0x14d   :  { %2870 = vmatpush.bf16.msrb.mxu2 %v5560_v42  ;;  %2822 = vmatmul.bf16.vlgmr.msra.gmra.mxu3 %v7415_v49  ;;  %v5564_v42 = vor.u32 %v6560_v29, %v5563_v28  ;;  %v5472_v52 = vor.u32 %v6535_v38, %v5469_v40  ;;  %v1519_v63 = vpop.f32.mrf.mxu0  ;;  %v6581_v28 = vld [vmem:[%s9939_s2 + $0x574] sm:$0xf]  ;;  %v5653_v29 = vld [vmem:[%s9939_s2 + $0x578] sm:$0xf0]  ;;  %v5517_v38 = vld [vmem:[%s9939_s2 + $0x468] sm:$0xf0] }
 0x14e   :  { %2884 = vmatpush.bf16.msrb.mxu3 %v5624_v43  ;;  %v6551_v43 = vld [vmem:[%s9939_s2 + $0x484] sm:$0xf]  ;;  %v5656_v40 = vor.u32 %v6581_v28, %v5653_v29  ;;  %v5917_v28 = vld [vmem:[%s9939_s2 + $0xe10] sm:$0xf]  ;;  %v6738_v29 = vld [vmem:[%s9939_s2 + $0xe14] sm:$0xf0] }
 0x14f   :  { %2834 = vmatpush.bf16.msra.mxu0 %v5572_v21  ;;  %v6565_v21 = vld [vmem:[%s9939_s2 + $0x4f4] sm:$0xf] }
 0x150   :  { %2857 = vmatpush.bf16.msrb.mxu1 %v5488_v3  ;;  %v5536_v3 = vor.u32 %v6551_v43, %v5533_v44  ;;  %v5581_v43 = vld [vmem:[%s9939_s2 + $0x4e8] sm:$0xf0] }
 0x151   :  { %2871 = vmatpush.bf16.msrb.mxu2 %v5552_v8  ;;  %v5461_v8 = vld [vmem:[%s9939_s2 + $0x3f8] sm:$0xf0] }
 0x152   :  { %2885 = vmatpush.bf16.msrb.mxu3 %v5616_v10  ;;  %v1520_v10 = vadd.f32 %v1519_v63, %v1505_v45  ;;  %v5464_v26 = vor.u32 %v6533_v5, %v5461_v8  ;;  %v6579_v45 = vld [vmem:[%s9939_s2 + $0x564] sm:$0xf]  ;;  %v5509_v63 = vld [vmem:[%s9939_s2 + $0x458] sm:$0xf0]  ;;  %v6577_v8 = vld [vmem:[%s9939_s2 + $0x554] sm:$0xf] }
 0x153   :  { %2835 = vmatpush.bf16.msra.mxu0 %v5564_v42  ;;  %v6563_v42 = vld [vmem:[%s9939_s2 + $0x4e4] sm:$0xf]  ;;  %v5573_v5 = vld [vmem:[%s9939_s2 + $0x4d8] sm:$0xf0] }
 0x154   :  { %2858 = vmatpush.bf16.msrb.mxu1 %v5480_v31  ;;  %v1534_v24 = vadd.f32 %v1533_v1, %v1520_v10  ;;  %v6531_v31 = vld [vmem:[%s9939_s2 + $0x3e4] sm:$0xf]  ;;  %v5584_v54 = vor.u32 %v6563_v42, %v5581_v43  ;;  %v5629_v43 = vld [vmem:[%s9939_s2 + $0x548] sm:$0xf0] }
 0x155   :  { %2872 = vmatpush.bf16.msrb.mxu2 %v5544_v37  ;;  %v5592_v37 = vor.u32 %v6565_v21, %v5589_v22  ;;  %v5456_v44 = vor.u32 %v6531_v31, %v5453_v32  ;;  %v6543_v21 = vld [vmem:[%s9939_s2 + $0x444] sm:$0xf]  ;;  %v5501_v22 = vld [vmem:[%s9939_s2 + $0x448] sm:$0xf0]  ;;  %v5981_v31 = vld [vmem:[%s9939_s2 + $0xe90] sm:$0xf] }
 0x156   :  { %2886 = vmatpush.bf16.msrb.mxu3 %v5608_v9  ;;  %2836 = vmatmul.bf16.vlgmr.msra.gmra.mxu0 %v7492_v23  ;;  %v9053_v36 = vadd.f32 %v1547_v0, %v1534_v24  ;;  %v6547_v9 = vld [vmem:[%s9939_s2 + $0x464] sm:$0xf]  ;;  %v5565_v0 = vld [vmem:[%s9939_s2 + $0x4c8] sm:$0xf0]  ;;  %v6754_v32 = vld [vmem:[%s9939_s2 + $0xe94] sm:$0xf0] }
 0x157   :  { %2900 = vmatpush.bf16.msrb.mxu0 %v5672_v47  ;;  %v5645_v47 = vld [vmem:[%s9939_s2 + $0x568] sm:$0xf0]  ;;  %v5520_v50 = vor.u32 %v6547_v9, %v5517_v38  ;;  %v6559_v24 = vld [vmem:[%s9939_s2 + $0x4c4] sm:$0xf]  ;;  %v1859_v9 = vpop.f32.mrf.mxu2  ;;  %v5440_v38 = vor.u32 %v6527_v12, %v5437_v14  ;;  %v6021_v12 = vld [vmem:[%s9939_s2 + $0xee0] sm:$0xf] }
 0x158   :  { %2859 = vmatpush.bf16.msrb.mxu1 %v5472_v52  ;;  %v5445_v52 = vld [vmem:[%s9939_s2 + $0x3d8] sm:$0xf0]  ;;  %v5648_v1 = vor.u32 %v6579_v45, %v5645_v47  ;;  %v6575_v42 = vld [vmem:[%s9939_s2 + $0x544] sm:$0xf]  ;;  %v1873_v45 = vpop.f32.mrf.mxu3  ;;  %v5504_v47 = vor.u32 %v6543_v21, %v5501_v22  ;;  %v6764_v14 = vld [vmem:[%s9939_s2 + $0xee4] sm:$0xf0] }
 0x159   :  { %2873 = vmatpush.bf16.msrb.mxu2 %v5536_v3  ;;  %v6561_v3 = vld [vmem:[%s9939_s2 + $0x4d4] sm:$0xf]  ;;  %v5448_v10 = vor.u32 %v6529_v51, %v5445_v52  ;;  %v5568_v51 = vor.u32 %v6559_v24, %v5565_v0  ;;  %v5982_v52 = vor.u32 %v6754_v32, %v5981_v31  ;;  %v5845_v0 = vld [vmem:[%s9939_s2 + $0xd80] sm:$0xf]  ;;  %v6734_v31 = vld [vmem:[%s9939_s2 + $0xdf4] sm:$0xf0] }
 0x15a   :  { %2887 = vmatpush.bf16.msrb.mxu3 %v5600_v11  ;;  %v5637_v11 = vld [vmem:[%s9939_s2 + $0x558] sm:$0xf0]  ;;  %v5965_v32 = vld [vmem:[%s9939_s2 + $0xe70] sm:$0xf] }
 0x15b   :  { %2901 = vmatpush.bf16.msrb.mxu0 %v5664_v19  ;;  %v5512_v19 = vor.u32 %v6545_v55, %v5509_v63  ;;  %v6722_v55 = vld [vmem:[%s9939_s2 + $0xd94] sm:$0xf0]  ;;  %v5909_v63 = vld [vmem:[%s9939_s2 + $0xe00] sm:$0xf] }
 0x15c   :  { %2860 = vmatpush.bf16.msrb.mxu1 %v5464_v26  ;;  %v5576_v26 = vor.u32 %v6561_v3, %v5573_v5  ;;  %v5632_v3 = vor.u32 %v6575_v42, %v5629_v43  ;;  %v1901_v5 = vpop.f32.mrf.mxu1  ;;  %v6762_v42 = vld [vmem:[%s9939_s2 + $0xed4] sm:$0xf0] }
 0x15d   :  { %2874 = vmatpush.bf16.msrb.mxu2 %v5528_v30  ;;  %v5640_v30 = vor.u32 %v6577_v8, %v5637_v11  ;;  %v6736_v8 = vld [vmem:[%s9939_s2 + $0xe04] sm:$0xf0] }
 0x15e   :  { %2888 = vmatpush.bf16.msrb.mxu3 %v5592_v37  ;;  %v6029_v37 = vld [vmem:[%s9939_s2 + $0xef0] sm:$0xf]  ;;  %v6752_v11 = vld [vmem:[%s9939_s2 + $0xe84] sm:$0xf0]  ;;  %v5910_v24 = vor.u32 %v6736_v8, %v5909_v63 }
 0x15f   :  { %2902 = vmatpush.bf16.msrb.mxu0 %v5656_v40  ;;  %v6766_v40 = vld [vmem:[%s9939_s2 + $0xef4] sm:$0xf0]  ;;  %v6760_v8 = vld [vmem:[%s9939_s2 + $0xec4] sm:$0xf0] }
 0x160   :  { %2861 = vmatpush.bf16.msrb.mxu1 %v5456_v44  ;;  %v1860_v44 = vadd.f32 %v1859_v9, %v8812_v46 }
 0x161   :  { %2875 = vmatpush.bf16.msrb.mxu2 %v5520_v50  ;;  %v5918_v50 = vor.u32 %v6738_v29, %v5917_v28  ;;  %v6720_v28 = vld [vmem:[%s9939_s2 + $0xd84] sm:$0xf0]  ;;  %v5901_v29 = vld [vmem:[%s9939_s2 + $0xdf0] sm:$0xf] }
 0x162   :  { %2889 = vmatpush.bf16.msrb.mxu3 %v5584_v54  ;;  %v5853_v54 = vld [vmem:[%s9939_s2 + $0xd90] sm:$0xf]  ;;  %v1874_v46 = vadd.f32 %v1873_v45, %v1860_v44  ;;  %v1875_v44 = vpop.f32.mrf.mxu3  ;;  %v5846_v45 = vor.u32 %v6720_v28, %v5845_v0  ;;  %v6730_v28 = vld [vmem:[%s9939_s2 + $0xdd4] sm:$0xf0] }
 0x163   :  { %2903 = vmatpush.bf16.msrb.mxu0 %v5648_v1  ;;  %v6030_v1 = vor.u32 %v6766_v40, %v6029_v37  ;;  %v5854_v21 = vor.u32 %v6722_v55, %v5853_v54  ;;  %v6750_v37 = vld [vmem:[%s9939_s2 + $0xe74] sm:$0xf0]  ;;  %v6013_v40 = vld [vmem:[%s9939_s2 + $0xed0] sm:$0xf] }
 0x164   :  { %2862 = vmatpush.bf16.msrb.mxu1 %v5448_v10  ;;  %v5973_v10 = vld [vmem:[%s9939_s2 + $0xe80] sm:$0xf]  ;;  %v6718_v54 = vld [vmem:[%s9939_s2 + $0xd74] sm:$0xf0]  ;;  %v6014_v63 = vor.u32 %v6762_v42, %v6013_v40 }
 0x165   :  { %2876 = vmatpush.bf16.msrb.mxu2 %v5512_v19  ;;  %v1887_v19 = vpop.f32.mrf.mxu0 }
 0x166   :  { %2890 = vmatpush.bf16.msrb.mxu3 %v5576_v26  ;;  %v1888_v22 = vadd.f32 %v1887_v19, %v1874_v46  ;;  %v5974_v26 = vor.u32 %v6752_v11, %v5973_v10  ;;  %v6732_v46 = vld [vmem:[%s9939_s2 + $0xde4] sm:$0xf0]  ;;  %v1903_v11 = vpop.f32.mrf.mxu1 }
 0x167   :  { %2904 = vmatpush.bf16.msrb.mxu0 %v5640_v30  ;;  %v6022_v30 = vor.u32 %v6764_v14, %v6021_v12 }
 0x168   :  { %2863 = vmatpush.bf16.msrb.mxu1 %v5440_v38  ;;  %v9182_v9 = vadd.f32 %v1901_v5, %v1888_v22  ;;  %v1861_v38 = vpop.f32.mrf.mxu2  ;;  %v6005_v5 = vld [vmem:[%s9939_s2 + $0xec0] sm:$0xf] }
 0x169   :  { %2877 = vmatpush.bf16.msrb.mxu2 %v5504_v47  ;;  %v1862_v43 = vadd.f32 %v1861_v38, %v8864_v39  ;;  %v5893_v39 = vld [vmem:[%s9939_s2 + $0xde0] sm:$0xf]  ;;  %v6006_v0 = vor.u32 %v6760_v8, %v6005_v5 }
 0x16a   :  { %2891 = vmatpush.bf16.msrb.mxu3 %v5568_v51  ;;  %v1962_v47 = vmax.f32 %v8403_v59, %v9182_v9  ;;  %v5966_v51 = vor.u32 %v6750_v37, %v5965_v32  ;;  %v5894_v19 = vor.u32 %v6732_v46, %v5893_v39  ;;  %v5829_v22 = vld [vmem:[%s9939_s2 + $0xd60] sm:$0xf]  ;;  %v5997_v32 = vld [vmem:[%s9939_s2 + $0xeb0] sm:$0xf]  ;;  %v6758_v37 = vld [vmem:[%s9939_s2 + $0xeb4] sm:$0xf0] }
 0x16b   :  { %2905 = vmatpush.bf16.msrb.mxu0 %v5632_v3  ;;  %2864 = vmatmul.bf16.vlgmr.msrb.gmra.mxu1 %v7413_v48  ;;  %v1876_v55 = vadd.f32 %v1875_v44, %v1862_v43  ;;  %v6748_v3 = vld [vmem:[%s9939_s2 + $0xe64] sm:$0xf0]  ;;  %v5821_v43 = vld [vmem:[%s9939_s2 + $0xd50] sm:$0xf]  ;;  %v6714_v44 = vld [vmem:[%s9939_s2 + $0xd54] sm:$0xf0] }
 0x16c   :  { %3352 = vmatpush.bf16.msra.mxu1 %v5918_v50  ;;  %2878 = vmatmul.bf16.vlgmr.msrb.gmra.mxu2 %v7415_v49  ;;  %v5902_v50 = vor.u32 %v6734_v31, %v5901_v29  ;;  %v5949_v29 = vld [vmem:[%s9939_s2 + $0xe50] sm:$0xf]  ;;  %v5989_v39 = vld [vmem:[%s9939_s2 + $0xea0] sm:$0xf]  ;;  %v6721_v46 = vld [vmem:[%s9939_s2 + $0xd94] sm:$0xf] }
 0x16d   :  { %3366 = vmatpush.bf16.msra.mxu2 %v5982_v52  ;;  %2892 = vmatmul.bf16.vlgmr.msrb.gmra.mxu3 %v7492_v23  ;;  %v5837_v52 = vld [vmem:[%s9939_s2 + $0xd70] sm:$0xf]  ;;  %v1889_v10 = vpop.f32.mrf.mxu0  ;;  %v5813_v8 = vld [vmem:[%s9939_s2 + $0xd40] sm:$0xf] }
 0x16e   :  { %3382 = vmatpush.bf16.msra.mxu3 %v6030_v1  ;;  %5674 = vmatmul.msk.bf16.vlgmr.msrb.gmra.mxu0 %vm466_vm0, %v7426_v53  ;;  %v5957_v1 = vld [vmem:[%s9939_s2 + $0xe60] sm:$0xf]  ;;  %v5838_v12 = vor.u32 %v6718_v54, %v5837_v52  ;;  %v1890_v14 = vadd.f32 %v1889_v10, %v1876_v55  ;;  %v6744_v54 = vld [vmem:[%s9939_s2 + $0xe44] sm:$0xf0] }
 0x16f   :  { %3338 = vmatpush.bf16.msra.mxu0 %v5854_v21  ;;  %v5958_v21 = vor.u32 %v6748_v3, %v5957_v1  ;;  %v5941_v52 = vld [vmem:[%s9939_s2 + $0xe40] sm:$0xf]  ;;  %v6756_v55 = vld [vmem:[%s9939_s2 + $0xea4] sm:$0xf0]  ;;  %v5855_v1 = vld [vmem:[%s9939_s2 + $0xd98] sm:$0xf0] }
 0x170   :  { %3353 = vmatpush.bf16.msra.mxu1 %v5910_v24  ;;  %v6716_v24 = vld [vmem:[%s9939_s2 + $0xd64] sm:$0xf0]  ;;  %v9240_v31 = vadd.f32 %v1903_v11, %v1890_v14  ;;  %v5942_v5 = vor.u32 %v6744_v54, %v5941_v52  ;;  %v5869_v11 = vld [vmem:[%s9939_s2 + $0xdb0] sm:$0xf]  ;;  %v6726_v14 = vld [vmem:[%s9939_s2 + $0xdb4] sm:$0xf0] }
 0x171   :  { %3367 = vmatpush.bf16.msra.mxu2 %v5974_v26  ;;  %v5885_v26 = vld [vmem:[%s9939_s2 + $0xdd0] sm:$0xf]  ;;  %v5830_v38 = vor.u32 %v6716_v24, %v5829_v22  ;;  %v6712_v10 = vld [vmem:[%s9939_s2 + $0xd44] sm:$0xf0]  ;;  %v1915_v22 = vpop.f32.mrf.mxu1  ;;  %v5858_v24 = vor.u32 %v6721_v46, %v5855_v1  ;;  %v6031_v52 = vld [vmem:[%s9939_s2 + $0xef8] sm:$0xf0] }
 0x172   :  { %3383 = vmatpush.bf16.msra.mxu3 %v6022_v30  ;;  %v6746_v30 = vld [vmem:[%s9939_s2 + $0xe54] sm:$0xf0]  ;;  %v5886_v40 = vor.u32 %v6730_v28, %v5885_v26  ;;  %v1916_v26 = vadd.f32 %v1915_v22, %v9002_v41  ;;  %v6719_v28 = vld [vmem:[%s9939_s2 + $0xd84] sm:$0xf] }
 0x173   :  { %3339 = vmatpush.bf16.msra.mxu0 %v5846_v45  ;;  %v5950_v42 = vor.u32 %v6746_v30, %v5949_v29  ;;  %v5877_v45 = vld [vmem:[%s9939_s2 + $0xdc0] sm:$0xf]  ;;  %v5847_v29 = vld [vmem:[%s9939_s2 + $0xd88] sm:$0xf0]  ;;  %v5805_v30 = vld [vmem:[%s9939_s2 + $0xd30] sm:$0xf] }
 0x174   :  { %3354 = vmatpush.bf16.msra.mxu1 %v5902_v50  ;;  %v5998_v50 = vor.u32 %v6758_v37, %v5997_v32  ;;  %v5870_v32 = vor.u32 %v6726_v14, %v5869_v11  ;;  %v6710_v41 = vld [vmem:[%s9939_s2 + $0xd34] sm:$0xf0]  ;;  %v6751_v22 = vld [vmem:[%s9939_s2 + $0xe84] sm:$0xf] }
 0x175   :  { %3368 = vmatpush.bf16.msra.mxu2 %v5966_v51  ;;  %v6728_v51 = vld [vmem:[%s9939_s2 + $0xdc4] sm:$0xf0]  ;;  %v5806_v54 = vor.u32 %v6710_v41, %v5805_v30  ;;  %v6715_v41 = vld [vmem:[%s9939_s2 + $0xd64] sm:$0xf] }
 0x176   :  { %3384 = vmatpush.bf16.msra.mxu3 %v6014_v63  ;;  %v5822_v63 = vor.u32 %v6714_v44, %v5821_v43  ;;  %v5878_v3 = vor.u32 %v6728_v51, %v5877_v45  ;;  %v6740_v43 = vld [vmem:[%s9939_s2 + $0xe24] sm:$0xf0]  ;;  %v6753_v44 = vld [vmem:[%s9939_s2 + $0xe94] sm:$0xf]  ;;  %v5850_v45 = vor.u32 %v6719_v28, %v5847_v29  ;;  %v6763_v28 = vld [vmem:[%s9939_s2 + $0xee4] sm:$0xf] }
 0x177   :  { %3340 = vmatpush.bf16.msra.mxu0 %v5838_v12  ;;  %v5990_v12 = vor.u32 %v6756_v55, %v5989_v39  ;;  %v6765_v51 = vld [vmem:[%s9939_s2 + $0xef4] sm:$0xf]  ;;  %v5839_v55 = vld [vmem:[%s9939_s2 + $0xd78] sm:$0xf0]  ;;  %v6023_v29 = vld [vmem:[%s9939_s2 + $0xee8] sm:$0xf0] }
 0x178   :  { %3355 = vmatpush.bf16.msra.mxu1 %v5894_v19  ;;  %v5933_v19 = vld [vmem:[%s9939_s2 + $0xe30] sm:$0xf]  ;;  %v6717_v39 = vld [vmem:[%s9939_s2 + $0xd74] sm:$0xf]  ;;  %v1943_v11 = vpop.f32.mrf.mxu3  ;;  %v6034_v14 = vor.u32 %v6765_v51, %v6031_v52  ;;  %v5967_v52 = vld [vmem:[%s9939_s2 + $0xe78] sm:$0xf0] }
 0x179   :  { %3369 = vmatpush.bf16.msra.mxu2 %v5958_v21  ;;  %v6742_v21 = vld [vmem:[%s9939_s2 + $0xe34] sm:$0xf0] }
 0x17a   :  { %3385 = vmatpush.bf16.msra.mxu3 %v6006_v0  ;;  %v5814_v0 = vor.u32 %v6712_v10, %v5813_v8  ;;  %v5934_v37 = vor.u32 %v6742_v21, %v5933_v19  ;;  %v6708_v8 = vld [vmem:[%s9939_s2 + $0xd24] sm:$0xf0]  ;;  %v6737_v19 = vld [vmem:[%s9939_s2 + $0xe14] sm:$0xf]  ;;  %v5919_v21 = vld [vmem:[%s9939_s2 + $0xe18] sm:$0xf0] }
 0x17b   :  { %3341 = vmatpush.bf16.msra.mxu0 %v5830_v38  ;;  %v5861_v38 = vld [vmem:[%s9939_s2 + $0xda0] sm:$0xf] }
 0x17c   :  { %3356 = vmatpush.bf16.msra.mxu1 %v5886_v40  ;;  %v6724_v40 = vld [vmem:[%s9939_s2 + $0xda4] sm:$0xf0] }
 0x17d   :  { %3370 = vmatpush.bf16.msra.mxu2 %v5950_v42  ;;  %v5925_v42 = vld [vmem:[%s9939_s2 + $0xe20] sm:$0xf]  ;;  %v5862_v46 = vor.u32 %v6724_v40, %v5861_v38  ;;  %v5831_v38 = vld [vmem:[%s9939_s2 + $0xd68] sm:$0xf0]  ;;  %v5922_v40 = vor.u32 %v6737_v19, %v5919_v21  ;;  %v6747_v19 = vld [vmem:[%s9939_s2 + $0xe64] sm:$0xf] }
 0x17e   :  { %3386 = vmatpush.bf16.msra.mxu3 %v5998_v50  ;;  %v5983_v50 = vld [vmem:[%s9939_s2 + $0xe98] sm:$0xf0]  ;;  %v5926_v1 = vor.u32 %v6740_v43, %v5925_v42  ;;  %v5834_v51 = vor.u32 %v6715_v41, %v5831_v38 }
 0x17f   :  { %3342 = vmatpush.bf16.msra.mxu0 %v5822_v63  ;;  %v1929_v63 = vpop.f32.mrf.mxu2 }
 0x180   :  { %3357 = vmatpush.bf16.msra.mxu1 %v5878_v3  ;;  %v1957_v3 = vpop.f32.mrf.mxu0  ;;  %v1930_v10 = vadd.f32 %v1929_v63, %v1916_v26  ;;  %v5842_v26 = vor.u32 %v6717_v39, %v5839_v55  ;;  %v6015_v39 = vld [vmem:[%s9939_s2 + $0xed8] sm:$0xf0]  ;;  %v6713_v63 = vld [vmem:[%s9939_s2 + $0xd54] sm:$0xf] }
 0x181   :  { %3371 = vmatpush.bf16.msra.mxu2 %v5942_v5  ;;  %v5797_v5 = vld [vmem:[%s9939_s2 + $0xd20] sm:$0xf] }
 0x182   :  { %3387 = vmatpush.bf16.msra.mxu3 %v5990_v12  ;;  %v5986_v12 = vor.u32 %v6753_v44, %v5983_v50  ;;  %v6026_v44 = vor.u32 %v6763_v28, %v6023_v29  ;;  %v6749_v50 = vld [vmem:[%s9939_s2 + $0xe74] sm:$0xf]  ;;  %v6711_v29 = vld [vmem:[%s9939_s2 + $0xd44] sm:$0xf] }
 0x183   :  { %3343 = vmatpush.bf16.msra.mxu0 %v5814_v0  ;;  %v5975_v0 = vld [vmem:[%s9939_s2 + $0xe88] sm:$0xf0] }
 0x184   :  { %3358 = vmatpush.bf16.msra.mxu1 %v5870_v32  ;;  %v1944_v32 = vadd.f32 %v1943_v11, %v1930_v10  ;;  %v5978_v43 = vor.u32 %v6751_v22, %v5975_v0  ;;  %v5970_v10 = vor.u32 %v6749_v50, %v5967_v52  ;;  %v6007_v0 = vld [vmem:[%s9939_s2 + $0xec8] sm:$0xf0]  ;;  %v6757_v50 = vld [vmem:[%s9939_s2 + $0xeb4] sm:$0xf] }
 0x185   :  { %3372 = vmatpush.bf16.msra.mxu2 %v5934_v37  ;;  %6035 = vmatmul.msk.bf16.vlgmr.msra.gmra.mxu3 %vm466_vm0, %v7064_v2  ;;  %v5798_v37 = vor.u32 %v6708_v8, %v5797_v5  ;;  %v1945_v8 = vpop.f32.mrf.mxu3  ;;  %v6709_v52 = vld [vmem:[%s9939_s2 + $0xd34] sm:$0xf] }
 0x186   :  { %3394 = vmatpush.bf16.msrb.mxu3 %v5858_v24  ;;  %v1917_v24 = vpop.f32.mrf.mxu1  ;;  %v9372_v42 = vadd.f32 %v1957_v3, %v1944_v32 }
 0x187   :  { %3344 = vmatpush.bf16.msra.mxu0 %v5806_v54  ;;  %v1918_v30 = vadd.f32 %v1917_v24, %v9053_v36  ;;  %v6735_v36 = vld [vmem:[%s9939_s2 + $0xe04] sm:$0xf]  ;;  %v6761_v54 = vld [vmem:[%s9939_s2 + $0xed4] sm:$0xf]  ;;  %v5959_v24 = vld [vmem:[%s9939_s2 + $0xe68] sm:$0xf0] }
 0x188   :  { %3359 = vmatpush.bf16.msra.mxu1 %v5862_v46  ;;  %v1963_v55 = vmax.f32 %v8604_v15, %v9372_v42  ;;  %v5823_v46 = vld [vmem:[%s9939_s2 + $0xd58] sm:$0xf0]  ;;  %v6018_v11 = vor.u32 %v6761_v54, %v6015_v39  ;;  %v1959_v21 = vpop.f32.mrf.mxu0  ;;  %v5962_v41 = vor.u32 %v6747_v19, %v5959_v24  ;;  %v5799_v19 = vld [vmem:[%s9939_s2 + $0xd28] sm:$0xf0] }
 0x189   :  { %3373 = vmatpush.bf16.msra.mxu2 %v5926_v1  ;;  %v1931_v1 = vpop.f32.mrf.mxu2  ;;  %v5826_v22 = vor.u32 %v6713_v63, %v5823_v46  ;;  %v5807_v54 = vld [vmem:[%s9939_s2 + $0xd38] sm:$0xf0]  ;;  %v6729_v63 = vld [vmem:[%s9939_s2 + $0xdd4] sm:$0xf] }
 0x18a   :  { %3395 = vmatpush.bf16.msrb.mxu3 %v5850_v45  ;;  %v5911_v45 = vld [vmem:[%s9939_s2 + $0xe08] sm:$0xf0]  ;;  %v1932_v5 = vadd.f32 %v1931_v1, %v1918_v30 }
 0x18b   :  { %3345 = vmatpush.bf16.msra.mxu0 %v5798_v37  ;;  %v5914_v3 = vor.u32 %v6735_v36, %v5911_v45  ;;  %3360 = vmatmul.bf16.vlgmr.msra.gmra.mxu1 %v7098_v17  ;;  %v5815_v30 = vld [vmem:[%s9939_s2 + $0xd48] sm:$0xf0]  ;;  %v5951_v45 = vld [vmem:[%s9939_s2 + $0xe58] sm:$0xf0] }
 0x18c   :  { %3422 = vmatpush.bf16.msrb.mxu1 %v5986_v12  ;;  %3374 = vmatmul.bf16.vlgmr.msra.gmra.mxu2 %v7047_v58  ;;  %v6733_v12 = vld [vmem:[%s9939_s2 + $0xdf4] sm:$0xf]  ;;  %v1946_v28 = vadd.f32 %v1945_v8, %v1932_v5  ;;  %v5818_v36 = vor.u32 %v6711_v29, %v5815_v30  ;;  %v6707_v5 = vld [vmem:[%s9939_s2 + $0xd24] sm:$0xf] }
 0x18d   :  { %3438 = vmatpush.bf16.msrb.mxu2 %v6034_v14  ;;  %v5903_v14 = vld [vmem:[%s9939_s2 + $0xdf8] sm:$0xf0]  ;;  %v6743_v8 = vld [vmem:[%s9939_s2 + $0xe44] sm:$0xf] }
 0x18e   :  { %3396 = vmatpush.bf16.msrb.mxu3 %v5842_v26  ;;  %v6759_v26 = vld [vmem:[%s9939_s2 + $0xec4] sm:$0xf]  ;;  %3346 = vmatmul.bf16.vlgmr.msra.gmra.mxu0 %v7096_v16  ;;  %v5906_v32 = vor.u32 %v6733_v12, %v5903_v14  ;;  %v9427_v37 = vadd.f32 %v1959_v21, %v1946_v28  ;;  %v5991_v14 = vld [vmem:[%s9939_s2 + $0xea8] sm:$0xf0]  ;;  %v6095_v21 = vld [vmem:[%s9939_s2 + $0x610] sm:$0xf] }
 0x18f   :  { %3408 = vmatpush.bf16.msrb.mxu0 %v5922_v40  ;;  %v6010_v38 = vor.u32 %v6759_v26, %v6007_v0  ;;  %v6731_v40 = vld [vmem:[%s9939_s2 + $0xde4] sm:$0xf]  ;;  %v6159_v26 = vld [vmem:[%s9939_s2 + $0x690] sm:$0xf]  ;;  %v6678_v0 = vld [vmem:[%s9939_s2 + $0x694] sm:$0xf0] }
 0x190   :  { %3423 = vmatpush.bf16.msrb.mxu1 %v5978_v43  ;;  %v5895_v43 = vld [vmem:[%s9939_s2 + $0xde8] sm:$0xf0]  ;;  %v6755_v12 = vld [vmem:[%s9939_s2 + $0xea4] sm:$0xf] }
 0x191   :  { %3439 = vmatpush.bf16.msrb.mxu2 %v6026_v44  ;;  %v6745_v44 = vld [vmem:[%s9939_s2 + $0xe54] sm:$0xf]  ;;  %v5898_v39 = vor.u32 %v6731_v40, %v5895_v43  ;;  %v5994_v29 = vor.u32 %v6755_v12, %v5991_v14  ;;  %v6727_v30 = vld [vmem:[%s9939_s2 + $0xdc4] sm:$0xf]  ;;  %v5935_v43 = vld [vmem:[%s9939_s2 + $0xe38] sm:$0xf0] }
 0x192   :  { %3397 = vmatpush.bf16.msrb.mxu3 %v5834_v51  ;;  %v5999_v51 = vld [vmem:[%s9939_s2 + $0xeb8] sm:$0xf0]  ;;  %v5954_v46 = vor.u32 %v6745_v44, %v5951_v45  ;;  %v6741_v40 = vld [vmem:[%s9939_s2 + $0xe34] sm:$0xf]  ;;  %v6160_v44 = vor.u32 %v6678_v0, %v6159_v26  ;;  %v6660_v45 = vld [vmem:[%s9939_s2 + $0x604] sm:$0xf0] }
 0x193   :  { %3409 = vmatpush.bf16.msrb.mxu0 %v5914_v3  ;;  %v6002_v1 = vor.u32 %v6757_v50, %v5999_v51  ;;  %v5887_v3 = vld [vmem:[%s9939_s2 + $0xdd8] sm:$0xf0]  ;;  %v6151_v51 = vld [vmem:[%s9939_s2 + $0x680] sm:$0xf]  ;;  %v6658_v12 = vld [vmem:[%s9939_s2 + $0x5f4] sm:$0xf0] }
 0x194   :  { %3424 = vmatpush.bf16.msrb.mxu1 %v5970_v10  ;;  %v5810_v10 = vor.u32 %v6709_v52, %v5807_v54  ;;  %v5890_v24 = vor.u32 %v6729_v63, %v5887_v3  ;;  %v6676_v52 = vld [vmem:[%s9939_s2 + $0x684] sm:$0xf0]  ;;  %v2411_v54 = vpop.f32.mrf.mxu1  ;;  %v6725_v63 = vld [vmem:[%s9939_s2 + $0xdb4] sm:$0xf]  ;;  %v6739_v3 = vld [vmem:[%s9939_s2 + $0xe24] sm:$0xf] }
 0x195   :  { %3440 = vmatpush.bf16.msrb.mxu2 %v6018_v11  ;;  %v5943_v11 = vld [vmem:[%s9939_s2 + $0xe48] sm:$0xf0]  ;;  %v6271_v14 = vld [vmem:[%s9939_s2 + $0x770] sm:$0xf]  ;;  %v6674_v0 = vld [vmem:[%s9939_s2 + $0x674] sm:$0xf0] }
 0x196   :  { %3398 = vmatpush.bf16.msrb.mxu3 %v5826_v22  ;;  %v6662_v22 = vld [vmem:[%s9939_s2 + $0x614] sm:$0xf0]  ;;  %v5946_v28 = vor.u32 %v6743_v8, %v5943_v11  ;;  %v6079_v8 = vld [vmem:[%s9939_s2 + $0x5f0] sm:$0xf]  ;;  %v6152_v11 = vor.u32 %v6676_v52, %v6151_v51  ;;  %v6135_v52 = vld [vmem:[%s9939_s2 + $0x660] sm:$0xf] }
 0x197   :  { %3410 = vmatpush.bf16.msrb.mxu0 %v5906_v32  ;;  %v5879_v32 = vld [vmem:[%s9939_s2 + $0xdc8] sm:$0xf0]  ;;  %v6143_v26 = vld [vmem:[%s9939_s2 + $0x670] sm:$0xf] }
 0x198   :  { %3425 = vmatpush.bf16.msrb.mxu1 %v5962_v41  ;;  %v5802_v41 = vor.u32 %v6707_v5, %v5799_v19  ;;  %v5882_v50 = vor.u32 %v6727_v30, %v5879_v32  ;;  %v5927_v5 = vld [vmem:[%s9939_s2 + $0xe28] sm:$0xf0]  ;;  %v6706_v19 = vld [vmem:[%s9939_s2 + $0x774] sm:$0xf0]  ;;  %v2425_v32 = vpop.f32.mrf.mxu2 }
 0x199   :  { %3441 = vmatpush.bf16.msrb.mxu2 %v6010_v38  ;;  %v6096_v38 = vor.u32 %v6662_v22, %v6095_v21  ;;  %v2439_v22 = vpop.f32.mrf.mxu3  ;;  %v5863_v30 = vld [vmem:[%s9939_s2 + $0xda8] sm:$0xf0] }
 0x19a   :  { %3399 = vmatpush.bf16.msrb.mxu3 %v5818_v36  ;;  %v6087_v36 = vld [vmem:[%s9939_s2 + $0x600] sm:$0xf] }
 0x19b   :  { %3411 = vmatpush.bf16.msrb.mxu0 %v5898_v39  ;;  %v5938_v39 = vor.u32 %v6741_v40, %v5935_v43  ;;  %v6694_v40 = vld [vmem:[%s9939_s2 + $0x714] sm:$0xf0]  ;;  %v6071_v43 = vld [vmem:[%s9939_s2 + $0x5e0] sm:$0xf] }
 0x19c   :  { %3426 = vmatpush.bf16.msrb.mxu1 %v5954_v46  ;;  %v5871_v46 = vld [vmem:[%s9939_s2 + $0xdb8] sm:$0xf0] }
 0x19d   :  { %3442 = vmatpush.bf16.msrb.mxu2 %v6002_v1  ;;  %v6088_v1 = vor.u32 %v6660_v45, %v6087_v36  ;;  %v6144_v36 = vor.u32 %v6674_v0, %v6143_v26  ;;  %v6263_v45 = vld [vmem:[%s9939_s2 + $0x760] sm:$0xf]  ;;  %v6670_v26 = vld [vmem:[%s9939_s2 + $0x654] sm:$0xf0] }
 0x19e   :  { %3400 = vmatpush.bf16.msrb.mxu3 %v5810_v10  ;;  %v2397_v10 = vpop.f32.mrf.mxu0 }
 0x19f   :  { %3412 = vmatpush.bf16.msrb.mxu0 %v5890_v24  ;;  %v2412_v21 = vadd.f32 %v2411_v54, %v2397_v10  ;;  %v5874_v24 = vor.u32 %v6725_v63, %v5871_v46  ;;  %v6672_v54 = vld [vmem:[%s9939_s2 + $0x664] sm:$0xf0]  ;;  %v2413_v63 = vpop.f32.mrf.mxu1  ;;  %v6063_v10 = vld [vmem:[%s9939_s2 + $0x5d0] sm:$0xf] }
 0x1a0   :  { %3427 = vmatpush.bf16.msrb.mxu1 %v5946_v28  ;;  %v5930_v28 = vor.u32 %v6739_v3, %v5927_v5  ;;  %v6215_v5 = vld [vmem:[%s9939_s2 + $0x700] sm:$0xf] }
 0x1a1   :  { %3443 = vmatpush.bf16.msrb.mxu2 %v5994_v29  ;;  %v6723_v29 = vld [vmem:[%s9939_s2 + $0xda4] sm:$0xf] }
 0x1a2   :  { %3401 = vmatpush.bf16.msrb.mxu3 %v5802_v41  ;;  %v6080_v41 = vor.u32 %v6658_v12, %v6079_v8  ;;  %v5866_v51 = vor.u32 %v6723_v29, %v5863_v30  ;;  %v6692_v8 = vld [vmem:[%s9939_s2 + $0x704] sm:$0xf0]  ;;  %v6136_v12 = vor.u32 %v6672_v54, %v6135_v52  ;;  %v2441_v29 = vpop.f32.mrf.mxu3 }
 0x1a3   :  { %3413 = vmatpush.bf16.msrb.mxu0 %v5882_v50  ;;  %v6704_v50 = vld [vmem:[%s9939_s2 + $0x764] sm:$0xf0]  ;;  %v6216_v0 = vor.u32 %v6692_v8, %v6215_v5  ;;  %v6239_v5 = vld [vmem:[%s9939_s2 + $0x730] sm:$0xf]  ;;  %v6698_v8 = vld [vmem:[%s9939_s2 + $0x734] sm:$0xf0] }
 0x1a4   :  { %6036 = vmatmul.msk.bf16.vlgmr.msrb.gmra.mxu2 %vm466_vm0, %v7064_v2  ;;  %3428 = vmatpush.bf16.msrb.mxu1 %v5938_v39  ;;  %v6223_v2 = vld [vmem:[%s9939_s2 + $0x710] sm:$0xf]  ;;  %v6264_v3 = vor.u32 %v6704_v50, %v6263_v45  ;;  %v6668_v45 = vld [vmem:[%s9939_s2 + $0x644] sm:$0xf0] }
 0x1a5   :  { %3750 = vmatpush.bf16.msra.mxu2 %v6096_v38  ;;  %3402 = vmatmul.bf16.vlgmr.msrb.gmra.mxu3 %v7096_v16  ;;  %v6272_v38 = vor.u32 %v6706_v19, %v6271_v14  ;;  %v6656_v16 = vld [vmem:[%s9939_s2 + $0x5e4] sm:$0xf0]  ;;  %v6224_v46 = vor.u32 %v6694_v40, %v6223_v2  ;;  %v6654_v14 = vld [vmem:[%s9939_s2 + $0x5d4] sm:$0xf0]  ;;  %v6255_v19 = vld [vmem:[%s9939_s2 + $0x750] sm:$0xf] }
 0x1a6   :  { %3764 = vmatpush.bf16.msra.mxu3 %v6160_v44  ;;  %v2426_v44 = vadd.f32 %v2425_v32, %v2412_v21  ;;  %v6702_v21 = vld [vmem:[%s9939_s2 + $0x754] sm:$0xf0]  ;;  %v6064_v30 = vor.u32 %v6654_v14, %v6063_v10  ;;  %v6111_v10 = vld [vmem:[%s9939_s2 + $0x630] sm:$0xf] }
 0x1a7   :  { %3414 = vmatpush.bf16.msrb.mxu0 %v5874_v24  ;;  %v6127_v24 = vld [vmem:[%s9939_s2 + $0x650] sm:$0xf]  ;;  %v6256_v32 = vor.u32 %v6702_v21, %v6255_v19  ;;  %v6686_v19 = vld [vmem:[%s9939_s2 + $0x6d4] sm:$0xf0] }
 0x1a8   :  { %v9576_v39 = vadd.f32 %v2439_v22, %v2426_v44  ;;  %3429 = vmatpush.bf16.msrb.mxu1 %v5930_v28  ;;  %v2427_v28 = vpop.f32.mrf.mxu2  ;;  %v6128_v40 = vor.u32 %v6670_v26, %v6127_v24  ;;  %v6247_v44 = vld [vmem:[%s9939_s2 + $0x740] sm:$0xf]  ;;  %v6191_v14 = vld [vmem:[%s9939_s2 + $0x6d0] sm:$0xf]  ;;  %v6648_v26 = vld [vmem:[%s9939_s2 + $0x5a4] sm:$0xf0] }
 0x1a9   :  { %3751 = vmatpush.bf16.msra.mxu2 %v6088_v1  ;;  %v6072_v1 = vor.u32 %v6656_v16, %v6071_v43  ;;  %v6652_v43 = vld [vmem:[%s9939_s2 + $0x5c4] sm:$0xf0]  ;;  %v6119_v16 = vld [vmem:[%s9939_s2 + $0x640] sm:$0xf] }
 0x1aa   :  { %3765 = vmatpush.bf16.msra.mxu3 %v6152_v11  ;;  %v2399_v11 = vpop.f32.mrf.mxu0  ;;  %v6039_v24 = vld [vmem:[%s9939_s2 + $0x5a0] sm:$0xf] }
 0x1ab   :  { %v2414_v22 = vadd.f32 %v2413_v63, %v2399_v11  ;;  %3415 = vmatpush.bf16.msrb.mxu0 %v5866_v51  ;;  %3430 = vmatmul.bf16.vlgmr.msrb.gmra.mxu1 %v7047_v58  ;;  %v6055_v58 = vld [vmem:[%s9939_s2 + $0x5c0] sm:$0xf]  ;;  %v6688_v63 = vld [vmem:[%s9939_s2 + $0x6e4] sm:$0xf0]  ;;  %v6666_v11 = vld [vmem:[%s9939_s2 + $0x634] sm:$0xf0] }
 0x1ac   :  { %3794 = vmatpush.bf16.msra.mxu1 %v6272_v38  ;;  %v6690_v38 = vld [vmem:[%s9939_s2 + $0x6f4] sm:$0xf0]  ;;  %v6056_v52 = vor.u32 %v6652_v43, %v6055_v58  ;;  %v6677_v58 = vld [vmem:[%s9939_s2 + $0x694] sm:$0xf] }
 0x1ad   :  { %3752 = vmatpush.bf16.msra.mxu2 %v6080_v41  ;;  %v6207_v41 = vld [vmem:[%s9939_s2 + $0x6f0] sm:$0xf]  ;;  %v2428_v2 = vadd.f32 %v2427_v28, %v2414_v22  ;;  %v6240_v22 = vor.u32 %v6698_v8, %v6239_v5  ;;  %v6112_v28 = vor.u32 %v6666_v11, %v6111_v10  ;;  %v6693_v43 = vld [vmem:[%s9939_s2 + $0x714] sm:$0xf]  ;;  %v6675_v5 = vld [vmem:[%s9939_s2 + $0x684] sm:$0xf] }
 0x1ae   :  { %3766 = vmatpush.bf16.msra.mxu3 %v6144_v36  ;;  %v6700_v36 = vld [vmem:[%s9939_s2 + $0x744] sm:$0xf0]  ;;  %3416 = vmatmul.bf16.vlgmr.msrb.gmra.mxu0 %v7098_v17  ;;  %v6208_v51 = vor.u32 %v6690_v38, %v6207_v41  ;;  %v6199_v17 = vld [vmem:[%s9939_s2 + $0x6e0] sm:$0xf]  ;;  %v6661_v41 = vld [vmem:[%s9939_s2 + $0x614] sm:$0xf] }
 0x1af   :  { %3778 = vmatpush.bf16.msra.mxu0 %v6224_v46  ;;  %v9628_v50 = vadd.f32 %v2441_v29, %v2428_v2  ;;  %v6248_v54 = vor.u32 %v6700_v36, %v6247_v44  ;;  %v6047_v46 = vld [vmem:[%s9939_s2 + $0x5b0] sm:$0xf]  ;;  %v6664_v29 = vld [vmem:[%s9939_s2 + $0x624] sm:$0xf0]  ;;  %v6097_v38 = vld [vmem:[%s9939_s2 + $0x618] sm:$0xf0]  ;;  %v6192_v2 = vor.u32 %v6686_v19, %v6191_v14  ;;  %v6040_v36 = vor.u32 %v6648_v26, %v6039_v24 }
 0x1b0   :  { %3795 = vmatpush.bf16.msra.mxu1 %v6264_v3  ;;  %v6650_v3 = vld [vmem:[%s9939_s2 + $0x5b4] sm:$0xf0]  ;;  %v6225_v44 = vld [vmem:[%s9939_s2 + $0x718] sm:$0xf0]  ;;  %v6153_v10 = vld [vmem:[%s9939_s2 + $0x688] sm:$0xf0]  ;;  %v2481_v14 = vpop.f32.mrf.mxu1 }
 0x1b1   :  { %3753 = vmatpush.bf16.msra.mxu2 %v6072_v1  ;;  %v6120_v1 = vor.u32 %v6668_v45, %v6119_v16  ;;  %v6048_v21 = vor.u32 %v6650_v3, %v6047_v46  ;;  %v6183_v45 = vld [vmem:[%s9939_s2 + $0x6c0] sm:$0xf]  ;;  %v6228_v46 = vor.u32 %v6693_v43, %v6225_v44  ;;  %v6089_v3 = vld [vmem:[%s9939_s2 + $0x608] sm:$0xf0]  ;;  %v6691_v11 = vld [vmem:[%s9939_s2 + $0x704] sm:$0xf]  ;;  %v6156_v26 = vor.u32 %v6675_v5, %v6153_v10 }
 0x1b2   :  { %3767 = vmatpush.bf16.msra.mxu3 %v6136_v12  ;;  %v6200_v12 = vor.u32 %v6688_v63, %v6199_v17  ;;  %v2453_v17 = vpop.f32.mrf.mxu3  ;;  %v6175_v19 = vld [vmem:[%s9939_s2 + $0x6b0] sm:$0xf]  ;;  %v6167_v43 = vld [vmem:[%s9939_s2 + $0x6a0] sm:$0xf]  ;;  %v6680_v44 = vld [vmem:[%s9939_s2 + $0x6a4] sm:$0xf0] }
 0x1b3   :  { %3779 = vmatpush.bf16.msra.mxu0 %v6216_v0  ;;  %v6103_v0 = vld [vmem:[%s9939_s2 + $0x620] sm:$0xf]  ;;  %v2467_v24 = vpop.f32.mrf.mxu0  ;;  %v6137_v5 = vld [vmem:[%s9939_s2 + $0x668] sm:$0xf0] }
 0x1b4   :  { %3796 = vmatpush.bf16.msra.mxu1 %v6256_v32  ;;  %v6696_v32 = vld [vmem:[%s9939_s2 + $0x724] sm:$0xf0] }
 0x1b5   :  { %3754 = vmatpush.bf16.msra.mxu2 %v6064_v30  ;;  %v6231_v30 = vld [vmem:[%s9939_s2 + $0x720] sm:$0xf] }
 0x1b6   :  { %3768 = vmatpush.bf16.msra.mxu3 %v6128_v40  ;;  %v6161_v40 = vld [vmem:[%s9939_s2 + $0x698] sm:$0xf0]  ;;  %v6232_v16 = vor.u32 %v6696_v32, %v6231_v30  ;;  %v6673_v30 = vld [vmem:[%s9939_s2 + $0x674] sm:$0xf]  ;;  %v2468_v32 = vadd.f32 %v2467_v24, %v2453_v17  ;;  %v6655_v17 = vld [vmem:[%s9939_s2 + $0x5e4] sm:$0xf] }
 0x1b7   :  { %3780 = vmatpush.bf16.msra.mxu0 %v6208_v51  ;;  %v6684_v51 = vld [vmem:[%s9939_s2 + $0x6c4] sm:$0xf0]  ;;  %v6164_v63 = vor.u32 %v6677_v58, %v6161_v40  ;;  %v6689_v58 = vld [vmem:[%s9939_s2 + $0x6f4] sm:$0xf]  ;;  %v2495_v40 = vpop.f32.mrf.mxu2 }
 0x1b8   :  { %3797 = vmatpush.bf16.msra.mxu1 %v6248_v54  ;;  %v6100_v54 = vor.u32 %v6661_v41, %v6097_v38  ;;  %v6184_v8 = vor.u32 %v6684_v51, %v6183_v45  ;;  %v6145_v38 = vld [vmem:[%s9939_s2 + $0x678] sm:$0xf0]  ;;  %v6705_v45 = vld [vmem:[%s9939_s2 + $0x774] sm:$0xf]  ;;  %v2483_v24 = vpop.f32.mrf.mxu1 }
 0x1b9   :  { %3755 = vmatpush.bf16.msra.mxu2 %v6056_v52  ;;  %v6104_v52 = vor.u32 %v6664_v29, %v6103_v0  ;;  %v6081_v29 = vld [vmem:[%s9939_s2 + $0x5f8] sm:$0xf0] }
 0x1ba   :  { %3769 = vmatpush.bf16.msra.mxu3 %v6120_v1  ;;  %v6659_v1 = vld [vmem:[%s9939_s2 + $0x604] sm:$0xf]  ;;  %v6273_v51 = vld [vmem:[%s9939_s2 + $0x778] sm:$0xf0] }
 0x1bb   :  { %3781 = vmatpush.bf16.msra.mxu0 %v6200_v12  ;;  %v6217_v12 = vld [vmem:[%s9939_s2 + $0x708] sm:$0xf0]  ;;  %v6276_v10 = vor.u32 %v6705_v45, %v6273_v51  ;;  %v6651_v51 = vld [vmem:[%s9939_s2 + $0x5c4] sm:$0xf] }
 0x1bc   :  { %3798 = vmatpush.bf16.msra.mxu1 %v6240_v22  ;;  %v6092_v22 = vor.u32 %v6659_v1, %v6089_v3  ;;  %v6220_v0 = vor.u32 %v6691_v11, %v6217_v12  ;;  %v6168_v1 = vor.u32 %v6680_v44, %v6167_v43  ;;  %v6671_v3 = vld [vmem:[%s9939_s2 + $0x664] sm:$0xf]  ;;  %v6201_v12 = vld [vmem:[%s9939_s2 + $0x6e8] sm:$0xf0] }
 0x1bd   :  { %3756 = vmatpush.bf16.msra.mxu2 %v6048_v21  ;;  %v6682_v21 = vld [vmem:[%s9939_s2 + $0x6b4] sm:$0xf0]  ;;  %v6687_v11 = vld [vmem:[%s9939_s2 + $0x6e4] sm:$0xf] }
 0x1be   :  { %3770 = vmatpush.bf16.msra.mxu3 %v6112_v28  ;;  %v6657_v28 = vld [vmem:[%s9939_s2 + $0x5f4] sm:$0xf]  ;;  %v6176_v41 = vor.u32 %v6682_v21, %v6175_v19  ;;  %v6703_v19 = vld [vmem:[%s9939_s2 + $0x764] sm:$0xf]  ;;  %v6265_v21 = vld [vmem:[%s9939_s2 + $0x768] sm:$0xf0] }
 0x1bf   :  { %3782 = vmatpush.bf16.msra.mxu0 %v6192_v2  ;;  %v6209_v2 = vld [vmem:[%s9939_s2 + $0x6f8] sm:$0xf0]  ;;  %v2497_v44 = vpop.f32.mrf.mxu2 }
 0x1c0   :  { %3799 = vmatpush.bf16.msra.mxu1 %v6232_v16  ;;  %v6084_v16 = vor.u32 %v6657_v28, %v6081_v29  ;;  %v6065_v28 = vld [vmem:[%s9939_s2 + $0x5d8] sm:$0xf0] }
 0x1c1   :  { %3757 = vmatpush.bf16.msra.mxu2 %v6040_v36  ;;  %v2482_v36 = vadd.f32 %v2481_v14, %v2468_v32  ;;  %v6669_v32 = vld [vmem:[%s9939_s2 + $0x654] sm:$0xf] }
 0x1c2   :  { %3771 = vmatpush.bf16.msra.mxu3 %v6104_v52  ;;  %v6148_v52 = vor.u32 %v6673_v30, %v6145_v38  ;;  %v6204_v30 = vor.u32 %v6687_v11, %v6201_v12  ;;  %v6268_v38 = vor.u32 %v6703_v19, %v6265_v21  ;;  %v6699_v12 = vld [vmem:[%s9939_s2 + $0x744] sm:$0xf]  ;;  %v6649_v21 = vld [vmem:[%s9939_s2 + $0x5b4] sm:$0xf] }
 0x1c3   :  { %3783 = vmatpush.bf16.msra.mxu0 %v6184_v8  ;;  %6277 = vmatmul.msk.bf16.vlgmr.msra.gmra.mxu1 %vm466_vm0, %v7426_v53  ;;  %v2455_v8 = vpop.f32.mrf.mxu3 }
 0x1c4   :  { %3806 = vmatpush.bf16.msrb.mxu1 %v6100_v54  ;;  %3758 = vmatmul.bf16.vlgmr.msra.gmra.mxu2 %v7413_v48  ;;  %v6212_v54 = vor.u32 %v6689_v58, %v6209_v2  ;;  %v6685_v58 = vld [vmem:[%s9939_s2 + $0x6d4] sm:$0xf]  ;;  %v6193_v2 = vld [vmem:[%s9939_s2 + $0x6d8] sm:$0xf0] }
 0x1c5   :  { %3820 = vmatpush.bf16.msrb.mxu2 %v6164_v63  ;;  %3772 = vmatmul.bf16.vlgmr.msra.gmra.mxu3 %v7415_v49  ;;  %v6073_v63 = vld [vmem:[%s9939_s2 + $0x5e8] sm:$0xf0] }
 0x1c6   :  { %3834 = vmatpush.bf16.msrb.mxu3 %v6228_v46  ;;  %v9766_v46 = vadd.f32 %v2495_v40, %v2482_v36  ;;  %v6076_v14 = vor.u32 %v6655_v17, %v6073_v63  ;;  %v6701_v36 = vld [vmem:[%s9939_s2 + $0x754] sm:$0xf]  ;;  %v6196_v17 = vor.u32 %v6685_v58, %v6193_v2  ;;  %v6667_v63 = vld [vmem:[%s9939_s2 + $0x644] sm:$0xf] }
 0x1c7   :  { %3784 = vmatpush.bf16.msra.mxu0 %v6176_v41  ;;  %v6129_v41 = vld [vmem:[%s9939_s2 + $0x658] sm:$0xf0]  ;;  %v6647_v58 = vld [vmem:[%s9939_s2 + $0x5a4] sm:$0xf] }
 0x1c8   :  { %3807 = vmatpush.bf16.msrb.mxu1 %v6092_v22  ;;  %v2469_v22 = vpop.f32.mrf.mxu0  ;;  %v6132_v45 = vor.u32 %v6669_v32, %v6129_v41  ;;  %v6697_v32 = vld [vmem:[%s9939_s2 + $0x734] sm:$0xf]  ;;  %v6241_v41 = vld [vmem:[%s9939_s2 + $0x738] sm:$0xf0] }
 0x1c9   :  { %3821 = vmatpush.bf16.msrb.mxu2 %v6156_v26  ;;  %v6140_v26 = vor.u32 %v6671_v3, %v6137_v5  ;;  %v2470_v29 = vadd.f32 %v2469_v22, %v2455_v8  ;;  %v6683_v5 = vld [vmem:[%s9939_s2 + $0x6c4] sm:$0xf]  ;;  %v6185_v8 = vld [vmem:[%s9939_s2 + $0x6c8] sm:$0xf0]  ;;  %v6665_v22 = vld [vmem:[%s9939_s2 + $0x634] sm:$0xf] }
 0x1ca   :  { %3835 = vmatpush.bf16.msrb.mxu3 %v6220_v0  ;;  %v6653_v0 = vld [vmem:[%s9939_s2 + $0x5d4] sm:$0xf] }
 0x1cb   :  { %3785 = vmatpush.bf16.msra.mxu0 %v6168_v1  ;;  %v2484_v40 = vadd.f32 %v2483_v24, %v2470_v29  ;;  %v6068_v43 = vor.u32 %v6653_v0, %v6065_v28  ;;  %v6121_v1 = vld [vmem:[%s9939_s2 + $0x648] sm:$0xf0]  ;;  %v6113_v24 = vld [vmem:[%s9939_s2 + $0x638] sm:$0xf0]  ;;  %v6681_v0 = vld [vmem:[%s9939_s2 + $0x6b4] sm:$0xf] }
 0x1cc   :  { %3808 = vmatpush.bf16.msrb.mxu1 %v6084_v16  ;;  %v6257_v16 = vld [vmem:[%s9939_s2 + $0x758] sm:$0xf0]  ;;  %v6124_v19 = vor.u32 %v6667_v63, %v6121_v1  ;;  %v6233_v63 = vld [vmem:[%s9939_s2 + $0x728] sm:$0xf0] }
 0x1cd   :  { %3822 = vmatpush.bf16.msrb.mxu2 %v6148_v52  ;;  %v6057_v52 = vld [vmem:[%s9939_s2 + $0x5c8] sm:$0xf0]  ;;  %v6260_v3 = vor.u32 %v6701_v36, %v6257_v16  ;;  %v6177_v28 = vld [vmem:[%s9939_s2 + $0x6b8] sm:$0xf0]  ;;  %v6679_v36 = vld [vmem:[%s9939_s2 + $0x6a4] sm:$0xf] }
 0x1ce   :  { %3836 = vmatpush.bf16.msrb.mxu3 %v6212_v54  ;;  %3786 = vmatmul.bf16.vlgmr.msra.gmra.mxu0 %v7492_v23  ;;  %v9817_v54 = vadd.f32 %v2497_v44, %v2484_v40  ;;  %v6060_v11 = vor.u32 %v6651_v51, %v6057_v52  ;;  %v6180_v2 = vor.u32 %v6681_v0, %v6177_v28  ;;  %v6663_v40 = vld [vmem:[%s9939_s2 + $0x624] sm:$0xf]  ;;  %v6169_v16 = vld [vmem:[%s9939_s2 + $0x6a8] sm:$0xf0] }
 0x1cf   :  { %3850 = vmatpush.bf16.msrb.mxu0 %v6276_v10  ;;  %v496_v10 = vadd.f32 %v8143_v6, %v8121_v60  ;;  %v6049_v60 = vld [vmem:[%s9939_s2 + $0x5b8] sm:$0xf0]  ;;  %v6188_v6 = vor.u32 %v6683_v5, %v6185_v8  ;;  %v6244_v44 = vor.u32 %v6697_v32, %v6241_v41  ;;  %v2809_v51 = vpop.f32.mrf.mxu2 }
 0x1d0   :  { %3809 = vmatpush.bf16.msrb.mxu1 %v6076_v14  ;;  %v6249_v14 = vld [vmem:[%s9939_s2 + $0x748] sm:$0xf0]  ;;  %v2810_v1 = vadd.f32 %v2809_v51, %v9576_v39 }
 0x1d1   :  { %3823 = vmatpush.bf16.msrb.mxu2 %v6140_v26  ;;  %v6252_v26 = vor.u32 %v6699_v12, %v6249_v14  ;;  %v510_v29 = vadd.f32 %v8160_v18, %v496_v10  ;;  %v6041_v18 = vld [vmem:[%s9939_s2 + $0x5a8] sm:$0xf0]  ;;  %v2851_v12 = vpop.f32.mrf.mxu1 }
 0x1d2   :  { %3837 = vmatpush.bf16.msrb.mxu3 %v6204_v30  ;;  %v6052_v30 = vor.u32 %v6649_v21, %v6049_v60  ;;  %v6044_v52 = vor.u32 %v6647_v58, %v6041_v18 }
 0x1d3   :  { %3851 = vmatpush.bf16.msrb.mxu0 %v6268_v38  ;;  %v6116_v38 = vor.u32 %v6665_v22, %v6113_v24  ;;  %v2837_v14 = vpop.f32.mrf.mxu0 }
 0x1d4   :  { %3810 = vmatpush.bf16.msrb.mxu1 %v6068_v43  ;;  %v6105_v43 = vld [vmem:[%s9939_s2 + $0x628] sm:$0xf0] }
 0x1d5   :  { %3824 = vmatpush.bf16.msrb.mxu2 %v6132_v45  ;;  %v524_v45 = vadd.f32 %v8123_v62, %v510_v29  ;;  %v6108_v5 = vor.u32 %v6663_v40, %v6105_v43  ;;  %v6172_v62 = vor.u32 %v6679_v36, %v6169_v16 }
 0x1d6   :  { %3838 = vmatpush.bf16.msrb.mxu3 %v6196_v17  ;;  %v6695_v17 = vld [vmem:[%s9939_s2 + $0x724] sm:$0xf] }
 0x1d7   :  { %3852 = vmatpush.bf16.msrb.mxu0 %v6260_v3  ;;  %v2823_v3 = vpop.f32.mrf.mxu3  ;;  %v916_v8 = vadd.f32 %v8505_v61, %v524_v45  ;;  %v2811_v61 = vpop.f32.mrf.mxu2 }
 0x1d8   :  { %3811 = vmatpush.bf16.msrb.mxu1 %v6060_v11  ;;  %v2824_v10 = vadd.f32 %v2823_v3, %v2810_v1  ;;  %v6236_v11 = vor.u32 %v6695_v17, %v6233_v63  ;;  %v2812_v60 = vadd.f32 %v2811_v61, %v9628_v50 }
 0x1d9   :  { %3825 = vmatpush.bf16.msrb.mxu2 %v6124_v19  ;;  %v930_v19 = vadd.f32 %v8516_v7, %v916_v8 }
 0x1da   :  { %3839 = vmatpush.bf16.msrb.mxu3 %v6188_v6  ;;  %v2838_v21 = vadd.f32 %v2837_v14, %v2824_v10 }
 0x1db   :  { %3853 = vmatpush.bf16.msrb.mxu0 %v6252_v26  ;;  %v944_v22 = vadd.f32 %v8527_v13, %v930_v19  ;;  %v2839_v24 = vpop.f32.mrf.mxu0  ;;  %v2853_v26 = vpop.f32.mrf.mxu1  ;;  %v552_v13 = vadd.f32 %v8320_v56, %v8279_v34 }
 0x1dc   :  { %3812 = vmatpush.bf16.msrb.mxu1 %v6052_v30  ;;  %v2852_v39 = vadd.f32 %v2851_v12, %v2838_v21 }
 0x1dd   :  { %3826 = vmatpush.bf16.msrb.mxu2 %v6116_v38  ;;  %v566_v9 = vadd.f32 %v8322_v57, %v552_v13 }
 0x1de   :  { %3840 = vmatpush.bf16.msrb.mxu3 %v6180_v2  ;;  %v9900_v7 = vmax.f32 %v1962_v47, %v2852_v39 }
 0x1df   :  { %3854 = vmatpush.bf16.msrb.mxu0 %v6244_v44  ;;  %v2825_v6 = vpop.f32.mrf.mxu3  ;;  %v580_v47 = vadd.f32 %v8277_v33, %v566_v9 }
 0x1e0   :  { %3813 = vmatpush.bf16.msrb.mxu1 %v6044_v52 }
 0x1e1   :  { %3827 = vmatpush.bf16.msrb.mxu2 %v6108_v5 }
 0x1e2   :  { %3841 = vmatpush.bf16.msrb.mxu3 %v6172_v62 }
 0x1e3   :  { %3855 = vmatpush.bf16.msrb.mxu0 %v6236_v11  ;;  %3814 = vmatmul.bf16.vlgmr.msrb.gmra.mxu1 %v7413_v48  ;;  %v2826_v48 = vadd.f32 %v2825_v6, %v2812_v60 }
 0x1e4   :  { %3828 = vmatmul.bf16.vlgmr.msrb.gmra.mxu2 %v7415_v49  ;;  %v958_v49 = vadd.f32 %v8449_v25, %v944_v22  ;;  %v972_v25 = vadd.f32 %v8681_v4, %v580_v47 }
 0x1e5   :  { %3842 = vmatmul.bf16.vlgmr.msrb.gmra.mxu3 %v7492_v23  ;;  %v2840_v0 = vadd.f32 %v2839_v24, %v2826_v48 }
 0x1e6   :  { %6278 = vmatmul.msk.bf16.vlgmr.msrb.gmra.mxu0 %vm466_vm0, %v7426_v53  ;;  %v1964_v23 = vmax.f32 %v958_v49, %v9240_v31  ;;  %v986_v31 = vadd.f32 %v8723_v35, %v972_v25 }
 0x1e7   :  { %v2854_v50 = vadd.f32 %v2853_v26, %v2840_v0 }
 0x1e8   :  { %v2865_v59 = vpop.f32.mrf.mxu1  ;;  %v1000_v34 = vadd.f32 %v8706_v27, %v986_v31 }
 0x1e9   :  { %v9906_v28 = vmax.f32 %v1964_v23, %v2854_v50  ;;  %v2866_v53 = vadd.f32 %v2865_v59, %v9766_v46 }
 0x1ea   :  { %v1014_v40 = vadd.f32 %v8695_v20, %v1000_v34 }
 0x1eb   :  { %v2907_v30 = vpop.f32.mrf.mxu0 }
 0x1ec   :  { %v1965_v35 = vmax.f32 %v1014_v40, %v9427_v37 }
 0x1ef   :  { %v2879_v29 = vpop.f32.mrf.mxu2 }
 0x1f0   :  { %v2880_v32 = vadd.f32 %v2879_v29, %v2866_v53  ;;  %v2893_v41 = vpop.f32.mrf.mxu3  ;;  %v2867_v58 = vpop.f32.mrf.mxu1 }
 0x1f1   :  { %v2868_v56 = vadd.f32 %v2867_v58, %v9817_v54 }
 0x1f2   :  { %v2894_v38 = vadd.f32 %v2893_v41, %v2880_v32 }
 0x1f3   :  { %v2909_v4 = vpop.f32.mrf.mxu0 }
 0x1f4   :  { %v2908_v18 = vadd.f32 %v2907_v30, %v2894_v38  ;;  %v3866_v30 = vld [vmem:[%s9942_s3] sm:$0x3] }
 0x1f6   :  { %v9920_v33 = vmax.f32 %v1963_v55, %v2908_v18  ;;  %v3868_v18 = vperm.slane %v3866_v30, 0 }
 0x1f7   :  { %v2881_v57 = vpop.f32.mrf.mxu2 }
 0x1f8   :  { %v2882_v46 = vadd.f32 %v2881_v57, %v2868_v56  ;;  %v2895_v2 = vpop.f32.mrf.mxu3 }
 0x1fa   :  { %v2896_v43 = vadd.f32 %v2895_v2, %v2882_v46  ;;  %v3869_v2 = vperm.slane %v3866_v30, 1 }
 0x1fc   :  { %v2910_v44 = vadd.f32 %v2909_v4, %v2896_v43 }
 0x1fe   :  { %v9924_v36 = vmax.f32 %v1965_v35, %v2910_v44 }
 0x208   :  { %v3361_v27 = vpop.f32.mrf.mxu1  ;;  %v3389_v54 = vpop.f32.mrf.mxu3 }
 0x20b   :  { %v3347_v45 = vpop.f32.mrf.mxu0 }
 0x20c   :  { %v3362_v62 = vadd.f32 %v3361_v27, %v3347_v45 }
 0x20f   :  { %v3375_v16 = vpop.f32.mrf.mxu2 }
 0x210   :  { %v3363_v51 = vpop.f32.mrf.mxu1  ;;  %v3391_v42 = vpop.f32.mrf.mxu3  ;;  %v3376_v10 = vadd.f32 %v3375_v16, %v3362_v62 }
 0x212   :  { %v3390_v19 = vadd.f32 %v3389_v54, %v3376_v10 }
 0x213   :  { %v3349_v52 = vpop.f32.mrf.mxu0 }
 0x214   :  { %v3364_v21 = vadd.f32 %v3363_v51, %v3349_v52 }
 0x217   :  { %v3377_v15 = vpop.f32.mrf.mxu2 }
 0x218   :  { %v3378_v60 = vadd.f32 %v3377_v15, %v3364_v21 }
 0x21a   :  { %v3392_v24 = vadd.f32 %v3391_v42, %v3378_v60 }
 0x227   :  { %v3445_v17 = vpop.f32.mrf.mxu2 }
 0x228   :  { %v3431_v55 = vpop.f32.mrf.mxu1  ;;  %v3403_v63 = vpop.f32.mrf.mxu3 }
 0x22b   :  { %v3417_v1 = vpop.f32.mrf.mxu0 }
 0x22c   :  { %v3418_v6 = vadd.f32 %v3417_v1, %v3403_v63 }
 0x22e   :  { %v3432_v26 = vadd.f32 %v3431_v55, %v3418_v6 }
 0x22f   :  { %v3447_v20 = vpop.f32.mrf.mxu2 }
 0x230   :  { %v3433_v3 = vpop.f32.mrf.mxu1  ;;  %v3405_v5 = vpop.f32.mrf.mxu3  ;;  %v3446_v9 = vadd.f32 %v3445_v17, %v3432_v26 }
 0x233   :  { %v3419_v8 = vpop.f32.mrf.mxu0 }
 0x234   :  { %v3420_v59 = vadd.f32 %v3419_v8, %v3405_v5 }
 0x236   :  { %v3434_v32 = vadd.f32 %v3433_v3, %v3420_v59 }
 0x238   :  { %v3448_v4 = vadd.f32 %v3447_v20, %v3434_v32 }
 0x240   :  { %v3801_v37 = vpop.f32.mrf.mxu1 }
 0x247   :  { %v3759_v11 = vpop.f32.mrf.mxu2 }
 0x248   :  { %v3773_v12 = vpop.f32.mrf.mxu3  ;;  %v3803_v39 = vpop.f32.mrf.mxu1  ;;  %v3760_v61 = vadd.f32 %v3759_v11, %v3390_v19 }
 0x24a   :  { %v3774_v22 = vadd.f32 %v3773_v12, %v3760_v61 }
 0x24b   :  { %v3787_v14 = vpop.f32.mrf.mxu0 }
 0x24c   :  { %v3788_v50 = vadd.f32 %v3787_v14, %v3774_v22 }
 0x24e   :  { %v3802_v47 = vadd.f32 %v3801_v37, %v3788_v50 }
 0x24f   :  { %v3761_v48 = vpop.f32.mrf.mxu2 }
 0x250   :  { %v3775_v49 = vpop.f32.mrf.mxu3  ;;  %v3762_v13 = vadd.f32 %v3761_v48, %v3392_v24  ;;  %v3862_v58 = vmax.f32 %v9900_v7, %v3802_v47 }
 0x252   :  { %v3776_v53 = vadd.f32 %v3775_v49, %v3762_v13  ;;  %v3872_v40 = vadd.f32 %v3868_v18, %v3862_v58 }
 0x253   :  { %v3789_v0 = vpop.f32.mrf.mxu0 }
 0x254   :  { %v3790_v34 = vadd.f32 %v3789_v0, %v3776_v53  ;;  %v3876_v51 = vmax.f32 %v3872_v40, 0.0 }
 0x256   :  { %v3804_v43 = vadd.f32 %v3803_v39, %v3790_v34 }
 0x258   :  { %v3864_v7 = vmax.f32 %v9906_v28, %v3804_v43 }
 0x25a   :  { %v3874_v63 = vadd.f32 %v3868_v18, %v3864_v7 }
 0x25c   :  { %v3878_v3 = vmax.f32 %v3874_v63, 0.0 }
 0x260   :  { %v3815_v23 = vpop.f32.mrf.mxu1 }
 0x261   :  { %v3816_v29 = vadd.f32 %v3815_v23, %v3446_v9 }
 0x263   :  { %v3857_v38 = vpop.f32.mrf.mxu0 }
 0x267   :  { %v3829_v25 = vpop.f32.mrf.mxu2 }
 0x268   :  { %v3830_v41 = vadd.f32 %v3829_v25, %v3816_v29  ;;  %v3843_v31 = vpop.f32.mrf.mxu3  ;;  %v3817_v57 = vpop.f32.mrf.mxu1 }
 0x269   :  { %v3818_v44 = vadd.f32 %v3817_v57, %v3448_v4 }
 0x26a   :  { %v3844_v56 = vadd.f32 %v3843_v31, %v3830_v41 }
 0x26b   :  { %v3859_v55 = vpop.f32.mrf.mxu0 }
 0x26c   :  { %v3858_v46 = vadd.f32 %v3857_v38, %v3844_v56 }
 0x26e   :  { %v3863_v35 = vmax.f32 %v9920_v33, %v3858_v46 }
 0x26f   :  { %v3831_v27 = vpop.f32.mrf.mxu2 }
 0x270   :  { %v3873_v16 = vadd.f32 %v3869_v2, %v3863_v35  ;;  %v3832_v54 = vadd.f32 %v3831_v27, %v3818_v44  ;;  %v3845_v45 = vpop.f32.mrf.mxu3 }
 0x272   :  { %v3877_v15 = vmax.f32 %v3873_v16, 0.0  ;;  %v3846_v42 = vadd.f32 %v3845_v45, %v3832_v54 }
 0x274   :  { %v3880_v52 = vpack.c.bf16 %v3877_v15, %v3876_v51  ;;  %v3860_v17 = vadd.f32 %v3859_v55, %v3846_v42 }
 0x276   :  { %3885 = vst.msk [vmem:[%s9943_s4] sm:$0xff] %vm3884_vm3, %v3880_v52  ;;  %v3865_v33 = vmax.f32 %v9924_v36, %v3860_v17 }
 0x278   :  { %v3875_v1 = vadd.f32 %v3869_v2, %v3865_v33 }
 0x27a   :  { %v3879_v20 = vmax.f32 %v3875_v1, 0.0 }
 0x27c   :  { %v3881_v5 = vpack.c.bf16 %v3879_v20, %v3878_v3 }
 0x27e   :  { %3886 = vst.msk [vmem:[%s9943_s4 + $0x8] sm:$0xff] %vm3884_vm3, %v3881_v5 }

// kernel: simple_cnn_forward.5
= control target key start
LH: loop header
LB: loop body
LE: loop exit
PB: predicated region body
PF: predicated region fallthrough
CT: control target
= control target key end

     0   :  { %s2006_s0 = inlined_call_operand.vmem [shape: bf16[2,1536], index: 0, kind: input, shape index: {}]   ;;  %s2007_s1 = inlined_call_operand.vmem [shape: bf16[1536,128], index: 1, kind: input, shape index: {}]   ;;  %s2008_s2 = inlined_call_operand.vmem [shape: f32[1,128], index: 2, kind: input, shape index: {}]   ;;  %s2009_s3 = inlined_call_operand.vmem [shape: bf16[128,2], index: 3, kind: input, shape index: {}]   ;;  %s2010_s4 = inlined_call_operand.vmem [shape: f32[1,2], index: 4, kind: input, shape index: {}]   ;;  %s2011_s5 = inlined_call_operand.hbm [shape: f32[2,2], index: 5, kind: output, shape index: {}]  }
   0x1   :  { %v1515_v0 = vld [vmem:[%s2007_s1 + $0x38] sm:$0xff]  ;;  %v1514_v4 = vld [vmem:[%s2007_s1 + $0x30] sm:$0xff]  ;;  %v1513_v8 = vld [vmem:[%s2007_s1 + $0x28] sm:$0xff] }
   0x2   :  { %v1523_v1 = vld [vmem:[%s2007_s1 + $0x78] sm:$0xff]  ;;  %823 = vmatpush.bf16.msra.mxu0 %v1515_v0  ;;  %v1522_v5 = vld [vmem:[%s2007_s1 + $0x70] sm:$0xff]  ;;  %v1521_v9 = vld [vmem:[%s2007_s1 + $0x68] sm:$0xff] }
   0x3   :  { %v1531_v2 = vld [vmem:[%s2007_s1 + $0xb8] sm:$0xff]  ;;  %836 = vmatpush.bf16.msra.mxu1 %v1523_v1  ;;  %v1530_v6 = vld [vmem:[%s2007_s1 + $0xb0] sm:$0xff]  ;;  %v1529_v10 = vld [vmem:[%s2007_s1 + $0xa8] sm:$0xff] }
   0x4   :  { %v1539_v3 = vld [vmem:[%s2007_s1 + $0xf8] sm:$0xff]  ;;  %849 = vmatpush.bf16.msra.mxu2 %v1531_v2  ;;  %v1538_v7 = vld [vmem:[%s2007_s1 + $0xf0] sm:$0xff]  ;;  %v1537_v11 = vld [vmem:[%s2007_s1 + $0xe8] sm:$0xff] }
   0x5   :  { %862 = vmatpush.bf16.msra.mxu3 %v1539_v3  ;;  %v1512_v12 = vld [vmem:[%s2007_s1 + $0x20] sm:$0xff]  ;;  %v1511_v16 = vld [vmem:[%s2007_s1 + $0x18] sm:$0xff]  ;;  %v1510_v20 = vld [vmem:[%s2007_s1 + $0x10] sm:$0xff] }
   0x6   :  { %824 = vmatpush.bf16.msra.mxu0 %v1514_v4  ;;  %v1520_v13 = vld [vmem:[%s2007_s1 + $0x60] sm:$0xff]  ;;  %v1519_v17 = vld [vmem:[%s2007_s1 + $0x58] sm:$0xff]  ;;  %v1518_v21 = vld [vmem:[%s2007_s1 + $0x50] sm:$0xff] }
   0x7   :  { %837 = vmatpush.bf16.msra.mxu1 %v1522_v5  ;;  %v1528_v14 = vld [vmem:[%s2007_s1 + $0xa0] sm:$0xff]  ;;  %v1527_v18 = vld [vmem:[%s2007_s1 + $0x98] sm:$0xff]  ;;  %v1526_v23 = vld [vmem:[%s2007_s1 + $0x90] sm:$0xff] }
   0x8   :  { %850 = vmatpush.bf16.msra.mxu2 %v1530_v6  ;;  %v1536_v15 = vld [vmem:[%s2007_s1 + $0xe0] sm:$0xff]  ;;  %v1535_v19 = vld [vmem:[%s2007_s1 + $0xd8] sm:$0xff]  ;;  %v1534_v24 = vld [vmem:[%s2007_s1 + $0xd0] sm:$0xff] }
   0x9   :  { %863 = vmatpush.bf16.msra.mxu3 %v1538_v7  ;;  %v21_v22 = vld [vmem:[%s2006_s0] sm:$0xff] }
   0xa   :  { %825 = vmatpush.bf16.msra.mxu0 %v1513_v8  ;;  %220 = vst [vmem:[#allocation1] ss:$9 sm:$0xff] %v21_v22 }
   0xb   :  { %838 = vmatpush.bf16.msra.mxu1 %v1521_v9 }
   0xc   :  { %851 = vmatpush.bf16.msra.mxu2 %v1529_v10 }
   0xd   :  { %864 = vmatpush.bf16.msra.mxu3 %v1537_v11 }
   0xe   :  { %826 = vmatpush.bf16.msra.mxu0 %v1512_v12 }
   0xf   :  { %839 = vmatpush.bf16.msra.mxu1 %v1520_v13 }
  0x10   :  { %852 = vmatpush.bf16.msra.mxu2 %v1528_v14 }
  0x11   :  { %865 = vmatpush.bf16.msra.mxu3 %v1536_v15 }
  0x12   :  { %827 = vmatpush.bf16.msra.mxu0 %v1511_v16 }
  0x13   :  { %840 = vmatpush.bf16.msra.mxu1 %v1519_v17 }
  0x14   :  { %853 = vmatpush.bf16.msra.mxu2 %v1527_v18 }
  0x15   :  { %866 = vmatpush.bf16.msra.mxu3 %v1535_v19 }
  0x16   :  { %10 = vsyncpa [#allocation3], 0  ;;  %828 = vmatpush.bf16.msra.mxu0 %v1510_v20  ;;  %v1509_v25 = vld [vmem:[%s2007_s1 + $0x8] sm:$0xff]  ;;  %v1508_v29 = vld [vmem:[%s2007_s1] sm:$0xff]  ;;  %vm1062_vm0 = vcmask 9216   ;;  %s1645_s26 = smov [#allocation2]  }
  0x17   :  { %841 = vmatpush.bf16.msra.mxu1 %v1518_v21  ;;  %v1517_v26 = vld [vmem:[%s2007_s1 + $0x48] sm:$0xff]  ;;  %v1516_v30 = vld [vmem:[%s2007_s1 + $0x40] sm:$0xff]  ;;  %v1547_v33 = vld [vmem:[%s2007_s1 + $0x138] sm:$0xff]  ;;  %s1083_s29 = sshll.u32 %s2011_s5, 4  ;;  %s1084_s29 = int_to_ptr.hbm [resolvable:$true] %s1083_s29 }
  0x18   :  { %854 = vmatpush.bf16.msra.mxu2 %v1526_v23  ;;  %v1525_v27 = vld [vmem:[%s2007_s1 + $0x88] sm:$0xff]  ;;  %v1524_v31 = vld [vmem:[%s2007_s1 + $0x80] sm:$0xff]  ;;  %v1555_v34 = vld [vmem:[%s2007_s1 + $0x178] sm:$0xff] }
  0x19   :  { %867 = vmatpush.bf16.msra.mxu3 %v1534_v24  ;;  %v1533_v28 = vld [vmem:[%s2007_s1 + $0xc8] sm:$0xff]  ;;  %v1532_v32 = vld [vmem:[%s2007_s1 + $0xc0] sm:$0xff]  ;;  %v1563_v35 = vld [vmem:[%s2007_s1 + $0x1b8] sm:$0xff] }
  0x1a   :  { %829 = vmatpush.bf16.msra.mxu0 %v1509_v25  ;;  %v1571_v36 = vld [vmem:[%s2007_s1 + $0x1f8] sm:$0xff]  ;;  %v1546_v37 = vld [vmem:[%s2007_s1 + $0x130] sm:$0xff]  ;;  %v221_v39 = vld [vmem:[#allocation1] sm:$0xff] }
  0x1b   :  { %842 = vmatpush.bf16.msra.mxu1 %v1517_v26  ;;  %v223_v38 = vld [vmem:[#allocation1 + $0x12] sm:$0xff]  ;;  %v224_v41 = vld [vmem:[#allocation1 + $0x1b] sm:$0xff]  ;;  %v222_v42 = vld [vmem:[#allocation1 + $0x9] sm:$0xff] }
  0x1c   :  { %855 = vmatpush.bf16.msra.mxu2 %v1525_v27  ;;  %v1554_v40 = vld [vmem:[%s2007_s1 + $0x170] sm:$0xff]  ;;  %v1545_v45 = vld [vmem:[%s2007_s1 + $0x128] sm:$0xff]  ;;  %v1544_v49 = vld [vmem:[%s2007_s1 + $0x120] sm:$0xff] }
  0x1d   :  { %868 = vmatpush.bf16.msra.mxu3 %v1533_v28  ;;  %v1562_v43 = vld [vmem:[%s2007_s1 + $0x1b0] sm:$0xff]  ;;  %v1553_v46 = vld [vmem:[%s2007_s1 + $0x168] sm:$0xff]  ;;  %v1552_v50 = vld [vmem:[%s2007_s1 + $0x160] sm:$0xff] }
  0x1e   :  { %830 = vmatpush.bf16.msra.mxu0 %v1508_v29  ;;  %v1570_v44 = vld [vmem:[%s2007_s1 + $0x1f0] sm:$0xff]  ;;  %v1561_v47 = vld [vmem:[%s2007_s1 + $0x1a8] sm:$0xff]  ;;  %v228_v54 = vld [vmem:[#allocation1 + $0x3f] sm:$0xff] }
  0x1f   :  { %843 = vmatpush.bf16.msra.mxu1 %v1516_v30  ;;  %v1569_v48 = vld [vmem:[%s2007_s1 + $0x1e8] sm:$0xff]  ;;  %v227_v51 = vld [vmem:[#allocation1 + $0x36] sm:$0xff]  ;;  %v1560_v56 = vld [vmem:[%s2007_s1 + $0x1a0] sm:$0xff] }
  0x20   :  { %856 = vmatpush.bf16.msra.mxu2 %v1524_v31  ;;  %v22_v52 = vld [vmem:[%s2006_s0 + $0x8] sm:$0xf]  ;;  %v226_v55 = vld [vmem:[#allocation1 + $0x2d] sm:$0xff]  ;;  %v1568_v57 = vld [vmem:[%s2007_s1 + $0x1e0] sm:$0xff] }
  0x21   :  { %869 = vmatpush.bf16.msra.mxu3 %v1532_v32  ;;  %831 = vmatmul.bf16.vlgmr.msra.gmra.mxu0 %v221_v39  ;;  %v225_v53 = vld [vmem:[#allocation1 + $0x24] sm:$0xff]  ;;  %v1543_v58 = vld [vmem:[%s2007_s1 + $0x118] sm:$0xff]  ;;  %v1542_v62 = vld [vmem:[%s2007_s1 + $0x110] sm:$0xff] }
  0x22   :  { %875 = vmatpush.bf16.msrb.mxu0 %v1547_v33  ;;  %844 = vmatmul.bf16.vlgmr.msra.gmra.mxu1 %v222_v42  ;;  %230 = vst [vmem:[#allocation1] ss:$9 sm:$0xff] %v22_v52  ;;  %v1551_v59 = vld [vmem:[%s2007_s1 + $0x158] sm:$0xff]  ;;  %v1550_v63 = vld [vmem:[%s2007_s1 + $0x150] sm:$0xff]  ;;  %v1541_v2 = vld [vmem:[%s2007_s1 + $0x108] sm:$0xff] }
  0x23   :  { %888 = vmatpush.bf16.msrb.mxu1 %v1555_v34  ;;  %857 = vmatmul.bf16.vlgmr.msra.gmra.mxu2 %v223_v38  ;;  %v1559_v60 = vld [vmem:[%s2007_s1 + $0x198] sm:$0xff]  ;;  %v1558_v0 = vld [vmem:[%s2007_s1 + $0x190] sm:$0xff]  ;;  %v1549_v3 = vld [vmem:[%s2007_s1 + $0x148] sm:$0xff] }
  0x24   :  { %901 = vmatpush.bf16.msrb.mxu2 %v1563_v35  ;;  %870 = vmatmul.bf16.vlgmr.msra.gmra.mxu3 %v224_v41  ;;  %v1567_v61 = vld [vmem:[%s2007_s1 + $0x1d8] sm:$0xff]  ;;  %v1566_v1 = vld [vmem:[%s2007_s1 + $0x1d0] sm:$0xff]  ;;  %v1557_v4 = vld [vmem:[%s2007_s1 + $0x188] sm:$0xff] }
  0x25   :  { %914 = vmatpush.bf16.msrb.mxu3 %v1571_v36  ;;  %v1565_v5 = vld [vmem:[%s2007_s1 + $0x1c8] sm:$0xff]  ;;  %v1540_v6 = vld [vmem:[%s2007_s1 + $0x100] sm:$0xff]  ;;  %v1579_v10 = vld [vmem:[%s2007_s1 + $0x238] sm:$0xff] }
  0x26   :  { %876 = vmatpush.bf16.msrb.mxu0 %v1546_v37  ;;  %v1548_v7 = vld [vmem:[%s2007_s1 + $0x140] sm:$0xff]  ;;  %v1587_v11 = vld [vmem:[%s2007_s1 + $0x278] sm:$0xff]  ;;  %v1578_v14 = vld [vmem:[%s2007_s1 + $0x230] sm:$0xff] }
  0x27   :  { %889 = vmatpush.bf16.msrb.mxu1 %v1554_v40  ;;  %v1556_v8 = vld [vmem:[%s2007_s1 + $0x180] sm:$0xff]  ;;  %v1595_v12 = vld [vmem:[%s2007_s1 + $0x2b8] sm:$0xff]  ;;  %v1586_v15 = vld [vmem:[%s2007_s1 + $0x270] sm:$0xff] }
  0x28   :  { %902 = vmatpush.bf16.msrb.mxu2 %v1562_v43  ;;  %v1564_v9 = vld [vmem:[%s2007_s1 + $0x1c0] sm:$0xff]  ;;  %v1603_v13 = vld [vmem:[%s2007_s1 + $0x2f8] sm:$0xff]  ;;  %v1594_v16 = vld [vmem:[%s2007_s1 + $0x2b0] sm:$0xff] }
  0x29   :  { %915 = vmatpush.bf16.msrb.mxu3 %v1570_v44  ;;  %v1602_v17 = vld [vmem:[%s2007_s1 + $0x2f0] sm:$0xff]  ;;  %v1577_v18 = vld [vmem:[%s2007_s1 + $0x228] sm:$0xff]  ;;  %v1576_v22 = vld [vmem:[%s2007_s1 + $0x220] sm:$0xff] }
  0x2a   :  { %877 = vmatpush.bf16.msrb.mxu0 %v1545_v45  ;;  %v1585_v19 = vld [vmem:[%s2007_s1 + $0x268] sm:$0xff]  ;;  %v1584_v23 = vld [vmem:[%s2007_s1 + $0x260] sm:$0xff]  ;;  %v1575_v26 = vld [vmem:[%s2007_s1 + $0x218] sm:$0xff] }
  0x2b   :  { %890 = vmatpush.bf16.msrb.mxu1 %v1553_v46  ;;  %v1593_v20 = vld [vmem:[%s2007_s1 + $0x2a8] sm:$0xff]  ;;  %v1592_v24 = vld [vmem:[%s2007_s1 + $0x2a0] sm:$0xff]  ;;  %v1583_v27 = vld [vmem:[%s2007_s1 + $0x258] sm:$0xff] }
  0x2c   :  { %903 = vmatpush.bf16.msrb.mxu2 %v1561_v47  ;;  %v1601_v21 = vld [vmem:[%s2007_s1 + $0x2e8] sm:$0xff]  ;;  %v1600_v25 = vld [vmem:[%s2007_s1 + $0x2e0] sm:$0xff]  ;;  %v1591_v28 = vld [vmem:[%s2007_s1 + $0x298] sm:$0xff] }
  0x2d   :  { %916 = vmatpush.bf16.msrb.mxu3 %v1569_v48  ;;  %v1599_v29 = vld [vmem:[%s2007_s1 + $0x2d8] sm:$0xff]  ;;  %v1574_v30 = vld [vmem:[%s2007_s1 + $0x210] sm:$0xff]  ;;  %v1573_v34 = vld [vmem:[%s2007_s1 + $0x208] sm:$0xff] }
  0x2e   :  { %878 = vmatpush.bf16.msrb.mxu0 %v1544_v49  ;;  %v1582_v31 = vld [vmem:[%s2007_s1 + $0x250] sm:$0xff]  ;;  %v1581_v35 = vld [vmem:[%s2007_s1 + $0x248] sm:$0xff]  ;;  %v1572_v38 = vld [vmem:[%s2007_s1 + $0x200] sm:$0xff] }
  0x2f   :  { %891 = vmatpush.bf16.msrb.mxu1 %v1552_v50  ;;  %v1590_v32 = vld [vmem:[%s2007_s1 + $0x290] sm:$0xff]  ;;  %v1589_v36 = vld [vmem:[%s2007_s1 + $0x288] sm:$0xff]  ;;  %v1580_v39 = vld [vmem:[%s2007_s1 + $0x240] sm:$0xff] }
  0x30   :  { %904 = vmatpush.bf16.msrb.mxu2 %v1560_v56  ;;  %v1598_v33 = vld [vmem:[%s2007_s1 + $0x2d0] sm:$0xff]  ;;  %v1597_v37 = vld [vmem:[%s2007_s1 + $0x2c8] sm:$0xff]  ;;  %v1588_v40 = vld [vmem:[%s2007_s1 + $0x280] sm:$0xff] }
  0x31   :  { %917 = vmatpush.bf16.msrb.mxu3 %v1568_v57  ;;  %v1596_v41 = vld [vmem:[%s2007_s1 + $0x2c0] sm:$0xff]  ;;  %v232_v43 = vld [vmem:[#allocation1 + $0x9] sm:$0xff]  ;;  %v233_v44 = vld [vmem:[#allocation1 + $0x12] sm:$0xff] }
  0x32   :  { %879 = vmatpush.bf16.msrb.mxu0 %v1543_v58  ;;  %v231_v42 = vld [vmem:[#allocation1] sm:$0xff]  ;;  %v1611_v50 = vld [vmem:[%s2009_s3 + $0x38] sm:$0xff] }
  0x33   :  { %892 = vmatpush.bf16.msrb.mxu1 %v1551_v59  ;;  %v234_v45 = vld [vmem:[#allocation1 + $0x1b] sm:$0xff] }
  0x34   :  { %905 = vmatpush.bf16.msrb.mxu2 %v1559_v60  ;;  %v1608_v57 = vld [vmem:[%s2009_s3 + $0x20] sm:$0xff]  ;;  %v1607_v58 = vld [vmem:[%s2009_s3 + $0x18] sm:$0xff] }
  0x35   :  { %918 = vmatpush.bf16.msrb.mxu3 %v1567_v61  ;;  %v1613_v59 = vld [vmem:[%s2008_s2] ss:$0 sm:$0xff]  ;;  %v1606_v61 = vld [vmem:[%s2009_s3 + $0x10] sm:$0xff] }
  0x36   :  { %880 = vmatpush.bf16.msrb.mxu0 %v1542_v62 }
  0x37   :  { %893 = vmatpush.bf16.msrb.mxu1 %v1550_v63 }
  0x38   :  { %906 = vmatpush.bf16.msrb.mxu2 %v1558_v0  ;;  %v1605_v0 = vld [vmem:[%s2009_s3 + $0x8] sm:$0xff] }
  0x39   :  { %919 = vmatpush.bf16.msrb.mxu3 %v1566_v1 }
  0x3a   :  { %881 = vmatpush.bf16.msrb.mxu0 %v1541_v2 }
  0x3b   :  { %894 = vmatpush.bf16.msrb.mxu1 %v1549_v3 }
  0x3c   :  { %907 = vmatpush.bf16.msrb.mxu2 %v1557_v4 }
  0x3d   :  { %920 = vmatpush.bf16.msrb.mxu3 %v1565_v5  ;;  %v1604_v5 = vld [vmem:[%s2009_s3] sm:$0xff] }
  0x3e   :  { %882 = vmatpush.bf16.msrb.mxu0 %v1540_v6 }
  0x3f   :  { %895 = vmatpush.bf16.msrb.mxu1 %v1548_v7 }
  0x40   :  { %908 = vmatpush.bf16.msrb.mxu2 %v1556_v8 }
  0x41   :  { %921 = vmatpush.bf16.msrb.mxu3 %v1564_v9  ;;  %883 = vmatmul.bf16.vlgmr.msrb.gmra.mxu0 %v225_v53  ;;  %v1610_v53 = vld [vmem:[%s2009_s3 + $0x30] sm:$0xff] }
  0x42   :  { %927 = vmatpush.bf16.msra.mxu0 %v1579_v10  ;;  %896 = vmatmul.bf16.vlgmr.msrb.gmra.mxu1 %v226_v55 }
  0x43   :  { %940 = vmatpush.bf16.msra.mxu1 %v1587_v11  ;;  %909 = vmatmul.bf16.vlgmr.msrb.gmra.mxu2 %v227_v51 }
  0x44   :  { %953 = vmatpush.bf16.msra.mxu2 %v1595_v12  ;;  %922 = vmatmul.bf16.vlgmr.msrb.gmra.mxu3 %v228_v54  ;;  %v1609_v54 = vld [vmem:[%s2009_s3 + $0x28] sm:$0xff] }
  0x45   :  { %966 = vmatpush.bf16.msra.mxu3 %v1603_v13 }
  0x46   :  { %928 = vmatpush.bf16.msra.mxu0 %v1578_v14 }
  0x47   :  { %941 = vmatpush.bf16.msra.mxu1 %v1586_v15 }
  0x48   :  { %954 = vmatpush.bf16.msra.mxu2 %v1594_v16 }
  0x49   :  { %967 = vmatpush.bf16.msra.mxu3 %v1602_v17 }
  0x4a   :  { %929 = vmatpush.bf16.msra.mxu0 %v1577_v18 }
  0x4b   :  { %942 = vmatpush.bf16.msra.mxu1 %v1585_v19 }
  0x4c   :  { %955 = vmatpush.bf16.msra.mxu2 %v1593_v20 }
  0x4d   :  { %968 = vmatpush.bf16.msra.mxu3 %v1601_v21 }
  0x4e   :  { %930 = vmatpush.bf16.msra.mxu0 %v1576_v22 }
  0x4f   :  { %943 = vmatpush.bf16.msra.mxu1 %v1584_v23 }
  0x50   :  { %956 = vmatpush.bf16.msra.mxu2 %v1592_v24 }
  0x51   :  { %969 = vmatpush.bf16.msra.mxu3 %v1600_v25 }
  0x52   :  { %931 = vmatpush.bf16.msra.mxu0 %v1575_v26 }
  0x53   :  { %944 = vmatpush.bf16.msra.mxu1 %v1583_v27 }
  0x54   :  { %957 = vmatpush.bf16.msra.mxu2 %v1591_v28 }
  0x55   :  { %970 = vmatpush.bf16.msra.mxu3 %v1599_v29  ;;  %v1614_v29 = vld [vmem:[%s2010_s4] ss:$0 sm:$0xff]  ;;  %s1081_s4 = sshll.u32 %s1645_s26, 4  ;;  %s1082_s4 = int_to_ptr.vmem [resolvable:$true] %s1081_s4 }
  0x56   :  { %932 = vmatpush.bf16.msra.mxu0 %v1574_v30 }
  0x57   :  { %945 = vmatpush.bf16.msra.mxu1 %v1582_v31 }
  0x58   :  { %958 = vmatpush.bf16.msra.mxu2 %v1590_v32 }
  0x59   :  { %971 = vmatpush.bf16.msra.mxu3 %v1598_v33 }
  0x5a   :  { %933 = vmatpush.bf16.msra.mxu0 %v1573_v34 }
  0x5b   :  { %946 = vmatpush.bf16.msra.mxu1 %v1581_v35 }
  0x5c   :  { %959 = vmatpush.bf16.msra.mxu2 %v1589_v36 }
  0x5d   :  { %972 = vmatpush.bf16.msra.mxu3 %v1597_v37 }
  0x5e   :  { %934 = vmatpush.bf16.msra.mxu0 %v1572_v38 }
  0x5f   :  { %947 = vmatpush.bf16.msra.mxu1 %v1580_v39 }
  0x60   :  { %960 = vmatpush.bf16.msra.mxu2 %v1588_v40 }
  0x61   :  { %973 = vmatpush.bf16.msra.mxu3 %v1596_v41  ;;  %935 = vmatmul.bf16.vlgmr.msra.gmra.mxu0 %v231_v42 }
  0x62   :  { %948 = vmatmul.bf16.vlgmr.msra.gmra.mxu1 %v232_v43  ;;  %1049 = vmatpush.bf16.msrb.mxu0 %v1611_v50 }
  0x63   :  { %961 = vmatmul.bf16.vlgmr.msra.gmra.mxu2 %v233_v44 }
  0x64   :  { %974 = vmatmul.bf16.vlgmr.msra.gmra.mxu3 %v234_v45 }
  0x66   :  { %1050 = vmatpush.bf16.msrb.mxu0 %v1610_v53 }
  0x6a   :  { %1051 = vmatpush.bf16.msrb.mxu0 %v1609_v54 }
  0x6e   :  { %1052 = vmatpush.bf16.msrb.mxu0 %v1608_v57 }
  0x72   :  { %1053 = vmatpush.bf16.msrb.mxu0 %v1607_v58 }
  0x76   :  { %1054 = vmatpush.bf16.msrb.mxu0 %v1606_v61 }
  0x7a   :  { %1055 = vmatpush.bf16.msrb.mxu0 %v1605_v0 }
  0x7e   :  { %1056 = vmatpush.bf16.msrb.mxu0 %v1604_v5 }
  0x9e   :  { %v832_v46 = vpop.f32.mrf.mxu0 }
  0x9f   :  { %v845_v47 = vpop.f32.mrf.mxu1  ;;  %v833_v62 = vadd.f32 %v1613_v59, %v832_v46 }
  0xa1   :  { %v846_v1 = vadd.f32 %v845_v47, %v833_v62 }
  0xa6   :  { %v858_v48 = vpop.f32.mrf.mxu2  ;;  %v834_v51 = vpop.f32.mrf.mxu0 }
  0xa7   :  { %v871_v49 = vpop.f32.mrf.mxu3  ;;  %v847_v52 = vpop.f32.mrf.mxu1  ;;  %v859_v6 = vadd.f32 %v858_v48, %v846_v1 }
  0xa9   :  { %v872_v8 = vadd.f32 %v871_v49, %v859_v6 }
  0xae   :  { %v860_v55 = vpop.f32.mrf.mxu2 }
  0xaf   :  { %v873_v56 = vpop.f32.mrf.mxu3 }
  0xbe   :  { %v884_v60 = vpop.f32.mrf.mxu0 }
  0xbf   :  { %v897_v63 = vpop.f32.mrf.mxu1  ;;  %v885_v11 = vadd.f32 %v884_v60, %v872_v8 }
  0xc1   :  { %v898_v12 = vadd.f32 %v897_v63, %v885_v11 }
  0xc6   :  { %v910_v2 = vpop.f32.mrf.mxu2  ;;  %v886_v4 = vpop.f32.mrf.mxu0 }
  0xc7   :  { %v923_v3 = vpop.f32.mrf.mxu3  ;;  %v899_v7 = vpop.f32.mrf.mxu1  ;;  %v911_v13 = vadd.f32 %v910_v2, %v898_v12 }
  0xc9   :  { %v924_v14 = vadd.f32 %v923_v3, %v911_v13 }
  0xce   :  { %v912_v9 = vpop.f32.mrf.mxu2 }
  0xcf   :  { %v925_v10 = vpop.f32.mrf.mxu3 }
  0xde   :  { %v936_v15 = vpop.f32.mrf.mxu0 }
  0xdf   :  { %v949_v16 = vpop.f32.mrf.mxu1  ;;  %v937_v17 = vadd.f32 %v936_v15, %v924_v14 }
  0xe1   :  { %v950_v18 = vadd.f32 %v949_v16, %v937_v17 }
  0xe6   :  { %v962_v19 = vpop.f32.mrf.mxu2  ;;  %v938_v22 = vpop.f32.mrf.mxu0 }
  0xe7   :  { %v975_v20 = vpop.f32.mrf.mxu3  ;;  %v963_v21 = vadd.f32 %v962_v19, %v950_v18  ;;  %v951_v23 = vpop.f32.mrf.mxu1 }
  0xe9   :  { %v976_v24 = vadd.f32 %v975_v20, %v963_v21 }
  0xeb   :  { %v979_v25 = vmax.f32 %v976_v24, 0.0 }
  0xed   :  { %v980_v26 = vpack.c.bf16 %v979_v25, %v979_v25 }
  0xee   :  { %v964_v27 = vpop.f32.mrf.mxu2 }
  0xef   :  { %v977_v28 = vpop.f32.mrf.mxu3  ;;  %1057 = vmatmul.bf16.vlgmr.msrb.gmra.mxu0 %v980_v26 }
 0x16c   :  { %v1058_v30 = vpop.f32.mrf.mxu0 }
 0x16d   :  { %v1059_v31 = vadd.f32 %v1614_v29, %v1058_v30 }
 0x16f   :  { %v1063_v32 = vsel %vm1062_vm0, %v1059_v31, -inf }
 0x170   :  { %1064 = vmax.xlane.f32.xlu0 %v1063_v32 }
 0x174   :  { %v1060_v33 = vpop.f32.mrf.mxu0 }
 0x1e3   :  { %v1065_v34 = vpop.xlane.xlu0 %1064 }
 0x1e4   :  { %v1066_v35 = vsub.f32 %v1059_v31, %v1065_v34 }
 0x1e6   :  { %v1067_v36 = vmul.f32 1.442695, %v1066_v35 }
 0x1e8   :  { %1615 = vpow2.f32 %v1067_v36 }
 0x1ee   :  { %v1616_v37 = vpop.eup %1615 }
 0x1ef   :  { %v1069_v38 = vsel %vm1062_vm0, %v1616_v37, 0.0 }
 0x1f0   :  { %1070 = vadd.xlane.f32.xlu0 %v1069_v38 }
 0x263   :  { %v1071_v39 = vpop.xlane.xlu0 %1070 }
 0x264   :  { %1617 = vlog2.f32 %v1071_v39 }
 0x26a   :  { %v1618_v40 = vpop.eup %1617 }
 0x26b   :  { %v1073_v41 = vmul.f32 0.6931472, %v1618_v40 }
 0x26d   :  { %v1074_v42 = vsub.f32 %v1066_v35, %v1073_v41 }
 0x26f   :  { %1075 = vst.msk [vmem:[#allocation2] sm:$0x3] %vm1062_vm0, %v1074_v42 }
 0x270   :  { %1086 = dma.vmem_to_hbm [thread:$0]  %s1082_s4, 32, %s1084_s29, [#allocation3]  }
 0x271   :  { %1643 = dma.done.wait [#allocation3], 32  }
 0x272   :  { %1644 = vsyncadd [#allocation3], 4294967264 }
 0x273   :  { %1091 = vsyncpa [#allocation3], 1 }

</bundles_post_ra>
